<compile_context>
chip_gen: v7x
topology: tpu7x:2x2x1
jax: 0.10.0
libtpu: 0.0.40
codegen_flags: <defaults>
</compile_context>

<pallas_src>
import jax
import jax.numpy as jnp
import numpy as np
from jax import lax, random
from jax.experimental import pallas as pl
from jax.experimental.pallas import tpu as pltpu

EPS = 1e-5
_BF16 = jnp.bfloat16


# ---------------------------------------------------------------------------
# Kernel 1: fused 1x1 stem  (relu(x @ W + b)), tiled over (M, Cout)
# ---------------------------------------------------------------------------
def _gemm_bias_relu_kernel(x_ref, w_ref, b_ref, o_ref):
    acc = jnp.dot(x_ref[...], w_ref[...], preferred_element_type=jnp.float32)
    o_ref[...] = jnp.maximum(acc + b_ref[...], 0.0).astype(o_ref.dtype)


def conv1x1_fused(x_nhwc, w_folded, bias, *, tm=128, tn=256):
    """1x1 conv with BN scale pre-folded into w, + bias + ReLU, as tiled GEMM."""
    N, H, W, Cin = x_nhwc.shape
    Cout = w_folded.shape[1]
    assert Cout % tn == 0
    M = N * H * W
    Mp = pl.cdiv(M, tm) * tm
    x2d = x_nhwc.reshape(M, Cin)
    if Mp != M:
        x2d = jnp.pad(x2d, ((0, Mp - M), (0, 0)))
    w2 = w_folded.astype(_BF16)
    b2 = bias.reshape(1, Cout).astype(jnp.float32)

    out = pl.pallas_call(
        _gemm_bias_relu_kernel,
        out_shape=jax.ShapeDtypeStruct((Mp, Cout), x_nhwc.dtype),
        grid=(Mp // tm, Cout // tn),
        in_specs=[
            pl.BlockSpec((tm, Cin), lambda i, j: (i, 0)),
            pl.BlockSpec((Cin, tn), lambda i, j: (0, j)),
            pl.BlockSpec((1, tn), lambda i, j: (0, j)),
        ],
        out_specs=pl.BlockSpec((tm, tn), lambda i, j: (i, j)),
        compiler_params=pltpu.CompilerParams(
            dimension_semantics=("parallel", "parallel")),
    )(x2d, w2, b2)
    return out[:M].reshape(N, H, W, Cout)


# ---------------------------------------------------------------------------
# Kernel 2: 3x3 conv, stride 1, padding 1 (in-kernel 9-tap accumulation)
# ---------------------------------------------------------------------------
def conv3x3_s1p1(x_nhwc, w_hwio, scale, bias, *, ct=128):
    N, H, W, Cin = x_nhwc.shape
    KH, KW, _, Cout = w_hwio.shape
    Ho, Wo = H, W                                # stride 1, pad 1
    th = 8 if Ho % 8 == 0 else Ho                # output row-slab (8-aligned)
    n_rb = Ho // th
    assert Cout % ct == 0
    xp = jnp.pad(x_nhwc, ((0, 0), (1, 1), (1, 1), (0, 0)))
    w9 = (w_hwio * scale).reshape(KH * KW, Cin, Cout).astype(_BF16)
    b2 = bias.reshape(1, Cout).astype(jnp.float32)

    def kernel(x_ref, w_ref, b_ref, o_ref):
        rb = pl.program_id(2)
        r0 = pl.multiple_of(rb * th, th)
        acc = None
        for kh in range(KH):
            for kw in range(KW):
                tap = x_ref[0, pl.ds(r0 + kh, th), pl.ds(kw, Wo), :]
                d = jnp.dot(tap.reshape(th * Wo, Cin), w_ref[kh * KW + kw],
                            preferred_element_type=jnp.float32)
                acc = d if acc is None else acc + d
        o_ref[0] = jnp.maximum(acc + b_ref[...], 0.0).astype(o_ref.dtype)

    out = pl.pallas_call(
        kernel,
        out_shape=jax.ShapeDtypeStruct((N, Ho * Wo, Cout), x_nhwc.dtype),
        grid=(N, Cout // ct, n_rb),
        in_specs=[
            pl.BlockSpec((1, H + 2, W + 2, Cin), lambda n, c, rb: (n, 0, 0, 0)),
            pl.BlockSpec((KH * KW, Cin, ct), lambda n, c, rb: (0, 0, c)),
            pl.BlockSpec((1, ct), lambda n, c, rb: (0, c)),
        ],
        out_specs=pl.BlockSpec((1, th * Wo, ct), lambda n, c, rb: (n, rb, c)),
        compiler_params=pltpu.CompilerParams(
            dimension_semantics=("parallel", "parallel", "parallel")),
    )(xp, w9, b2)
    return out.reshape(N, Ho, Wo, Cout)


# ---------------------------------------------------------------------------
# Stride-2 helpers: 2x2 space-to-depth so every 3x3/stride-2 tap is a dense
# slice.  Row index of the folded array = ((h%2)*2 + w%2)*HP2 + h//2.
# ---------------------------------------------------------------------------
def _parity_split(xp):
    N, HP, WP, C = xp.shape
    h2, w2 = HP // 2, WP // 2
    xs = xp.reshape(N, h2, 2, w2, 2, C).transpose(0, 2, 4, 1, 3, 5)
    return xs.reshape(N, 4 * h2, w2, C)


# ---------------------------------------------------------------------------
# Kernel 3: 3x3 conv, stride 2, valid padding (in-kernel 9-tap accumulation)
# ---------------------------------------------------------------------------
def conv3x3_s2(x_nhwc, w_hwio, scale, bias, *, ct=128):
    N, H, W, Cin = x_nhwc.shape
    KH, KW, _, Cout = w_hwio.shape
    assert Cout % ct == 0
    Ho = (H - KH) // 2 + 1                       # valid output (7 for H=16)
    HO8 = pl.cdiv(Ho, 8) * 8                     # 8-aligned slab, cropped later
    HP = 2 * HO8 + 2                             # even padded input extent
    HP2 = HP // 2
    xp = jnp.pad(x_nhwc, ((0, 0), (0, HP - H), (0, HP - W), (0, 0)))
    xs = _parity_split(xp)                       # (N, 4*HP2, HP2, Cin)
    w9 = (w_hwio * scale).reshape(KH * KW, Cin, Cout).astype(_BF16)
    b2 = bias.reshape(1, Cout).astype(jnp.float32)

    def kernel(x_ref, w_ref, b_ref, o_ref):
        acc = None
        for kh in range(KH):
            for kw in range(KW):
                par = (kh % 2) * 2 + (kw % 2)
                row0 = par * HP2 + kh // 2
                tap = x_ref[0, row0:row0 + HO8, kw // 2:kw // 2 + HO8, :]
                d = jnp.dot(tap.reshape(HO8 * HO8, Cin), w_ref[kh * KW + kw],
                            preferred_element_type=jnp.float32)
                acc = d if acc is None else acc + d
        o_ref[0] = jnp.maximum(acc + b_ref[...], 0.0).astype(o_ref.dtype)

    out = pl.pallas_call(
        kernel,
        out_shape=jax.ShapeDtypeStruct((N, HO8 * HO8, Cout), x_nhwc.dtype),
        grid=(N, Cout // ct),
        in_specs=[
            pl.BlockSpec((1, 4 * HP2, HP2, Cin), lambda n, c: (n, 0, 0, 0)),
            pl.BlockSpec((KH * KW, Cin, ct), lambda n, c: (0, 0, c)),
            pl.BlockSpec((1, ct), lambda n, c: (0, c)),
        ],
        out_specs=pl.BlockSpec((1, HO8 * HO8, ct), lambda n, c: (n, 0, c)),
        compiler_params=pltpu.CompilerParams(
            dimension_semantics=("parallel", "parallel")),
    )(xs, w9, b2)
    return out.reshape(N, HO8, HO8, Cout)[:, :Ho, :Ho, :]


# ---------------------------------------------------------------------------
# Kernel 4: 3x3 / stride-2 max-pool (9 taps reduced in-kernel, no tap stack)
# ---------------------------------------------------------------------------
def maxpool3x3_s2(x_nhwc):
    N, H, W, C = x_nhwc.shape
    Ho = (H - 3) // 2 + 1
    HO8 = pl.cdiv(Ho, 8) * 8
    HP = 2 * HO8 + 2
    HP2 = HP // 2
    xp = jnp.pad(x_nhwc, ((0, 0), (0, HP - H), (0, HP - W), (0, 0)),
                 constant_values=-jnp.inf)       # pad only affects cropped rows
    xs = _parity_split(xp)                       # (N, 4*HP2, HP2, C)

    def kernel(x_ref, o_ref):
        m = None
        for kh in range(3):
            for kw in range(3):
                par = (kh % 2) * 2 + (kw % 2)
                row0 = par * HP2 + kh // 2
                tap = x_ref[0, row0:row0 + HO8, kw // 2:kw // 2 + HO8, :]
                m = tap if m is None else jnp.maximum(m, tap)
        o_ref[0] = m

    out = pl.pallas_call(
        kernel,
        out_shape=jax.ShapeDtypeStruct((N, HO8, HO8, C), x_nhwc.dtype),
        grid=(N,),
        in_specs=[pl.BlockSpec((1, 4 * HP2, HP2, C), lambda n: (n, 0, 0, 0))],
        out_specs=pl.BlockSpec((1, HO8, HO8, C), lambda n: (n, 0, 0, 0)),
        compiler_params=pltpu.CompilerParams(dimension_semantics=("parallel",)),
    )(xs)
    return out[:, :Ho, :Ho, :]


# ---------------------------------------------------------------------------
# Parameter init (deterministic; Conv3x3 = Conv2d(bias=False) + BN, inference)
# ---------------------------------------------------------------------------
def init_conv_bn(key, cin, cout, k):
    k1, k2, k3, k4, k5 = random.split(key, 5)
    w = random.normal(k1, (k, k, cin, cout), jnp.float32) / np.sqrt(k * k * cin)
    gamma = 1.0 + 0.1 * random.normal(k2, (cout,), jnp.float32)
    beta = 0.1 * random.normal(k3, (cout,), jnp.float32)
    mean = 0.1 * random.normal(k4, (cout,), jnp.float32)
    var = 0.5 + random.uniform(k5, (cout,), jnp.float32)
    scale = gamma / jnp.sqrt(var + EPS)          # fold BN (inference mode)
    bias = beta - mean * scale
    return {"w": w, "scale": scale, "bias": bias}


def init_reduction_b(key, cin):
    keys = random.split(key, 7)
    return {
        "b0_0": init_conv_bn(keys[0], cin, 256, 1),
        "b0_1": init_conv_bn(keys[1], 256, 384, 3),
        "b1_0": init_conv_bn(keys[2], cin, 256, 1),
        "b1_1": init_conv_bn(keys[3], 256, 256, 3),
        "b2_0": init_conv_bn(keys[4], cin, 256, 1),
        "b2_1": init_conv_bn(keys[5], 256, 256, 3),
        "b2_2": init_conv_bn(keys[6], 256, 256, 3),
    }


# ---------------------------------------------------------------------------
# Forward pass (matches torch reduction_b.forward; NCHW in / NCHW out)
# ---------------------------------------------------------------------------
def reduction_b_forward(x_nchw, p):
    x = jnp.transpose(x_nchw, (0, 2, 3, 1)).astype(_BF16)      # NHWC, bf16

    # Fused 1x1 stems of branches 0/1/2 -> one GEMM with Cout = 3*256.
    w_stem = jnp.concatenate(
        [p["b0_0"]["w"][0, 0] * p["b0_0"]["scale"],
         p["b1_0"]["w"][0, 0] * p["b1_0"]["scale"],
         p["b2_0"]["w"][0, 0] * p["b2_0"]["scale"]], axis=-1)   # (Cin, 768)
    b_stem = jnp.concatenate(
        [p["b0_0"]["bias"], p["b1_0"]["bias"], p["b2_0"]["bias"]])
    stem = conv1x1_fused(x, w_stem, b_stem)                     # (N,H,W,768)
    s0, s1, s2 = stem[..., :256], stem[..., 256:512], stem[..., 512:]

    e1 = conv3x3_s2(s0, p["b0_1"]["w"], p["b0_1"]["scale"], p["b0_1"]["bias"])
    e2 = conv3x3_s2(s1, p["b1_1"]["w"], p["b1_1"]["scale"], p["b1_1"]["bias"])
    s2 = conv3x3_s1p1(s2, p["b2_1"]["w"], p["b2_1"]["scale"], p["b2_1"]["bias"])
    e3 = conv3x3_s2(s2, p["b2_2"]["w"], p["b2_2"]["scale"], p["b2_2"]["bias"])
    e4 = maxpool3x3_s2(x)

    y = jnp.concatenate([e1, e2, e3, e4], axis=-1)              # channel concat
    return jnp.transpose(y, (0, 3, 1, 2)).astype(jnp.float32)   # NHWC -> NCHW


# ---------------------------------------------------------------------------
# Pure-JAX f32 reference for a sanity check
# ---------------------------------------------------------------------------
def _conv_bn_relu_ref(x, w, scale, bias, stride, padding):
    y = lax.conv_general_dilated(
        x, w, (stride, stride), [(padding, padding), (padding, padding)],
        dimension_numbers=("NHWC", "HWIO", "NHWC"),
        precision=lax.Precision.HIGHEST)
    return jnp.maximum(y * scale + bias, 0.0)


def reduction_b_ref(x_nchw, p):
    x = jnp.transpose(x_nchw, (0, 2, 3, 1))
    b0 = _conv_bn_relu_ref(x, p["b0_0"]["w"], p["b0_0"]["scale"], p["b0_0"]["bias"], 1, 0)
    e1 = _conv_bn_relu_ref(b0, p["b0_1"]["w"], p["b0_1"]["scale"], p["b0_1"]["bias"], 2, 0)
    b1 = _conv_bn_relu_ref(x, p["b1_0"]["w"], p["b1_0"]["scale"], p["b1_0"]["bias"], 1, 0)
    e2 = _conv_bn_relu_ref(b1, p["b1_1"]["w"], p["b1_1"]["scale"], p["b1_1"]["bias"], 2, 0)
    b2 = _conv_bn_relu_ref(x, p["b2_0"]["w"], p["b2_0"]["scale"], p["b2_0"]["bias"], 1, 0)
    b2 = _conv_bn_relu_ref(b2, p["b2_1"]["w"], p["b2_1"]["scale"], p["b2_1"]["bias"], 1, 1)
    e3 = _conv_bn_relu_ref(b2, p["b2_2"]["w"], p["b2_2"]["scale"], p["b2_2"]["bias"], 2, 0)
    e4 = lax.reduce_window(x, -jnp.inf, lax.max, (1, 3, 3, 1), (1, 2, 2, 1), "VALID")
    y = jnp.concatenate([e1, e2, e3, e4], axis=-1)
    return jnp.transpose(y, (0, 3, 1, 2))


if __name__ == "__main__":
    key = random.PRNGKey(0)
    kx, kp = random.split(key)

    N, CIN, H, W = 2, 32, 16, 16
    x = random.normal(kx, (N, CIN, H, W), jnp.float32)   # NCHW, like PyTorch
    params = init_reduction_b(kp, CIN)

    fwd = jax.jit(reduction_b_forward)
    out = jax.block_until_ready(fwd(x, params))

    expected_shape = (N, 384 + 256 + 256 + CIN, 7, 7)
    assert out.shape == expected_shape, (out.shape, expected_shape)

    ref = jax.block_until_ready(reduction_b_ref(x, params))
    max_diff = float(np.max(np.abs(np.asarray(out) - np.asarray(ref))))
    # bf16 matmul operands (f32 accumulation) -> slightly looser tolerance.
    assert np.allclose(np.asarray(out), np.asarray(ref), rtol=2e-2, atol=2e-2), (
        "max abs diff", max_diff)

    print("KERNEL_OK")
</pallas_src>

<mosaic_0001>
module attributes {stable_mosaic.version = 11 : i64} {
  func.func @kernel(%arg0: i32, %arg1: memref<1x36x9x32xbf16, #tpu.memory_space<vmem>>, %arg2: memref<1x8x8x32xbf16, #tpu.memory_space<vmem>>) attributes {dimension_semantics = [#tpu.dimension_semantics<parallel>], iteration_bounds = array<i64: 2>, scalar_prefetch = 0 : i64, scratch_operands = 0 : i64, tpu.core_type = #tpu.core_type<tc>, window_params = [{transform_indices = @transform_0, window_bounds = array<i64: 1, 36, 9, 32>}, {transform_indices = @transform_1, window_bounds = array<i64: 1, 8, 8, 32>}]} {
    %c0 = arith.constant 0 : index
    %c0_0 = arith.constant 0 : index
    %c0_1 = arith.constant 0 : index
    %c0_2 = arith.constant 0 : index
    %0 = vector.load %arg1[%c0, %c0_0, %c0_1, %c0_2] : memref<1x36x9x32xbf16, #tpu.memory_space<vmem>>, vector<1x8x8x32xbf16>
    %1 = vector.shape_cast %0 : vector<1x8x8x32xbf16> to vector<8x8x32xbf16>
    %c0_3 = arith.constant 0 : index
    %c9 = arith.constant 9 : index
    %c0_4 = arith.constant 0 : index
    %c0_5 = arith.constant 0 : index
    %2 = vector.load %arg1[%c0_3, %c9, %c0_4, %c0_5] : memref<1x36x9x32xbf16, #tpu.memory_space<vmem>>, vector<1x8x8x32xbf16>
    %3 = vector.shape_cast %2 : vector<1x8x8x32xbf16> to vector<8x8x32xbf16>
    %4 = arith.maximumf %1, %3 : vector<8x8x32xbf16>
    %c0_6 = arith.constant 0 : index
    %c0_7 = arith.constant 0 : index
    %c1 = arith.constant 1 : index
    %c0_8 = arith.constant 0 : index
    %5 = vector.load %arg1[%c0_6, %c0_7, %c1, %c0_8] : memref<1x36x9x32xbf16, #tpu.memory_space<vmem>>, vector<1x8x8x32xbf16>
    %6 = vector.shape_cast %5 : vector<1x8x8x32xbf16> to vector<8x8x32xbf16>
    %7 = arith.maximumf %4, %6 : vector<8x8x32xbf16>
    %c0_9 = arith.constant 0 : index
    %c18 = arith.constant 18 : index
    %c0_10 = arith.constant 0 : index
    %c0_11 = arith.constant 0 : index
    %8 = vector.load %arg1[%c0_9, %c18, %c0_10, %c0_11] : memref<1x36x9x32xbf16, #tpu.memory_space<vmem>>, vector<1x8x8x32xbf16>
    %9 = vector.shape_cast %8 : vector<1x8x8x32xbf16> to vector<8x8x32xbf16>
    %10 = arith.maximumf %7, %9 : vector<8x8x32xbf16>
    %c0_12 = arith.constant 0 : index
    %c27 = arith.constant 27 : index
    %c0_13 = arith.constant 0 : index
    %c0_14 = arith.constant 0 : index
    %11 = vector.load %arg1[%c0_12, %c27, %c0_13, %c0_14] : memref<1x36x9x32xbf16, #tpu.memory_space<vmem>>, vector<1x8x8x32xbf16>
    %12 = vector.shape_cast %11 : vector<1x8x8x32xbf16> to vector<8x8x32xbf16>
    %13 = arith.maximumf %10, %12 : vector<8x8x32xbf16>
    %c0_15 = arith.constant 0 : index
    %c18_16 = arith.constant 18 : index
    %c1_17 = arith.constant 1 : index
    %c0_18 = arith.constant 0 : index
    %14 = vector.load %arg1[%c0_15, %c18_16, %c1_17, %c0_18] : memref<1x36x9x32xbf16, #tpu.memory_space<vmem>>, vector<1x8x8x32xbf16>
    %15 = vector.shape_cast %14 : vector<1x8x8x32xbf16> to vector<8x8x32xbf16>
    %16 = arith.maximumf %13, %15 : vector<8x8x32xbf16>
    %c0_19 = arith.constant 0 : index
    %c1_20 = arith.constant 1 : index
    %c0_21 = arith.constant 0 : index
    %c0_22 = arith.constant 0 : index
    %17 = vector.load %arg1[%c0_19, %c1_20, %c0_21, %c0_22] : memref<1x36x9x32xbf16, #tpu.memory_space<vmem>>, vector<1x8x8x32xbf16>
    %18 = vector.shape_cast %17 : vector<1x8x8x32xbf16> to vector<8x8x32xbf16>
    %19 = arith.maximumf %16, %18 : vector<8x8x32xbf16>
    %c0_23 = arith.constant 0 : index
    %c10 = arith.constant 10 : index
    %c0_24 = arith.constant 0 : index
    %c0_25 = arith.constant 0 : index
    %20 = vector.load %arg1[%c0_23, %c10, %c0_24, %c0_25] : memref<1x36x9x32xbf16, #tpu.memory_space<vmem>>, vector<1x8x8x32xbf16>
    %21 = vector.shape_cast %20 : vector<1x8x8x32xbf16> to vector<8x8x32xbf16>
    %22 = arith.maximumf %19, %21 : vector<8x8x32xbf16>
    %c0_26 = arith.constant 0 : index
    %c1_27 = arith.constant 1 : index
    %c1_28 = arith.constant 1 : index
    %c0_29 = arith.constant 0 : index
    %23 = vector.load %arg1[%c0_26, %c1_27, %c1_28, %c0_29] : memref<1x36x9x32xbf16, #tpu.memory_space<vmem>>, vector<1x8x8x32xbf16>
    %24 = vector.shape_cast %23 : vector<1x8x8x32xbf16> to vector<8x8x32xbf16>
    %25 = arith.maximumf %22, %24 : vector<8x8x32xbf16>
    %c0_30 = arith.constant 0 : index
    %c0_31 = arith.constant 0 : index
    %c0_32 = arith.constant 0 : index
    %c0_33 = arith.constant 0 : index
    %26 = vector.load %arg2[%c0_30, %c0_31, %c0_32, %c0_33] : memref<1x8x8x32xbf16, #tpu.memory_space<vmem>>, vector<1x8x8x32xbf16>
    %27 = vector.shape_cast %26 : vector<1x8x8x32xbf16> to vector<8x8x32xbf16>
    %28 = vector.shape_cast %25 : vector<8x8x32xbf16> to vector<1x8x8x32xbf16>
    tpu.vector_store %arg2[%c0_30, %c0_31, %c0_32, %c0_33], %28 {strides = array<i32>} : memref<1x8x8x32xbf16, #tpu.memory_space<vmem>>, vector<1x8x8x32xbf16>,
    return
  }
  func.func @transform_0(%arg0: i32) -> (i32, i32, i32, i32) {
    %c0_i32 = arith.constant 0 : i32
    %c0_i32_0 = arith.constant 0 : i32
    %c0_i32_1 = arith.constant 0 : i32
    %c0_i32_2 = arith.constant 0 : i32
    return %arg0, %c0_i32, %c0_i32_0, %c0_i32_1 : i32, i32, i32, i32
  }
  func.func @transform_1(%arg0: i32) -> (i32, i32, i32, i32) {
    %c0_i32 = arith.constant 0 : i32
    %c0_i32_0 = arith.constant 0 : i32
    %c0_i32_1 = arith.constant 0 : i32
    %c0_i32_2 = arith.constant 0 : i32
    return %arg0, %c0_i32, %c0_i32_0, %c0_i32_1 : i32, i32, i32, i32
  }
}

module attributes {stable_mosaic.version = 11 : i64} {
  func.func @_gemm_bias_relu_kernel(%arg0: i32, %arg1: i32, %arg2: memref<128x32xbf16, #tpu.memory_space<vmem>>, %arg3: memref<32x256xbf16, #tpu.memory_space<vmem>>, %arg4: memref<1x256xf32, #tpu.memory_space<vmem>>, %arg5: memref<128x256xbf16, #tpu.memory_space<vmem>>) attributes {dimension_semantics = [#tpu.dimension_semantics<parallel>, #tpu.dimension_semantics<parallel>], iteration_bounds = array<i64: 4, 3>, scalar_prefetch = 0 : i64, scratch_operands = 0 : i64, tpu.core_type = #tpu.core_type<tc>, window_params = [{transform_indices = @transform_0, window_bounds = array<i64: 128, 32>}, {transform_indices = @transform_1, window_bounds = array<i64: 32, 256>}, {transform_indices = @transform_2, window_bounds = array<i64: 1, 256>}, {transform_indices = @transform_3, window_bounds = array<i64: 128, 256>}]} {
    %c0 = arith.constant 0 : index
    %c0_0 = arith.constant 0 : index
    %0 = vector.load %arg2[%c0, %c0_0] : memref<128x32xbf16, #tpu.memory_space<vmem>>, vector<128x32xbf16>
    %c0_1 = arith.constant 0 : index
    %c0_2 = arith.constant 0 : index
    %1 = vector.load %arg3[%c0_1, %c0_2] : memref<32x256xbf16, #tpu.memory_space<vmem>>, vector<32x256xbf16>
    %cst = arith.constant dense<0.000000e+00> : vector<128x256xf32>
    %2 = tpu.matmul %0, %1, %cst {dimension_numbers = #tpu.dot_dimension_numbers<[1], [0], [0], [1], [0, 0, 1, 1], [], []>} : vector<128x32xbf16>, vector<32x256xbf16>, vector<128x256xf32> -> vector<128x256xf32>
    %c0_3 = arith.constant 0 : index
    %c0_4 = arith.constant 0 : index
    %3 = vector.load %arg4[%c0_3, %c0_4] : memref<1x256xf32, #tpu.memory_space<vmem>>, vector<1x256xf32>
    %4 = vector.broadcast %3 : vector<1x256xf32> to vector<128x256xf32>
    %5 = arith.addf %2, %4 : vector<128x256xf32>
    %cst_5 = arith.constant 0.000000e+00 : f32
    %6 = vector.broadcast %cst_5 : f32 to vector<128x256xf32>
    %7 = arith.maximumf %5, %6 : vector<128x256xf32>
    %8 = arith.truncf %7 : vector<128x256xf32> to vector<128x256xbf16>
    %c0_6 = arith.constant 0 : index
    %c0_7 = arith.constant 0 : index
    %9 = vector.load %arg5[%c0_6, %c0_7] : memref<128x256xbf16, #tpu.memory_space<vmem>>, vector<128x256xbf16>
    tpu.vector_store %arg5[%c0_6, %c0_7], %8 {strides = array<i32>} : memref<128x256xbf16, #tpu.memory_space<vmem>>, vector<128x256xbf16>,
    return
  }
  func.func @transform_0(%arg0: i32, %arg1: i32) -> (i32, i32) {
    %c0_i32 = arith.constant 0 : i32
    %c0_i32_0 = arith.constant 0 : i32
    return %arg0, %c0_i32 : i32, i32
  }
  func.func @transform_1(%arg0: i32, %arg1: i32) -> (i32, i32) {
    %c0_i32 = arith.constant 0 : i32
    %c0_i32_0 = arith.constant 0 : i32
    return %c0_i32, %arg1 : i32, i32
  }
  func.func @transform_2(%arg0: i32, %arg1: i32) -> (i32, i32) {
    %c0_i32 = arith.constant 0 : i32
    %c0_i32_0 = arith.constant 0 : i32
    return %c0_i32, %arg1 : i32, i32
  }
  func.func @transform_3(%arg0: i32, %arg1: i32) -> (i32, i32) {
    %c0_i32 = arith.constant 0 : i32
    return %arg0, %arg1 : i32, i32
  }
}

module attributes {stable_mosaic.version = 11 : i64} {
  func.func @kernel(%arg0: i32, %arg1: i32, %arg2: i32, %arg3: memref<1x18x18x256xbf16, #tpu.memory_space<vmem>>, %arg4: memref<9x256x128xbf16, #tpu.memory_space<vmem>>, %arg5: memref<1x128xf32, #tpu.memory_space<vmem>>, %arg6: memref<1x128x128xbf16, #tpu.memory_space<vmem>>) attributes {dimension_semantics = [#tpu.dimension_semantics<parallel>, #tpu.dimension_semantics<parallel>, #tpu.dimension_semantics<parallel>], iteration_bounds = array<i64: 2, 2, 2>, scalar_prefetch = 0 : i64, scratch_operands = 0 : i64, tpu.core_type = #tpu.core_type<tc>, window_params = [{transform_indices = @transform_0, window_bounds = array<i64: 1, 18, 18, 256>}, {transform_indices = @transform_1, window_bounds = array<i64: 9, 256, 128>}, {transform_indices = @transform_2, window_bounds = array<i64: 1, 128>}, {transform_indices = @transform_3, window_bounds = array<i64: 1, 128, 128>}]} {
    %c8_i32 = arith.constant 8 : i32
    %0 = arith.muli %arg2, %c8_i32 : i32
    %1 = tpu.assume_multiple %0, 8 : i32
    %c0_i32 = arith.constant 0 : i32
    %2 = arith.addi %1, %c0_i32 : i32
    %c0 = arith.constant 0 : index
    %3 = arith.index_cast %2 : i32 to index
    %c0_0 = arith.constant 0 : index
    %c0_1 = arith.constant 0 : index
    %4 = vector.load %arg3[%c0, %3, %c0_0, %c0_1] : memref<1x18x18x256xbf16, #tpu.memory_space<vmem>>, vector<1x8x16x256xbf16>
    %5 = vector.shape_cast %4 : vector<1x8x16x256xbf16> to vector<8x16x256xbf16>
    %6 = vector.shape_cast %5 : vector<8x16x256xbf16> to vector<128x256xbf16>
    %c0_2 = arith.constant 0 : index
    %c0_3 = arith.constant 0 : index
    %c0_4 = arith.constant 0 : index
    %7 = vector.load %arg4[%c0_2, %c0_3, %c0_4] : memref<9x256x128xbf16, #tpu.memory_space<vmem>>, vector<1x256x128xbf16>
    %8 = vector.shape_cast %7 : vector<1x256x128xbf16> to vector<256x128xbf16>
    %cst = arith.constant dense<0.000000e+00> : vector<128x128xf32>
    %9 = tpu.matmul %6, %8, %cst {dimension_numbers = #tpu.dot_dimension_numbers<[1], [0], [0], [1], [0, 0, 1, 1], [], []>} : vector<128x256xbf16>, vector<256x128xbf16>, vector<128x128xf32> -> vector<128x128xf32>
    %c0_i32_5 = arith.constant 0 : i32
    %10 = arith.addi %1, %c0_i32_5 : i32
    %c0_6 = arith.constant 0 : index
    %11 = arith.index_cast %10 : i32 to index
    %c1 = arith.constant 1 : index
    %c0_7 = arith.constant 0 : index
    %12 = vector.load %arg3[%c0_6, %11, %c1, %c0_7] : memref<1x18x18x256xbf16, #tpu.memory_space<vmem>>, vector<1x8x16x256xbf16>
    %13 = vector.shape_cast %12 : vector<1x8x16x256xbf16> to vector<8x16x256xbf16>
    %14 = vector.shape_cast %13 : vector<8x16x256xbf16> to vector<128x256xbf16>
    %c1_8 = arith.constant 1 : index
    %c0_9 = arith.constant 0 : index
    %c0_10 = arith.constant 0 : index
    %15 = vector.load %arg4[%c1_8, %c0_9, %c0_10] : memref<9x256x128xbf16, #tpu.memory_space<vmem>>, vector<1x256x128xbf16>
    %16 = vector.shape_cast %15 : vector<1x256x128xbf16> to vector<256x128xbf16>
    %cst_11 = arith.constant dense<0.000000e+00> : vector<128x128xf32>
    %17 = tpu.matmul %14, %16, %cst_11 {dimension_numbers = #tpu.dot_dimension_numbers<[1], [0], [0], [1], [0, 0, 1, 1], [], []>} : vector<128x256xbf16>, vector<256x128xbf16>, vector<128x128xf32> -> vector<128x128xf32>
    %18 = arith.addf %9, %17 : vector<128x128xf32>
    %c0_i32_12 = arith.constant 0 : i32
    %19 = arith.addi %1, %c0_i32_12 : i32
    %c0_13 = arith.constant 0 : index
    %20 = arith.index_cast %19 : i32 to index
    %c2 = arith.constant 2 : index
    %c0_14 = arith.constant 0 : index
    %21 = vector.load %arg3[%c0_13, %20, %c2, %c0_14] : memref<1x18x18x256xbf16, #tpu.memory_space<vmem>>, vector<1x8x16x256xbf16>
    %22 = vector.shape_cast %21 : vector<1x8x16x256xbf16> to vector<8x16x256xbf16>
    %23 = vector.shape_cast %22 : vector<8x16x256xbf16> to vector<128x256xbf16>
    %c2_15 = arith.constant 2 : index
    %c0_16 = arith.constant 0 : index
    %c0_17 = arith.constant 0 : index
    %24 = vector.load %arg4[%c2_15, %c0_16, %c0_17] : memref<9x256x128xbf16, #tpu.memory_space<vmem>>, vector<1x256x128xbf16>
    %25 = vector.shape_cast %24 : vector<1x256x128xbf16> to vector<256x128xbf16>
    %cst_18 = arith.constant dense<0.000000e+00> : vector<128x128xf32>
    %26 = tpu.matmul %23, %25, %cst_18 {dimension_numbers = #tpu.dot_dimension_numbers<[1], [0], [0], [1], [0, 0, 1, 1], [], []>} : vector<128x256xbf16>, vector<256x128xbf16>, vector<128x128xf32> -> vector<128x128xf32>
    %27 = arith.addf %18, %26 : vector<128x128xf32>
    %c1_i32 = arith.constant 1 : i32
    %28 = arith.addi %1, %c1_i32 : i32
    %c0_19 = arith.constant 0 : index
    %29 = arith.index_cast %28 : i32 to index
    %c0_20 = arith.constant 0 : index
    %c0_21 = arith.constant 0 : index
    %30 = vector.load %arg3[%c0_19, %29, %c0_20, %c0_21] : memref<1x18x18x256xbf16, #tpu.memory_space<vmem>>, vector<1x8x16x256xbf16>
    %31 = vector.shape_cast %30 : vector<1x8x16x256xbf16> to vector<8x16x256xbf16>
    %32 = vector.shape_cast %31 : vector<8x16x256xbf16> to vector<128x256xbf16>
    %c3 = arith.constant 3 : index
    %c0_22 = arith.constant 0 : index
    %c0_23 = arith.constant 0 : index
    %33 = vector.load %arg4[%c3, %c0_22, %c0_23] : memref<9x256x128xbf16, #tpu.memory_space<vmem>>, vector<1x256x128xbf16>
    %34 = vector.shape_cast %33 : vector<1x256x128xbf16> to vector<256x128xbf16>
    %cst_24 = arith.constant dense<0.000000e+00> : vector<128x128xf32>
    %35 = tpu.matmul %32, %34, %cst_24 {dimension_numbers = #tpu.dot_dimension_numbers<[1], [0], [0], [1], [0, 0, 1, 1], [], []>} : vector<128x256xbf16>, vector<256x128xbf16>, vector<128x128xf32> -> vector<128x128xf32>
    %36 = arith.addf %27, %35 : vector<128x128xf32>
    %c1_i32_25 = arith.constant 1 : i32
    %37 = arith.addi %1, %c1_i32_25 : i32
    %c0_26 = arith.constant 0 : index
    %38 = arith.index_cast %37 : i32 to index
    %c1_27 = arith.constant 1 : index
    %c0_28 = arith.constant 0 : index
    %39 = vector.load %arg3[%c0_26, %38, %c1_27, %c0_28] : memref<1x18x18x256xbf16, #tpu.memory_space<vmem>>, vector<1x8x16x256xbf16>
    %40 = vector.shape_cast %39 : vector<1x8x16x256xbf16> to vector<8x16x256xbf16>
    %41 = vector.shape_cast %40 : vector<8x16x256xbf16> to vector<128x256xbf16>
    %c4 = arith.constant 4 : index
    %c0_29 = arith.constant 0 : index
    %c0_30 = arith.constant 0 : index
    %42 = vector.load %arg4[%c4, %c0_29, %c0_30] : memref<9x256x128xbf16, #tpu.memory_space<vmem>>, vector<1x256x128xbf16>
    %43 = vector.shape_cast %42 : vector<1x256x128xbf16> to vector<256x128xbf16>
    %cst_31 = arith.constant dense<0.000000e+00> : vector<128x128xf32>
    %44 = tpu.matmul %41, %43, %cst_31 {dimension_numbers = #tpu.dot_dimension_numbers<[1], [0], [0], [1], [0, 0, 1, 1], [], []>} : vector<128x256xbf16>, vector<256x128xbf16>, vector<128x128xf32> -> vector<128x128xf32>
    %45 = arith.addf %36, %44 : vector<128x128xf32>
    %c1_i32_32 = arith.constant 1 : i32
    %46 = arith.addi %1, %c1_i32_32 : i32
    %c0_33 = arith.constant 0 : index
    %47 = arith.index_cast %46 : i32 to index
    %c2_34 = arith.constant 2 : index
    %c0_35 = arith.constant 0 : index
    %48 = vector.load %arg3[%c0_33, %47, %c2_34, %c0_35] : memref<1x18x18x256xbf16, #tpu.memory_space<vmem>>, vector<1x8x16x256xbf16>
    %49 = vector.shape_cast %48 : vector<1x8x16x256xbf16> to vector<8x16x256xbf16>
    %50 = vector.shape_cast %49 : vector<8x16x256xbf16> to vector<128x256xbf16>
    %c5 = arith.constant 5 : index
    %c0_36 = arith.constant 0 : index
    %c0_37 = arith.constant 0 : index
    %51 = vector.load %arg4[%c5, %c0_36, %c0_37] : memref<9x256x128xbf16, #tpu.memory_space<vmem>>, vector<1x256x128xbf16>
    %52 = vector.shape_cast %51 : vector<1x256x128xbf16> to vector<256x128xbf16>
    %cst_38 = arith.constant dense<0.000000e+00> : vector<128x128xf32>
    %53 = tpu.matmul %50, %52, %cst_38 {dimension_numbers = #tpu.dot_dimension_numbers<[1], [0], [0], [1], [0, 0, 1, 1], [], []>} : vector<128x256xbf16>, vector<256x128xbf16>, vector<128x128xf32> -> vector<128x128xf32>
    %54 = arith.addf %45, %53 : vector<128x128xf32>
    %c2_i32 = arith.constant 2 : i32
    %55 = arith.addi %1, %c2_i32 : i32
    %c0_39 = arith.constant 0 : index
    %56 = arith.index_cast %55 : i32 to index
    %c0_40 = arith.constant 0 : index
    %c0_41 = arith.constant 0 : index
    %57 = vector.load %arg3[%c0_39, %56, %c0_40, %c0_41] : memref<1x18x18x256xbf16, #tpu.memory_space<vmem>>, vector<1x8x16x256xbf16>
    %58 = vector.shape_cast %57 : vector<1x8x16x256xbf16> to vector<8x16x256xbf16>
    %59 = vector.shape_cast %58 : vector<8x16x256xbf16> to vector<128x256xbf16>
    %c6 = arith.constant 6 : index
    %c0_42 = arith.constant 0 : index
    %c0_43 = arith.constant 0 : index
    %60 = vector.load %arg4[%c6, %c0_42, %c0_43] : memref<9x256x128xbf16, #tpu.memory_space<vmem>>, vector<1x256x128xbf16>
    %61 = vector.shape_cast %60 : vector<1x256x128xbf16> to vector<256x128xbf16>
    %cst_44 = arith.constant dense<0.000000e+00> : vector<128x128xf32>
    %62 = tpu.matmul %59, %61, %cst_44 {dimension_numbers = #tpu.dot_dimension_numbers<[1], [0], [0], [1], [0, 0, 1, 1], [], []>} : vector<128x256xbf16>, vector<256x128xbf16>, vector<128x128xf32> -> vector<128x128xf32>
    %63 = arith.addf %54, %62 : vector<128x128xf32>
    %c2_i32_45 = arith.constant 2 : i32
    %64 = arith.addi %1, %c2_i32_45 : i32
    %c0_46 = arith.constant 0 : index
    %65 = arith.index_cast %64 : i32 to index
    %c1_47 = arith.constant 1 : index
    %c0_48 = arith.constant 0 : index
    %66 = vector.load %arg3[%c0_46, %65, %c1_47, %c0_48] : memref<1x18x18x256xbf16, #tpu.memory_space<vmem>>, vector<1x8x16x256xbf16>
    %67 = vector.shape_cast %66 : vector<1x8x16x256xbf16> to vector<8x16x256xbf16>
    %68 = vector.shape_cast %67 : vector<8x16x256xbf16> to vector<128x256xbf16>
    %c7 = arith.constant 7 : index
    %c0_49 = arith.constant 0 : index
    %c0_50 = arith.constant 0 : index
    %69 = vector.load %arg4[%c7, %c0_49, %c0_50] : memref<9x256x128xbf16, #tpu.memory_space<vmem>>, vector<1x256x128xbf16>
    %70 = vector.shape_cast %69 : vector<1x256x128xbf16> to vector<256x128xbf16>
    %cst_51 = arith.constant dense<0.000000e+00> : vector<128x128xf32>
    %71 = tpu.matmul %68, %70, %cst_51 {dimension_numbers = #tpu.dot_dimension_numbers<[1], [0], [0], [1], [0, 0, 1, 1], [], []>} : vector<128x256xbf16>, vector<256x128xbf16>, vector<128x128xf32> -> vector<128x128xf32>
    %72 = arith.addf %63, %71 : vector<128x128xf32>
    %c2_i32_52 = arith.constant 2 : i32
    %73 = arith.addi %1, %c2_i32_52 : i32
    %c0_53 = arith.constant 0 : index
    %74 = arith.index_cast %73 : i32 to index
    %c2_54 = arith.constant 2 : index
    %c0_55 = arith.constant 0 : index
    %75 = vector.load %arg3[%c0_53, %74, %c2_54, %c0_55] : memref<1x18x18x256xbf16, #tpu.memory_space<vmem>>, vector<1x8x16x256xbf16>
    %76 = vector.shape_cast %75 : vector<1x8x16x256xbf16> to vector<8x16x256xbf16>
    %77 = vector.shape_cast %76 : vector<8x16x256xbf16> to vector<128x256xbf16>
    %c8 = arith.constant 8 : index
    %c0_56 = arith.constant 0 : index
    %c0_57 = arith.constant 0 : index
    %78 = vector.load %arg4[%c8, %c0_56, %c0_57] : memref<9x256x128xbf16, #tpu.memory_space<vmem>>, vector<1x256x128xbf16>
    %79 = vector.shape_cast %78 : vector<1x256x128xbf16> to vector<256x128xbf16>
    %cst_58 = arith.constant dense<0.000000e+00> : vector<128x128xf32>
    %80 = tpu.matmul %77, %79, %cst_58 {dimension_numbers = #tpu.dot_dimension_numbers<[1], [0], [0], [1], [0, 0, 1, 1], [], []>} : vector<128x256xbf16>, vector<256x128xbf16>, vector<128x128xf32> -> vector<128x128xf32>
    %81 = arith.addf %72, %80 : vector<128x128xf32>
    %c0_59 = arith.constant 0 : index
    %c0_60 = arith.constant 0 : index
    %82 = vector.load %arg5[%c0_59, %c0_60] : memref<1x128xf32, #tpu.memory_space<vmem>>, vector<1x128xf32>
    %83 = vector.broadcast %82 : vector<1x128xf32> to vector<128x128xf32>
    %84 = arith.addf %81, %83 : vector<128x128xf32>
    %cst_61 = arith.constant 0.000000e+00 : f32
    %85 = vector.broadcast %cst_61 : f32 to vector<128x128xf32>
    %86 = arith.maximumf %84, %85 : vector<128x128xf32>
    %87 = arith.truncf %86 : vector<128x128xf32> to vector<128x128xbf16>
    %c0_62 = arith.constant 0 : index
    %c0_63 = arith.constant 0 : index
    %c0_64 = arith.constant 0 : index
    %88 = vector.load %arg6[%c0_62, %c0_63, %c0_64] : memref<1x128x128xbf16, #tpu.memory_space<vmem>>, vector<1x128x128xbf16>
    %89 = vector.shape_cast %88 : vector<1x128x128xbf16> to vector<128x128xbf16>
    %90 = vector.shape_cast %87 : vector<128x128xbf16> to vector<1x128x128xbf16>
    tpu.vector_store %arg6[%c0_62, %c0_63, %c0_64], %90 {strides = array<i32>} : memref<1x128x128xbf16, #tpu.memory_space<vmem>>, vector<1x128x128xbf16>,
    return
  }
  func.func @transform_0(%arg0: i32, %arg1: i32, %arg2: i32) -> (i32, i32, i32, i32) {
    %c0_i32 = arith.constant 0 : i32
    %c0_i32_0 = arith.constant 0 : i32
    %c0_i32_1 = arith.constant 0 : i32
    %c0_i32_2 = arith.constant 0 : i32
    return %arg0, %c0_i32, %c0_i32_0, %c0_i32_1 : i32, i32, i32, i32
  }
  func.func @transform_1(%arg0: i32, %arg1: i32, %arg2: i32) -> (i32, i32, i32) {
    %c0_i32 = arith.constant 0 : i32
    %c0_i32_0 = arith.constant 0 : i32
    %c0_i32_1 = arith.constant 0 : i32
    return %c0_i32, %c0_i32_0, %arg1 : i32, i32, i32
  }
  func.func @transform_2(%arg0: i32, %arg1: i32, %arg2: i32) -> (i32, i32) {
    %c0_i32 = arith.constant 0 : i32
    %c0_i32_0 = arith.constant 0 : i32
    return %c0_i32, %arg1 : i32, i32
  }
  func.func @transform_3(%arg0: i32, %arg1: i32, %arg2: i32) -> (i32, i32, i32) {
    %c0_i32 = arith.constant 0 : i32
    return %arg0, %arg2, %arg1 : i32, i32, i32
  }
}

module attributes {stable_mosaic.version = 11 : i64} {
  func.func @kernel(%arg0: i32, %arg1: i32, %arg2: memref<1x36x9x256xbf16, #tpu.memory_space<vmem>>, %arg3: memref<9x256x128xbf16, #tpu.memory_space<vmem>>, %arg4: memref<1x128xf32, #tpu.memory_space<vmem>>, %arg5: memref<1x64x128xbf16, #tpu.memory_space<vmem>>) attributes {dimension_semantics = [#tpu.dimension_semantics<parallel>, #tpu.dimension_semantics<parallel>], iteration_bounds = array<i64: 2, 2>, scalar_prefetch = 0 : i64, scratch_operands = 0 : i64, tpu.core_type = #tpu.core_type<tc>, window_params = [{transform_indices = @transform_0, window_bounds = array<i64: 1, 36, 9, 256>}, {transform_indices = @transform_1, window_bounds = array<i64: 9, 256, 128>}, {transform_indices = @transform_2, window_bounds = array<i64: 1, 128>}, {transform_indices = @transform_3, window_bounds = array<i64: 1, 64, 128>}]} {
    %c0 = arith.constant 0 : index
    %c0_0 = arith.constant 0 : index
    %c0_1 = arith.constant 0 : index
    %c0_2 = arith.constant 0 : index
    %0 = vector.load %arg2[%c0, %c0_0, %c0_1, %c0_2] : memref<1x36x9x256xbf16, #tpu.memory_space<vmem>>, vector<1x8x8x256xbf16>
    %1 = vector.shape_cast %0 : vector<1x8x8x256xbf16> to vector<8x8x256xbf16>
    %2 = vector.shape_cast %1 : vector<8x8x256xbf16> to vector<64x256xbf16>
    %c0_3 = arith.constant 0 : index
    %c0_4 = arith.constant 0 : index
    %c0_5 = arith.constant 0 : index
    %3 = vector.load %arg3[%c0_3, %c0_4, %c0_5] : memref<9x256x128xbf16, #tpu.memory_space<vmem>>, vector<1x256x128xbf16>
    %4 = vector.shape_cast %3 : vector<1x256x128xbf16> to vector<256x128xbf16>
    %cst = arith.constant dense<0.000000e+00> : vector<64x128xf32>
    %5 = tpu.matmul %2, %4, %cst {dimension_numbers = #tpu.dot_dimension_numbers<[1], [0], [0], [1], [0, 0, 1, 1], [], []>} : vector<64x256xbf16>, vector<256x128xbf16>, vector<64x128xf32> -> vector<64x128xf32>
    %c0_6 = arith.constant 0 : index
    %c9 = arith.constant 9 : index
    %c0_7 = arith.constant 0 : index
    %c0_8 = arith.constant 0 : index
    %6 = vector.load %arg2[%c0_6, %c9, %c0_7, %c0_8] : memref<1x36x9x256xbf16, #tpu.memory_space<vmem>>, vector<1x8x8x256xbf16>
    %7 = vector.shape_cast %6 : vector<1x8x8x256xbf16> to vector<8x8x256xbf16>
    %8 = vector.shape_cast %7 : vector<8x8x256xbf16> to vector<64x256xbf16>
    %c1 = arith.constant 1 : index
    %c0_9 = arith.constant 0 : index
    %c0_10 = arith.constant 0 : index
    %9 = vector.load %arg3[%c1, %c0_9, %c0_10] : memref<9x256x128xbf16, #tpu.memory_space<vmem>>, vector<1x256x128xbf16>
    %10 = vector.shape_cast %9 : vector<1x256x128xbf16> to vector<256x128xbf16>
    %cst_11 = arith.constant dense<0.000000e+00> : vector<64x128xf32>
    %11 = tpu.matmul %8, %10, %cst_11 {dimension_numbers = #tpu.dot_dimension_numbers<[1], [0], [0], [1], [0, 0, 1, 1], [], []>} : vector<64x256xbf16>, vector<256x128xbf16>, vector<64x128xf32> -> vector<64x128xf32>
    %12 = arith.addf %5, %11 : vector<64x128xf32>
    %c0_12 = arith.constant 0 : index
    %c0_13 = arith.constant 0 : index
    %c1_14 = arith.constant 1 : index
    %c0_15 = arith.constant 0 : index
    %13 = vector.load %arg2[%c0_12, %c0_13, %c1_14, %c0_15] : memref<1x36x9x256xbf16, #tpu.memory_space<vmem>>, vector<1x8x8x256xbf16>
    %14 = vector.shape_cast %13 : vector<1x8x8x256xbf16> to vector<8x8x256xbf16>
    %15 = vector.shape_cast %14 : vector<8x8x256xbf16> to vector<64x256xbf16>
    %c2 = arith.constant 2 : index
    %c0_16 = arith.constant 0 : index
    %c0_17 = arith.constant 0 : index
    %16 = vector.load %arg3[%c2, %c0_16, %c0_17] : memref<9x256x128xbf16, #tpu.memory_space<vmem>>, vector<1x256x128xbf16>
    %17 = vector.shape_cast %16 : vector<1x256x128xbf16> to vector<256x128xbf16>
    %cst_18 = arith.constant dense<0.000000e+00> : vector<64x128xf32>
    %18 = tpu.matmul %15, %17, %cst_18 {dimension_numbers = #tpu.dot_dimension_numbers<[1], [0], [0], [1], [0, 0, 1, 1], [], []>} : vector<64x256xbf16>, vector<256x128xbf16>, vector<64x128xf32> -> vector<64x128xf32>
    %19 = arith.addf %12, %18 : vector<64x128xf32>
    %c0_19 = arith.constant 0 : index
    %c18 = arith.constant 18 : index
    %c0_20 = arith.constant 0 : index
    %c0_21 = arith.constant 0 : index
    %20 = vector.load %arg2[%c0_19, %c18, %c0_20, %c0_21] : memref<1x36x9x256xbf16, #tpu.memory_space<vmem>>, vector<1x8x8x256xbf16>
    %21 = vector.shape_cast %20 : vector<1x8x8x256xbf16> to vector<8x8x256xbf16>
    %22 = vector.shape_cast %21 : vector<8x8x256xbf16> to vector<64x256xbf16>
    %c3 = arith.constant 3 : index
    %c0_22 = arith.constant 0 : index
    %c0_23 = arith.constant 0 : index
    %23 = vector.load %arg3[%c3, %c0_22, %c0_23] : memref<9x256x128xbf16, #tpu.memory_space<vmem>>, vector<1x256x128xbf16>
    %24 = vector.shape_cast %23 : vector<1x256x128xbf16> to vector<256x128xbf16>
    %cst_24 = arith.constant dense<0.000000e+00> : vector<64x128xf32>
    %25 = tpu.matmul %22, %24, %cst_24 {dimension_numbers = #tpu.dot_dimension_numbers<[1], [0], [0], [1], [0, 0, 1, 1], [], []>} : vector<64x256xbf16>, vector<256x128xbf16>, vector<64x128xf32> -> vector<64x128xf32>
    %26 = arith.addf %19, %25 : vector<64x128xf32>
    %c0_25 = arith.constant 0 : index
    %c27 = arith.constant 27 : index
    %c0_26 = arith.constant 0 : index
    %c0_27 = arith.constant 0 : index
    %27 = vector.load %arg2[%c0_25, %c27, %c0_26, %c0_27] : memref<1x36x9x256xbf16, #tpu.memory_space<vmem>>, vector<1x8x8x256xbf16>
    %28 = vector.shape_cast %27 : vector<1x8x8x256xbf16> to vector<8x8x256xbf16>
    %29 = vector.shape_cast %28 : vector<8x8x256xbf16> to vector<64x256xbf16>
    %c4 = arith.constant 4 : index
    %c0_28 = arith.constant 0 : index
    %c0_29 = arith.constant 0 : index
    %30 = vector.load %arg3[%c4, %c0_28, %c0_29] : memref<9x256x128xbf16, #tpu.memory_space<vmem>>, vector<1x256x128xbf16>
    %31 = vector.shape_cast %30 : vector<1x256x128xbf16> to vector<256x128xbf16>
    %cst_30 = arith.constant dense<0.000000e+00> : vector<64x128xf32>
    %32 = tpu.matmul %29, %31, %cst_30 {dimension_numbers = #tpu.dot_dimension_numbers<[1], [0], [0], [1], [0, 0, 1, 1], [], []>} : vector<64x256xbf16>, vector<256x128xbf16>, vector<64x128xf32> -> vector<64x128xf32>
    %33 = arith.addf %26, %32 : vector<64x128xf32>
    %c0_31 = arith.constant 0 : index
    %c18_32 = arith.constant 18 : index
    %c1_33 = arith.constant 1 : index
    %c0_34 = arith.constant 0 : index
    %34 = vector.load %arg2[%c0_31, %c18_32, %c1_33, %c0_34] : memref<1x36x9x256xbf16, #tpu.memory_space<vmem>>, vector<1x8x8x256xbf16>
    %35 = vector.shape_cast %34 : vector<1x8x8x256xbf16> to vector<8x8x256xbf16>
    %36 = vector.shape_cast %35 : vector<8x8x256xbf16> to vector<64x256xbf16>
    %c5 = arith.constant 5 : index
    %c0_35 = arith.constant 0 : index
    %c0_36 = arith.constant 0 : index
    %37 = vector.load %arg3[%c5, %c0_35, %c0_36] : memref<9x256x128xbf16, #tpu.memory_space<vmem>>, vector<1x256x128xbf16>
    %38 = vector.shape_cast %37 : vector<1x256x128xbf16> to vector<256x128xbf16>
    %cst_37 = arith.constant dense<0.000000e+00> : vector<64x128xf32>
    %39 = tpu.matmul %36, %38, %cst_37 {dimension_numbers = #tpu.dot_dimension_numbers<[1], [0], [0], [1], [0, 0, 1, 1], [], []>} : vector<64x256xbf16>, vector<256x128xbf16>, vector<64x128xf32> -> vector<64x128xf32>
    %40 = arith.addf %33, %39 : vector<64x128xf32>
    %c0_38 = arith.constant 0 : index
    %c1_39 = arith.constant 1 : index
    %c0_40 = arith.constant 0 : index
    %c0_41 = arith.constant 0 : index
    %41 = vector.load %arg2[%c0_38, %c1_39, %c0_40, %c0_41] : memref<1x36x9x256xbf16, #tpu.memory_space<vmem>>, vector<1x8x8x256xbf16>
    %42 = vector.shape_cast %41 : vector<1x8x8x256xbf16> to vector<8x8x256xbf16>
    %43 = vector.shape_cast %42 : vector<8x8x256xbf16> to vector<64x256xbf16>
    %c6 = arith.constant 6 : index
    %c0_42 = arith.constant 0 : index
    %c0_43 = arith.constant 0 : index
    %44 = vector.load %arg3[%c6, %c0_42, %c0_43] : memref<9x256x128xbf16, #tpu.memory_space<vmem>>, vector<1x256x128xbf16>
    %45 = vector.shape_cast %44 : vector<1x256x128xbf16> to vector<256x128xbf16>
    %cst_44 = arith.constant dense<0.000000e+00> : vector<64x128xf32>
    %46 = tpu.matmul %43, %45, %cst_44 {dimension_numbers = #tpu.dot_dimension_numbers<[1], [0], [0], [1], [0, 0, 1, 1], [], []>} : vector<64x256xbf16>, vector<256x128xbf16>, vector<64x128xf32> -> vector<64x128xf32>
    %47 = arith.addf %40, %46 : vector<64x128xf32>
    %c0_45 = arith.constant 0 : index
    %c10 = arith.constant 10 : index
    %c0_46 = arith.constant 0 : index
    %c0_47 = arith.constant 0 : index
    %48 = vector.load %arg2[%c0_45, %c10, %c0_46, %c0_47] : memref<1x36x9x256xbf16, #tpu.memory_space<vmem>>, vector<1x8x8x256xbf16>
    %49 = vector.shape_cast %48 : vector<1x8x8x256xbf16> to vector<8x8x256xbf16>
    %50 = vector.shape_cast %49 : vector<8x8x256xbf16> to vector<64x256xbf16>
    %c7 = arith.constant 7 : index
    %c0_48 = arith.constant 0 : index
    %c0_49 = arith.constant 0 : index
    %51 = vector.load %arg3[%c7, %c0_48, %c0_49] : memref<9x256x128xbf16, #tpu.memory_space<vmem>>, vector<1x256x128xbf16>
    %52 = vector.shape_cast %51 : vector<1x256x128xbf16> to vector<256x128xbf16>
    %cst_50 = arith.constant dense<0.000000e+00> : vector<64x128xf32>
    %53 = tpu.matmul %50, %52, %cst_50 {dimension_numbers = #tpu.dot_dimension_numbers<[1], [0], [0], [1], [0, 0, 1, 1], [], []>} : vector<64x256xbf16>, vector<256x128xbf16>, vector<64x128xf32> -> vector<64x128xf32>
    %54 = arith.addf %47, %53 : vector<64x128xf32>
    %c0_51 = arith.constant 0 : index
    %c1_52 = arith.constant 1 : index
    %c1_53 = arith.constant 1 : index
    %c0_54 = arith.constant 0 : index
    %55 = vector.load %arg2[%c0_51, %c1_52, %c1_53, %c0_54] : memref<1x36x9x256xbf16, #tpu.memory_space<vmem>>, vector<1x8x8x256xbf16>
    %56 = vector.shape_cast %55 : vector<1x8x8x256xbf16> to vector<8x8x256xbf16>
    %57 = vector.shape_cast %56 : vector<8x8x256xbf16> to vector<64x256xbf16>
    %c8 = arith.constant 8 : index
    %c0_55 = arith.constant 0 : index
    %c0_56 = arith.constant 0 : index
    %58 = vector.load %arg3[%c8, %c0_55, %c0_56] : memref<9x256x128xbf16, #tpu.memory_space<vmem>>, vector<1x256x128xbf16>
    %59 = vector.shape_cast %58 : vector<1x256x128xbf16> to vector<256x128xbf16>
    %cst_57 = arith.constant dense<0.000000e+00> : vector<64x128xf32>
    %60 = tpu.matmul %57, %59, %cst_57 {dimension_numbers = #tpu.dot_dimension_numbers<[1], [0], [0], [1], [0, 0, 1, 1], [], []>} : vector<64x256xbf16>, vector<256x128xbf16>, vector<64x128xf32> -> vector<64x128xf32>
    %61 = arith.addf %54, %60 : vector<64x128xf32>
    %c0_58 = arith.constant 0 : index
    %c0_59 = arith.constant 0 : index
    %62 = vector.load %arg4[%c0_58, %c0_59] : memref<1x128xf32, #tpu.memory_space<vmem>>, vector<1x128xf32>
    %63 = vector.broadcast %62 : vector<1x128xf32> to vector<64x128xf32>
    %64 = arith.addf %61, %63 : vector<64x128xf32>
    %cst_60 = arith.constant 0.000000e+00 : f32
    %65 = vector.broadcast %cst_60 : f32 to vector<64x128xf32>
    %66 = arith.maximumf %64, %65 : vector<64x128xf32>
    %67 = arith.truncf %66 : vector<64x128xf32> to vector<64x128xbf16>
    %c0_61 = arith.constant 0 : index
    %c0_62 = arith.constant 0 : index
    %c0_63 = arith.constant 0 : index
    %68 = vector.load %arg5[%c0_61, %c0_62, %c0_63] : memref<1x64x128xbf16, #tpu.memory_space<vmem>>, vector<1x64x128xbf16>
    %69 = vector.shape_cast %68 : vector<1x64x128xbf16> to vector<64x128xbf16>
    %70 = vector.shape_cast %67 : vector<64x128xbf16> to vector<1x64x128xbf16>
    tpu.vector_store %arg5[%c0_61, %c0_62, %c0_63], %70 {strides = array<i32>} : memref<1x64x128xbf16, #tpu.memory_space<vmem>>, vector<1x64x128xbf16>,
    return
  }
  func.func @transform_0(%arg0: i32, %arg1: i32) -> (i32, i32, i32, i32) {
    %c0_i32 = arith.constant 0 : i32
    %c0_i32_0 = arith.constant 0 : i32
    %c0_i32_1 = arith.constant 0 : i32
    %c0_i32_2 = arith.constant 0 : i32
    return %arg0, %c0_i32, %c0_i32_0, %c0_i32_1 : i32, i32, i32, i32
  }
  func.func @transform_1(%arg0: i32, %arg1: i32) -> (i32, i32, i32) {
    %c0_i32 = arith.constant 0 : i32
    %c0_i32_0 = arith.constant 0 : i32
    %c0_i32_1 = arith.constant 0 : i32
    return %c0_i32, %c0_i32_0, %arg1 : i32, i32, i32
  }
  func.func @transform_2(%arg0: i32, %arg1: i32) -> (i32, i32) {
    %c0_i32 = arith.constant 0 : i32
    %c0_i32_0 = arith.constant 0 : i32
    return %c0_i32, %arg1 : i32, i32
  }
  func.func @transform_3(%arg0: i32, %arg1: i32) -> (i32, i32, i32) {
    %c0_i32 = arith.constant 0 : i32
    %c0_i32_0 = arith.constant 0 : i32
    return %arg0, %c0_i32, %arg1 : i32, i32, i32
  }
}

module attributes {stable_mosaic.version = 11 : i64} {
  func.func @kernel(%arg0: i32, %arg1: i32, %arg2: memref<1x36x9x256xbf16, #tpu.memory_space<vmem>>, %arg3: memref<9x256x128xbf16, #tpu.memory_space<vmem>>, %arg4: memref<1x128xf32, #tpu.memory_space<vmem>>, %arg5: memref<1x64x128xbf16, #tpu.memory_space<vmem>>) attributes {dimension_semantics = [#tpu.dimension_semantics<parallel>, #tpu.dimension_semantics<parallel>], iteration_bounds = array<i64: 2, 3>, scalar_prefetch = 0 : i64, scratch_operands = 0 : i64, tpu.core_type = #tpu.core_type<tc>, window_params = [{transform_indices = @transform_0, window_bounds = array<i64: 1, 36, 9, 256>}, {transform_indices = @transform_1, window_bounds = array<i64: 9, 256, 128>}, {transform_indices = @transform_2, window_bounds = array<i64: 1, 128>}, {transform_indices = @transform_3, window_bounds = array<i64: 1, 64, 128>}]} {
    %c0 = arith.constant 0 : index
    %c0_0 = arith.constant 0 : index
    %c0_1 = arith.constant 0 : index
    %c0_2 = arith.constant 0 : index
    %0 = vector.load %arg2[%c0, %c0_0, %c0_1, %c0_2] : memref<1x36x9x256xbf16, #tpu.memory_space<vmem>>, vector<1x8x8x256xbf16>
    %1 = vector.shape_cast %0 : vector<1x8x8x256xbf16> to vector<8x8x256xbf16>
    %2 = vector.shape_cast %1 : vector<8x8x256xbf16> to vector<64x256xbf16>
    %c0_3 = arith.constant 0 : index
    %c0_4 = arith.constant 0 : index
    %c0_5 = arith.constant 0 : index
    %3 = vector.load %arg3[%c0_3, %c0_4, %c0_5] : memref<9x256x128xbf16, #tpu.memory_space<vmem>>, vector<1x256x128xbf16>
    %4 = vector.shape_cast %3 : vector<1x256x128xbf16> to vector<256x128xbf16>
    %cst = arith.constant dense<0.000000e+00> : vector<64x128xf32>
    %5 = tpu.matmul %2, %4, %cst {dimension_numbers = #tpu.dot_dimension_numbers<[1], [0], [0], [1], [0, 0, 1, 1], [], []>} : vector<64x256xbf16>, vector<256x128xbf16>, vector<64x128xf32> -> vector<64x128xf32>
    %c0_6 = arith.constant 0 : index
    %c9 = arith.constant 9 : index
    %c0_7 = arith.constant 0 : index
    %c0_8 = arith.constant 0 : index
    %6 = vector.load %arg2[%c0_6, %c9, %c0_7, %c0_8] : memref<1x36x9x256xbf16, #tpu.memory_space<vmem>>, vector<1x8x8x256xbf16>
    %7 = vector.shape_cast %6 : vector<1x8x8x256xbf16> to vector<8x8x256xbf16>
    %8 = vector.shape_cast %7 : vector<8x8x256xbf16> to vector<64x256xbf16>
    %c1 = arith.constant 1 : index
    %c0_9 = arith.constant 0 : index
    %c0_10 = arith.constant 0 : index
    %9 = vector.load %arg3[%c1, %c0_9, %c0_10] : memref<9x256x128xbf16, #tpu.memory_space<vmem>>, vector<1x256x128xbf16>
    %10 = vector.shape_cast %9 : vector<1x256x128xbf16> to vector<256x128xbf16>
    %cst_11 = arith.constant dense<0.000000e+00> : vector<64x128xf32>
    %11 = tpu.matmul %8, %10, %cst_11 {dimension_numbers = #tpu.dot_dimension_numbers<[1], [0], [0], [1], [0, 0, 1, 1], [], []>} : vector<64x256xbf16>, vector<256x128xbf16>, vector<64x128xf32> -> vector<64x128xf32>
    %12 = arith.addf %5, %11 : vector<64x128xf32>
    %c0_12 = arith.constant 0 : index
    %c0_13 = arith.constant 0 : index
    %c1_14 = arith.constant 1 : index
    %c0_15 = arith.constant 0 : index
    %13 = vector.load %arg2[%c0_12, %c0_13, %c1_14, %c0_15] : memref<1x36x9x256xbf16, #tpu.memory_space<vmem>>, vector<1x8x8x256xbf16>
    %14 = vector.shape_cast %13 : vector<1x8x8x256xbf16> to vector<8x8x256xbf16>
    %15 = vector.shape_cast %14 : vector<8x8x256xbf16> to vector<64x256xbf16>
    %c2 = arith.constant 2 : index
    %c0_16 = arith.constant 0 : index
    %c0_17 = arith.constant 0 : index
    %16 = vector.load %arg3[%c2, %c0_16, %c0_17] : memref<9x256x128xbf16, #tpu.memory_space<vmem>>, vector<1x256x128xbf16>
    %17 = vector.shape_cast %16 : vector<1x256x128xbf16> to vector<256x128xbf16>
    %cst_18 = arith.constant dense<0.000000e+00> : vector<64x128xf32>
    %18 = tpu.matmul %15, %17, %cst_18 {dimension_numbers = #tpu.dot_dimension_numbers<[1], [0], [0], [1], [0, 0, 1, 1], [], []>} : vector<64x256xbf16>, vector<256x128xbf16>, vector<64x128xf32> -> vector<64x128xf32>
    %19 = arith.addf %12, %18 : vector<64x128xf32>
    %c0_19 = arith.constant 0 : index
    %c18 = arith.constant 18 : index
    %c0_20 = arith.constant 0 : index
    %c0_21 = arith.constant 0 : index
    %20 = vector.load %arg2[%c0_19, %c18, %c0_20, %c0_21] : memref<1x36x9x256xbf16, #tpu.memory_space<vmem>>, vector<1x8x8x256xbf16>
    %21 = vector.shape_cast %20 : vector<1x8x8x256xbf16> to vector<8x8x256xbf16>
    %22 = vector.shape_cast %21 : vector<8x8x256xbf16> to vector<64x256xbf16>
    %c3 = arith.constant 3 : index
    %c0_22 = arith.constant 0 : index
    %c0_23 = arith.constant 0 : index
    %23 = vector.load %arg3[%c3, %c0_22, %c0_23] : memref<9x256x128xbf16, #tpu.memory_space<vmem>>, vector<1x256x128xbf16>
    %24 = vector.shape_cast %23 : vector<1x256x128xbf16> to vector<256x128xbf16>
    %cst_24 = arith.constant dense<0.000000e+00> : vector<64x128xf32>
    %25 = tpu.matmul %22, %24, %cst_24 {dimension_numbers = #tpu.dot_dimension_numbers<[1], [0], [0], [1], [0, 0, 1, 1], [], []>} : vector<64x256xbf16>, vector<256x128xbf16>, vector<64x128xf32> -> vector<64x128xf32>
    %26 = arith.addf %19, %25 : vector<64x128xf32>
    %c0_25 = arith.constant 0 : index
    %c27 = arith.constant 27 : index
    %c0_26 = arith.constant 0 : index
    %c0_27 = arith.constant 0 : index
    %27 = vector.load %arg2[%c0_25, %c27, %c0_26, %c0_27] : memref<1x36x9x256xbf16, #tpu.memory_space<vmem>>, vector<1x8x8x256xbf16>
    %28 = vector.shape_cast %27 : vector<1x8x8x256xbf16> to vector<8x8x256xbf16>
    %29 = vector.shape_cast %28 : vector<8x8x256xbf16> to vector<64x256xbf16>
    %c4 = arith.constant 4 : index
    %c0_28 = arith.constant 0 : index
    %c0_29 = arith.constant 0 : index
    %30 = vector.load %arg3[%c4, %c0_28, %c0_29] : memref<9x256x128xbf16, #tpu.memory_space<vmem>>, vector<1x256x128xbf16>
    %31 = vector.shape_cast %30 : vector<1x256x128xbf16> to vector<256x128xbf16>
    %cst_30 = arith.constant dense<0.000000e+00> : vector<64x128xf32>
    %32 = tpu.matmul %29, %31, %cst_30 {dimension_numbers = #tpu.dot_dimension_numbers<[1], [0], [0], [1], [0, 0, 1, 1], [], []>} : vector<64x256xbf16>, vector<256x128xbf16>, vector<64x128xf32> -> vector<64x128xf32>
    %33 = arith.addf %26, %32 : vector<64x128xf32>
    %c0_31 = arith.constant 0 : index
    %c18_32 = arith.constant 18 : index
    %c1_33 = arith.constant 1 : index
    %c0_34 = arith.constant 0 : index
    %34 = vector.load %arg2[%c0_31, %c18_32, %c1_33, %c0_34] : memref<1x36x9x256xbf16, #tpu.memory_space<vmem>>, vector<1x8x8x256xbf16>
    %35 = vector.shape_cast %34 : vector<1x8x8x256xbf16> to vector<8x8x256xbf16>
    %36 = vector.shape_cast %35 : vector<8x8x256xbf16> to vector<64x256xbf16>
    %c5 = arith.constant 5 : index
    %c0_35 = arith.constant 0 : index
    %c0_36 = arith.constant 0 : index
    %37 = vector.load %arg3[%c5, %c0_35, %c0_36] : memref<9x256x128xbf16, #tpu.memory_space<vmem>>, vector<1x256x128xbf16>
    %38 = vector.shape_cast %37 : vector<1x256x128xbf16> to vector<256x128xbf16>
    %cst_37 = arith.constant dense<0.000000e+00> : vector<64x128xf32>
    %39 = tpu.matmul %36, %38, %cst_37 {dimension_numbers = #tpu.dot_dimension_numbers<[1], [0], [0], [1], [0, 0, 1, 1], [], []>} : vector<64x256xbf16>, vector<256x128xbf16>, vector<64x128xf32> -> vector<64x128xf32>
    %40 = arith.addf %33, %39 : vector<64x128xf32>
    %c0_38 = arith.constant 0 : index
    %c1_39 = arith.constant 1 : index
    %c0_40 = arith.constant 0 : index
    %c0_41 = arith.constant 0 : index
    %41 = vector.load %arg2[%c0_38, %c1_39, %c0_40, %c0_41] : memref<1x36x9x256xbf16, #tpu.memory_space<vmem>>, vector<1x8x8x256xbf16>
    %42 = vector.shape_cast %41 : vector<1x8x8x256xbf16> to vector<8x8x256xbf16>
    %43 = vector.shape_cast %42 : vector<8x8x256xbf16> to vector<64x256xbf16>
    %c6 = arith.constant 6 : index
    %c0_42 = arith.constant 0 : index
    %c0_43 = arith.constant 0 : index
    %44 = vector.load %arg3[%c6, %c0_42, %c0_43] : memref<9x256x128xbf16, #tpu.memory_space<vmem>>, vector<1x256x128xbf16>
    %45 = vector.shape_cast %44 : vector<1x256x128xbf16> to vector<256x128xbf16>
    %cst_44 = arith.constant dense<0.000000e+00> : vector<64x128xf32>
    %46 = tpu.matmul %43, %45, %cst_44 {dimension_numbers = #tpu.dot_dimension_numbers<[1], [0], [0], [1], [0, 0, 1, 1], [], []>} : vector<64x256xbf16>, vector<256x128xbf16>, vector<64x128xf32> -> vector<64x128xf32>
    %47 = arith.addf %40, %46 : vector<64x128xf32>
    %c0_45 = arith.constant 0 : index
    %c10 = arith.constant 10 : index
    %c0_46 = arith.constant 0 : index
    %c0_47 = arith.constant 0 : index
    %48 = vector.load %arg2[%c0_45, %c10, %c0_46, %c0_47] : memref<1x36x9x256xbf16, #tpu.memory_space<vmem>>, vector<1x8x8x256xbf16>
    %49 = vector.shape_cast %48 : vector<1x8x8x256xbf16> to vector<8x8x256xbf16>
    %50 = vector.shape_cast %49 : vector<8x8x256xbf16> to vector<64x256xbf16>
    %c7 = arith.constant 7 : index
    %c0_48 = arith.constant 0 : index
    %c0_49 = arith.constant 0 : index
    %51 = vector.load %arg3[%c7, %c0_48, %c0_49] : memref<9x256x128xbf16, #tpu.memory_space<vmem>>, vector<1x256x128xbf16>
    %52 = vector.shape_cast %51 : vector<1x256x128xbf16> to vector<256x128xbf16>
    %cst_50 = arith.constant dense<0.000000e+00> : vector<64x128xf32>
    %53 = tpu.matmul %50, %52, %cst_50 {dimension_numbers = #tpu.dot_dimension_numbers<[1], [0], [0], [1], [0, 0, 1, 1], [], []>} : vector<64x256xbf16>, vector<256x128xbf16>, vector<64x128xf32> -> vector<64x128xf32>
    %54 = arith.addf %47, %53 : vector<64x128xf32>
    %c0_51 = arith.constant 0 : index
    %c1_52 = arith.constant 1 : index
    %c1_53 = arith.constant 1 : index
    %c0_54 = arith.constant 0 : index
    %55 = vector.load %arg2[%c0_51, %c1_52, %c1_53, %c0_54] : memref<1x36x9x256xbf16, #tpu.memory_space<vmem>>, vector<1x8x8x256xbf16>
    %56 = vector.shape_cast %55 : vector<1x8x8x256xbf16> to vector<8x8x256xbf16>
    %57 = vector.shape_cast %56 : vector<8x8x256xbf16> to vector<64x256xbf16>
    %c8 = arith.constant 8 : index
    %c0_55 = arith.constant 0 : index
    %c0_56 = arith.constant 0 : index
    %58 = vector.load %arg3[%c8, %c0_55, %c0_56] : memref<9x256x128xbf16, #tpu.memory_space<vmem>>, vector<1x256x128xbf16>
    %59 = vector.shape_cast %58 : vector<1x256x128xbf16> to vector<256x128xbf16>
    %cst_57 = arith.constant dense<0.000000e+00> : vector<64x128xf32>
    %60 = tpu.matmul %57, %59, %cst_57 {dimension_numbers = #tpu.dot_dimension_numbers<[1], [0], [0], [1], [0, 0, 1, 1], [], []>} : vector<64x256xbf16>, vector<256x128xbf16>, vector<64x128xf32> -> vector<64x128xf32>
    %61 = arith.addf %54, %60 : vector<64x128xf32>
    %c0_58 = arith.constant 0 : index
    %c0_59 = arith.constant 0 : index
    %62 = vector.load %arg4[%c0_58, %c0_59] : memref<1x128xf32, #tpu.memory_space<vmem>>, vector<1x128xf32>
    %63 = vector.broadcast %62 : vector<1x128xf32> to vector<64x128xf32>
    %64 = arith.addf %61, %63 : vector<64x128xf32>
    %cst_60 = arith.constant 0.000000e+00 : f32
    %65 = vector.broadcast %cst_60 : f32 to vector<64x128xf32>
    %66 = arith.maximumf %64, %65 : vector<64x128xf32>
    %67 = arith.truncf %66 : vector<64x128xf32> to vector<64x128xbf16>
    %c0_61 = arith.constant 0 : index
    %c0_62 = arith.constant 0 : index
    %c0_63 = arith.constant 0 : index
    %68 = vector.load %arg5[%c0_61, %c0_62, %c0_63] : memref<1x64x128xbf16, #tpu.memory_space<vmem>>, vector<1x64x128xbf16>
    %69 = vector.shape_cast %68 : vector<1x64x128xbf16> to vector<64x128xbf16>
    %70 = vector.shape_cast %67 : vector<64x128xbf16> to vector<1x64x128xbf16>
    tpu.vector_store %arg5[%c0_61, %c0_62, %c0_63], %70 {strides = array<i32>} : memref<1x64x128xbf16, #tpu.memory_space<vmem>>, vector<1x64x128xbf16>,
    return
  }
  func.func @transform_0(%arg0: i32, %arg1: i32) -> (i32, i32, i32, i32) {
    %c0_i32 = arith.constant 0 : i32
    %c0_i32_0 = arith.constant 0 : i32
    %c0_i32_1 = arith.constant 0 : i32
    %c0_i32_2 = arith.constant 0 : i32
    return %arg0, %c0_i32, %c0_i32_0, %c0_i32_1 : i32, i32, i32, i32
  }
  func.func @transform_1(%arg0: i32, %arg1: i32) -> (i32, i32, i32) {
    %c0_i32 = arith.constant 0 : i32
    %c0_i32_0 = arith.constant 0 : i32
    %c0_i32_1 = arith.constant 0 : i32
    return %c0_i32, %c0_i32_0, %arg1 : i32, i32, i32
  }
  func.func @transform_2(%arg0: i32, %arg1: i32) -> (i32, i32) {
    %c0_i32 = arith.constant 0 : i32
    %c0_i32_0 = arith.constant 0 : i32
    return %c0_i32, %arg1 : i32, i32
  }
  func.func @transform_3(%arg0: i32, %arg1: i32) -> (i32, i32, i32) {
    %c0_i32 = arith.constant 0 : i32
    %c0_i32_0 = arith.constant 0 : i32
    return %arg0, %c0_i32, %arg1 : i32, i32, i32
  }
}

</mosaic_0001>

<bundles_post_ra>
// kernel: reduction_b_forward.11
= control target key start
LH: loop header
LB: loop body
LE: loop exit
PB: predicated region body
PF: predicated region fallthrough
CT: control target
= control target key end

     0   :  { %s779_s6 = smov 0   ;;  %s1043_s0 = inlined_call_operand.vmem [shape: bf16[2,36,9,32], index: 0, kind: input, shape index: {}]   ;;  %s1044_s1 = inlined_call_operand.vmem [shape: bf16[2,8,8,32], index: 1, kind: output, shape index: {}]  }
   0x1 LB: > { %s685_s7 = sadd.s32 4294967295, %s767_s6   ;;  %p689_p0 = scmp.ge.s32.totalorder %s767_s6, 1  ;;  %s767_s6 = sphi %s779_s6, %s11_s6  }
   0x2   : > { %p87_p1 = scmp.lt.s32.totalorder %s767_s6, 3 }
   0x4   : > { %p88_p2 = pnand %p689_p0, %p87_p1 }
   0x5   : > { %p107_p3 = scmp.lt.s32.totalorder (!%p88_p2), %s685_s7, 1  ;;  %vm150_vm0 = vsmask.f32 (!%p88_p2), 3328  ;;  %vm151_vm1 = vsmask.f32 (!%p88_p2), 7440  ;;  %vm621_vm3 = vcmask (!%p88_p2), 257024  }
   0x6   : > { %91 = sbr.rel (%p88_p2) target bundleno = 100 (0x64), region = 24  ;;  %vm809_vm2 = vmor (!%p88_p2), %vm150_vm0, %vm151_vm1 }
   0xd   : > { %s1048_s7 = smov (!%p107_p3, %s685_s7), 1 }
   0xe   : > { %s752_s8 = smul.u32 288, %s1048_s7  ;;  %s751_s12 = sshll.u32 %s1048_s7, 5 }
   0xf   : > { %s868_s15 = scalar_lea.vmem %s1044_s1, %s751_s12 }
  0x10   : > { %s793_s11 = scalar_lea.vmem %s1043_s0, %s752_s8 }
  0x11   : > { %v117_v0 = vld [vmem:[%s793_s11] sm:$0xf]  ;;  %v142_v1 = vld [vmem:[%s793_s11 + $0x4] sm:$0x1]  ;;  %v701_v5 = vld [vmem:[%s793_s11 + $0x90] sm:$0xf] }
  0x12   : > { %v154_v2 = vshrl.u32 %v117_v0, 16  ;;  %v157_v3 = vshll.u32 %v117_v0, 16  ;;  %v163_v4 = vshll.u32 %v142_v1, 16  ;;  %v693_v6 = vld [vmem:[%s793_s11 + $0x48] sm:$0xf]  ;;  %v324_v8 = vshrl.u32 %v701_v5, 16 }
  0x13   : > { %v717_v7 = vld [vmem:[%s793_s11 + $0x94] sm:$0x1]  ;;  %v327_v9 = vshll.u32 %v701_v5, 16  ;;  %v801_v13 = vld [vmem:[%s793_s11 + $0x8] sm:$0xf]  ;;  %v134_v22 = vmax.bf16 %v693_v6, %v117_v0 }
  0x14   : > { %v156_v10 = vrot.slane %v154_v2, 4  ;;  %v159_v11 = vrot.slane %v157_v3, 5  ;;  %v333_v12 = vshll.u32 %v717_v7, 16  ;;  %v326_v14 = vrot.slane %v324_v8, 4  ;;  %v741_v16 = vld [vmem:[%s793_s11 + $0xc] sm:$0x1] }
  0x15   : > { %v329_v15 = vrot.slane %v327_v9, 5  ;;  %v165_v18 = vrot.slane %v163_v4, 5  ;;  %v494_v19 = vshrl.u32 %v801_v13, 16  ;;  %v497_v20 = vshll.u32 %v801_v13, 16  ;;  %v118_v21 = vld [vmem:[%s793_s11 + $0x8] sm:$0xf] }
  0x16   : > { %v160_v17 = vor.u32 %v159_v11, %v156_v10  ;;  %v503_v25 = vshll.u32 %v741_v16, 16  ;;  %v694_v26 = vld [vmem:[%s793_s11 + $0x50] sm:$0xf]  ;;  %v143_v27 = vld [vmem:[%s793_s11 + $0xc] sm:$0x1]  ;;  %v168_v28 = vshrl.u32 %v118_v21, 16 }
  0x17   : > { %v330_v24 = vor.u32 %v329_v15, %v326_v14  ;;  %v335_v30 = vrot.slane %v333_v12, 5  ;;  %v496_v31 = vrot.slane %v494_v19, 4  ;;  %v499_v32 = vrot.slane %v497_v20, 5  ;;  %v816_v33 = vld [vmem:[%s793_s11 + $0x98] sm:$0xf] }
  0x18   : > { %v161_v29 = vrot.slane %v160_v17, 4  ;;  %v135_v35 = vmax.bf16 %v694_v26, %v118_v21  ;;  %v170_v36 = vrot.slane %v168_v28, 4  ;;  %v171_v37 = vshll.u32 %v118_v21, 16  ;;  %v718_v41 = vld [vmem:[%s793_s11 + $0x9c] sm:$0x1] }
  0x19   : > { %v331_v34 = vrot.slane %v330_v24, 4  ;;  %v500_v39 = vor.u32 %v499_v32, %v496_v31  ;;  %v177_v40 = vshll.u32 %v143_v27, 16  ;;  %v338_v42 = vshrl.u32 %v816_v33, 16  ;;  %v823_v43 = vld [vmem:[%s793_s11 + $0x10] sm:$0xf] }
  0x1a   : > { %v166_v38 = vsel %vm809_vm2, %v161_v29, %v165_v18  ;;  %v825_v45 = vrot.slane %v503_v25, 5  ;;  %v173_v46 = vrot.slane %v171_v37, 5  ;;  %v341_v47 = vshll.u32 %v816_v33, 16  ;;  %v742_v48 = vld [vmem:[%s793_s11 + $0x14] sm:$0x1] }
  0x1b   : > { %v273_v44 = vmax.bf16 %v166_v38, %v134_v22  ;;  %v709_v49 = vld [vmem:[%s793_s11 + $0xd8] sm:$0xf]  ;;  %v501_v50 = vrot.slane %v500_v39, 4  ;;  %v179_v51 = vrot.slane %v177_v40, 5  ;;  %v340_v52 = vrot.slane %v338_v42, 4 }
  0x1c   : > { %v347_v53 = vshll.u32 %v718_v41, 16  ;;  %v174_v55 = vor.u32 %v173_v46, %v170_v36  ;;  %v343_v56 = vrot.slane %v341_v47, 5  ;;  %v508_v57 = vshrl.u32 %v823_v43, 16  ;;  %v832_v58 = vld [vmem:[%s793_s11 + $0x10] sm:$0xf] }
  0x1d   : > { %v290_v54 = vmax.bf16 %v701_v5, %v273_v44  ;;  %v336_v59 = vsel %vm809_vm2, %v331_v34, %v335_v30  ;;  %v511_v61 = vshll.u32 %v823_v43, 16  ;;  %v517_v62 = vshll.u32 %v742_v48, 16  ;;  %v144_v3 = vld [vmem:[%s793_s11 + $0x14] sm:$0x1]  ;;  %v845_v8 = vld [vmem:[%s793_s11 + $0xa0] sm:$0xf] }
  0x1e   : > { %v349_v60 = vrot.slane %v347_v53, 5  ;;  %v175_v0 = vrot.slane %v174_v55, 4  ;;  %v344_v1 = vor.u32 %v343_v56, %v340_v52  ;;  %v510_v2 = vrot.slane %v508_v57, 4  ;;  %v733_v10 = vld [vmem:[%s793_s11 + $0x50] sm:$0xf] }
  0x1f   : > { %v307_v63 = vmax.bf16 %v709_v49, %v290_v54  ;;  %v506_v4 = vsel %vm809_vm2, %v501_v50, %v825_v45  ;;  %v513_v5 = vrot.slane %v511_v61, 5  ;;  %v841_v6 = vrot.slane %v517_v62, 5  ;;  %v710_v16 = vld [vmem:[%s793_s11 + $0xe0] sm:$0xf]  ;;  %v719_v20 = vld [vmem:[%s793_s11 + $0xa4] sm:$0x1] }
  0x20   : > { %v182_v7 = vshrl.u32 %v832_v58, 16  ;;  %v180_v11 = vsel %vm809_vm2, %v175_v0, %v179_v51  ;;  %v345_v12 = vrot.slane %v344_v1, 4  ;;  %v185_v14 = vshll.u32 %v832_v58, 16  ;;  %v695_v24 = vld [vmem:[%s793_s11 + $0x58] sm:$0xf] }
  0x21   : > { %v443_v9 = vmax.bf16 %v336_v59, %v307_v63  ;;  %v274_v15 = vmax.bf16 %v180_v11, %v135_v35  ;;  %v514_v17 = vor.u32 %v513_v5, %v510_v2  ;;  %v191_v19 = vshll.u32 %v144_v3, 16  ;;  %v860_v27 = vld [vmem:[%s793_s11 + $0x18] sm:$0xf]  ;;  %v743_v36 = vld [vmem:[%s793_s11 + $0x1c] sm:$0x1] }
  0x22   : > { %v184_v18 = vrot.slane %v182_v7, 4  ;;  %v350_v22 = vsel %vm809_vm2, %v345_v12, %v349_v60  ;;  %v187_v25 = vrot.slane %v185_v14, 5  ;;  %v352_v26 = vshrl.u32 %v845_v8, 16  ;;  %v873_v40 = vld [vmem:[%s793_s11 + $0x18] sm:$0xf] }
  0x23   : > { %v460_v21 = vmax.bf16 %v801_v13, %v443_v9  ;;  %v291_v28 = vmax.bf16 %v816_v33, %v274_v15  ;;  %v515_v29 = vrot.slane %v514_v17, 4  ;;  %v193_v30 = vrot.slane %v191_v19, 5  ;;  %v880_v46 = vld [vmem:[%s793_s11 + $0x60] sm:$0xf]  ;;  %v734_v48 = vld [vmem:[%s793_s11 + $0x58] sm:$0xf] }
  0x24   : > { %v355_v31 = vshll.u32 %v845_v8, 16  ;;  %v188_v34 = vor.u32 %v187_v25, %v184_v18  ;;  %v354_v13 = vrot.slane %v352_v26, 4  ;;  %v361_v35 = vshll.u32 %v719_v20, 16  ;;  %v145_v52 = vld [vmem:[%s793_s11 + $0x1c] sm:$0x1] }
  0x25   : > { %v477_v32 = vmax.bf16 %v733_v10, %v460_v21  ;;  %v308_v37 = vmax.bf16 %v710_v16, %v291_v28  ;;  %v136_v33 = vmax.bf16 %v695_v24, %v832_v58  ;;  %v522_v39 = vshrl.u32 %v860_v27, 16  ;;  %v890_v57 = vld [vmem:[%s793_s11 + $0xa8] sm:$0xf]  ;;  %v720_v3 = vld [vmem:[%s793_s11 + $0xac] sm:$0x1] }
  0x26   : > { %v357_v38 = vrot.slane %v355_v31, 5  ;;  %v520_v42 = vsel %vm809_vm2, %v515_v29, %v841_v6  ;;  %v189_v44 = vrot.slane %v188_v34, 4  ;;  %v525_v45 = vshll.u32 %v860_v27, 16  ;;  %v711_v60 = vld [vmem:[%s793_s11 + $0xe8] sm:$0xf] }
  0x27   : > { %v613_v41 = vmax.bf16 %v506_v4, %v477_v32  ;;  %v444_v47 = vmax.bf16 %v350_v22, %v308_v37  ;;  %v524_v50 = vrot.slane %v522_v39, 4  ;;  %v531_v51 = vshll.u32 %v743_v36, 16  ;;  %v901_v7 = vld [vmem:[%s793_s11 + $0x20] sm:$0xf]  ;;  %v744_v14 = vld [vmem:[%s793_s11 + $0x24] sm:$0x1] }
  0x28   : > { %v358_v49 = vor.u32 %v357_v38, %v354_v13  ;;  %v194_v53 = vsel %vm809_vm2, %v189_v44, %v193_v30  ;;  %v363_v54 = vrot.slane %v361_v35, 5  ;;  %v527_v55 = vrot.slane %v525_v45, 5  ;;  %v909_v22 = vld [vmem:[%s793_s11 + $0x20] sm:$0xf]  ;;  %v146_v29 = vld [vmem:[%s793_s11 + $0x24] sm:$0x1] }
  0x29   : > { %622 = vst.msk [vmem:[%s868_s15] sm:$0xf] %vm621_vm3, %v613_v41  ;;  %v196_v56 = vshrl.u32 %v873_v40, 16  ;;  %v461_v58 = vmax.bf16 %v823_v43, %v444_v47  ;;  %v275_v59 = vmax.bf16 %v194_v53, %v136_v33  ;;  %v137_v62 = vmax.bf16 %v880_v46, %v873_v40  ;;  %v735_v30 = vld [vmem:[%s793_s11 + $0x60] sm:$0xf] }
  0x2a   : > { %v359_v61 = vrot.slane %v358_v49, 4  ;;  %v528_v63 = vor.u32 %v527_v55, %v524_v50  ;;  %v199_v1 = vshll.u32 %v873_v40, 16  ;;  %v205_v2 = vshll.u32 %v145_v52, 16  ;;  %v923_v38 = vld [vmem:[%s793_s11 + $0xb0] sm:$0xf] }
  0x2b   : > { %v198_v0 = vrot.slane %v196_v56, 4  ;;  %v478_v4 = vmax.bf16 %v734_v48, %v461_v58  ;;  %v292_v5 = vmax.bf16 %v845_v8, %v275_v59  ;;  %v533_v6 = vrot.slane %v531_v51, 5  ;;  %v712_v40 = vld [vmem:[%s793_s11 + $0xf0] sm:$0xf]  ;;  %v721_v48 = vld [vmem:[%s793_s11 + $0xb4] sm:$0x1] }
  0x2c   : > { %v366_v43 = vshrl.u32 %v890_v57, 16  ;;  %v364_v9 = vsel %vm809_vm2, %v359_v61, %v363_v54  ;;  %v529_v10 = vrot.slane %v528_v63, 4  ;;  %v201_v11 = vrot.slane %v199_v1, 5  ;;  %v931_v49 = vld [vmem:[%s793_s11 + $0x28] sm:$0xf] }
  0x2d   : > { %v369_v12 = vshll.u32 %v890_v57, 16  ;;  %v614_v15 = vmax.bf16 %v520_v42, %v478_v4  ;;  %v309_v16 = vmax.bf16 %v711_v60, %v292_v5  ;;  %v375_v17 = vshll.u32 %v720_v3, 16  ;;  %v697_v51 = vld [vmem:[%s793_s11 + $0x68] sm:$0xf]  ;;  %v745_v63 = vld [vmem:[%s793_s11 + $0x2c] sm:$0x1] }
  0x2e   : > { %v368_v8 = vrot.slane %v366_v43, 4  ;;  %v202_v18 = vor.u32 %v201_v11, %v198_v0  ;;  %v207_v19 = vrot.slane %v205_v2, 5  ;;  %v536_v21 = vshrl.u32 %v901_v7, 16  ;;  %v122_v4 = vld [vmem:[%s793_s11 + $0x28] sm:$0xf] }
  0x2f   : > { %v371_v20 = vrot.slane %v369_v12, 5  ;;  %623 = vst.msk [vmem:[%s868_s15 + $0x4] sm:$0xf] %vm621_vm3, %v614_v15  ;;  %v445_v24 = vmax.bf16 %v364_v9, %v309_v16  ;;  %v534_v25 = vsel %vm809_vm2, %v529_v10, %v533_v6  ;;  %v539_v26 = vshll.u32 %v901_v7, 16  ;;  %v698_v5 = vld [vmem:[%s793_s11 + $0x70] sm:$0xf] }
  0x30   : > { %v545_v28 = vshll.u32 %v744_v14, 16  ;;  %v203_v31 = vrot.slane %v202_v18, 4  ;;  %v377_v34 = vrot.slane %v375_v17, 5  ;;  %v538_v13 = vrot.slane %v536_v21, 4  ;;  %v147_v16 = vld [vmem:[%s793_s11 + $0x2c] sm:$0x1] }
  0x31   : > { %v372_v32 = vor.u32 %v371_v20, %v368_v8  ;;  %v462_v35 = vmax.bf16 %v860_v27, %v445_v24  ;;  %v541_v36 = vrot.slane %v539_v26, 5  ;;  %v210_v33 = vshrl.u32 %v909_v22, 16  ;;  %v952_v8 = vld [vmem:[%s793_s11 + $0xb8] sm:$0xf]  ;;  %v736_v17 = vld [vmem:[%s793_s11 + $0x68] sm:$0xf] }
  0x32   : > { %v919_v37 = vrot.slane %v545_v28, 5  ;;  %v208_v39 = vsel %vm809_vm2, %v203_v31, %v207_v19  ;;  %v213_v42 = vshll.u32 %v909_v22, 16  ;;  %v219_v44 = vshll.u32 %v146_v29, 16 }
  0x33   : > { %v373_v41 = vrot.slane %v372_v32, 4  ;;  %v479_v45 = vmax.bf16 %v735_v30, %v462_v35  ;;  %v276_v46 = vmax.bf16 %v208_v39, %v137_v62  ;;  %v542_v47 = vor.u32 %v541_v36, %v538_v13  ;;  %v722_v32 = vld [vmem:[%s793_s11 + $0xbc] sm:$0x1] }
  0x34   : > { %v212_v27 = vrot.slane %v210_v33, 4  ;;  %v215_v52 = vrot.slane %v213_v42, 5  ;;  %v221_v53 = vrot.slane %v219_v44, 5  ;;  %v380_v54 = vshrl.u32 %v923_v38, 16  ;;  %v746_v42 = vld [vmem:[%s793_s11 + $0x34] sm:$0x1] }
  0x35   : > { %v378_v50 = vsel %vm809_vm2, %v373_v41, %v377_v34  ;;  %v615_v55 = vmax.bf16 %v534_v25, %v479_v45  ;;  %v293_v56 = vmax.bf16 %v890_v57, %v276_v46  ;;  %v543_v58 = vrot.slane %v542_v47, 4  ;;  %v713_v25 = vld [vmem:[%s793_s11 + $0xf8] sm:$0xf] }
  0x36   : > { %v383_v59 = vshll.u32 %v923_v38, 16  ;;  %v216_v60 = vor.u32 %v215_v52, %v212_v27  ;;  %v382_v61 = vrot.slane %v380_v54, 4  ;;  %v389_v62 = vshll.u32 %v721_v48, 16 }
  0x37   : > { %v550_v0 = vshrl.u32 %v931_v49, 16  ;;  %624 = vst.msk [vmem:[%s868_s15 + $0x8] sm:$0xf] %vm621_vm3, %v615_v55  ;;  %v310_v1 = vmax.bf16 %v712_v40, %v293_v56  ;;  %v138_v2 = vmax.bf16 %v697_v51, %v909_v22  ;;  %v553_v57 = vshll.u32 %v931_v49, 16  ;;  %v972_v51 = vld [vmem:[%s793_s11 + $0x30] sm:$0xf] }
  0x38   : > { %v385_v3 = vrot.slane %v383_v59, 5  ;;  %v548_v6 = vsel %vm809_vm2, %v543_v58, %v919_v37  ;;  %v217_v43 = vrot.slane %v216_v60, 4  ;;  %v391_v9 = vrot.slane %v389_v62, 5  ;;  %v148_v55 = vld [vmem:[%s793_s11 + $0x34] sm:$0x1] }
  0x39   : > { %v552_v10 = vrot.slane %v550_v0, 4  ;;  %v446_v11 = vmax.bf16 %v378_v50, %v310_v1  ;;  %v555_v14 = vrot.slane %v553_v57, 5  ;;  %v559_v15 = vshll.u32 %v745_v63, 16  ;;  %v737_v56 = vld [vmem:[%s793_s11 + $0x70] sm:$0xf] }
  0x3a   : > { %v386_v12 = vor.u32 %v385_v3, %v382_v61  ;;  %v222_v18 = vsel %vm809_vm2, %v217_v43, %v221_v53  ;;  %v139_v19 = vmax.bf16 %v698_v5, %v122_v4  ;;  %v224_v20 = vshrl.u32 %v122_v4, 16  ;;  %v981_v62 = vld [vmem:[%s793_s11 + $0xc0] sm:$0xf] }
  0x3b   : > { %v227_v21 = vshll.u32 %v122_v4, 16  ;;  %v463_v22 = vmax.bf16 %v901_v7, %v446_v11  ;;  %v277_v24 = vmax.bf16 %v222_v18, %v138_v2  ;;  %v556_v28 = vor.u32 %v555_v14, %v552_v10  ;;  %v965_v7 = vld [vmem:[%s793_s11 + $0x30] sm:$0xf]  ;;  %v714_v3 = vld [vmem:[%s793_s11 + $0x100] sm:$0xf] }
  0x3c   : > { %v387_v26 = vrot.slane %v386_v12, 4  ;;  %v226_v29 = vrot.slane %v224_v20, 4  ;;  %v233_v31 = vshll.u32 %v147_v16, 16  ;;  %v394_v34 = vshrl.u32 %v952_v8, 16  ;;  %v993_v12 = vld [vmem:[%s793_s11 + $0x38] sm:$0xf] }
  0x3d   : > { %v229_v30 = vrot.slane %v227_v21, 5  ;;  %v480_v13 = vmax.bf16 %v736_v17, %v463_v22  ;;  %v294_v35 = vmax.bf16 %v923_v38, %v277_v24  ;;  %v561_v37 = vrot.slane %v559_v15, 5  ;;  %v699_v17 = vld [vmem:[%s793_s11 + $0x78] sm:$0xf]  ;;  %v747_v22 = vld [vmem:[%s793_s11 + $0x3c] sm:$0x1] }
  0x3e   : > { %v392_v36 = vsel %vm809_vm2, %v387_v26, %v391_v9  ;;  %v235_v39 = vrot.slane %v233_v31, 5  ;;  %v396_v40 = vrot.slane %v394_v34, 4  ;;  %v397_v41 = vshll.u32 %v952_v8, 16  ;;  %v738_v24 = vld [vmem:[%s793_s11 + $0x78] sm:$0xf] }
  0x3f   : > { %v230_v33 = vor.u32 %v229_v30, %v226_v29  ;;  %v616_v44 = vmax.bf16 %v548_v6, %v480_v13  ;;  %v311_v45 = vmax.bf16 %v713_v25, %v294_v35  ;;  %v557_v46 = vrot.slane %v556_v28, 4  ;;  %v124_v13 = vld [vmem:[%s793_s11 + $0x38] sm:$0xf]  ;;  %v149_v35 = vld [vmem:[%s793_s11 + $0x3c] sm:$0x1] }
  0x40   : > { %v403_v38 = vshll.u32 %v722_v32, 16  ;;  %v399_v27 = vrot.slane %v397_v41, 5  ;;  %v564_v48 = vshrl.u32 %v965_v7, 16  ;;  %v567_v50 = vshll.u32 %v965_v7, 16 }
  0x41   : > { %v231_v47 = vrot.slane %v230_v33, 4  ;;  %625 = vst.msk [vmem:[%s868_s15 + $0xc] sm:$0xf] %vm621_vm3, %v616_v44  ;;  %v447_v52 = vmax.bf16 %v392_v36, %v311_v45  ;;  %v573_v54 = vshll.u32 %v746_v42, 16  ;;  %v562_v0 = vsel %vm809_vm2, %v557_v46, %v561_v37  ;;  %v708_v46 = vld [vmem:[%s793_s11 + $0xc8] sm:$0xf] }
  0x42   : > { %v405_v53 = vrot.slane %v403_v38, 5  ;;  %v400_v59 = vor.u32 %v399_v27, %v396_v40  ;;  %v566_v60 = vrot.slane %v564_v48, 4  ;;  %v569_v61 = vrot.slane %v567_v50, 5  ;;  %v700_v40 = vld [vmem:[%s793_s11 + $0x80] sm:$0xf] }
  0x43   : > { %v236_v58 = vsel %vm809_vm2, %v231_v47, %v235_v39  ;;  %v464_v63 = vmax.bf16 %v931_v49, %v447_v52  ;;  %v238_v2 = vshrl.u32 %v972_v51, 16  ;;  %v241_v5 = vshll.u32 %v972_v51, 16  ;;  %v723_v49 = vld [vmem:[%s793_s11 + $0xc4] sm:$0x1]  ;;  %v715_v52 = vld [vmem:[%s793_s11 + $0x108] sm:$0xf] }
  0x44   : > { %v278_v1 = vmax.bf16 %v236_v58, %v139_v19  ;;  %v401_v57 = vrot.slane %v400_v59, 4  ;;  %v570_v4 = vor.u32 %v569_v61, %v566_v60  ;;  %v247_v6 = vshll.u32 %v148_v55, 16  ;;  %v724_v55 = vld [vmem:[%s793_s11 + $0xcc] sm:$0x1]  ;;  %v732_v60 = vld [vmem:[%s793_s11 + $0x40] sm:$0xf] }
  0x45   : > { %v481_v43 = vmax.bf16 %v737_v56, %v464_v63  ;;  %v240_v10 = vrot.slane %v238_v2, 4  ;;  %v408_v11 = vshrl.u32 %v981_v62, 16  ;;  %v575_v16 = vrot.slane %v573_v54, 5  ;;  %v748_v2 = vld [vmem:[%s793_s11 + $0x44] sm:$0x1] }
  0x46   : > { %v295_v9 = vmax.bf16 %v952_v8, %v278_v1  ;;  %v406_v14 = vsel %vm809_vm2, %v401_v57, %v405_v53  ;;  %v571_v15 = vrot.slane %v570_v4, 4  ;;  %v243_v18 = vrot.slane %v241_v5, 5 }
  0x47   : > { %v617_v19 = vmax.bf16 %v562_v0, %v481_v43  ;;  %v410_v21 = vrot.slane %v408_v11, 4  ;;  %v411_v8 = vshll.u32 %v981_v62, 16  ;;  %v249_v26 = vrot.slane %v247_v6, 5 }
  0x48   : > { %v312_v20 = vmax.bf16 %v714_v3, %v295_v9  ;;  %v244_v25 = vor.u32 %v243_v18, %v240_v10  ;;  %v417_v28 = vshll.u32 %v723_v49, 16  ;;  %v578_v29 = vshrl.u32 %v993_v12, 16  ;;  %v739_v18 = vld [vmem:[%s793_s11 + $0x80] sm:$0xf] }
  0x49   : > { %626 = vst.msk [vmem:[%s868_s15 + $0x10] sm:$0xf] %vm621_vm3, %v617_v19  ;;  %v140_v31 = vmax.bf16 %v699_v17, %v972_v51  ;;  %v413_v32 = vrot.slane %v411_v8, 5  ;;  %v581_v34 = vshll.u32 %v993_v12, 16  ;;  %v576_v36 = vsel %vm809_vm2, %v571_v15, %v575_v16 }
  0x4a   : > { %v448_v30 = vmax.bf16 %v406_v14, %v312_v20  ;;  %v245_v37 = vrot.slane %v244_v25, 4  ;;  %v580_v33 = vrot.slane %v578_v29, 4  ;;  %v587_v39 = vshll.u32 %v747_v22, 16 }
  0x4b   : > { %v414_v42 = vor.u32 %v413_v32, %v410_v21  ;;  %v419_v44 = vrot.slane %v417_v28, 5  ;;  %v583_v45 = vrot.slane %v581_v34, 5  ;;  %v252_v47 = vshrl.u32 %v124_v13, 16  ;;  %v716_v28 = vld [vmem:[%s793_s11 + $0x110] sm:$0xf] }
  0x4c   : > { %v465_v41 = vmax.bf16 %v965_v7, %v448_v30  ;;  %v250_v38 = vsel %vm809_vm2, %v245_v37, %v249_v26  ;;  %v255_v27 = vshll.u32 %v124_v13, 16  ;;  %v261_v48 = vshll.u32 %v149_v35, 16  ;;  %v740_v37 = vld [vmem:[%s793_s11 + $0x88] sm:$0xf] }
  0x4d   : > { %v279_v51 = vmax.bf16 %v250_v38, %v140_v31  ;;  %v415_v53 = vrot.slane %v414_v42, 4  ;;  %v141_v54 = vmax.bf16 %v700_v40, %v124_v13  ;;  %v584_v7 = vor.u32 %v583_v45, %v580_v33 }
  0x4e   : > { %v482_v50 = vmax.bf16 %v738_v24, %v465_v41  ;;  %v254_v56 = vrot.slane %v252_v47, 4  ;;  %v257_v58 = vrot.slane %v255_v27, 5  ;;  %v422_v59 = vshrl.u32 %v708_v46, 16 }
  0x4f   : > { %v296_v63 = vmax.bf16 %v981_v62, %v279_v51  ;;  %v420_v0 = vsel %vm809_vm2, %v415_v53, %v419_v44  ;;  %v263_v1 = vrot.slane %v261_v48, 5  ;;  %v425_v4 = vshll.u32 %v708_v46, 16 }
  0x50   : > { %v618_v61 = vmax.bf16 %v576_v36, %v482_v50  ;;  %v258_v3 = vor.u32 %v257_v58, %v254_v56  ;;  %v424_v57 = vrot.slane %v422_v59, 4  ;;  %v431_v5 = vshll.u32 %v724_v55, 16 }
  0x51   : > { %v313_v6 = vmax.bf16 %v715_v52, %v296_v63  ;;  %v589_v43 = vrot.slane %v587_v39, 5  ;;  %v592_v9 = vshrl.u32 %v732_v60, 16  ;;  %v595_v10 = vshll.u32 %v732_v60, 16 }
  0x52   : > { %627 = vst.msk [vmem:[%s868_s15 + $0x14] sm:$0xf] %vm621_vm3, %v618_v61  ;;  %v585_v49 = vrot.slane %v584_v7, 4  ;;  %v259_v11 = vrot.slane %v258_v3, 4  ;;  %v427_v62 = vrot.slane %v425_v4, 5  ;;  %v601_v14 = vshll.u32 %v748_v2, 16 }
  0x53   : > { %v449_v15 = vmax.bf16 %v420_v0, %v313_v6  ;;  %v594_v16 = vrot.slane %v592_v9, 4  ;;  %v597_v17 = vrot.slane %v595_v10, 5  ;;  %v433_v21 = vrot.slane %v431_v5, 5 }
  0x54   : > { %v264_v19 = vsel %vm809_vm2, %v259_v11, %v263_v1  ;;  %v428_v20 = vor.u32 %v427_v62, %v424_v57  ;;  %v603_v25 = vrot.slane %v601_v14, 5  ;;  %v590_v26 = vsel %vm809_vm2, %v585_v49, %v589_v43 }
  0x55   : > { %v466_v8 = vmax.bf16 %v993_v12, %v449_v15  ;;  %v280_v22 = vmax.bf16 %v264_v19, %v141_v54  ;;  %v598_v24 = vor.u32 %v597_v17, %v594_v16 }
  0x56   : > { %v429_v29 = vrot.slane %v428_v20, 4 }
  0x57   : > { %v483_v30 = vmax.bf16 %v739_v18, %v466_v8  ;;  %v297_v31 = vmax.bf16 %v708_v46, %v280_v22  ;;  %v599_v32 = vrot.slane %v598_v24, 4 }
  0x58   : > { %v434_v34 = vsel %vm809_vm2, %v429_v29, %v433_v21 }
  0x59   : > { %v619_v13 = vmax.bf16 %v590_v26, %v483_v30  ;;  %v314_v35 = vmax.bf16 %v716_v28, %v297_v31  ;;  %v604_v12 = vsel %vm809_vm2, %v599_v32, %v603_v25 }
  0x5b   : > { %628 = vst.msk [vmem:[%s868_s15 + $0x18] sm:$0xf] %vm621_vm3, %v619_v13  ;;  %v450_v36 = vmax.bf16 %v434_v34, %v314_v35 }
  0x5d   : > { %v467_v33 = vmax.bf16 %v732_v60, %v450_v36 }
  0x5f   : > { %v484_v39 = vmax.bf16 %v740_v37, %v467_v33 }
  0x61   : > { %v620_v40 = vmax.bf16 %v604_v12, %v484_v39 }
  0x63   : > { %629 = vst.msk [vmem:[%s868_s15 + $0x1c] sm:$0xf] %vm621_vm3, %v620_v40 }
  0x64 PF: > { %s11_s6 = sadd.s32 1, %s767_s6  }
  0x65   : > { %p8_p4 = scmp.ge.s32.totalorder %s11_s6, 4  }
  0x67   :  { %10 = sbr.rel (!%p8_p4) target bundleno = 1 (0x1), region = 59 }

// kernel: reduction_b_forward.6
= control target key start
LH: loop header
LB: loop body
LE: loop exit
PB: predicated region body
PF: predicated region fallthrough
CT: control target
= control target key end

     0   :  { %s1100_s12 = smov 0   ;;  %s1102_s13 = smov 0   ;;  %s1308_s0 = inlined_call_operand.vmem [shape: bf16[512,32], index: 0, kind: input, shape index: {}]   ;;  %s1309_s1 = inlined_call_operand.vmem [shape: bf16[32,768], index: 1, kind: input, shape index: {}]   ;;  %s1310_s2 = inlined_call_operand.vmem [shape: f32[1,768], index: 2, kind: input, shape index: {}]   ;;  %s1311_s3 = inlined_call_operand.vmem [shape: bf16[512,768], index: 3, kind: output, shape index: {}]  }
   0x1   :  { %s1104_s14 = smov 0   ;;  %s1106_s15 = smov 0  }
   0x2   :  { %s1108_s16 = smov 0   ;;  %s1110_s17 = smov 0  }
   0x3   :  { %s1112_s18 = smov 0   ;;  %s1114_s19 = smov 0  }
   0x4   :  { %s1116_s20 = smov 0  }
   0x5 LB: > { %s842_s21 = sadd.s32 4294967295, %s1077_s20   ;;  %s22_s22 = sadd.s32 1, %s1069_s18  ;;  %s1077_s20 = sphi %s1116_s20, %s13_s20   ;;  %s1073_s19 = sphi %s1114_s19, %s1320_s19   ;;  %s1069_s18 = sphi %s1112_s18, %s1319_s18   ;;  %s1065_s17 = sphi %s1110_s17, %s1318_s17   ;;  %s1061_s16 = sphi %s1108_s16, %s1317_s16   ;;  %s1057_s15 = sphi %s1106_s15, %s1316_s15   ;;  %s1053_s14 = sphi %s1104_s14, %s1315_s14   ;;  %s1049_s13 = sphi %s1102_s13, %s1314_s13   ;;  %s1045_s12 = sphi %s1100_s12, %s1313_s12  }
   0x6   : > { %p23_p0 = scmp.ge.s32.totalorder %s22_s22, 3  ;;  %s25_s23 = sadd.s32 1, %s1073_s19 }
   0x7   : > { %s58_s24 = sadd.s32 1, %s1057_s15  ;;  %p65_p1 = scmp.ne.s32.totalorder %s1057_s15, %s1053_s14 }
   0x8   : > { %s1322_s22 = smov (%p23_p0, %s22_s22), 0  ;;  %s1324_s23 = smov (!%p23_p0, %s25_s23), %s1073_s19 }
   0x9   : > { %s55_s25 = ssub.s32 %s1069_s18, %s1322_s22  ;;  %p66_p2 = scmp.eq.s32.totalorder %s1077_s20, 0 }
   0xa   : > { %p27_p3 = scmp.ge.s32.totalorder %s1324_s23, 4  ;;  %p56_p4 = scmp.eq.s32.totalorder %s55_s25, 0 }
   0xb   : > { %p67_p5 = por %p66_p2, %p65_p1  ;;  %s112_s26 = sadd.s32 1, %s1049_s13 }
   0xc   : > { %s1326_s23 = smov (%p27_p3, %s1324_s23), 0  ;;  %p122_p6 = scmp.ne.s32.totalorder %s1049_s13, %s1045_s12 }
   0xd   : > { %s1161_s27 = scalar_select %p56_p4, %s1057_s15, %s58_s24  }
   0xe   : > { %s107_s28 = ssub.s32 %s1073_s19, %s1326_s23  ;;  %p123_p7 = scmp.eq.s32.totalorder %s842_s21, 11 }
   0xf   : > { %s109_s29 = sor.u32 %s107_s28, %s55_s25  ;;  %p845_p10 = scmp.ge.s32.totalorder %s1077_s20, 12 }
  0x10   : > { %p110_p8 = scmp.eq.s32.totalorder %s109_s29, 0  ;;  %p1167_p9 = por %p123_p7, %p122_p6 }
  0x11   : > { %145 = sbr.rel (%p845_p10) target bundleno = 31 (0x1f), region = 16 }
  0x12   : > { %s1172_s4 = scalar_select %p110_p8, %s1049_s13, %s112_s26  }
  0x18   : > { %157 = sbr.rel (!%p67_p5) target bundleno = 31 (0x1f), region = 24  ;;  %s159_s5 = sand.u32 (%p67_p5), 1, %s1057_s15  }
  0x19   : > { %s898_s6 = sshll.u32 (%p67_p5), %s1069_s18, 3  ;;  %s846_s7 = sshll.u32 (%p67_p5), %s159_s5, 5 }
  0x1a   : > { %s164_s10 = scalar_lea.vmem (%p67_p5), %s1309_s1, %s898_s6  ;;  %s161_s11 = scalar_lea.vmem (%p67_p5), [#allocation2], %s846_s7 }
  0x1b   : > { %v198_v0 = vld [vmem:[%s164_s10] sm:$0xff] (%p67_p5)  ;;  %v200_v1 = vld [vmem:[%s164_s10 + $0x18] sm:$0xff] (%p67_p5)  ;;  %v202_v2 = vld [vmem:[%s164_s10 + $0x30] sm:$0xff] (%p67_p5) }
  0x1c   : > { %199 = vst [vmem:[%s161_s11] sm:$0xff] (%p67_p5), %v198_v0  ;;  %201 = vst [vmem:[%s161_s11 + $0x8] sm:$0xff] (%p67_p5), %v200_v1  ;;  %v204_v3 = vld [vmem:[%s164_s10 + $0x48] sm:$0xff] (%p67_p5) }
  0x1d   : > { %203 = vst [vmem:[%s161_s11 + $0x10] sm:$0xff] (%p67_p5), %v202_v2  ;;  %205 = vst [vmem:[%s161_s11 + $0x18] sm:$0xff] (%p67_p5), %v204_v3 }
  0x1f PF: > { %p849_p11 = scmp.ge.s32.totalorder %s1077_s20, 1  ;;  %p218_p12 = scmp.lt.s32.totalorder %s1077_s20, 13 }
  0x21   : > { %p219_p13 = pnand %p849_p11, %p218_p12 }
  0x22   : > { %s225_s21 = sand.u32 (!%p219_p13), 1, %s1053_s14   ;;  %s852_s24 = sshll.u32 (!%p219_p13), %s1065_s17, 4  ;;  %v1079_v4 = vmov (!%p219_p13), 0   ;;  %vm363_vm0 = vcmask (!%p219_p13), 261120   ;;  %v293_v17 = vlaneseq (!%p219_p13) }
  0x23   : > { %222 = sbr.rel (%p219_p13) target bundleno = 301 (0x12d), region = 66  ;;  %s850_s25 = sshll.u32 (!%p219_p13), %s225_s21, 5  ;;  %420 = vmatprep.mubr.bf16.mxu0 (!%p219_p13), %v1079_v4  ;;  %460 = vmatprep.mubr.bf16.mxu1 (!%p219_p13), %v1079_v4 }
  0x24   : > { %p257_p0 = scmp.lt.s32.totalorder (!%p219_p13), %s852_s24, 63  ;;  %s227_s26 = scalar_lea.vmem (!%p219_p13), [#allocation2], %s850_s25  ;;  %v294_v18 = vshrl.u32 (!%p219_p13), %v293_v17, 7 }
  0x25   : > { %v993_v5 = vld [vmem:[%s227_s26 + $0x4] ss:$8 sps:$4 sm:$0xff] (!%p219_p13)   ;;  %v995_v6 = vld [vmem:[%s227_s26] ss:$8 sps:$4 sm:$0xff] (!%p219_p13)   ;;  %v996_v7 = vld [vmem:[%s227_s26 + $0x14] ss:$8 sps:$4 sm:$0xff] (!%p219_p13)  }
  0x26   : > { %388 = vmatprep.subr.bf16.mxu0 (!%p219_p13), %v993_v5  ;;  %915 = vmatprep.subr.bf16.mxu1 (!%p219_p13), %v993_v5  ;;  %v998_v8 = vld [vmem:[%s227_s26 + $0x10] ss:$8 sps:$4 sm:$0xff] (!%p219_p13)   ;;  %s1196_s6 = sshll.u32 (!%p219_p13), %s1061_s16, 1  ;;  %v295_v19 = vsub.s32 (!%p219_p13), 0, %v294_v18  ;;  %v299_v21 = vsub.s32 (!%p219_p13), 1, %v294_v18  ;;  %s253_s11 = sand.u32 (!%p219_p13), 1, %s1045_s12  }
  0x27   : > { %389 = vmatpush1.bf16.msra.mxu0 (!%p219_p13), %v995_v6  ;;  %917 = vmatpush1.bf16.msra.mxu1 (!%p219_p13), %v995_v6  ;;  %p264_p1 = scmp.lt.s32.totalorder (!%p219_p13), %s1196_s6, 5  ;;  %s851_s16 = sshll.u32 (!%p219_p13), %s253_s11, 7 }
  0x28   : > { %390 = vmatprep.subr.bf16.mxu0 (!%p219_p13), %v996_v7  ;;  %916 = vmatprep.subr.bf16.mxu1 (!%p219_p13), %v996_v7  ;;  %s1216_s12 = scalar_lea.vmem (!%p219_p13), [#allocation3], %s851_s16 }
  0x2a   : > { %s1328_s24 = smov (!%p257_p0, %s852_s24), 63  ;;  %s919_s21 = smul.u32 (%p1167_p9), 96, %s1065_s17 }
  0x2b   : > { %s853_s28 = sshll.u32 %s1328_s24, 2  ;;  %391 = vmatpush1.bf16.msra.mxu0 %v998_v8  ;;  %918 = vmatpush1.bf16.msra.mxu1 %v998_v8 }
  0x2c   : > { %s260_s14 = scalar_lea.vmem %s1308_s0, %s853_s28  ;;  %s655_s30 = sadd.s32 (%p1167_p9), %s919_s21, %s1196_s6 }
  0x2d   : > { %v999_v9 = vld [vmem:[%s260_s14] sm:$0xff]   ;;  %v1001_v11 = vld [vmem:[%s260_s14 + $0x8] sm:$0xff]   ;;  %v1003_v13 = vld [vmem:[%s260_s14 + $0x10] sm:$0xff]   ;;  %s265_s7 = scalar_select %p264_p1, %s1196_s6, 5 }
  0x2e   : > { %v1000_v10 = vld [vmem:[%s260_s14 + $0x20] sm:$0xff]   ;;  %867 = vmatmul.mubr.msk.bf16.vlgmr.msra.gmra.mrb[0].mxu0 %vm363_vm0, %v999_v9  ;;  %v1002_v12 = vld [vmem:[%s260_s14 + $0x28] sm:$0xff]   ;;  %v1004_v14 = vld [vmem:[%s260_s14 + $0x30] sm:$0xff]   ;;  %s895_s24 = sshll.u32 (%p1167_p9), %s655_s30, 2 }
  0x2f   : > { %871 = vmatmul.mubr.msk.bf16.vlgmr.msra.gmra.mrb[0].mxu1 %vm363_vm0, %v1000_v10  ;;  %430 = vmatprep.mubr.bf16.mxu0 %v1079_v4  ;;  %v1005_v15 = vld [vmem:[%s260_s14 + $0x18] sm:$0xff]   ;;  %s266_s10 = scalar_lea.vmem %s1310_s2, %s265_s7  ;;  %s657_s17 = scalar_lea.vmem (%p1167_p9), %s1311_s3, %s895_s24 }
  0x30   : > { %470 = vmatprep.mubr.bf16.mxu1 %v1079_v4  ;;  %v1006_v16 = vld [vmem:[%s260_s14 + $0x38] sm:$0xff]   ;;  %v291_v20 = vld [vmem:[%s266_s10] sm:$0x3] }
  0x31   : > { %v1203_v22 = vrot.slane %v291_v20, %v295_v19  ;;  %v1205_v23 = vrot.slane %v291_v20, %v299_v21 }
  0x36   : > { %868 = vmatmul.mubr.msk.bf16.gmra.mrb[4].mxu0 %vm363_vm0, %v1001_v11 }
  0x37   : > { %872 = vmatmul.mubr.msk.bf16.gmra.mrb[4].mxu1 %vm363_vm0, %v1002_v12  ;;  %440 = vmatprep.mubr.bf16.mxu0 %v1079_v4 }
  0x38   : > { %480 = vmatprep.mubr.bf16.mxu1 %v1079_v4 }
  0x3e   : > { %869 = vmatmul.mubr.msk.bf16.gmra.mrb[8].mxu0 %vm363_vm0, %v1003_v13 }
  0x3f   : > { %873 = vmatmul.mubr.msk.bf16.gmra.mrb[8].mxu1 %vm363_vm0, %v1004_v14  ;;  %450 = vmatprep.mubr.bf16.mxu0 %v1079_v4 }
  0x40   : > { %490 = vmatprep.mubr.bf16.mxu1 %v1079_v4 }
  0x46   : > { %870 = vmatmul.mubr.msk.bf16.gmra.mrb[12].mxu0 %vm363_vm0, %v1005_v15 }
  0x47   : > { %874 = vmatmul.mubr.msk.bf16.gmra.mrb[12].mxu1 %vm363_vm0, %v1006_v16 }
 0x101   : > { %v422_v24 = vpop.f32.mrb[0].mxu0 }
 0x102   : > { %v462_v25 = vpop.f32.mrb[0].mxu1  ;;  %v423_v26 = vadd.f32 %v422_v24, %v1203_v22  ;;  %v424_v28 = vpop.f32.mrb[1].mxu0 }
 0x103   : > { %v463_v27 = vadd.f32 %v462_v25, %v1203_v22  ;;  %v464_v29 = vpop.f32.mrb[1].mxu1  ;;  %v425_v30 = vadd.f32 %v424_v28, %v1205_v23  ;;  %v426_v32 = vpop.f32.mrb[2].mxu0 }
 0x104   : > { %v465_v31 = vadd.f32 %v464_v29, %v1205_v23  ;;  %v466_v33 = vpop.f32.mrb[2].mxu1  ;;  %v501_v34 = vmax.f32 %v423_v26, 0.0  ;;  %v427_v36 = vadd.f32 %v426_v32, %v1203_v22  ;;  %v428_v38 = vpop.f32.mrb[3].mxu0 }
 0x105   : > { %v517_v35 = vmax.f32 %v463_v27, 0.0  ;;  %v467_v37 = vadd.f32 %v466_v33, %v1203_v22  ;;  %v468_v39 = vpop.f32.mrb[3].mxu1  ;;  %v502_v40 = vmax.f32 %v425_v30, 0.0  ;;  %v429_v42 = vadd.f32 %v428_v38, %v1205_v23 }
 0x106   : > { %v518_v41 = vmax.f32 %v465_v31, 0.0  ;;  %v469_v43 = vadd.f32 %v468_v39, %v1205_v23  ;;  %v503_v44 = vmax.f32 %v427_v36, 0.0 }
 0x107   : > { %v519_v45 = vmax.f32 %v467_v37, 0.0  ;;  %v899_v46 = vpack.c.bf16 %v502_v40, %v501_v34  ;;  %v504_v48 = vmax.f32 %v429_v42, 0.0 }
 0x108   : > { %v907_v47 = vpack.c.bf16 %v518_v41, %v517_v35  ;;  %v520_v49 = vmax.f32 %v469_v43, 0.0 }
 0x109   : > { %629 = vst [vmem:[%s1216_s12] sm:$0xff] %v899_v46  ;;  %v900_v50 = vpack.c.bf16 %v504_v48, %v503_v44  ;;  %v432_v52 = vpop.f32.mrb[4].mxu0 }
 0x10a   : > { %637 = vst [vmem:[%s1216_s12 + $0x40] sm:$0xff] %v907_v47  ;;  %v908_v51 = vpack.c.bf16 %v520_v49, %v519_v45  ;;  %v472_v53 = vpop.f32.mrb[4].mxu1  ;;  %v433_v54 = vadd.f32 %v432_v52, %v1203_v22  ;;  %v434_v56 = vpop.f32.mrb[5].mxu0 }
 0x10b   : > { %v473_v55 = vadd.f32 %v472_v53, %v1203_v22  ;;  %v474_v57 = vpop.f32.mrb[5].mxu1  ;;  %630 = vst [vmem:[%s1216_s12 + $0x8] sm:$0xff] %v900_v50  ;;  %v435_v58 = vadd.f32 %v434_v56, %v1205_v23  ;;  %v436_v60 = vpop.f32.mrb[6].mxu0 }
 0x10c   : > { %638 = vst [vmem:[%s1216_s12 + $0x48] sm:$0xff] %v908_v51  ;;  %v475_v59 = vadd.f32 %v474_v57, %v1205_v23  ;;  %v476_v61 = vpop.f32.mrb[6].mxu1  ;;  %v505_v62 = vmax.f32 %v433_v54, 0.0  ;;  %v437_v0 = vadd.f32 %v436_v60, %v1203_v22  ;;  %v438_v2 = vpop.f32.mrb[7].mxu0 }
 0x10d   : > { %v521_v63 = vmax.f32 %v473_v55, 0.0  ;;  %v477_v1 = vadd.f32 %v476_v61, %v1203_v22  ;;  %v478_v3 = vpop.f32.mrb[7].mxu1  ;;  %v506_v4 = vmax.f32 %v435_v58, 0.0  ;;  %v439_v6 = vadd.f32 %v438_v2, %v1205_v23 }
 0x10e   : > { %v522_v5 = vmax.f32 %v475_v59, 0.0  ;;  %v479_v7 = vadd.f32 %v478_v3, %v1205_v23  ;;  %v507_v8 = vmax.f32 %v437_v0, 0.0 }
 0x10f   : > { %v523_v9 = vmax.f32 %v477_v1, 0.0  ;;  %v901_v10 = vpack.c.bf16 %v506_v4, %v505_v62  ;;  %v508_v12 = vmax.f32 %v439_v6, 0.0 }
 0x110   : > { %v909_v11 = vpack.c.bf16 %v522_v5, %v521_v63  ;;  %v524_v13 = vmax.f32 %v479_v7, 0.0 }
 0x111   : > { %631 = vst [vmem:[%s1216_s12 + $0x10] sm:$0xff] %v901_v10  ;;  %v902_v14 = vpack.c.bf16 %v508_v12, %v507_v8  ;;  %v442_v16 = vpop.f32.mrb[8].mxu0 }
 0x112   : > { %639 = vst [vmem:[%s1216_s12 + $0x50] sm:$0xff] %v909_v11  ;;  %v910_v15 = vpack.c.bf16 %v524_v13, %v523_v9  ;;  %v482_v17 = vpop.f32.mrb[8].mxu1  ;;  %v443_v18 = vadd.f32 %v442_v16, %v1203_v22  ;;  %v444_v20 = vpop.f32.mrb[9].mxu0  ;;  %v717_v9 = vld [vmem:[%s1216_s12 + $0x8] sm:$0xff] (%p1167_p9)  ;;  %v731_v16 = vld [vmem:[%s1216_s12 + $0x40] sm:$0xff] (%p1167_p9) }
 0x113   : > { %v483_v19 = vadd.f32 %v482_v17, %v1203_v22  ;;  %v484_v21 = vpop.f32.mrb[9].mxu1  ;;  %632 = vst [vmem:[%s1216_s12 + $0x18] sm:$0xff] %v902_v14  ;;  %v445_v24 = vadd.f32 %v444_v20, %v1205_v23  ;;  %v446_v26 = vpop.f32.mrb[10].mxu0  ;;  %v733_v17 = vld [vmem:[%s1216_s12 + $0x48] sm:$0xff] (%p1167_p9)  ;;  %718 = vst [vmem:[%s657_s17 + $0x18] sm:$0xff] (%p1167_p9), %v717_v9 }
 0x114   : > { %640 = vst [vmem:[%s1216_s12 + $0x58] sm:$0xff] %v910_v15  ;;  %v485_v25 = vadd.f32 %v484_v21, %v1205_v23  ;;  %v486_v27 = vpop.f32.mrb[10].mxu1  ;;  %v509_v28 = vmax.f32 %v443_v18, 0.0  ;;  %v447_v30 = vadd.f32 %v446_v26, %v1203_v22  ;;  %v448_v32 = vpop.f32.mrb[11].mxu0  ;;  %732 = vst [vmem:[%s657_s17 + $0xc0] sm:$0xff] (%p1167_p9), %v731_v16 }
 0x115   : > { %v525_v29 = vmax.f32 %v483_v19, 0.0  ;;  %v487_v31 = vadd.f32 %v486_v27, %v1203_v22  ;;  %v488_v33 = vpop.f32.mrb[11].mxu1  ;;  %v510_v34 = vmax.f32 %v445_v24, 0.0  ;;  %v449_v36 = vadd.f32 %v448_v32, %v1205_v23  ;;  %734 = vst [vmem:[%s657_s17 + $0xd8] sm:$0xff] (%p1167_p9), %v733_v17 }
 0x116   : > { %v526_v35 = vmax.f32 %v485_v25, 0.0  ;;  %v489_v37 = vadd.f32 %v488_v33, %v1205_v23  ;;  %v511_v38 = vmax.f32 %v447_v30, 0.0 }
 0x117   : > { %v527_v39 = vmax.f32 %v487_v31, 0.0  ;;  %v903_v40 = vpack.c.bf16 %v510_v34, %v509_v28  ;;  %v512_v42 = vmax.f32 %v449_v36, 0.0 }
 0x118   : > { %v911_v41 = vpack.c.bf16 %v526_v35, %v525_v29  ;;  %v528_v43 = vmax.f32 %v489_v37, 0.0  ;;  %v719_v10 = vld [vmem:[%s1216_s12 + $0x10] sm:$0xff] (%p1167_p9) }
 0x119   : > { %633 = vst [vmem:[%s1216_s12 + $0x20] sm:$0xff] %v903_v40  ;;  %v904_v44 = vpack.c.bf16 %v512_v42, %v511_v38  ;;  %v452_v46 = vpop.f32.mrb[12].mxu0  ;;  %v735_v18 = vld [vmem:[%s1216_s12 + $0x50] sm:$0xff] (%p1167_p9)  ;;  %720 = vst [vmem:[%s657_s17 + $0x30] sm:$0xff] (%p1167_p9), %v719_v10 }
 0x11a   : > { %641 = vst [vmem:[%s1216_s12 + $0x60] sm:$0xff] %v911_v41  ;;  %v912_v45 = vpack.c.bf16 %v528_v43, %v527_v39  ;;  %v492_v47 = vpop.f32.mrb[12].mxu1  ;;  %v453_v48 = vadd.f32 %v452_v46, %v1203_v22  ;;  %v454_v50 = vpop.f32.mrb[13].mxu0  ;;  %v721_v11 = vld [vmem:[%s1216_s12 + $0x18] sm:$0xff] (%p1167_p9)  ;;  %736 = vst [vmem:[%s657_s17 + $0xf0] sm:$0xff] (%p1167_p9), %v735_v18 }
 0x11b   : > { %v493_v49 = vadd.f32 %v492_v47, %v1203_v22  ;;  %v494_v51 = vpop.f32.mrb[13].mxu1  ;;  %634 = vst [vmem:[%s1216_s12 + $0x28] sm:$0xff] %v904_v44  ;;  %v455_v52 = vadd.f32 %v454_v50, %v1205_v23  ;;  %v456_v54 = vpop.f32.mrb[14].mxu0  ;;  %v737_v19 = vld [vmem:[%s1216_s12 + $0x58] sm:$0xff] (%p1167_p9)  ;;  %722 = vst [vmem:[%s657_s17 + $0x48] sm:$0xff] (%p1167_p9), %v721_v11 }
 0x11c   : > { %642 = vst [vmem:[%s1216_s12 + $0x68] sm:$0xff] %v912_v45  ;;  %v495_v53 = vadd.f32 %v494_v51, %v1205_v23  ;;  %v496_v55 = vpop.f32.mrb[14].mxu1  ;;  %v513_v56 = vmax.f32 %v453_v48, 0.0  ;;  %v457_v58 = vadd.f32 %v456_v54, %v1203_v22  ;;  %v458_v60 = vpop.f32.mrb[15].mxu0  ;;  %738 = vst [vmem:[%s657_s17 + $0x108] sm:$0xff] (%p1167_p9), %v737_v19 }
 0x11d   : > { %v529_v57 = vmax.f32 %v493_v49, 0.0  ;;  %v497_v59 = vadd.f32 %v496_v55, %v1203_v22  ;;  %v498_v61 = vpop.f32.mrb[15].mxu1  ;;  %v514_v62 = vmax.f32 %v455_v52, 0.0  ;;  %v459_v0 = vadd.f32 %v458_v60, %v1205_v23 }
 0x11e   : > { %v530_v63 = vmax.f32 %v495_v53, 0.0  ;;  %v499_v1 = vadd.f32 %v498_v61, %v1205_v23  ;;  %v515_v2 = vmax.f32 %v457_v58, 0.0  ;;  %651 = sbr.rel (!%p1167_p9) target bundleno = 301 (0x12d), region = 74  ;;  %v715_v23 = vld [vmem:[%s1216_s12] sm:$0xff] (%p1167_p9) }
 0x11f   : > { %v531_v3 = vmax.f32 %v497_v59, 0.0  ;;  %v905_v4 = vpack.c.bf16 %v514_v62, %v513_v56  ;;  %v516_v6 = vmax.f32 %v459_v0, 0.0  ;;  %716 = vst [vmem:[%s657_s17] sm:$0xff] (%p1167_p9), %v715_v23 }
 0x120   : > { %v913_v5 = vpack.c.bf16 %v530_v63, %v529_v57  ;;  %v532_v7 = vmax.f32 %v499_v1, 0.0  ;;  %v723_v12 = vld [vmem:[%s1216_s12 + $0x20] sm:$0xff] (%p1167_p9) }
 0x121   : > { %635 = vst [vmem:[%s1216_s12 + $0x30] sm:$0xff] %v905_v4  ;;  %v906_v8 = vpack.c.bf16 %v516_v6, %v515_v2  ;;  %v739_v20 = vld [vmem:[%s1216_s12 + $0x60] sm:$0xff] (%p1167_p9)  ;;  %724 = vst [vmem:[%s657_s17 + $0x60] sm:$0xff] (%p1167_p9), %v723_v12 }
 0x122   : > { %643 = vst [vmem:[%s1216_s12 + $0x70] sm:$0xff] %v913_v5  ;;  %v914_v22 = vpack.c.bf16 %v532_v7, %v531_v3  ;;  %v725_v13 = vld [vmem:[%s1216_s12 + $0x28] sm:$0xff] (%p1167_p9)  ;;  %740 = vst [vmem:[%s657_s17 + $0x120] sm:$0xff] (%p1167_p9), %v739_v20 }
 0x123   : > { %636 = vst [vmem:[%s1216_s12 + $0x38] sm:$0xff] %v906_v8  ;;  %v741_v21 = vld [vmem:[%s1216_s12 + $0x68] sm:$0xff] (%p1167_p9)  ;;  %726 = vst [vmem:[%s657_s17 + $0x78] sm:$0xff] (%p1167_p9), %v725_v13 }
 0x124   : > { %644 = vst [vmem:[%s1216_s12 + $0x78] sm:$0xff] %v914_v22  ;;  %742 = vst [vmem:[%s657_s17 + $0x138] sm:$0xff] (%p1167_p9), %v741_v21 }
 0x128   : > { %v727_v14 = vld [vmem:[%s1216_s12 + $0x30] sm:$0xff] }
 0x129   : > { %v743_v24 = vld [vmem:[%s1216_s12 + $0x70] sm:$0xff]  ;;  %728 = vst [vmem:[%s657_s17 + $0x90] sm:$0xff] %v727_v14 }
 0x12a   : > { %v729_v15 = vld [vmem:[%s1216_s12 + $0x38] sm:$0xff]  ;;  %744 = vst [vmem:[%s657_s17 + $0x150] sm:$0xff] %v743_v24 }
 0x12b   : > { %730 = vst [vmem:[%s657_s17 + $0xa8] sm:$0xff] %v729_v15  ;;  %v745_v25 = vld [vmem:[%s1216_s12 + $0x78] sm:$0xff] }
 0x12c   : > { %746 = vst [vmem:[%s657_s17 + $0x168] sm:$0xff] %v745_v25 }
 0x12d PF: > { %s13_s20 = sadd.s32 1, %s1077_s20   ;;  %s1313_s12 = smov %s1049_s13 }
 0x12e   : > { %p10_p2 = scmp.ge.s32.totalorder %s13_s20, 14   ;;  %s1314_s13 = smov %s1172_s4 }
 0x12f   : > { %s1315_s14 = smov %s1057_s15  ;;  %s1316_s15 = smov %s1161_s27 }
 0x130   : > { %s1317_s16 = smov %s1069_s18  ;;  %s1318_s17 = smov %s1073_s19 }
 0x131   : > { %s1319_s18 = smov %s1322_s22  ;;  %s1320_s19 = smov %s1326_s23 }
 0x132   :  { %12 = sbr.rel (!%p10_p2) target bundleno = 5 (0x5), region = 149 }

// kernel: reduction_b_forward.9
= control target key start
LH: loop header
LB: loop body
LE: loop exit
PB: predicated region body
PF: predicated region fallthrough
CT: control target
= control target key end

     0   :  { %s7212_s12 = smov 0   ;;  %s7214_s13 = smov 0   ;;  %s9387_s0 = inlined_call_operand.vmem [shape: bf16[2,18,18,256], index: 0, kind: input, shape index: {}]   ;;  %s9388_s1 = inlined_call_operand.vmem [shape: bf16[9,256,256], index: 1, kind: input, shape index: {}]   ;;  %s9389_s2 = inlined_call_operand.vmem [shape: f32[1,256], index: 2, kind: input, shape index: {}]   ;;  %s9390_s3 = inlined_call_operand.vmem [shape: bf16[2,256,256], index: 3, kind: output, shape index: {}]  }
   0x1   :  { %s7216_s14 = smov 0   ;;  %s7218_s15 = smov 0  }
   0x2   :  { %s7220_s16 = smov 0   ;;  %s7222_s17 = smov 0  }
   0x3   :  { %s7224_s18 = smov 0   ;;  %s7226_s19 = smov 0  }
   0x4   :  { %s7228_s20 = smov 0   ;;  %s7230_s21 = smov 0  }
   0x5   :  { %s7232_s22 = smov 0  }
   0x6 LB: > { %s25_s23 = sadd.s32 1, %s7178_s19  ;;  %s28_s24 = sadd.s32 1, %s7182_s20  ;;  %s7190_s22 = sphi %s7232_s22, %s13_s22   ;;  %s7186_s21 = sphi %s7230_s21, %s9416_s21   ;;  %s7182_s20 = sphi %s7228_s20, %s9415_s20   ;;  %s7178_s19 = sphi %s7226_s19, %s9414_s19   ;;  %s7174_s18 = sphi %s7224_s18, %s9413_s18   ;;  %s7170_s17 = sphi %s7222_s17, %s9412_s17   ;;  %s7166_s16 = sphi %s7220_s16, %s9411_s16   ;;  %s7162_s15 = sphi %s7218_s15, %s9410_s15   ;;  %s7158_s14 = sphi %s7216_s14, %s9409_s14   ;;  %s7154_s13 = sphi %s7214_s13, %s9408_s13   ;;  %s7150_s12 = sphi %s7212_s12, %s9407_s12  }
   0x7   : > { %p26_p0 = scmp.ge.s32.totalorder %s25_s23, 2  ;;  %s5477_s25 = sadd.s32 4294967295, %s7190_s22  }
   0x8   : > { %p72_p1 = scmp.ne.s32.totalorder %s7162_s15, %s7158_s14  ;;  %p73_p2 = scmp.eq.s32.totalorder %s7190_s22, 0 }
   0x9   : > { %s9418_s23 = smov (%p26_p0, %s25_s23), 0  ;;  %s9420_s24 = smov (!%p26_p0, %s28_s24), %s7182_s20 }
   0xa   : > { %p30_p3 = scmp.ge.s32.totalorder %s9420_s24, 2  ;;  %s32_s26 = sadd.s32 1, %s7186_s21 }
   0xb   : > { %s65_s27 = sadd.s32 1, %s7162_s15  ;;  %p7278_p4 = por %p73_p2, %p72_p1 }
   0xc   : > { %s9422_s24 = smov (%p30_p3, %s9420_s24), 0  ;;  %s9424_s26 = smov (!%p30_p3, %s32_s26), %s7186_s21 }
   0xd   : > { %9396 = sst [smem:[#allocation4_spill]] %s9422_s24  ;;  %s62_s29 = ssub.s32 %s7182_s20, %s9422_s24 }
   0xe   : > { %p131_p5 = scmp.ne.s32.totalorder %s7154_s13, %s7150_s12  ;;  %p34_p6 = scmp.ge.s32.totalorder %s9424_s26, 2 }
   0xf   : > { %p63_p7 = scmp.eq.s32.totalorder %s62_s29, 0  ;;  %s115_s30 = ssub.s32 %s7178_s19, %s9418_s23 }
  0x10   : > { %p132_p8 = scmp.eq.s32.totalorder %s5477_s25, 7  ;;  %s9426_s26 = smov (%p34_p6, %s9424_s26), 0 }
  0x11   : > { %9397 = sst [smem:[#allocation5_spill]] %s9426_s26  ;;  %s114_s5 = ssub.s32 %s7186_s21, %s9426_s26 }
  0x12   : > { %s7294_s4 = scalar_select %p63_p7, %s7162_s15, %s65_s27  }
  0x13   : > { %p7298_p9 = por %p132_p8, %p131_p5  ;;  %s116_s7 = sor.u32 %s115_s30, %s114_s5 }
  0x14   : > { %s118_s8 = sor.u32 %s116_s7, %s62_s29  ;;  %s121_s9 = sadd.s32 1, %s7154_s13 }
  0x15   : > { %p119_p10 = scmp.eq.s32.totalorder %s118_s8, 0  ;;  %p5480_p11 = scmp.ge.s32.totalorder %s7190_s22, 8 }
  0x17   : > { %s7304_s10 = scalar_select %p119_p10, %s7154_s13, %s121_s9  }
  0x18   : > { %154 = sbr.rel (%p5480_p11) target bundleno = 227 (0xe3), region = 16 }
  0x1f   : > { %165 = sbr.rel (!%p7278_p4) target bundleno = 227 (0xe3), region = 24  ;;  %s167_s11 = sand.u32 (%p7278_p4), 1, %s7162_s15  }
  0x20   : > { %s5481_s25 = sshll.u32 (%p7278_p4), %s7182_s20, 2  ;;  %s6837_s27 = smul.u32 (%p7278_p4), 1152, %s167_s11 }
  0x21   : > { %s7314_s30 = scalar_lea.vmem (%p7278_p4), %s9388_s1, %s5481_s25 }
  0x22   : > { %v187_v0 = vld [vmem:[%s7314_s30] sm:$0xf] (%p7278_p4)  ;;  %v189_v1 = vld [vmem:[%s7314_s30 + $0x8] sm:$0xf] (%p7278_p4)  ;;  %v191_v2 = vld [vmem:[%s7314_s30 + $0x10] sm:$0xf] (%p7278_p4) }
  0x23   : > { %v193_v3 = vld [vmem:[%s7314_s30 + $0x18] sm:$0xf] (%p7278_p4)  ;;  %v195_v4 = vld [vmem:[%s7314_s30 + $0x20] sm:$0xf] (%p7278_p4)  ;;  %s7321_s28 = scalar_lea.vmem (%p7278_p4), [#allocation2], %s6837_s27 }
  0x24   : > { %188 = vst [vmem:[%s7321_s28] sm:$0xf] (%p7278_p4), %v187_v0  ;;  %190 = vst [vmem:[%s7321_s28 + $0x4] sm:$0xf] (%p7278_p4), %v189_v1  ;;  %v197_v5 = vld [vmem:[%s7314_s30 + $0x28] sm:$0xf] (%p7278_p4) }
  0x25   : > { %192 = vst [vmem:[%s7321_s28 + $0x8] sm:$0xf] (%p7278_p4), %v191_v2  ;;  %194 = vst [vmem:[%s7321_s28 + $0xc] sm:$0xf] (%p7278_p4), %v193_v3  ;;  %v199_v6 = vld [vmem:[%s7314_s30 + $0x30] sm:$0xf] (%p7278_p4) }
  0x26   : > { %196 = vst [vmem:[%s7321_s28 + $0x10] sm:$0xf] %v195_v4  ;;  %v201_v7 = vld [vmem:[%s7314_s30 + $0x38] sm:$0xf]  ;;  %198 = vst [vmem:[%s7321_s28 + $0x14] sm:$0xf] %v197_v5 }
  0x27   : > { %200 = vst [vmem:[%s7321_s28 + $0x18] sm:$0xf] %v199_v6  ;;  %202 = vst [vmem:[%s7321_s28 + $0x1c] sm:$0xf] %v201_v7  ;;  %v203_v8 = vld [vmem:[%s7314_s30 + $0x40] sm:$0xf] }
  0x28   : > { %v205_v9 = vld [vmem:[%s7314_s30 + $0x48] sm:$0xf]  ;;  %v207_v10 = vld [vmem:[%s7314_s30 + $0x50] sm:$0xf]  ;;  %204 = vst [vmem:[%s7321_s28 + $0x20] sm:$0xf] %v203_v8 }
  0x29   : > { %206 = vst [vmem:[%s7321_s28 + $0x24] sm:$0xf] %v205_v9  ;;  %208 = vst [vmem:[%s7321_s28 + $0x28] sm:$0xf] %v207_v10  ;;  %v209_v11 = vld [vmem:[%s7314_s30 + $0x58] sm:$0xf] }
  0x2a   : > { %v211_v12 = vld [vmem:[%s7314_s30 + $0x60] sm:$0xf]  ;;  %v213_v13 = vld [vmem:[%s7314_s30 + $0x68] sm:$0xf]  ;;  %210 = vst [vmem:[%s7321_s28 + $0x2c] sm:$0xf] %v209_v11 }
  0x2b   : > { %212 = vst [vmem:[%s7321_s28 + $0x30] sm:$0xf] %v211_v12  ;;  %214 = vst [vmem:[%s7321_s28 + $0x34] sm:$0xf] %v213_v13  ;;  %v215_v14 = vld [vmem:[%s7314_s30 + $0x70] sm:$0xf] }
  0x2c   : > { %v217_v15 = vld [vmem:[%s7314_s30 + $0x78] sm:$0xf]  ;;  %v219_v16 = vld [vmem:[%s7314_s30 + $0x80] sm:$0xf]  ;;  %216 = vst [vmem:[%s7321_s28 + $0x38] sm:$0xf] %v215_v14 }
  0x2d   : > { %218 = vst [vmem:[%s7321_s28 + $0x3c] sm:$0xf] %v217_v15  ;;  %220 = vst [vmem:[%s7321_s28 + $0x40] sm:$0xf] %v219_v16  ;;  %v221_v17 = vld [vmem:[%s7314_s30 + $0x88] sm:$0xf] }
  0x2e   : > { %v223_v18 = vld [vmem:[%s7314_s30 + $0x90] sm:$0xf]  ;;  %v225_v19 = vld [vmem:[%s7314_s30 + $0x98] sm:$0xf]  ;;  %222 = vst [vmem:[%s7321_s28 + $0x44] sm:$0xf] %v221_v17 }
  0x2f   : > { %224 = vst [vmem:[%s7321_s28 + $0x48] sm:$0xf] %v223_v18  ;;  %226 = vst [vmem:[%s7321_s28 + $0x4c] sm:$0xf] %v225_v19  ;;  %v227_v20 = vld [vmem:[%s7314_s30 + $0xa0] sm:$0xf] }
  0x30   : > { %v229_v21 = vld [vmem:[%s7314_s30 + $0xa8] sm:$0xf]  ;;  %v231_v22 = vld [vmem:[%s7314_s30 + $0xb0] sm:$0xf]  ;;  %228 = vst [vmem:[%s7321_s28 + $0x50] sm:$0xf] %v227_v20 }
  0x31   : > { %230 = vst [vmem:[%s7321_s28 + $0x54] sm:$0xf] %v229_v21  ;;  %232 = vst [vmem:[%s7321_s28 + $0x58] sm:$0xf] %v231_v22  ;;  %v233_v23 = vld [vmem:[%s7314_s30 + $0xb8] sm:$0xf] }
  0x32   : > { %v235_v24 = vld [vmem:[%s7314_s30 + $0xc0] sm:$0xf]  ;;  %v237_v25 = vld [vmem:[%s7314_s30 + $0xc8] sm:$0xf]  ;;  %234 = vst [vmem:[%s7321_s28 + $0x5c] sm:$0xf] %v233_v23 }
  0x33   : > { %236 = vst [vmem:[%s7321_s28 + $0x60] sm:$0xf] %v235_v24  ;;  %238 = vst [vmem:[%s7321_s28 + $0x64] sm:$0xf] %v237_v25  ;;  %v239_v26 = vld [vmem:[%s7314_s30 + $0xd0] sm:$0xf] }
  0x34   : > { %v241_v27 = vld [vmem:[%s7314_s30 + $0xd8] sm:$0xf]  ;;  %v243_v28 = vld [vmem:[%s7314_s30 + $0xe0] sm:$0xf]  ;;  %240 = vst [vmem:[%s7321_s28 + $0x68] sm:$0xf] %v239_v26 }
  0x35   : > { %242 = vst [vmem:[%s7321_s28 + $0x6c] sm:$0xf] %v241_v27  ;;  %244 = vst [vmem:[%s7321_s28 + $0x70] sm:$0xf] %v243_v28  ;;  %v245_v29 = vld [vmem:[%s7314_s30 + $0xe8] sm:$0xf] }
  0x36   : > { %v247_v30 = vld [vmem:[%s7314_s30 + $0xf0] sm:$0xf]  ;;  %v249_v31 = vld [vmem:[%s7314_s30 + $0xf8] sm:$0xf]  ;;  %246 = vst [vmem:[%s7321_s28 + $0x74] sm:$0xf] %v245_v29 }
  0x37   : > { %248 = vst [vmem:[%s7321_s28 + $0x78] sm:$0xf] %v247_v30  ;;  %250 = vst [vmem:[%s7321_s28 + $0x7c] sm:$0xf] %v249_v31  ;;  %v251_v32 = vld [vmem:[%s7314_s30 + $0x100] sm:$0xf] }
  0x38   : > { %v253_v33 = vld [vmem:[%s7314_s30 + $0x108] sm:$0xf]  ;;  %v255_v34 = vld [vmem:[%s7314_s30 + $0x110] sm:$0xf]  ;;  %252 = vst [vmem:[%s7321_s28 + $0x80] sm:$0xf] %v251_v32 }
  0x39   : > { %254 = vst [vmem:[%s7321_s28 + $0x84] sm:$0xf] %v253_v33  ;;  %256 = vst [vmem:[%s7321_s28 + $0x88] sm:$0xf] %v255_v34  ;;  %v257_v35 = vld [vmem:[%s7314_s30 + $0x118] sm:$0xf] }
  0x3a   : > { %v259_v36 = vld [vmem:[%s7314_s30 + $0x120] sm:$0xf]  ;;  %v261_v37 = vld [vmem:[%s7314_s30 + $0x128] sm:$0xf]  ;;  %258 = vst [vmem:[%s7321_s28 + $0x8c] sm:$0xf] %v257_v35 }
  0x3b   : > { %260 = vst [vmem:[%s7321_s28 + $0x90] sm:$0xf] %v259_v36  ;;  %262 = vst [vmem:[%s7321_s28 + $0x94] sm:$0xf] %v261_v37  ;;  %v263_v38 = vld [vmem:[%s7314_s30 + $0x130] sm:$0xf] }
  0x3c   : > { %v265_v39 = vld [vmem:[%s7314_s30 + $0x138] sm:$0xf]  ;;  %v267_v40 = vld [vmem:[%s7314_s30 + $0x140] sm:$0xf]  ;;  %264 = vst [vmem:[%s7321_s28 + $0x98] sm:$0xf] %v263_v38 }
  0x3d   : > { %266 = vst [vmem:[%s7321_s28 + $0x9c] sm:$0xf] %v265_v39  ;;  %268 = vst [vmem:[%s7321_s28 + $0xa0] sm:$0xf] %v267_v40  ;;  %v269_v41 = vld [vmem:[%s7314_s30 + $0x148] sm:$0xf] }
  0x3e   : > { %v271_v42 = vld [vmem:[%s7314_s30 + $0x150] sm:$0xf]  ;;  %v273_v43 = vld [vmem:[%s7314_s30 + $0x158] sm:$0xf]  ;;  %270 = vst [vmem:[%s7321_s28 + $0xa4] sm:$0xf] %v269_v41 }
  0x3f   : > { %272 = vst [vmem:[%s7321_s28 + $0xa8] sm:$0xf] %v271_v42  ;;  %274 = vst [vmem:[%s7321_s28 + $0xac] sm:$0xf] %v273_v43  ;;  %v275_v44 = vld [vmem:[%s7314_s30 + $0x160] sm:$0xf] }
  0x40   : > { %v277_v45 = vld [vmem:[%s7314_s30 + $0x168] sm:$0xf]  ;;  %v279_v46 = vld [vmem:[%s7314_s30 + $0x170] sm:$0xf]  ;;  %276 = vst [vmem:[%s7321_s28 + $0xb0] sm:$0xf] %v275_v44 }
  0x41   : > { %278 = vst [vmem:[%s7321_s28 + $0xb4] sm:$0xf] %v277_v45  ;;  %280 = vst [vmem:[%s7321_s28 + $0xb8] sm:$0xf] %v279_v46  ;;  %v281_v47 = vld [vmem:[%s7314_s30 + $0x178] sm:$0xf] }
  0x42   : > { %v283_v48 = vld [vmem:[%s7314_s30 + $0x180] sm:$0xf]  ;;  %v285_v49 = vld [vmem:[%s7314_s30 + $0x188] sm:$0xf]  ;;  %282 = vst [vmem:[%s7321_s28 + $0xbc] sm:$0xf] %v281_v47 }
  0x43   : > { %284 = vst [vmem:[%s7321_s28 + $0xc0] sm:$0xf] %v283_v48  ;;  %286 = vst [vmem:[%s7321_s28 + $0xc4] sm:$0xf] %v285_v49  ;;  %v287_v50 = vld [vmem:[%s7314_s30 + $0x190] sm:$0xf] }
  0x44   : > { %v289_v51 = vld [vmem:[%s7314_s30 + $0x198] sm:$0xf]  ;;  %v291_v52 = vld [vmem:[%s7314_s30 + $0x1a0] sm:$0xf]  ;;  %288 = vst [vmem:[%s7321_s28 + $0xc8] sm:$0xf] %v287_v50 }
  0x45   : > { %290 = vst [vmem:[%s7321_s28 + $0xcc] sm:$0xf] %v289_v51  ;;  %292 = vst [vmem:[%s7321_s28 + $0xd0] sm:$0xf] %v291_v52  ;;  %v293_v53 = vld [vmem:[%s7314_s30 + $0x1a8] sm:$0xf] }
  0x46   : > { %v295_v54 = vld [vmem:[%s7314_s30 + $0x1b0] sm:$0xf]  ;;  %v297_v55 = vld [vmem:[%s7314_s30 + $0x1b8] sm:$0xf]  ;;  %294 = vst [vmem:[%s7321_s28 + $0xd4] sm:$0xf] %v293_v53 }
  0x47   : > { %296 = vst [vmem:[%s7321_s28 + $0xd8] sm:$0xf] %v295_v54  ;;  %298 = vst [vmem:[%s7321_s28 + $0xdc] sm:$0xf] %v297_v55  ;;  %v299_v56 = vld [vmem:[%s7314_s30 + $0x1c0] sm:$0xf] }
  0x48   : > { %v301_v57 = vld [vmem:[%s7314_s30 + $0x1c8] sm:$0xf]  ;;  %v303_v58 = vld [vmem:[%s7314_s30 + $0x1d0] sm:$0xf]  ;;  %300 = vst [vmem:[%s7321_s28 + $0xe0] sm:$0xf] %v299_v56 }
  0x49   : > { %302 = vst [vmem:[%s7321_s28 + $0xe4] sm:$0xf] %v301_v57  ;;  %304 = vst [vmem:[%s7321_s28 + $0xe8] sm:$0xf] %v303_v58  ;;  %v305_v59 = vld [vmem:[%s7314_s30 + $0x1d8] sm:$0xf] }
  0x4a   : > { %v307_v60 = vld [vmem:[%s7314_s30 + $0x1e0] sm:$0xf]  ;;  %v309_v61 = vld [vmem:[%s7314_s30 + $0x1e8] sm:$0xf]  ;;  %306 = vst [vmem:[%s7321_s28 + $0xec] sm:$0xf] %v305_v59 }
  0x4b   : > { %308 = vst [vmem:[%s7321_s28 + $0xf0] sm:$0xf] %v307_v60  ;;  %310 = vst [vmem:[%s7321_s28 + $0xf4] sm:$0xf] %v309_v61  ;;  %v311_v62 = vld [vmem:[%s7314_s30 + $0x1f0] sm:$0xf] }
  0x4c   : > { %v313_v63 = vld [vmem:[%s7314_s30 + $0x1f8] sm:$0xf]  ;;  %v315_v0 = vld [vmem:[%s7314_s30 + $0x200] sm:$0xf]  ;;  %312 = vst [vmem:[%s7321_s28 + $0xf8] sm:$0xf] %v311_v62 }
  0x4d   : > { %314 = vst [vmem:[%s7321_s28 + $0xfc] sm:$0xf] %v313_v63  ;;  %316 = vst [vmem:[%s7321_s28 + $0x100] sm:$0xf] %v315_v0  ;;  %v317_v1 = vld [vmem:[%s7314_s30 + $0x208] sm:$0xf] }
  0x4e   : > { %v319_v2 = vld [vmem:[%s7314_s30 + $0x210] sm:$0xf]  ;;  %v321_v3 = vld [vmem:[%s7314_s30 + $0x218] sm:$0xf]  ;;  %318 = vst [vmem:[%s7321_s28 + $0x104] sm:$0xf] %v317_v1 }
  0x4f   : > { %320 = vst [vmem:[%s7321_s28 + $0x108] sm:$0xf] %v319_v2  ;;  %322 = vst [vmem:[%s7321_s28 + $0x10c] sm:$0xf] %v321_v3  ;;  %v323_v4 = vld [vmem:[%s7314_s30 + $0x220] sm:$0xf] }
  0x50   : > { %v325_v5 = vld [vmem:[%s7314_s30 + $0x228] sm:$0xf]  ;;  %v327_v6 = vld [vmem:[%s7314_s30 + $0x230] sm:$0xf]  ;;  %324 = vst [vmem:[%s7321_s28 + $0x110] sm:$0xf] %v323_v4 }
  0x51   : > { %326 = vst [vmem:[%s7321_s28 + $0x114] sm:$0xf] %v325_v5  ;;  %328 = vst [vmem:[%s7321_s28 + $0x118] sm:$0xf] %v327_v6  ;;  %v329_v7 = vld [vmem:[%s7314_s30 + $0x238] sm:$0xf] }
  0x52   : > { %v331_v8 = vld [vmem:[%s7314_s30 + $0x240] sm:$0xf]  ;;  %v333_v9 = vld [vmem:[%s7314_s30 + $0x248] sm:$0xf]  ;;  %330 = vst [vmem:[%s7321_s28 + $0x11c] sm:$0xf] %v329_v7 }
  0x53   : > { %332 = vst [vmem:[%s7321_s28 + $0x120] sm:$0xf] %v331_v8  ;;  %334 = vst [vmem:[%s7321_s28 + $0x124] sm:$0xf] %v333_v9  ;;  %v335_v10 = vld [vmem:[%s7314_s30 + $0x250] sm:$0xf] }
  0x54   : > { %v337_v11 = vld [vmem:[%s7314_s30 + $0x258] sm:$0xf]  ;;  %v339_v12 = vld [vmem:[%s7314_s30 + $0x260] sm:$0xf]  ;;  %336 = vst [vmem:[%s7321_s28 + $0x128] sm:$0xf] %v335_v10 }
  0x55   : > { %338 = vst [vmem:[%s7321_s28 + $0x12c] sm:$0xf] %v337_v11  ;;  %340 = vst [vmem:[%s7321_s28 + $0x130] sm:$0xf] %v339_v12  ;;  %v341_v13 = vld [vmem:[%s7314_s30 + $0x268] sm:$0xf] }
  0x56   : > { %v343_v14 = vld [vmem:[%s7314_s30 + $0x270] sm:$0xf]  ;;  %v345_v15 = vld [vmem:[%s7314_s30 + $0x278] sm:$0xf]  ;;  %342 = vst [vmem:[%s7321_s28 + $0x134] sm:$0xf] %v341_v13 }
  0x57   : > { %344 = vst [vmem:[%s7321_s28 + $0x138] sm:$0xf] %v343_v14  ;;  %346 = vst [vmem:[%s7321_s28 + $0x13c] sm:$0xf] %v345_v15  ;;  %v347_v16 = vld [vmem:[%s7314_s30 + $0x280] sm:$0xf] }
  0x58   : > { %v349_v17 = vld [vmem:[%s7314_s30 + $0x288] sm:$0xf]  ;;  %v351_v18 = vld [vmem:[%s7314_s30 + $0x290] sm:$0xf]  ;;  %348 = vst [vmem:[%s7321_s28 + $0x140] sm:$0xf] %v347_v16 }
  0x59   : > { %350 = vst [vmem:[%s7321_s28 + $0x144] sm:$0xf] %v349_v17  ;;  %352 = vst [vmem:[%s7321_s28 + $0x148] sm:$0xf] %v351_v18  ;;  %v353_v19 = vld [vmem:[%s7314_s30 + $0x298] sm:$0xf] }
  0x5a   : > { %v355_v20 = vld [vmem:[%s7314_s30 + $0x2a0] sm:$0xf]  ;;  %v357_v21 = vld [vmem:[%s7314_s30 + $0x2a8] sm:$0xf]  ;;  %354 = vst [vmem:[%s7321_s28 + $0x14c] sm:$0xf] %v353_v19 }
  0x5b   : > { %356 = vst [vmem:[%s7321_s28 + $0x150] sm:$0xf] %v355_v20  ;;  %358 = vst [vmem:[%s7321_s28 + $0x154] sm:$0xf] %v357_v21  ;;  %v359_v22 = vld [vmem:[%s7314_s30 + $0x2b0] sm:$0xf] }
  0x5c   : > { %v361_v23 = vld [vmem:[%s7314_s30 + $0x2b8] sm:$0xf]  ;;  %v363_v24 = vld [vmem:[%s7314_s30 + $0x2c0] sm:$0xf]  ;;  %360 = vst [vmem:[%s7321_s28 + $0x158] sm:$0xf] %v359_v22 }
  0x5d   : > { %362 = vst [vmem:[%s7321_s28 + $0x15c] sm:$0xf] %v361_v23  ;;  %364 = vst [vmem:[%s7321_s28 + $0x160] sm:$0xf] %v363_v24  ;;  %v365_v25 = vld [vmem:[%s7314_s30 + $0x2c8] sm:$0xf] }
  0x5e   : > { %v367_v26 = vld [vmem:[%s7314_s30 + $0x2d0] sm:$0xf]  ;;  %v369_v27 = vld [vmem:[%s7314_s30 + $0x2d8] sm:$0xf]  ;;  %366 = vst [vmem:[%s7321_s28 + $0x164] sm:$0xf] %v365_v25 }
  0x5f   : > { %368 = vst [vmem:[%s7321_s28 + $0x168] sm:$0xf] %v367_v26  ;;  %370 = vst [vmem:[%s7321_s28 + $0x16c] sm:$0xf] %v369_v27  ;;  %v371_v28 = vld [vmem:[%s7314_s30 + $0x2e0] sm:$0xf] }
  0x60   : > { %v373_v29 = vld [vmem:[%s7314_s30 + $0x2e8] sm:$0xf]  ;;  %v375_v30 = vld [vmem:[%s7314_s30 + $0x2f0] sm:$0xf]  ;;  %372 = vst [vmem:[%s7321_s28 + $0x170] sm:$0xf] %v371_v28 }
  0x61   : > { %374 = vst [vmem:[%s7321_s28 + $0x174] sm:$0xf] %v373_v29  ;;  %376 = vst [vmem:[%s7321_s28 + $0x178] sm:$0xf] %v375_v30  ;;  %v377_v31 = vld [vmem:[%s7314_s30 + $0x2f8] sm:$0xf] }
  0x62   : > { %v379_v32 = vld [vmem:[%s7314_s30 + $0x300] sm:$0xf]  ;;  %v381_v33 = vld [vmem:[%s7314_s30 + $0x308] sm:$0xf]  ;;  %378 = vst [vmem:[%s7321_s28 + $0x17c] sm:$0xf] %v377_v31 }
  0x63   : > { %380 = vst [vmem:[%s7321_s28 + $0x180] sm:$0xf] %v379_v32  ;;  %382 = vst [vmem:[%s7321_s28 + $0x184] sm:$0xf] %v381_v33  ;;  %v383_v34 = vld [vmem:[%s7314_s30 + $0x310] sm:$0xf] }
  0x64   : > { %v385_v35 = vld [vmem:[%s7314_s30 + $0x318] sm:$0xf]  ;;  %v387_v36 = vld [vmem:[%s7314_s30 + $0x320] sm:$0xf]  ;;  %384 = vst [vmem:[%s7321_s28 + $0x188] sm:$0xf] %v383_v34 }
  0x65   : > { %386 = vst [vmem:[%s7321_s28 + $0x18c] sm:$0xf] %v385_v35  ;;  %388 = vst [vmem:[%s7321_s28 + $0x190] sm:$0xf] %v387_v36  ;;  %v389_v37 = vld [vmem:[%s7314_s30 + $0x328] sm:$0xf] }
  0x66   : > { %v391_v38 = vld [vmem:[%s7314_s30 + $0x330] sm:$0xf]  ;;  %v393_v39 = vld [vmem:[%s7314_s30 + $0x338] sm:$0xf]  ;;  %390 = vst [vmem:[%s7321_s28 + $0x194] sm:$0xf] %v389_v37 }
  0x67   : > { %392 = vst [vmem:[%s7321_s28 + $0x198] sm:$0xf] %v391_v38  ;;  %394 = vst [vmem:[%s7321_s28 + $0x19c] sm:$0xf] %v393_v39  ;;  %v395_v40 = vld [vmem:[%s7314_s30 + $0x340] sm:$0xf] }
  0x68   : > { %v397_v41 = vld [vmem:[%s7314_s30 + $0x348] sm:$0xf]  ;;  %v399_v42 = vld [vmem:[%s7314_s30 + $0x350] sm:$0xf]  ;;  %396 = vst [vmem:[%s7321_s28 + $0x1a0] sm:$0xf] %v395_v40 }
  0x69   : > { %398 = vst [vmem:[%s7321_s28 + $0x1a4] sm:$0xf] %v397_v41  ;;  %400 = vst [vmem:[%s7321_s28 + $0x1a8] sm:$0xf] %v399_v42  ;;  %v401_v43 = vld [vmem:[%s7314_s30 + $0x358] sm:$0xf] }
  0x6a   : > { %v403_v44 = vld [vmem:[%s7314_s30 + $0x360] sm:$0xf]  ;;  %v405_v45 = vld [vmem:[%s7314_s30 + $0x368] sm:$0xf]  ;;  %402 = vst [vmem:[%s7321_s28 + $0x1ac] sm:$0xf] %v401_v43 }
  0x6b   : > { %404 = vst [vmem:[%s7321_s28 + $0x1b0] sm:$0xf] %v403_v44  ;;  %406 = vst [vmem:[%s7321_s28 + $0x1b4] sm:$0xf] %v405_v45  ;;  %v407_v46 = vld [vmem:[%s7314_s30 + $0x370] sm:$0xf] }
  0x6c   : > { %v409_v47 = vld [vmem:[%s7314_s30 + $0x378] sm:$0xf]  ;;  %v411_v48 = vld [vmem:[%s7314_s30 + $0x380] sm:$0xf]  ;;  %408 = vst [vmem:[%s7321_s28 + $0x1b8] sm:$0xf] %v407_v46 }
  0x6d   : > { %410 = vst [vmem:[%s7321_s28 + $0x1bc] sm:$0xf] %v409_v47  ;;  %412 = vst [vmem:[%s7321_s28 + $0x1c0] sm:$0xf] %v411_v48  ;;  %v413_v49 = vld [vmem:[%s7314_s30 + $0x388] sm:$0xf] }
  0x6e   : > { %v415_v50 = vld [vmem:[%s7314_s30 + $0x390] sm:$0xf]  ;;  %v417_v51 = vld [vmem:[%s7314_s30 + $0x398] sm:$0xf]  ;;  %414 = vst [vmem:[%s7321_s28 + $0x1c4] sm:$0xf] %v413_v49 }
  0x6f   : > { %416 = vst [vmem:[%s7321_s28 + $0x1c8] sm:$0xf] %v415_v50  ;;  %418 = vst [vmem:[%s7321_s28 + $0x1cc] sm:$0xf] %v417_v51  ;;  %v419_v52 = vld [vmem:[%s7314_s30 + $0x3a0] sm:$0xf] }
  0x70   : > { %v421_v53 = vld [vmem:[%s7314_s30 + $0x3a8] sm:$0xf]  ;;  %v423_v54 = vld [vmem:[%s7314_s30 + $0x3b0] sm:$0xf]  ;;  %420 = vst [vmem:[%s7321_s28 + $0x1d0] sm:$0xf] %v419_v52 }
  0x71   : > { %422 = vst [vmem:[%s7321_s28 + $0x1d4] sm:$0xf] %v421_v53  ;;  %424 = vst [vmem:[%s7321_s28 + $0x1d8] sm:$0xf] %v423_v54  ;;  %v425_v55 = vld [vmem:[%s7314_s30 + $0x3b8] sm:$0xf] }
  0x72   : > { %v427_v56 = vld [vmem:[%s7314_s30 + $0x3c0] sm:$0xf]  ;;  %v429_v57 = vld [vmem:[%s7314_s30 + $0x3c8] sm:$0xf]  ;;  %426 = vst [vmem:[%s7321_s28 + $0x1dc] sm:$0xf] %v425_v55 }
  0x73   : > { %428 = vst [vmem:[%s7321_s28 + $0x1e0] sm:$0xf] %v427_v56  ;;  %430 = vst [vmem:[%s7321_s28 + $0x1e4] sm:$0xf] %v429_v57  ;;  %v431_v58 = vld [vmem:[%s7314_s30 + $0x3d0] sm:$0xf] }
  0x74   : > { %v433_v59 = vld [vmem:[%s7314_s30 + $0x3d8] sm:$0xf]  ;;  %v435_v60 = vld [vmem:[%s7314_s30 + $0x3e0] sm:$0xf]  ;;  %432 = vst [vmem:[%s7321_s28 + $0x1e8] sm:$0xf] %v431_v58 }
  0x75   : > { %434 = vst [vmem:[%s7321_s28 + $0x1ec] sm:$0xf] %v433_v59  ;;  %436 = vst [vmem:[%s7321_s28 + $0x1f0] sm:$0xf] %v435_v60  ;;  %v437_v61 = vld [vmem:[%s7314_s30 + $0x3e8] sm:$0xf] }
  0x76   : > { %v439_v62 = vld [vmem:[%s7314_s30 + $0x3f0] sm:$0xf]  ;;  %v441_v63 = vld [vmem:[%s7314_s30 + $0x3f8] sm:$0xf]  ;;  %438 = vst [vmem:[%s7321_s28 + $0x1f4] sm:$0xf] %v437_v61 }
  0x77   : > { %440 = vst [vmem:[%s7321_s28 + $0x1f8] sm:$0xf] %v439_v62  ;;  %442 = vst [vmem:[%s7321_s28 + $0x1fc] sm:$0xf] %v441_v63  ;;  %v443_v0 = vld [vmem:[%s7314_s30 + $0x400] sm:$0xf] }
  0x78   : > { %v445_v1 = vld [vmem:[%s7314_s30 + $0x408] sm:$0xf]  ;;  %v447_v2 = vld [vmem:[%s7314_s30 + $0x410] sm:$0xf]  ;;  %444 = vst [vmem:[%s7321_s28 + $0x200] sm:$0xf] %v443_v0 }
  0x79   : > { %446 = vst [vmem:[%s7321_s28 + $0x204] sm:$0xf] %v445_v1  ;;  %448 = vst [vmem:[%s7321_s28 + $0x208] sm:$0xf] %v447_v2  ;;  %v449_v3 = vld [vmem:[%s7314_s30 + $0x418] sm:$0xf] }
  0x7a   : > { %v451_v4 = vld [vmem:[%s7314_s30 + $0x420] sm:$0xf]  ;;  %v453_v5 = vld [vmem:[%s7314_s30 + $0x428] sm:$0xf]  ;;  %450 = vst [vmem:[%s7321_s28 + $0x20c] sm:$0xf] %v449_v3 }
  0x7b   : > { %452 = vst [vmem:[%s7321_s28 + $0x210] sm:$0xf] %v451_v4  ;;  %454 = vst [vmem:[%s7321_s28 + $0x214] sm:$0xf] %v453_v5  ;;  %v455_v6 = vld [vmem:[%s7314_s30 + $0x430] sm:$0xf] }
  0x7c   : > { %v457_v7 = vld [vmem:[%s7314_s30 + $0x438] sm:$0xf]  ;;  %v459_v8 = vld [vmem:[%s7314_s30 + $0x440] sm:$0xf]  ;;  %456 = vst [vmem:[%s7321_s28 + $0x218] sm:$0xf] %v455_v6 }
  0x7d   : > { %458 = vst [vmem:[%s7321_s28 + $0x21c] sm:$0xf] %v457_v7  ;;  %460 = vst [vmem:[%s7321_s28 + $0x220] sm:$0xf] %v459_v8  ;;  %v461_v9 = vld [vmem:[%s7314_s30 + $0x448] sm:$0xf] }
  0x7e   : > { %v463_v10 = vld [vmem:[%s7314_s30 + $0x450] sm:$0xf]  ;;  %v465_v11 = vld [vmem:[%s7314_s30 + $0x458] sm:$0xf]  ;;  %462 = vst [vmem:[%s7321_s28 + $0x224] sm:$0xf] %v461_v9 }
  0x7f   : > { %464 = vst [vmem:[%s7321_s28 + $0x228] sm:$0xf] %v463_v10  ;;  %466 = vst [vmem:[%s7321_s28 + $0x22c] sm:$0xf] %v465_v11  ;;  %v467_v12 = vld [vmem:[%s7314_s30 + $0x460] sm:$0xf] }
  0x80   : > { %v469_v13 = vld [vmem:[%s7314_s30 + $0x468] sm:$0xf]  ;;  %v471_v14 = vld [vmem:[%s7314_s30 + $0x470] sm:$0xf]  ;;  %468 = vst [vmem:[%s7321_s28 + $0x230] sm:$0xf] %v467_v12 }
  0x81   : > { %470 = vst [vmem:[%s7321_s28 + $0x234] sm:$0xf] %v469_v13  ;;  %472 = vst [vmem:[%s7321_s28 + $0x238] sm:$0xf] %v471_v14  ;;  %v473_v15 = vld [vmem:[%s7314_s30 + $0x478] sm:$0xf] }
  0x82   : > { %v475_v16 = vld [vmem:[%s7314_s30 + $0x480] sm:$0xf]  ;;  %v477_v17 = vld [vmem:[%s7314_s30 + $0x488] sm:$0xf]  ;;  %474 = vst [vmem:[%s7321_s28 + $0x23c] sm:$0xf] %v473_v15 }
  0x83   : > { %476 = vst [vmem:[%s7321_s28 + $0x240] sm:$0xf] %v475_v16  ;;  %478 = vst [vmem:[%s7321_s28 + $0x244] sm:$0xf] %v477_v17  ;;  %v479_v18 = vld [vmem:[%s7314_s30 + $0x490] sm:$0xf] }
  0x84   : > { %v481_v19 = vld [vmem:[%s7314_s30 + $0x498] sm:$0xf]  ;;  %v483_v20 = vld [vmem:[%s7314_s30 + $0x4a0] sm:$0xf]  ;;  %480 = vst [vmem:[%s7321_s28 + $0x248] sm:$0xf] %v479_v18 }
  0x85   : > { %482 = vst [vmem:[%s7321_s28 + $0x24c] sm:$0xf] %v481_v19  ;;  %484 = vst [vmem:[%s7321_s28 + $0x250] sm:$0xf] %v483_v20  ;;  %v485_v21 = vld [vmem:[%s7314_s30 + $0x4a8] sm:$0xf] }
  0x86   : > { %v487_v22 = vld [vmem:[%s7314_s30 + $0x4b0] sm:$0xf]  ;;  %v489_v23 = vld [vmem:[%s7314_s30 + $0x4b8] sm:$0xf]  ;;  %486 = vst [vmem:[%s7321_s28 + $0x254] sm:$0xf] %v485_v21 }
  0x87   : > { %488 = vst [vmem:[%s7321_s28 + $0x258] sm:$0xf] %v487_v22  ;;  %490 = vst [vmem:[%s7321_s28 + $0x25c] sm:$0xf] %v489_v23  ;;  %v491_v24 = vld [vmem:[%s7314_s30 + $0x4c0] sm:$0xf] }
  0x88   : > { %v493_v25 = vld [vmem:[%s7314_s30 + $0x4c8] sm:$0xf]  ;;  %v495_v26 = vld [vmem:[%s7314_s30 + $0x4d0] sm:$0xf]  ;;  %492 = vst [vmem:[%s7321_s28 + $0x260] sm:$0xf] %v491_v24 }
  0x89   : > { %494 = vst [vmem:[%s7321_s28 + $0x264] sm:$0xf] %v493_v25  ;;  %496 = vst [vmem:[%s7321_s28 + $0x268] sm:$0xf] %v495_v26  ;;  %v497_v27 = vld [vmem:[%s7314_s30 + $0x4d8] sm:$0xf] }
  0x8a   : > { %v499_v28 = vld [vmem:[%s7314_s30 + $0x4e0] sm:$0xf]  ;;  %v501_v29 = vld [vmem:[%s7314_s30 + $0x4e8] sm:$0xf]  ;;  %498 = vst [vmem:[%s7321_s28 + $0x26c] sm:$0xf] %v497_v27 }
  0x8b   : > { %500 = vst [vmem:[%s7321_s28 + $0x270] sm:$0xf] %v499_v28  ;;  %502 = vst [vmem:[%s7321_s28 + $0x274] sm:$0xf] %v501_v29  ;;  %v503_v30 = vld [vmem:[%s7314_s30 + $0x4f0] sm:$0xf] }
  0x8c   : > { %v505_v31 = vld [vmem:[%s7314_s30 + $0x4f8] sm:$0xf]  ;;  %v507_v32 = vld [vmem:[%s7314_s30 + $0x500] sm:$0xf]  ;;  %504 = vst [vmem:[%s7321_s28 + $0x278] sm:$0xf] %v503_v30 }
  0x8d   : > { %506 = vst [vmem:[%s7321_s28 + $0x27c] sm:$0xf] %v505_v31  ;;  %508 = vst [vmem:[%s7321_s28 + $0x280] sm:$0xf] %v507_v32  ;;  %v509_v33 = vld [vmem:[%s7314_s30 + $0x508] sm:$0xf] }
  0x8e   : > { %v511_v34 = vld [vmem:[%s7314_s30 + $0x510] sm:$0xf]  ;;  %v513_v35 = vld [vmem:[%s7314_s30 + $0x518] sm:$0xf]  ;;  %510 = vst [vmem:[%s7321_s28 + $0x284] sm:$0xf] %v509_v33 }
  0x8f   : > { %512 = vst [vmem:[%s7321_s28 + $0x288] sm:$0xf] %v511_v34  ;;  %514 = vst [vmem:[%s7321_s28 + $0x28c] sm:$0xf] %v513_v35  ;;  %v515_v36 = vld [vmem:[%s7314_s30 + $0x520] sm:$0xf] }
  0x90   : > { %v517_v37 = vld [vmem:[%s7314_s30 + $0x528] sm:$0xf]  ;;  %v519_v38 = vld [vmem:[%s7314_s30 + $0x530] sm:$0xf]  ;;  %516 = vst [vmem:[%s7321_s28 + $0x290] sm:$0xf] %v515_v36 }
  0x91   : > { %518 = vst [vmem:[%s7321_s28 + $0x294] sm:$0xf] %v517_v37  ;;  %520 = vst [vmem:[%s7321_s28 + $0x298] sm:$0xf] %v519_v38  ;;  %v521_v39 = vld [vmem:[%s7314_s30 + $0x538] sm:$0xf] }
  0x92   : > { %v523_v40 = vld [vmem:[%s7314_s30 + $0x540] sm:$0xf]  ;;  %v525_v41 = vld [vmem:[%s7314_s30 + $0x548] sm:$0xf]  ;;  %522 = vst [vmem:[%s7321_s28 + $0x29c] sm:$0xf] %v521_v39 }
  0x93   : > { %524 = vst [vmem:[%s7321_s28 + $0x2a0] sm:$0xf] %v523_v40  ;;  %526 = vst [vmem:[%s7321_s28 + $0x2a4] sm:$0xf] %v525_v41  ;;  %v527_v42 = vld [vmem:[%s7314_s30 + $0x550] sm:$0xf] }
  0x94   : > { %v529_v43 = vld [vmem:[%s7314_s30 + $0x558] sm:$0xf]  ;;  %v531_v44 = vld [vmem:[%s7314_s30 + $0x560] sm:$0xf]  ;;  %528 = vst [vmem:[%s7321_s28 + $0x2a8] sm:$0xf] %v527_v42 }
  0x95   : > { %530 = vst [vmem:[%s7321_s28 + $0x2ac] sm:$0xf] %v529_v43  ;;  %532 = vst [vmem:[%s7321_s28 + $0x2b0] sm:$0xf] %v531_v44  ;;  %v533_v45 = vld [vmem:[%s7314_s30 + $0x568] sm:$0xf] }
  0x96   : > { %v535_v46 = vld [vmem:[%s7314_s30 + $0x570] sm:$0xf]  ;;  %v537_v47 = vld [vmem:[%s7314_s30 + $0x578] sm:$0xf]  ;;  %534 = vst [vmem:[%s7321_s28 + $0x2b4] sm:$0xf] %v533_v45 }
  0x97   : > { %536 = vst [vmem:[%s7321_s28 + $0x2b8] sm:$0xf] %v535_v46  ;;  %538 = vst [vmem:[%s7321_s28 + $0x2bc] sm:$0xf] %v537_v47  ;;  %v539_v48 = vld [vmem:[%s7314_s30 + $0x580] sm:$0xf] }
  0x98   : > { %v541_v49 = vld [vmem:[%s7314_s30 + $0x588] sm:$0xf]  ;;  %v543_v50 = vld [vmem:[%s7314_s30 + $0x590] sm:$0xf]  ;;  %540 = vst [vmem:[%s7321_s28 + $0x2c0] sm:$0xf] %v539_v48 }
  0x99   : > { %542 = vst [vmem:[%s7321_s28 + $0x2c4] sm:$0xf] %v541_v49  ;;  %544 = vst [vmem:[%s7321_s28 + $0x2c8] sm:$0xf] %v543_v50  ;;  %v545_v51 = vld [vmem:[%s7314_s30 + $0x598] sm:$0xf] }
  0x9a   : > { %v547_v52 = vld [vmem:[%s7314_s30 + $0x5a0] sm:$0xf]  ;;  %v549_v53 = vld [vmem:[%s7314_s30 + $0x5a8] sm:$0xf]  ;;  %546 = vst [vmem:[%s7321_s28 + $0x2cc] sm:$0xf] %v545_v51 }
  0x9b   : > { %548 = vst [vmem:[%s7321_s28 + $0x2d0] sm:$0xf] %v547_v52  ;;  %550 = vst [vmem:[%s7321_s28 + $0x2d4] sm:$0xf] %v549_v53  ;;  %v551_v54 = vld [vmem:[%s7314_s30 + $0x5b0] sm:$0xf] }
  0x9c   : > { %v553_v55 = vld [vmem:[%s7314_s30 + $0x5b8] sm:$0xf]  ;;  %v555_v56 = vld [vmem:[%s7314_s30 + $0x5c0] sm:$0xf]  ;;  %552 = vst [vmem:[%s7321_s28 + $0x2d8] sm:$0xf] %v551_v54 }
  0x9d   : > { %554 = vst [vmem:[%s7321_s28 + $0x2dc] sm:$0xf] %v553_v55  ;;  %556 = vst [vmem:[%s7321_s28 + $0x2e0] sm:$0xf] %v555_v56  ;;  %v557_v57 = vld [vmem:[%s7314_s30 + $0x5c8] sm:$0xf] }
  0x9e   : > { %v559_v58 = vld [vmem:[%s7314_s30 + $0x5d0] sm:$0xf]  ;;  %v561_v59 = vld [vmem:[%s7314_s30 + $0x5d8] sm:$0xf]  ;;  %558 = vst [vmem:[%s7321_s28 + $0x2e4] sm:$0xf] %v557_v57 }
  0x9f   : > { %560 = vst [vmem:[%s7321_s28 + $0x2e8] sm:$0xf] %v559_v58  ;;  %562 = vst [vmem:[%s7321_s28 + $0x2ec] sm:$0xf] %v561_v59  ;;  %v563_v60 = vld [vmem:[%s7314_s30 + $0x5e0] sm:$0xf] }
  0xa0   : > { %v565_v61 = vld [vmem:[%s7314_s30 + $0x5e8] sm:$0xf]  ;;  %v567_v62 = vld [vmem:[%s7314_s30 + $0x5f0] sm:$0xf]  ;;  %564 = vst [vmem:[%s7321_s28 + $0x2f0] sm:$0xf] %v563_v60 }
  0xa1   : > { %566 = vst [vmem:[%s7321_s28 + $0x2f4] sm:$0xf] %v565_v61  ;;  %568 = vst [vmem:[%s7321_s28 + $0x2f8] sm:$0xf] %v567_v62  ;;  %v569_v63 = vld [vmem:[%s7314_s30 + $0x5f8] sm:$0xf] }
  0xa2   : > { %v571_v0 = vld [vmem:[%s7314_s30 + $0x600] sm:$0xf]  ;;  %v573_v1 = vld [vmem:[%s7314_s30 + $0x608] sm:$0xf]  ;;  %570 = vst [vmem:[%s7321_s28 + $0x2fc] sm:$0xf] %v569_v63 }
  0xa3   : > { %572 = vst [vmem:[%s7321_s28 + $0x300] sm:$0xf] %v571_v0  ;;  %574 = vst [vmem:[%s7321_s28 + $0x304] sm:$0xf] %v573_v1  ;;  %v575_v2 = vld [vmem:[%s7314_s30 + $0x610] sm:$0xf] }
  0xa4   : > { %v577_v3 = vld [vmem:[%s7314_s30 + $0x618] sm:$0xf]  ;;  %v579_v4 = vld [vmem:[%s7314_s30 + $0x620] sm:$0xf]  ;;  %576 = vst [vmem:[%s7321_s28 + $0x308] sm:$0xf] %v575_v2 }
  0xa5   : > { %578 = vst [vmem:[%s7321_s28 + $0x30c] sm:$0xf] %v577_v3  ;;  %580 = vst [vmem:[%s7321_s28 + $0x310] sm:$0xf] %v579_v4  ;;  %v581_v5 = vld [vmem:[%s7314_s30 + $0x628] sm:$0xf] }
  0xa6   : > { %v583_v6 = vld [vmem:[%s7314_s30 + $0x630] sm:$0xf]  ;;  %v585_v7 = vld [vmem:[%s7314_s30 + $0x638] sm:$0xf]  ;;  %582 = vst [vmem:[%s7321_s28 + $0x314] sm:$0xf] %v581_v5 }
  0xa7   : > { %584 = vst [vmem:[%s7321_s28 + $0x318] sm:$0xf] %v583_v6  ;;  %586 = vst [vmem:[%s7321_s28 + $0x31c] sm:$0xf] %v585_v7  ;;  %v587_v8 = vld [vmem:[%s7314_s30 + $0x640] sm:$0xf] }
  0xa8   : > { %v589_v9 = vld [vmem:[%s7314_s30 + $0x648] sm:$0xf]  ;;  %v591_v10 = vld [vmem:[%s7314_s30 + $0x650] sm:$0xf]  ;;  %588 = vst [vmem:[%s7321_s28 + $0x320] sm:$0xf] %v587_v8 }
  0xa9   : > { %590 = vst [vmem:[%s7321_s28 + $0x324] sm:$0xf] %v589_v9  ;;  %592 = vst [vmem:[%s7321_s28 + $0x328] sm:$0xf] %v591_v10  ;;  %v593_v11 = vld [vmem:[%s7314_s30 + $0x658] sm:$0xf] }
  0xaa   : > { %v595_v12 = vld [vmem:[%s7314_s30 + $0x660] sm:$0xf]  ;;  %v597_v13 = vld [vmem:[%s7314_s30 + $0x668] sm:$0xf]  ;;  %594 = vst [vmem:[%s7321_s28 + $0x32c] sm:$0xf] %v593_v11 }
  0xab   : > { %596 = vst [vmem:[%s7321_s28 + $0x330] sm:$0xf] %v595_v12  ;;  %598 = vst [vmem:[%s7321_s28 + $0x334] sm:$0xf] %v597_v13  ;;  %v599_v14 = vld [vmem:[%s7314_s30 + $0x670] sm:$0xf] }
  0xac   : > { %v601_v15 = vld [vmem:[%s7314_s30 + $0x678] sm:$0xf]  ;;  %v603_v16 = vld [vmem:[%s7314_s30 + $0x680] sm:$0xf]  ;;  %600 = vst [vmem:[%s7321_s28 + $0x338] sm:$0xf] %v599_v14 }
  0xad   : > { %602 = vst [vmem:[%s7321_s28 + $0x33c] sm:$0xf] %v601_v15  ;;  %604 = vst [vmem:[%s7321_s28 + $0x340] sm:$0xf] %v603_v16  ;;  %v605_v17 = vld [vmem:[%s7314_s30 + $0x688] sm:$0xf] }
  0xae   : > { %v607_v18 = vld [vmem:[%s7314_s30 + $0x690] sm:$0xf]  ;;  %v609_v19 = vld [vmem:[%s7314_s30 + $0x698] sm:$0xf]  ;;  %606 = vst [vmem:[%s7321_s28 + $0x344] sm:$0xf] %v605_v17 }
  0xaf   : > { %608 = vst [vmem:[%s7321_s28 + $0x348] sm:$0xf] %v607_v18  ;;  %610 = vst [vmem:[%s7321_s28 + $0x34c] sm:$0xf] %v609_v19  ;;  %v611_v20 = vld [vmem:[%s7314_s30 + $0x6a0] sm:$0xf] }
  0xb0   : > { %v613_v21 = vld [vmem:[%s7314_s30 + $0x6a8] sm:$0xf]  ;;  %v615_v22 = vld [vmem:[%s7314_s30 + $0x6b0] sm:$0xf]  ;;  %612 = vst [vmem:[%s7321_s28 + $0x350] sm:$0xf] %v611_v20 }
  0xb1   : > { %614 = vst [vmem:[%s7321_s28 + $0x354] sm:$0xf] %v613_v21  ;;  %616 = vst [vmem:[%s7321_s28 + $0x358] sm:$0xf] %v615_v22  ;;  %v617_v23 = vld [vmem:[%s7314_s30 + $0x6b8] sm:$0xf] }
  0xb2   : > { %v619_v24 = vld [vmem:[%s7314_s30 + $0x6c0] sm:$0xf]  ;;  %v621_v25 = vld [vmem:[%s7314_s30 + $0x6c8] sm:$0xf]  ;;  %618 = vst [vmem:[%s7321_s28 + $0x35c] sm:$0xf] %v617_v23 }
  0xb3   : > { %620 = vst [vmem:[%s7321_s28 + $0x360] sm:$0xf] %v619_v24  ;;  %622 = vst [vmem:[%s7321_s28 + $0x364] sm:$0xf] %v621_v25  ;;  %v623_v26 = vld [vmem:[%s7314_s30 + $0x6d0] sm:$0xf] }
  0xb4   : > { %v625_v27 = vld [vmem:[%s7314_s30 + $0x6d8] sm:$0xf]  ;;  %v627_v28 = vld [vmem:[%s7314_s30 + $0x6e0] sm:$0xf]  ;;  %624 = vst [vmem:[%s7321_s28 + $0x368] sm:$0xf] %v623_v26 }
  0xb5   : > { %626 = vst [vmem:[%s7321_s28 + $0x36c] sm:$0xf] %v625_v27  ;;  %628 = vst [vmem:[%s7321_s28 + $0x370] sm:$0xf] %v627_v28  ;;  %v629_v29 = vld [vmem:[%s7314_s30 + $0x6e8] sm:$0xf] }
  0xb6   : > { %v631_v30 = vld [vmem:[%s7314_s30 + $0x6f0] sm:$0xf]  ;;  %v633_v31 = vld [vmem:[%s7314_s30 + $0x6f8] sm:$0xf]  ;;  %630 = vst [vmem:[%s7321_s28 + $0x374] sm:$0xf] %v629_v29 }
  0xb7   : > { %632 = vst [vmem:[%s7321_s28 + $0x378] sm:$0xf] %v631_v30  ;;  %634 = vst [vmem:[%s7321_s28 + $0x37c] sm:$0xf] %v633_v31  ;;  %v635_v32 = vld [vmem:[%s7314_s30 + $0x700] sm:$0xf] }
  0xb8   : > { %v637_v33 = vld [vmem:[%s7314_s30 + $0x708] sm:$0xf]  ;;  %v639_v34 = vld [vmem:[%s7314_s30 + $0x710] sm:$0xf]  ;;  %636 = vst [vmem:[%s7321_s28 + $0x380] sm:$0xf] %v635_v32 }
  0xb9   : > { %638 = vst [vmem:[%s7321_s28 + $0x384] sm:$0xf] %v637_v33  ;;  %640 = vst [vmem:[%s7321_s28 + $0x388] sm:$0xf] %v639_v34  ;;  %v641_v35 = vld [vmem:[%s7314_s30 + $0x718] sm:$0xf] }
  0xba   : > { %v643_v36 = vld [vmem:[%s7314_s30 + $0x720] sm:$0xf]  ;;  %v645_v37 = vld [vmem:[%s7314_s30 + $0x728] sm:$0xf]  ;;  %642 = vst [vmem:[%s7321_s28 + $0x38c] sm:$0xf] %v641_v35 }
  0xbb   : > { %644 = vst [vmem:[%s7321_s28 + $0x390] sm:$0xf] %v643_v36  ;;  %646 = vst [vmem:[%s7321_s28 + $0x394] sm:$0xf] %v645_v37  ;;  %v647_v38 = vld [vmem:[%s7314_s30 + $0x730] sm:$0xf] }
  0xbc   : > { %v649_v39 = vld [vmem:[%s7314_s30 + $0x738] sm:$0xf]  ;;  %v651_v40 = vld [vmem:[%s7314_s30 + $0x740] sm:$0xf]  ;;  %648 = vst [vmem:[%s7321_s28 + $0x398] sm:$0xf] %v647_v38 }
  0xbd   : > { %650 = vst [vmem:[%s7321_s28 + $0x39c] sm:$0xf] %v649_v39  ;;  %652 = vst [vmem:[%s7321_s28 + $0x3a0] sm:$0xf] %v651_v40  ;;  %v653_v41 = vld [vmem:[%s7314_s30 + $0x748] sm:$0xf] }
  0xbe   : > { %v655_v42 = vld [vmem:[%s7314_s30 + $0x750] sm:$0xf]  ;;  %v657_v43 = vld [vmem:[%s7314_s30 + $0x758] sm:$0xf]  ;;  %654 = vst [vmem:[%s7321_s28 + $0x3a4] sm:$0xf] %v653_v41 }
  0xbf   : > { %656 = vst [vmem:[%s7321_s28 + $0x3a8] sm:$0xf] %v655_v42  ;;  %658 = vst [vmem:[%s7321_s28 + $0x3ac] sm:$0xf] %v657_v43  ;;  %v659_v44 = vld [vmem:[%s7314_s30 + $0x760] sm:$0xf] }
  0xc0   : > { %v661_v45 = vld [vmem:[%s7314_s30 + $0x768] sm:$0xf]  ;;  %v663_v46 = vld [vmem:[%s7314_s30 + $0x770] sm:$0xf]  ;;  %660 = vst [vmem:[%s7321_s28 + $0x3b0] sm:$0xf] %v659_v44 }
  0xc1   : > { %662 = vst [vmem:[%s7321_s28 + $0x3b4] sm:$0xf] %v661_v45  ;;  %664 = vst [vmem:[%s7321_s28 + $0x3b8] sm:$0xf] %v663_v46  ;;  %v665_v47 = vld [vmem:[%s7314_s30 + $0x778] sm:$0xf] }
  0xc2   : > { %v667_v48 = vld [vmem:[%s7314_s30 + $0x780] sm:$0xf]  ;;  %v669_v49 = vld [vmem:[%s7314_s30 + $0x788] sm:$0xf]  ;;  %666 = vst [vmem:[%s7321_s28 + $0x3bc] sm:$0xf] %v665_v47 }
  0xc3   : > { %668 = vst [vmem:[%s7321_s28 + $0x3c0] sm:$0xf] %v667_v48  ;;  %670 = vst [vmem:[%s7321_s28 + $0x3c4] sm:$0xf] %v669_v49  ;;  %v671_v50 = vld [vmem:[%s7314_s30 + $0x790] sm:$0xf] }
  0xc4   : > { %v673_v51 = vld [vmem:[%s7314_s30 + $0x798] sm:$0xf]  ;;  %v675_v52 = vld [vmem:[%s7314_s30 + $0x7a0] sm:$0xf]  ;;  %672 = vst [vmem:[%s7321_s28 + $0x3c8] sm:$0xf] %v671_v50 }
  0xc5   : > { %674 = vst [vmem:[%s7321_s28 + $0x3cc] sm:$0xf] %v673_v51  ;;  %676 = vst [vmem:[%s7321_s28 + $0x3d0] sm:$0xf] %v675_v52  ;;  %v677_v53 = vld [vmem:[%s7314_s30 + $0x7a8] sm:$0xf] }
  0xc6   : > { %v679_v54 = vld [vmem:[%s7314_s30 + $0x7b0] sm:$0xf]  ;;  %v681_v55 = vld [vmem:[%s7314_s30 + $0x7b8] sm:$0xf]  ;;  %678 = vst [vmem:[%s7321_s28 + $0x3d4] sm:$0xf] %v677_v53 }
  0xc7   : > { %680 = vst [vmem:[%s7321_s28 + $0x3d8] sm:$0xf] %v679_v54  ;;  %682 = vst [vmem:[%s7321_s28 + $0x3dc] sm:$0xf] %v681_v55  ;;  %v683_v56 = vld [vmem:[%s7314_s30 + $0x7c0] sm:$0xf] }
  0xc8   : > { %v685_v57 = vld [vmem:[%s7314_s30 + $0x7c8] sm:$0xf]  ;;  %v687_v58 = vld [vmem:[%s7314_s30 + $0x7d0] sm:$0xf]  ;;  %684 = vst [vmem:[%s7321_s28 + $0x3e0] sm:$0xf] %v683_v56 }
  0xc9   : > { %686 = vst [vmem:[%s7321_s28 + $0x3e4] sm:$0xf] %v685_v57  ;;  %688 = vst [vmem:[%s7321_s28 + $0x3e8] sm:$0xf] %v687_v58  ;;  %v689_v59 = vld [vmem:[%s7314_s30 + $0x7d8] sm:$0xf] }
  0xca   : > { %v691_v60 = vld [vmem:[%s7314_s30 + $0x7e0] sm:$0xf]  ;;  %v693_v61 = vld [vmem:[%s7314_s30 + $0x7e8] sm:$0xf]  ;;  %690 = vst [vmem:[%s7321_s28 + $0x3ec] sm:$0xf] %v689_v59 }
  0xcb   : > { %692 = vst [vmem:[%s7321_s28 + $0x3f0] sm:$0xf] %v691_v60  ;;  %694 = vst [vmem:[%s7321_s28 + $0x3f4] sm:$0xf] %v693_v61  ;;  %v695_v62 = vld [vmem:[%s7314_s30 + $0x7f0] sm:$0xf] }
  0xcc   : > { %v697_v63 = vld [vmem:[%s7314_s30 + $0x7f8] sm:$0xf]  ;;  %v699_v0 = vld [vmem:[%s7314_s30 + $0x800] sm:$0xf]  ;;  %696 = vst [vmem:[%s7321_s28 + $0x3f8] sm:$0xf] %v695_v62 }
  0xcd   : > { %698 = vst [vmem:[%s7321_s28 + $0x3fc] sm:$0xf] %v697_v63  ;;  %700 = vst [vmem:[%s7321_s28 + $0x400] sm:$0xf] %v699_v0  ;;  %v701_v1 = vld [vmem:[%s7314_s30 + $0x808] sm:$0xf] }
  0xce   : > { %v703_v2 = vld [vmem:[%s7314_s30 + $0x810] sm:$0xf]  ;;  %v705_v3 = vld [vmem:[%s7314_s30 + $0x818] sm:$0xf]  ;;  %702 = vst [vmem:[%s7321_s28 + $0x404] sm:$0xf] %v701_v1 }
  0xcf   : > { %704 = vst [vmem:[%s7321_s28 + $0x408] sm:$0xf] %v703_v2  ;;  %706 = vst [vmem:[%s7321_s28 + $0x40c] sm:$0xf] %v705_v3  ;;  %v707_v4 = vld [vmem:[%s7314_s30 + $0x820] sm:$0xf] }
  0xd0   : > { %v709_v5 = vld [vmem:[%s7314_s30 + $0x828] sm:$0xf]  ;;  %v711_v6 = vld [vmem:[%s7314_s30 + $0x830] sm:$0xf]  ;;  %708 = vst [vmem:[%s7321_s28 + $0x410] sm:$0xf] %v707_v4 }
  0xd1   : > { %710 = vst [vmem:[%s7321_s28 + $0x414] sm:$0xf] %v709_v5  ;;  %712 = vst [vmem:[%s7321_s28 + $0x418] sm:$0xf] %v711_v6  ;;  %v713_v7 = vld [vmem:[%s7314_s30 + $0x838] sm:$0xf] }
  0xd2   : > { %v715_v8 = vld [vmem:[%s7314_s30 + $0x840] sm:$0xf]  ;;  %v717_v9 = vld [vmem:[%s7314_s30 + $0x848] sm:$0xf]  ;;  %714 = vst [vmem:[%s7321_s28 + $0x41c] sm:$0xf] %v713_v7 }
  0xd3   : > { %716 = vst [vmem:[%s7321_s28 + $0x420] sm:$0xf] %v715_v8  ;;  %718 = vst [vmem:[%s7321_s28 + $0x424] sm:$0xf] %v717_v9  ;;  %v719_v10 = vld [vmem:[%s7314_s30 + $0x850] sm:$0xf] }
  0xd4   : > { %v721_v11 = vld [vmem:[%s7314_s30 + $0x858] sm:$0xf]  ;;  %v723_v12 = vld [vmem:[%s7314_s30 + $0x860] sm:$0xf]  ;;  %720 = vst [vmem:[%s7321_s28 + $0x428] sm:$0xf] %v719_v10 }
  0xd5   : > { %722 = vst [vmem:[%s7321_s28 + $0x42c] sm:$0xf] %v721_v11  ;;  %724 = vst [vmem:[%s7321_s28 + $0x430] sm:$0xf] %v723_v12  ;;  %v725_v13 = vld [vmem:[%s7314_s30 + $0x868] sm:$0xf] }
  0xd6   : > { %v727_v14 = vld [vmem:[%s7314_s30 + $0x870] sm:$0xf]  ;;  %v729_v15 = vld [vmem:[%s7314_s30 + $0x878] sm:$0xf]  ;;  %726 = vst [vmem:[%s7321_s28 + $0x434] sm:$0xf] %v725_v13 }
  0xd7   : > { %728 = vst [vmem:[%s7321_s28 + $0x438] sm:$0xf] %v727_v14  ;;  %730 = vst [vmem:[%s7321_s28 + $0x43c] sm:$0xf] %v729_v15  ;;  %v731_v16 = vld [vmem:[%s7314_s30 + $0x880] sm:$0xf] }
  0xd8   : > { %v733_v17 = vld [vmem:[%s7314_s30 + $0x888] sm:$0xf]  ;;  %v735_v18 = vld [vmem:[%s7314_s30 + $0x890] sm:$0xf]  ;;  %732 = vst [vmem:[%s7321_s28 + $0x440] sm:$0xf] %v731_v16 }
  0xd9   : > { %734 = vst [vmem:[%s7321_s28 + $0x444] sm:$0xf] %v733_v17  ;;  %736 = vst [vmem:[%s7321_s28 + $0x448] sm:$0xf] %v735_v18  ;;  %v737_v19 = vld [vmem:[%s7314_s30 + $0x898] sm:$0xf] }
  0xda   : > { %v739_v20 = vld [vmem:[%s7314_s30 + $0x8a0] sm:$0xf]  ;;  %v741_v21 = vld [vmem:[%s7314_s30 + $0x8a8] sm:$0xf]  ;;  %738 = vst [vmem:[%s7321_s28 + $0x44c] sm:$0xf] %v737_v19 }
  0xdb   : > { %740 = vst [vmem:[%s7321_s28 + $0x450] sm:$0xf] %v739_v20  ;;  %742 = vst [vmem:[%s7321_s28 + $0x454] sm:$0xf] %v741_v21  ;;  %v743_v22 = vld [vmem:[%s7314_s30 + $0x8b0] sm:$0xf] }
  0xdc   : > { %v745_v23 = vld [vmem:[%s7314_s30 + $0x8b8] sm:$0xf]  ;;  %v747_v24 = vld [vmem:[%s7314_s30 + $0x8c0] sm:$0xf]  ;;  %744 = vst [vmem:[%s7321_s28 + $0x458] sm:$0xf] %v743_v22 }
  0xdd   : > { %746 = vst [vmem:[%s7321_s28 + $0x45c] sm:$0xf] %v745_v23  ;;  %748 = vst [vmem:[%s7321_s28 + $0x460] sm:$0xf] %v747_v24  ;;  %v749_v25 = vld [vmem:[%s7314_s30 + $0x8c8] sm:$0xf] }
  0xde   : > { %v751_v26 = vld [vmem:[%s7314_s30 + $0x8d0] sm:$0xf]  ;;  %v753_v27 = vld [vmem:[%s7314_s30 + $0x8d8] sm:$0xf]  ;;  %750 = vst [vmem:[%s7321_s28 + $0x464] sm:$0xf] %v749_v25 }
  0xdf   : > { %752 = vst [vmem:[%s7321_s28 + $0x468] sm:$0xf] %v751_v26  ;;  %754 = vst [vmem:[%s7321_s28 + $0x46c] sm:$0xf] %v753_v27  ;;  %v755_v28 = vld [vmem:[%s7314_s30 + $0x8e0] sm:$0xf] }
  0xe0   : > { %v757_v29 = vld [vmem:[%s7314_s30 + $0x8e8] sm:$0xf]  ;;  %v759_v30 = vld [vmem:[%s7314_s30 + $0x8f0] sm:$0xf]  ;;  %756 = vst [vmem:[%s7321_s28 + $0x470] sm:$0xf] %v755_v28 }
  0xe1   : > { %758 = vst [vmem:[%s7321_s28 + $0x474] sm:$0xf] %v757_v29  ;;  %760 = vst [vmem:[%s7321_s28 + $0x478] sm:$0xf] %v759_v30  ;;  %v761_v31 = vld [vmem:[%s7314_s30 + $0x8f8] sm:$0xf] }
  0xe2   : > { %762 = vst [vmem:[%s7321_s28 + $0x47c] sm:$0xf] %v761_v31 }
  0xe3 PF: > { %p5482_p12 = scmp.ge.s32.totalorder %s7190_s22, 1  ;;  %p1366_p13 = scmp.lt.s32.totalorder %s7190_s22, 9 }
  0xe5   : > { %p1367_p0 = pnand %p5482_p12, %p1366_p13 }
  0xe6   : > { %s1373_s24 = sand.u32 (!%p1367_p0), 1, %s7158_s14   ;;  %p1403_p1 = scmp.lt.s32.totalorder (!%p1367_p0), %s7174_s18, 1  ;;  %vm1473_vm0 = vsmask.f32 (!%p1367_p0), 3328  ;;  %vm1474_vm1 = vsmask.f32 (!%p1367_p0), 7440 }
  0xe7   : > { %1370 = sbr.rel (%p1367_p0) target bundleno = 791 (0x317), region = 69  ;;  %vm7950_vm2 = vmor (!%p1367_p0), %vm1473_vm0, %vm1474_vm1  ;;  %vm2255_vm3 = vcmask (!%p1367_p0), 1042432   ;;  %vm2256_vm4 = vcmask (!%p1367_p0), 1046532   ;;  %p1408_p2 = scmp.lt.s32.totalorder (!%p1367_p0), %s7170_s17, 1 }
  0xe8   : > { %s6838_s26 = smul.u32 (!%p1367_p0), 1152, %s1373_s24  ;;  %vm8011_vm5 = vmor (!%p1367_p0), %vm2255_vm3, %vm2256_vm4 }
  0xe9   : > { %s6180_s7 = smul.u32 (!%p1367_p0), 192, %s7166_s16 }
  0xea   : > { %s7898_s29 = scalar_lea.vmem (!%p1367_p0), [#allocation2], %s6838_s26  ;;  %s1400_s26 = sand.u32 (!%p1367_p0), 1, %s7150_s12  }
  0xeb   : > { %v6928_v32 = vld [vmem:[%s7898_s29 + $0xc0] sm:$0xff] (!%p1367_p0)   ;;  %v6930_v34 = vld [vmem:[%s7898_s29 + $0xc8] sm:$0xff] (!%p1367_p0)   ;;  %v6932_v36 = vld [vmem:[%s7898_s29 + $0xd0] sm:$0xff] (!%p1367_p0)  }
  0xec   : > { %v6929_v33 = vld [vmem:[%s7898_s29 + $0x80] sm:$0xff] (!%p1367_p0)   ;;  %6245 = vmatprep.subr.bf16.mxu0 (!%p1367_p0), %v6928_v32  ;;  %6821 = vmatprep.subr.bf16.mxu1 (!%p1367_p0), %v6928_v32  ;;  %v6931_v35 = vld [vmem:[%s7898_s29 + $0x88] sm:$0xff] (!%p1367_p0)   ;;  %v6933_v37 = vld [vmem:[%s7898_s29 + $0x90] sm:$0xff] (!%p1367_p0)  }
  0xed   : > { %6246 = vmatpush3.bf16.msra.mxu0 (!%p1367_p0), %v6929_v33  ;;  %6829 = vmatpush3.bf16.msra.mxu1 (!%p1367_p0), %v6929_v33  ;;  %v6934_v38 = vld [vmem:[%s7898_s29 + $0xd8] sm:$0xff] (!%p1367_p0)   ;;  %v6936_v40 = vld [vmem:[%s7898_s29 + $0xe0] sm:$0xff] (!%p1367_p0)   ;;  %v6938_v42 = vld [vmem:[%s7898_s29 + $0xe8] sm:$0xff] (!%p1367_p0)  }
  0xee   : > { %s1404_s5 = scalar_select %p1403_p1, %s7174_s18, 1  ;;  %6247 = vmatprep.subr.bf16.mxu0 %v6930_v34  ;;  %6822 = vmatprep.subr.bf16.mxu1 %v6930_v34  ;;  %v6935_v39 = vld [vmem:[%s7898_s29 + $0x98] sm:$0xff]   ;;  %v6937_v41 = vld [vmem:[%s7898_s29 + $0xa0] sm:$0xff]   ;;  %v6939_v46 = vld [vmem:[%s7898_s29 + $0xa8] sm:$0xff]  }
  0xef   : > { %v6940_v53 = vld [vmem:[%s7898_s29 + $0xf0] sm:$0xff]   ;;  %v6942_v13 = vld [vmem:[%s7898_s29 + $0xf8] sm:$0xff]   ;;  %v6944_v25 = vld [vmem:[%s7898_s29 + $0x40] sm:$0xff]   ;;  %s1409_s27 = scalar_select %p1408_p2, %s7170_s17, 1 }
  0xf0   : > { %s6839_s14 = smul.u32 432, %s1404_s5  ;;  %v6941_v9 = vld [vmem:[%s7898_s29 + $0xb0] sm:$0xff]   ;;  %v6943_v21 = vld [vmem:[%s7898_s29 + $0xb8] sm:$0xff]   ;;  %v6945_v26 = vld [vmem:[%s7898_s29 + $0x140] sm:$0xff]   ;;  %s6197_s5 = sshll.u32 (%p7298_p9), %s7166_s16, 5 }
  0xf1   : > { %6248 = vmatpush3.bf16.msra.mxu0 %v6931_v35  ;;  %6830 = vmatpush3.bf16.msra.mxu1 %v6931_v35  ;;  %v6946_v30 = vld [vmem:[%s7898_s29] sm:$0xff]   ;;  %s1410_s24 = scalar_lea.vmem %s9389_s2, %s1409_s27  ;;  %s5264_s6 = sadd.s32 (%p7298_p9), %s7170_s17, %s6197_s5 }
  0xf2   : > { %6249 = vmatprep.subr.bf16.mxu0 %v6932_v36  ;;  %6823 = vmatprep.subr.bf16.mxu1 %v6932_v36  ;;  %s1407_s11 = scalar_lea.vmem %s9387_s0, %s6839_s14  ;;  %v6947_v31 = vld [vmem:[%s7898_s29 + $0x100] sm:$0xff]   ;;  %s6176_s14 = sshll.u32 (%p7298_p9), %s7174_s18, 6 }
  0xf3   : > { %s7914_s25 = scalar_lea.vmem %s1407_s11, %s6180_s7  ;;  %s5266_s7 = sadd.s32 (%p7298_p9), %s6176_s14, %s5264_s6 }
  0xf4   : > { %v7919_v43 = vld [vmem:[%s7914_s25] sm:$0xff]  ;;  %v7922_v44 = vld [vmem:[%s7914_s25 + $0x8] sm:$0xff]  ;;  %v7925_v45 = vld [vmem:[%s7914_s25 + $0x10] sm:$0x11]  ;;  %s6177_s8 = sshll.u32 (%p7298_p9), %s5266_s7, 2 }
  0xf5   : > { %6250 = vmatpush3.bf16.msra.mxu0 %v6933_v37  ;;  %6831 = vmatpush3.bf16.msra.mxu1 %v6933_v37  ;;  %v1477_v47 = vshrl.u32 %v7919_v43, 16  ;;  %v1480_v48 = vshll.u32 %v7919_v43, 16  ;;  %v1486_v49 = vshll.u32 %v7922_v44, 16  ;;  %v1490_v50 = vshrl.u32 %v7922_v44, 16  ;;  %v7933_v51 = vld [vmem:[%s7914_s25 + $0x60] sm:$0xff]  ;;  %v7936_v52 = vld [vmem:[%s7914_s25 + $0x68] sm:$0xff]  ;;  %s5268_s16 = scalar_lea.vmem (%p7298_p9), %s9390_s3, %s6177_s8 }
  0xf6   : > { %6251 = vmatprep.subr.bf16.mxu0 %v6934_v38  ;;  %6824 = vmatprep.subr.bf16.mxu1 %v6934_v38  ;;  %v1496_v54 = vshll.u32 %v7925_v45, 16  ;;  %v7941_v55 = vld [vmem:[%s7914_s25 + $0x70] sm:$0x11]  ;;  %v1573_v56 = vshrl.u32 %v7933_v51, 16  ;;  %v1576_v57 = vshll.u32 %v7933_v51, 16  ;;  %v1582_v1 = vshll.u32 %v7936_v52, 16 }
  0xf7   : > { %v1479_v58 = vrot.slane %v1477_v47, 4  ;;  %v1482_v59 = vrot.slane %v1480_v48, 5  ;;  %v1488_v60 = vrot.slane %v1486_v49, 5  ;;  %v1492_v61 = vrot.slane %v1490_v50, 4  ;;  %v7975_v32 = vld [vmem:[%s7914_s25 + $0x18] sm:$0xff]  ;;  %v7978_v33 = vld [vmem:[%s7914_s25 + $0x20] sm:$0xff] }
  0xf8   : > { %v1498_v62 = vrot.slane %v1496_v54, 5  ;;  %v1575_v63 = vrot.slane %v1573_v56, 4  ;;  %v1578_v0 = vrot.slane %v1576_v57, 5  ;;  %v1586_v4 = vshrl.u32 %v7936_v52, 16  ;;  %v6948_v37 = vld [vmem:[%s7898_s29 + $0x48] sm:$0xff]  }
  0xf9   : > { %6252 = vmatpush3.bf16.msra.mxu0 %v6935_v39  ;;  %6832 = vmatpush3.bf16.msra.mxu1 %v6935_v39  ;;  %v1483_v2 = vor.u32 %v1482_v59, %v1479_v58  ;;  %v1493_v3 = vor.u32 %v1492_v61, %v1488_v60  ;;  %v1592_v5 = vshll.u32 %v7941_v55, 16  ;;  %v1584_v8 = vrot.slane %v1582_v1, 5  ;;  %v6949_v38 = vld [vmem:[%s7898_s29 + $0x148] sm:$0xff]  }
  0xfa   : > { %6253 = vmatprep.subr.bf16.mxu0 %v6936_v40  ;;  %6825 = vmatprep.subr.bf16.mxu1 %v6936_v40  ;;  %v1579_v7 = vor.u32 %v1578_v0, %v1575_v63  ;;  %v1588_v12 = vrot.slane %v1586_v4, 4  ;;  %v5561_v15 = vcombine.high %v7933_v51, %v7936_v52  ;;  %v5560_v16 = vcombine.low %v7933_v51, %v7936_v52  ;;  %v7984_v39 = vld [vmem:[%s7914_s25 + $0x28] sm:$0x11] }
  0xfb   : > { %v1484_v10 = vrot.slane %v1483_v2, 4  ;;  %v1494_v11 = vrot.slane %v1493_v3, 4  ;;  %v1594_v20 = vrot.slane %v1592_v5, 5  ;;  %v2291_v29 = vrot.slane %v7941_v55, 5  ;;  %v7998_v50 = vld [vmem:[%s7914_s25 + $0x88] sm:$0x11] }
  0xfc   : > { %v1580_v14 = vrot.slane %v1579_v7, 4  ;;  %v1589_v19 = vor.u32 %v1588_v12, %v1584_v8  ;;  %v2288_v34 = vrot.slane %v7936_v52, 5  ;;  %v1501_v40 = vshrl.u32 %v7975_v32, 16  ;;  %v6950_v58 = vld [vmem:[%s7898_s29 + $0x8] sm:$0xff]   ;;  %v6952_v12 = vld [vmem:[%s7898_s29 + $0x50] sm:$0xff]  }
  0xfd   : > { %6254 = vmatpush3.bf16.msra.mxu0 %v6937_v41  ;;  %6833 = vmatpush3.bf16.msra.mxu1 %v6937_v41  ;;  %v1489_v17 = vsel %vm7950_vm2, %v1484_v10, %v1488_v60  ;;  %v1499_v18 = vsel %vm7950_vm2, %v1494_v11, %v1498_v62  ;;  %v1504_v41 = vshll.u32 %v7975_v32, 16  ;;  %v1510_v47 = vshll.u32 %v7978_v33, 16  ;;  %v6951_v63 = vld [vmem:[%s7898_s29 + $0x108] sm:$0xff]  }
  0xfe   : > { %6255 = vmatprep.subr.bf16.mxu0 %v6938_v42  ;;  %6826 = vmatprep.subr.bf16.mxu1 %v6938_v42  ;;  %v5521_v22 = vcombine.high %v1489_v17, %v1499_v18  ;;  %v1585_v23 = vsel %vm7950_vm2, %v1580_v14, %v1584_v8  ;;  %v1590_v24 = vrot.slane %v1589_v19, 4  ;;  %v5520_v27 = vcombine.low %v1489_v17, %v1499_v18  ;;  %v7989_v42 = vld [vmem:[%s7914_s25 + $0x78] sm:$0xff]  ;;  %v6954_v18 = vld [vmem:[%s7898_s29 + $0x10] sm:$0xff]  }
  0xff   : > { %v1514_v48 = vshrl.u32 %v7978_v33, 16  ;;  %v1520_v49 = vshll.u32 %v7984_v39, 16  ;;  %v1503_v54 = vrot.slane %v1501_v40, 4  ;;  %v1506_v55 = vrot.slane %v1504_v41, 5  ;;  %v8047_v40 = vld [vmem:[%s7914_s25 + $0x30] sm:$0xff]  ;;  %v8050_v41 = vld [vmem:[%s7914_s25 + $0x38] sm:$0xff] }
 0x100   : > { %1893 = vmatprep.mubr.bf16.mxu0 %v5521_v22  ;;  %v1595_v28 = vsel %vm7950_vm2, %v1590_v24, %v1594_v20  ;;  %v1600_v56 = vshll.u32 %v7989_v42, 16  ;;  %v1512_v59 = vrot.slane %v1510_v47, 5  ;;  %v2290_v62 = vrot.slane %v2288_v34, 4  ;;  %v6955_v24 = vld [vmem:[%s7898_s29 + $0x110] sm:$0xff]   ;;  %v8053_v47 = vld [vmem:[%s7914_s25 + $0x40] sm:$0x11] }
 0x101   : > { %6256 = vmatpush3.bf16.msra.mxu0 %v6939_v46  ;;  %6834 = vmatpush3.bf16.msra.mxu1 %v6939_v46  ;;  %v5528_v35 = vcombine.low %v1585_v23, %v1595_v28  ;;  %v5529_v36 = vcombine.high %v1585_v23, %v1595_v28  ;;  %v7992_v46 = vld [vmem:[%s7914_s25 + $0x80] sm:$0xff]  ;;  %v1516_v60 = vrot.slane %v1514_v48, 4  ;;  %v1507_v0 = vor.u32 %v1506_v55, %v1503_v54 }
 0x102   : > { %6257 = vmatprep.subr.bf16.mxu0 %v6940_v53  ;;  %6827 = vmatprep.subr.bf16.mxu1 %v6940_v53  ;;  %v1597_v53 = vshrl.u32 %v7989_v42, 16  ;;  %v1606_v57 = vshll.u32 %v7992_v46, 16  ;;  %v1602_v1 = vrot.slane %v1600_v56, 5  ;;  %v1610_v3 = vshrl.u32 %v7992_v46, 16  ;;  %v8059_v56 = vld [vmem:[%s7914_s25 + $0x90] sm:$0xff] }
 0x103   : > { %1925 = vmatprep.mubr.bf16.mxu1 %v5529_v36  ;;  %v1517_v4 = vor.u32 %v1516_v60, %v1512_v59  ;;  %v1522_v5 = vrot.slane %v1520_v49, 5  ;;  %v1616_v7 = vshll.u32 %v7998_v50, 16  ;;  %v8022_v19 = vsel %vm8011_vm5, %v2290_v62, %v2291_v29  ;;  %v6958_v36 = vld [vmem:[%s7898_s29 + $0x18] sm:$0xff]  }
 0x104   : > { %v1599_v61 = vrot.slane %v1597_v53, 4  ;;  %v1608_v2 = vrot.slane %v1606_v57, 5  ;;  %v1612_v11 = vrot.slane %v1610_v3, 4  ;;  %v5563_v20 = vcombine.high %v7989_v42, %v7992_v46  ;;  %v8062_v57 = vld [vmem:[%s7914_s25 + $0x98] sm:$0xff] }
 0x105   : > { %6258 = vmatpush3.bf16.msra.mxu0 %v6941_v9  ;;  %6835 = vmatpush3.bf16.msra.mxu1 %v6941_v9  ;;  %v1508_v9 = vrot.slane %v1507_v0, 4  ;;  %v8017_v14 = vrot.slane %v1517_v4, 4  ;;  %v1618_v17 = vrot.slane %v1616_v7, 5  ;;  %v2260_v48 = vrot.slane %v7922_v44, 5 }
 0x106   : > { %6259 = vmatprep.subr.bf16.mxu0 %v6942_v13  ;;  %6828 = vmatprep.subr.bf16.mxu1 %v6942_v13  ;;  %v1603_v10 = vor.u32 %v1602_v1, %v1599_v61  ;;  %v6953_v13 = vld [vmem:[%s7898_s29 + $0x150] sm:$0xff]   ;;  %v1613_v23 = vor.u32 %v1612_v11, %v1608_v2  ;;  %v1525_v54 = vshrl.u32 %v8047_v40, 16  ;;  %v1528_v55 = vshll.u32 %v8047_v40, 16 }
 0x107   : > { %v1538_v60 = vshrl.u32 %v8050_v41, 16  ;;  %v1544_v61 = vshll.u32 %v8053_v47, 16  ;;  %v1621_v62 = vshrl.u32 %v8059_v56, 16  ;;  %v1624_v1 = vshll.u32 %v8059_v56, 16 }
 0x108   : > { %v1604_v22 = vrot.slane %v1603_v10, 4  ;;  %v1530_v0 = vrot.slane %v1528_v55, 5  ;;  %v6961_v10 = vld [vmem:[%s7898_s29 + $0x160] sm:$0xff]   ;;  %v6965_v55 = vld [vmem:[%s7898_s29 + $0x168] sm:$0xff]  }
 0x109   : > { %6260 = vmatpush3.bf16.msra.mxu0 %v6943_v21  ;;  %6836 = vmatpush3.bf16.msra.mxu1 %v6943_v21  ;;  %v8028_v21 = vsel %vm7950_vm2, %v1508_v9, %v1512_v59  ;;  %v1534_v59 = vshll.u32 %v8050_v41, 16  ;;  %v1540_v4 = vrot.slane %v1538_v60, 4  ;;  %v1623_v7 = vrot.slane %v1621_v62, 4  ;;  %v6960_v9 = vld [vmem:[%s7898_s29 + $0x60] sm:$0xff]  }
 0x10a   : > { %6309 = vmatprep.subr.bf16.mxu1 %v6944_v25  ;;  %6373 = vmatprep.subr.bf16.mxu0 %v6945_v26  ;;  %v5562_v25 = vcombine.low %v7989_v42, %v7992_v46  ;;  %v1523_v26 = vsel %vm7950_vm2, %v8017_v14, %v1522_v5  ;;  %v1609_v29 = vsel %vm7950_vm2, %v1604_v22, %v1608_v2  ;;  %v1630_v2 = vshll.u32 %v8062_v57, 16 }
 0x10b   : > { %v5523_v28 = vcombine.high %v8028_v21, %v1523_v26  ;;  %v1536_v3 = vrot.slane %v1534_v59, 5  ;;  %v1546_v5 = vrot.slane %v1544_v61, 5 }
 0x10c   : > { %1894 = vmatmul.mubr.bf16.vlgmr.msra.gmra.mrb[0].mxu0 %v5520_v27  ;;  %1926 = vmatmul.mubr.bf16.vlgmr.msra.gmra.mrb[0].mxu1 %v5528_v35  ;;  %v6956_v27 = vld [vmem:[%s7898_s29 + $0x58] sm:$0xff]  }
 0x10d   : > { %6310 = vmatpush3.bf16.msra.mxu1 %v6946_v30  ;;  %6374 = vmatpush3.bf16.msra.mxu0 %v6947_v31  ;;  %v1614_v30 = vrot.slane %v1613_v23, 4  ;;  %v5522_v31 = vcombine.low %v8028_v21, %v1523_v26  ;;  %v6957_v35 = vld [vmem:[%s7898_s29 + $0x158] sm:$0xff]   ;;  %v1541_v22 = vor.u32 %v1540_v4, %v1536_v3 }
 0x10e   : > { %6311 = vmatprep.subr.bf16.mxu1 %v6948_v37  ;;  %6375 = vmatprep.subr.bf16.mxu0 %v6949_v38  ;;  %v6959_v38 = vld [vmem:[%s7898_s29 + $0x118] sm:$0xff]  }
 0x10f   : > { %1901 = vmatprep.mubr.bf16.mxu0 %v5523_v28  ;;  %v1619_v37 = vsel %vm7950_vm2, %v1614_v30, %v1618_v17  ;;  %v1634_v17 = vshrl.u32 %v8062_v57, 16 }
 0x110   : > { %v5531_v49 = vcombine.high %v1609_v29, %v1619_v37  ;;  %v5530_v53 = vcombine.low %v1609_v29, %v1619_v37  ;;  %v8079_v29 = vrot.slane %v1541_v22, 4  ;;  %v8127_v22 = vld [vmem:[%s7914_s25 + $0xb0] sm:$0xff] }
 0x111   : > { %6312 = vmatpush3.bf16.msra.mxu1 %v6950_v58  ;;  %6376 = vmatpush3.bf16.msra.mxu0 %v6951_v63  ;;  %v8065_v58 = vld [vmem:[%s7914_s25 + $0xa0] sm:$0x11]  ;;  %v1527_v63 = vrot.slane %v1525_v54, 4  ;;  %v1636_v28 = vrot.slane %v1634_v17, 4 }
 0x112   : > { %6313 = vmatprep.subr.bf16.mxu1 %v6952_v12  ;;  %6377 = vmatprep.subr.bf16.mxu0 %v6953_v13  ;;  %v1626_v12 = vrot.slane %v1624_v1, 5  ;;  %v1632_v13 = vrot.slane %v1630_v2, 5  ;;  %v1640_v23 = vshll.u32 %v8065_v58, 16  ;;  %v1547_v54 = vsel %vm7950_vm2, %v8079_v29, %v1546_v5  ;;  %v8102_v1 = vld [vmem:[%s7914_s25 + $0x48] sm:$0xff]  ;;  %v8114_v5 = vld [vmem:[%s7914_s25 + $0x50] sm:$0xff] }
 0x113   : > { %1933 = vmatprep.mubr.bf16.mxu1 %v5531_v49  ;;  %v1531_v11 = vor.u32 %v1530_v0, %v1527_v63  ;;  %v6964_v49 = vld [vmem:[%s7898_s29 + $0x68] sm:$0xff]   ;;  %v8106_v2 = vrot.slane %v2260_v48, 4  ;;  %v1558_v17 = vshll.u32 %v8114_v5, 16 }
 0x114   : > { %1902 = vmatmul.mubr.bf16.gmra.mrb[4].mxu0 %v5522_v31  ;;  %1934 = vmatmul.mubr.bf16.gmra.mrb[4].mxu1 %v5530_v53  ;;  %v1642_v30 = vrot.slane %v1640_v23, 5  ;;  %v5565_v31 = vcombine.high %v8059_v56, %v8062_v57  ;;  %v2263_v53 = vrot.slane %v7925_v45, 5  ;;  %v6966_v63 = vld [vmem:[%s7898_s29 + $0x28] sm:$0xff]   ;;  %v8130_v23 = vld [vmem:[%s7914_s25 + $0xb8] sm:$0x11]  ;;  %v6980_v45 = vld [vmem:[%s7898_s29 + $0x240] sm:$0xff]  }
 0x115   : > { %6314 = vmatpush3.bf16.msra.mxu1 %v6954_v18  ;;  %6378 = vmatpush3.bf16.msra.mxu0 %v6955_v24  ;;  %v6962_v18 = vld [vmem:[%s7898_s29 + $0x20] sm:$0xff]   ;;  %v1532_v26 = vrot.slane %v1531_v11, 4  ;;  %v6967_v0 = vld [vmem:[%s7898_s29 + $0x128] sm:$0xff]  }
 0x116   : > { %6315 = vmatprep.subr.bf16.mxu1 %v6956_v27  ;;  %6379 = vmatprep.subr.bf16.mxu0 %v6957_v35  ;;  %v6963_v24 = vld [vmem:[%s7898_s29 + $0x120] sm:$0xff]   ;;  %v1627_v27 = vor.u32 %v1626_v12, %v1623_v7  ;;  %v5564_v35 = vcombine.low %v8059_v56, %v8062_v57  ;;  %v8117_v7 = vld [vmem:[%s7914_s25 + $0x58] sm:$0x11]  ;;  %v8122_v11 = vld [vmem:[%s7914_s25 + $0xa8] sm:$0xff] }
 0x118   : > { %v1628_v37 = vrot.slane %v1627_v27, 4 }
 0x119   : > { %6316 = vmatpush3.bf16.msra.mxu1 %v6958_v36  ;;  %6380 = vmatpush3.bf16.msra.mxu0 %v6959_v38  ;;  %v8087_v36 = vsel %vm7950_vm2, %v1532_v26, %v1536_v3  ;;  %v1637_v38 = vor.u32 %v1636_v28, %v1632_v13  ;;  %v8109_v3 = vrot.slane %v7978_v33, 5  ;;  %v1568_v28 = vshll.u32 %v8117_v7, 16 }
 0x11a   : > { %6317 = vmatprep.subr.bf16.mxu1 %v6960_v9  ;;  %6381 = vmatprep.subr.bf16.mxu0 %v6961_v10  ;;  %v5525_v59 = vcombine.high %v8087_v36, %v1547_v54  ;;  %v1633_v60 = vsel %vm7950_vm2, %v1628_v37, %v1632_v13  ;;  %v5524_v62 = vcombine.low %v8087_v36, %v1547_v54  ;;  %v1549_v9 = vshrl.u32 %v8102_v1, 16 }
 0x11b   : > { %v1638_v61 = vrot.slane %v1637_v38, 4  ;;  %v1552_v10 = vshll.u32 %v8102_v1, 16  ;;  %v1560_v37 = vrot.slane %v1558_v17, 5  ;;  %v1654_v54 = vshll.u32 %v8127_v22, 16 }
 0x11c   : > { %1909 = vmatprep.mubr.bf16.mxu0 %v5525_v59  ;;  %v1551_v26 = vrot.slane %v1549_v9, 4  ;;  %v1570_v59 = vrot.slane %v1568_v28, 5  ;;  %v1664_v9 = vshll.u32 %v8130_v23, 16 }
 0x11d   : > { %6318 = vmatpush3.bf16.msra.mxu1 %v6962_v18  ;;  %6382 = vmatpush3.bf16.msra.mxu0 %v6963_v24  ;;  %v1643_v4 = vsel %vm7950_vm2, %v1638_v61, %v1642_v30  ;;  %v1562_v18 = vshrl.u32 %v8114_v5, 16  ;;  %v6968_v24 = vld [vmem:[%s7898_s29 + $0x70] sm:$0xff]   ;;  %v1554_v27 = vrot.slane %v1552_v10, 5  ;;  %v1645_v30 = vshrl.u32 %v8122_v11, 16 }
 0x11e   : > { %6319 = vmatprep.subr.bf16.mxu1 %v6964_v49  ;;  %6383 = vmatprep.subr.bf16.mxu0 %v6965_v55  ;;  %v5533_v12 = vcombine.high %v1633_v60, %v1643_v4  ;;  %v5532_v13 = vcombine.low %v1633_v60, %v1643_v4  ;;  %v1648_v49 = vshll.u32 %v8122_v11, 16  ;;  %v1658_v61 = vshrl.u32 %v8127_v22, 16  ;;  %v6970_v10 = vld [vmem:[%s7898_s29 + $0x30] sm:$0xff]  }
 0x11f   : > { %1910 = vmatmul.mubr.bf16.gmra.mrb[8].mxu0 %v5524_v62  ;;  %v1564_v38 = vrot.slane %v1562_v18, 4  ;;  %v1555_v55 = vor.u32 %v1554_v27, %v1551_v26  ;;  %v1647_v60 = vrot.slane %v1645_v30, 4  ;;  %v6969_v62 = vld [vmem:[%s7898_s29 + $0x170] sm:$0xff]   ;;  %v1656_v4 = vrot.slane %v1654_v54, 5 }
 0x120   : > { %1941 = vmatprep.mubr.bf16.mxu1 %v5533_v12  ;;  %v1660_v17 = vrot.slane %v1658_v61, 4  ;;  %v1666_v28 = vrot.slane %v1664_v9, 5  ;;  %v6971_v30 = vld [vmem:[%s7898_s29 + $0x130] sm:$0xff]   ;;  %v2269_v9 = vrot.slane %v8109_v3, 4 }
 0x121   : > { %6320 = vmatpush3.bf16.msra.mxu1 %v6966_v63  ;;  %6384 = vmatpush3.bf16.msra.mxu0 %v6967_v0  ;;  %v1565_v63 = vor.u32 %v1564_v38, %v1560_v37  ;;  %v1650_v0 = vrot.slane %v1648_v49, 5  ;;  %v1556_v12 = vrot.slane %v1555_v55, 4  ;;  %v5567_v38 = vcombine.high %v8122_v11, %v8127_v22  ;;  %v6972_v55 = vld [vmem:[%s7898_s29 + $0x78] sm:$0xff]  }
 0x122   : > { %6321 = vmatprep.subr.bf16.mxu1 %v6968_v24  ;;  %1942 = vmatmul.mubr.bf16.gmra.mrb[8].mxu1 %v5532_v13  ;;  %v2295_v24 = vrot.slane %v7992_v46, 5  ;;  %v1661_v27 = vor.u32 %v1660_v17, %v1656_v4  ;;  %v5553_v17 = vcombine.high %v7919_v43, %v7922_v44  ;;  %v8395_v46 = vld [vmem:[%s7914_s25 + $0x78] sm:$0xff] }
 0x123   : > { %6385 = vmatprep.subr.bf16.mxu0 %v6969_v62  ;;  %v8141_v18 = vrot.slane %v1565_v63, 4  ;;  %v1651_v13 = vor.u32 %v1650_v0, %v1647_v60  ;;  %v8146_v26 = vsel %vm7950_vm2, %v1556_v12, %v1560_v37  ;;  %v5566_v60 = vcombine.low %v8122_v11, %v8127_v22  ;;  %v6973_v63 = vld [vmem:[%s7898_s29 + $0x178] sm:$0xff]  }
 0x124   : > { %v1662_v61 = vrot.slane %v1661_v27, 4  ;;  %v6975_v12 = vld [vmem:[%s7898_s29 + $0x138] sm:$0xff]   ;;  %v2270_v27 = vrot.slane %v7984_v39, 5  ;;  %v2297_v39 = vrot.slane %v2295_v24, 4 }
 0x125   : > { %6322 = vmatpush3.bf16.msra.mxu1 %v6970_v10  ;;  %v1571_v49 = vsel %vm7950_vm2, %v8141_v18, %v1570_v59  ;;  %v1652_v54 = vrot.slane %v1651_v13, 4  ;;  %6386 = vmatpush3.bf16.msra.mxu0 %v6971_v30  ;;  %v6974_v59 = vld [vmem:[%s7898_s29 + $0x38] sm:$0xff]   ;;  %v2231_v13 = vld [vmem:[%s7914_s25] sm:$0xee] }
 0x126   : > { %v5527_v37 = vcombine.high %v8146_v26, %v1571_v49  ;;  %v5526_v62 = vcombine.low %v8146_v26, %v1571_v49  ;;  %6323 = vmatprep.subr.bf16.mxu1 %v6972_v55  ;;  %v1667_v10 = vsel %vm7950_vm2, %v1662_v61, %v1666_v28  ;;  %6387 = vmatprep.subr.bf16.mxu0 %v6973_v63  ;;  %v5584_v49 = vrot.slane %v2231_v13, 9  ;;  %v2232_v61 = vld [vmem:[%s7914_s25 + $0x18] sm:$0xee] }
 0x127   : > { %v1657_v0 = vsel %vm7950_vm2, %v1652_v54, %v1656_v4  ;;  %v2264_v28 = vsel %vm8011_vm5, %v8106_v2, %v2263_v53  ;;  %v6978_v54 = vld [vmem:[%s7898_s29 + $0x1c0] sm:$0xff]   ;;  %v8178_v55 = vrot.slane %v8050_v41, 5  ;;  %v2298_v53 = vrot.slane %v7998_v50, 5 }
 0x128   : > { %1917 = vmatprep.mubr.bf16.mxu0 %v5527_v37  ;;  %v5535_v30 = vcombine.high %v1657_v0, %v1667_v10  ;;  %v5534_v4 = vcombine.low %v1657_v0, %v1667_v10  ;;  %v2261_v37 = vsel %vm8011_vm5, %v5584_v49, %v2260_v48  ;;  %v5585_v63 = vrot.slane %v2232_v61, 9  ;;  %v6981_v50 = vld [vmem:[%s7898_s29 + $0x200] sm:$0xff]  }
 0x129   : > { %1918 = vmatmul.mubr.bf16.gmra.mrb[12].mxu0 %v5526_v62  ;;  %6324 = vmatpush3.bf16.msra.mxu1 %v6974_v59  ;;  %v5625_v2 = vcombine.high %v2261_v37, %v2264_v28  ;;  %v5624_v62 = vcombine.low %v2261_v37, %v2264_v28  ;;  %v2271_v48 = vsel %vm8011_vm5, %v2269_v9, %v2270_v27  ;;  %v2276_v59 = vrot.slane %v8178_v55, 4  ;;  %v6979_v10 = vld [vmem:[%s7898_s29 + $0x180] sm:$0xff]   ;;  %v6992_v37 = vld [vmem:[%s7898_s29 + $0x250] sm:$0xff]  }
 0x12a   : > { %6388 = vmatpush3.bf16.msra.mxu0 %v6975_v12  ;;  %1949 = vmatprep.mubr.bf16.mxu1 %v5535_v30  ;;  %v8195_v0 = vsel %vm8011_vm5, %v2297_v39, %v2298_v53  ;;  %v2268_v12 = vsel %vm8011_vm5, %v5585_v63, %v8109_v3  ;;  %v2277_v13 = vrot.slane %v8053_v47, 5  ;;  %v5552_v27 = vcombine.low %v7919_v43, %v7922_v44  ;;  %v6987_v47 = vld [vmem:[%s7898_s29 + $0x208] sm:$0xff]   ;;  %v6990_v63 = vld [vmem:[%s7898_s29 + $0x1d0] sm:$0xff]  }
 0x12b   : > { %6437 = vmatprep.subr.bf16.mxu1 %v6978_v54  ;;  %1950 = vmatmul.mubr.bf16.gmra.mrb[12].mxu1 %v5534_v4  ;;  %v5627_v30 = vcombine.high %v2268_v12, %v2271_v48  ;;  %v6984_v4 = vld [vmem:[%s7898_s29 + $0x1c8] sm:$0xff]   ;;  %v8209_v49 = vrot.slane %v8114_v5, 5  ;;  %v8213_v28 = vcombine.high %v7975_v32, %v7978_v33  ;;  %v2233_v54 = vld [vmem:[%s7914_s25 + $0x30] sm:$0xee] }
 0x12c   : > { %2166 = vmatprep.mubr.bf16.mxu1 %v5553_v17  ;;  %6501 = vmatprep.subr.bf16.mxu0 %v6980_v45  ;;  %v6986_v17 = vld [vmem:[%s7898_s29 + $0x248] sm:$0xff]   ;;  %v5586_v39 = vrot.slane %v2233_v54, 9  ;;  %v2278_v43 = vsel %vm8011_vm5, %v2276_v59, %v2277_v13  ;;  %v5626_v45 = vcombine.low %v2268_v12, %v2271_v48  ;;  %v8234_v48 = vcombine.low %v7975_v32, %v7978_v33  ;;  %v6998_v12 = vld [vmem:[%s7898_s29 + $0x258] sm:$0xff]  }
 0x12d   : > { %2539 = vmatprep.mubr.bf16.mxu0 %v5625_v2  ;;  %v6985_v53 = vld [vmem:[%s7898_s29 + $0x188] sm:$0xff]   ;;  %v2283_v61 = vrot.slane %v8209_v49, 4  ;;  %v8239_v13 = vcombine.high %v8047_v40, %v8050_v41  ;;  %v6997_v54 = vld [vmem:[%s7898_s29 + $0x198] sm:$0xff]  }
 0x12e   : > { %v2275_v44 = vsel %vm8011_vm5, %v5586_v39, %v8178_v55  ;;  %v2234_v2 = vld [vmem:[%s7914_s25 + $0x48] sm:$0xee] }
 0x131   : > { %2540 = vmatmul.mubr.bf16.vlgmr.msra.gmra.mrb[16].mxu0 %v5624_v62  ;;  %v5629_v62 = vcombine.high %v2275_v44, %v2278_v43 }
 0x132   : > { %6502 = vmatpush3.bf16.msra.mxu0 %v6981_v50  ;;  %2547 = vmatprep.mubr.bf16.mxu0 %v5627_v30  ;;  %v2284_v50 = vrot.slane %v8117_v7, 5  ;;  %v2235_v30 = vld [vmem:[%s7914_s25 + $0x60] sm:$0xee]  ;;  %v6996_v7 = vld [vmem:[%s7898_s29 + $0x1d8] sm:$0xff]  }
 0x133   : > { %6503 = vmatprep.subr.bf16.mxu0 %v6986_v17  ;;  %2167 = vmatmul.mubr.bf16.vlgmr.msra.gmra.mrb[16].mxu1 %v5552_v27  ;;  %v6993_v17 = vld [vmem:[%s7898_s29 + $0x210] sm:$0xff]  }
 0x134   : > { %6438 = vmatpush3.bf16.msra.mxu1 %v6979_v10  ;;  %2174 = vmatprep.mubr.bf16.mxu1 %v8213_v28  ;;  %v5587_v10 = vrot.slane %v2234_v2, 9  ;;  %v6991_v27 = vld [vmem:[%s7898_s29 + $0x190] sm:$0xff]   ;;  %v2285_v33 = vsel %vm8011_vm5, %v2283_v61, %v2284_v50  ;;  %v2236_v50 = vld [vmem:[%s7914_s25 + $0x78] sm:$0xee] }
 0x135   : > { %6439 = vmatprep.subr.bf16.mxu1 %v6984_v4  ;;  %v5588_v4 = vrot.slane %v2235_v30, 9  ;;  %v7008_v30 = vld [vmem:[%s7898_s29 + $0x1e8] sm:$0xff]  }
 0x136   : > { %6504 = vmatpush3.bf16.msra.mxu0 %v6987_v47  ;;  %v2282_v32 = vsel %vm8011_vm5, %v5587_v10, %v8209_v49  ;;  %v6999_v47 = vld [vmem:[%s7898_s29 + $0x218] sm:$0xff]   ;;  %v8276_v10 = vcombine.high %v8102_v1, %v8114_v5 }
 0x137   : > { %6505 = vmatprep.subr.bf16.mxu0 %v6992_v37  ;;  %v8258_v39 = vsel %vm8011_vm5, %v5588_v4, %v2288_v34  ;;  %v7004_v37 = vld [vmem:[%s7898_s29 + $0x260] sm:$0xff]   ;;  %v2302_v4 = vrot.slane %v8062_v57, 5 }
 0x138   : > { %6440 = vmatpush3.bf16.msra.mxu1 %v6985_v53  ;;  %v5633_v53 = vcombine.high %v8258_v39, %v8022_v19  ;;  %v5632_v2 = vcombine.low %v8258_v39, %v8022_v19  ;;  %v7005_v34 = vld [vmem:[%s7898_s29 + $0x220] sm:$0xff]  }
 0x139   : > { %2548 = vmatmul.mubr.bf16.gmra.mrb[20].mxu0 %v5626_v45  ;;  %6441 = vmatprep.subr.bf16.mxu1 %v6990_v63  ;;  %v5628_v45 = vcombine.low %v2275_v44, %v2278_v43  ;;  %v5631_v63 = vcombine.high %v2282_v32, %v2285_v33  ;;  %v8271_v43 = vcombine.low %v8047_v40, %v8050_v41  ;;  %v7003_v44 = vld [vmem:[%s7898_s29 + $0x1a0] sm:$0xff]  }
 0x13a   : > { %2555 = vmatprep.mubr.bf16.mxu0 %v5629_v62  ;;  %6506 = vmatpush3.bf16.msra.mxu0 %v6993_v17  ;;  %v7002_v62 = vld [vmem:[%s7898_s29 + $0x1e0] sm:$0xff]   ;;  %v5589_v17 = vrot.slane %v2236_v50, 9  ;;  %v7015_v50 = vld [vmem:[%s7898_s29 + $0x1b0] sm:$0xff]  }
 0x13b   : > { %2175 = vmatmul.mubr.bf16.gmra.mrb[20].mxu1 %v8234_v48  ;;  %6507 = vmatprep.subr.bf16.mxu0 %v6998_v12 }
 0x13c   : > { %2182 = vmatprep.mubr.bf16.mxu1 %v8239_v13  ;;  %6442 = vmatpush3.bf16.msra.mxu1 %v6991_v27  ;;  %v8282_v12 = vsel %vm8011_vm5, %v5589_v17, %v2295_v24  ;;  %v7010_v27 = vld [vmem:[%s7898_s29 + $0x268] sm:$0xff]   ;;  %v7020_v17 = vld [vmem:[%s7898_s29 + $0x1f8] sm:$0xff]  }
 0x13d   : > { %6443 = vmatprep.subr.bf16.mxu1 %v6996_v7  ;;  %v5635_v40 = vcombine.high %v8282_v12, %v8195_v0  ;;  %v5634_v41 = vcombine.low %v8282_v12, %v8195_v0  ;;  %v7011_v7 = vld [vmem:[%s7898_s29 + $0x228] sm:$0xff]  }
 0x13e   : > { %6508 = vmatpush3.bf16.msra.mxu0 %v6999_v47  ;;  %v7009_v24 = vld [vmem:[%s7898_s29 + $0x1a8] sm:$0xff]   ;;  %v7016_v47 = vld [vmem:[%s7898_s29 + $0x270] sm:$0xff]  }
 0x13f   : > { %6509 = vmatprep.subr.bf16.mxu0 %v7004_v37  ;;  %v7014_v37 = vld [vmem:[%s7898_s29 + $0x1f0] sm:$0xff]  }
 0x140   : > { %6444 = vmatpush3.bf16.msra.mxu1 %v6997_v54  ;;  %v5630_v54 = vcombine.low %v2282_v32, %v2285_v33  ;;  %v2305_v32 = vrot.slane %v8065_v58, 5  ;;  %v7022_v33 = vld [vmem:[%s7898_s29 + $0x278] sm:$0xff]   ;;  %v7024_v58 = vld [vmem:[%s7898_s29 + $0x2c0] sm:$0xff]  }
 0x141   : > { %2556 = vmatmul.mubr.bf16.gmra.mrb[24].mxu0 %v5628_v45  ;;  %6445 = vmatprep.subr.bf16.mxu1 %v7002_v62  ;;  %v7017_v45 = vld [vmem:[%s7898_s29 + $0x230] sm:$0xff]   ;;  %v8300_v62 = vcombine.low %v8102_v1, %v8114_v5  ;;  %v7023_v1 = vld [vmem:[%s7898_s29 + $0x238] sm:$0xff]   ;;  %v5740_v5 = vld [vmem:[%s7914_s25 + $0x28] sm:$0x11] }
 0x142   : > { %2563 = vmatprep.mubr.bf16.mxu0 %v5631_v63  ;;  %6510 = vmatpush3.bf16.msra.mxu0 %v7005_v34  ;;  %v2304_v63 = vrot.slane %v2302_v4, 4  ;;  %v2237_v34 = vld [vmem:[%s7914_s25 + $0x90] sm:$0xee] }
 0x143   : > { %2183 = vmatmul.mubr.bf16.gmra.mrb[24].mxu1 %v8271_v43  ;;  %6511 = vmatprep.subr.bf16.mxu0 %v7010_v27  ;;  %v3521_v27 = vrot.slane %v5740_v5, 5 }
 0x144   : > { %2190 = vmatprep.mubr.bf16.mxu1 %v8276_v10  ;;  %6446 = vmatpush3.bf16.msra.mxu1 %v7003_v44  ;;  %v7021_v44 = vld [vmem:[%s7898_s29 + $0x1b8] sm:$0xff]  }
 0x145   : > { %6447 = vmatprep.subr.bf16.mxu1 %v7008_v30  ;;  %v5590_v30 = vrot.slane %v2237_v34, 9 }
 0x146   : > { %6512 = vmatpush3.bf16.msra.mxu0 %v7011_v7  ;;  %v5743_v7 = vld [vmem:[%s7914_s25 + $0x40] sm:$0x11] }
 0x147   : > { %6513 = vmatprep.subr.bf16.mxu0 %v7016_v47  ;;  %v3528_v47 = vrot.slane %v5743_v7, 5 }
 0x148   : > { %6448 = vmatpush3.bf16.msra.mxu1 %v7009_v24  ;;  %v8321_v24 = vsel %vm8011_vm5, %v2269_v9, %v3521_v27  ;;  %v2306_v9 = vsel %vm8011_vm5, %v2304_v63, %v2305_v32 }
 0x149   : > { %2564 = vmatmul.mubr.bf16.gmra.mrb[28].mxu0 %v5630_v54  ;;  %6449 = vmatprep.subr.bf16.mxu1 %v7014_v37  ;;  %v3030_v54 = vshll.u32 %v5743_v7, 16  ;;  %v8337_v19 = vsel %vm8011_vm5, %v2276_v59, %v3528_v47 }
 0x14a   : > { %2571 = vmatprep.mubr.bf16.mxu0 %v5633_v53  ;;  %6514 = vmatpush3.bf16.msra.mxu0 %v7017_v45  ;;  %v7026_v53 = vld [vmem:[%s7898_s29 + $0x340] sm:$0xff]   ;;  %v2303_v45 = vsel %vm8011_vm5, %v5590_v30, %v2302_v4 }
 0x14b   : > { %2191 = vmatmul.mubr.bf16.gmra.mrb[28].mxu1 %v8300_v62  ;;  %6515 = vmatprep.subr.bf16.mxu0 %v7022_v33  ;;  %v3032_v37 = vrot.slane %v3030_v54, 5  ;;  %v5746_v33 = vld [vmem:[%s7914_s25 + $0x58] sm:$0x11]  ;;  %v5637_v63 = vcombine.high %v2303_v45, %v2306_v9  ;;  %v5636_v0 = vcombine.low %v2303_v45, %v2306_v9 }
 0x14c   : > { %2198 = vmatprep.mubr.bf16.mxu1 %v5561_v15  ;;  %6450 = vmatpush3.bf16.msra.mxu1 %v7015_v50  ;;  %v2309_v15 = vrot.slane %v8127_v22, 5  ;;  %v2238_v50 = vld [vmem:[%s7914_s25 + $0xa8] sm:$0xee]  ;;  %v3535_v4 = vrot.slane %v5746_v33, 5 }
 0x14d   : > { %6451 = vmatprep.subr.bf16.mxu1 %v7020_v17  ;;  %v8345_v39 = vsel %vm7950_vm2, %v8079_v29, %v3032_v37  ;;  %v2312_v29 = vrot.slane %v8130_v23, 5  ;;  %v3006_v17 = vshll.u32 %v5740_v5, 16  ;;  %v8389_v5 = vld [vmem:[%s7914_s25 + $0x60] sm:$0xff] }
 0x14e   : > { %6516 = vmatpush3.bf16.msra.mxu0 %v7023_v1  ;;  %v5796_v59 = vcombine.low %v8087_v36, %v8345_v39  ;;  %v2311_v51 = vrot.slane %v2309_v15, 4  ;;  %v8359_v32 = vsel %vm8011_vm5, %v2283_v61, %v3535_v4  ;;  %v3059_v30 = vshrl.u32 %v8389_v5, 16  ;;  %v5752_v4 = vld [vmem:[%s7914_s25 + $0x88] sm:$0x11] }
 0x14f   : > { %6629 = vmatprep.subr.bf16.mxu0 %v7026_v53  ;;  %v3102_v22 = vshll.u32 %v5752_v4, 16 }
 0x150   : > { %6452 = vmatpush3.bf16.msra.mxu1 %v7021_v44  ;;  %v3008_v44 = vrot.slane %v3006_v17, 5  ;;  %v3061_v45 = vrot.slane %v3059_v30, 4  ;;  %v7027_v17 = vld [vmem:[%s7898_s29 + $0x300] sm:$0xff]  }
 0x151   : > { %2572 = vmatmul.mubr.bf16.gmra.mrb[32].mxu0 %v5632_v2  ;;  %6565 = vmatprep.subr.bf16.mxu1 %v7024_v58  ;;  %v3054_v2 = vshll.u32 %v5746_v33, 16  ;;  %v5749_v58 = vld [vmem:[%s7914_s25 + $0x70] sm:$0x11] }
 0x152   : > { %2579 = vmatprep.mubr.bf16.mxu0 %v5635_v40  ;;  %v5797_v40 = vcombine.high %v8087_v36, %v8345_v39  ;;  %v3542_v27 = vrot.slane %v5749_v58, 5  ;;  %v3009_v42 = vsel %vm7950_vm2, %v8017_v14, %v3008_v44  ;;  %v3062_v14 = vshll.u32 %v8389_v5, 16  ;;  %v7025_v44 = vld [vmem:[%s7898_s29 + $0x280] sm:$0xff]  }
 0x153   : > { %2199 = vmatmul.mubr.bf16.gmra.mrb[32].mxu1 %v5560_v16  ;;  %v3056_v52 = vrot.slane %v3054_v2, 5  ;;  %v5591_v16 = vrot.slane %v2238_v50, 9  ;;  %v5795_v54 = vcombine.high %v8028_v21, %v3009_v42  ;;  %v3078_v2 = vshll.u32 %v5749_v58, 16  ;;  %v7030_v58 = vld [vmem:[%s7898_s29 + $0x348] sm:$0xff]  }
 0x154   : > { %2206 = vmatprep.mubr.bf16.mxu1 %v5563_v20  ;;  %v3064_v9 = vrot.slane %v3062_v14, 5 }
 0x155   : > { %v8364_v20 = vsel %vm7950_vm2, %v8141_v18, %v3056_v52  ;;  %v2310_v61 = vsel %vm8011_vm5, %v5591_v16, %v2309_v15  ;;  %v2313_v18 = vsel %vm8011_vm5, %v2311_v51, %v2312_v29 }
 0x156   : > { %v5799_v34 = vcombine.high %v8146_v26, %v8364_v20  ;;  %v5798_v23 = vcombine.low %v8146_v26, %v8364_v20  ;;  %v5639_v12 = vcombine.high %v2310_v61, %v2313_v18  ;;  %v5638_v53 = vcombine.low %v2310_v61, %v2313_v18 }
 0x157   : > { %v3549_v61 = vrot.slane %v5752_v4, 5  ;;  %v5794_v18 = vcombine.low %v8028_v21, %v3009_v42  ;;  %v7028_v21 = vld [vmem:[%s7898_s29 + $0x2c8] sm:$0xff]   ;;  %v7032_v4 = vld [vmem:[%s7898_s29 + $0x2d0] sm:$0xff]  }
 0x159   : > { %2580 = vmatmul.mubr.bf16.gmra.mrb[36].mxu0 %v5634_v41  ;;  %v8384_v41 = vld [vmem:[%s7914_s25 + $0x68] sm:$0xff] }
 0x15a   : > { %2587 = vmatprep.mubr.bf16.mxu0 %v5637_v63  ;;  %v3539_v1 = vrot.slane %v8384_v41, 5  ;;  %v3068_v56 = vshll.u32 %v8384_v41, 16  ;;  %v3072_v57 = vshrl.u32 %v8384_v41, 16 }
 0x15b   : > { %2207 = vmatmul.mubr.bf16.gmra.mrb[36].mxu1 %v5562_v25 }
 0x15c   : > { %2214 = vmatprep.mubr.bf16.mxu1 %v5565_v31  ;;  %v3541_v25 = vrot.slane %v3539_v1, 4  ;;  %v8403_v31 = vld [vmem:[%s7914_s25 + $0x80] sm:$0xff]  ;;  %v8422_v50 = vrot.slane %v3068_v56, 5  ;;  %v3074_v33 = vrot.slane %v3072_v57, 4  ;;  %v7031_v56 = vld [vmem:[%s7898_s29 + $0x308] sm:$0xff]   ;;  %v7034_v57 = vld [vmem:[%s7898_s29 + $0x350] sm:$0xff]  }
 0x15d   : > { %v3092_v15 = vshll.u32 %v8403_v31, 16  ;;  %v3096_v47 = vshrl.u32 %v8403_v31, 16  ;;  %v3546_v37 = vrot.slane %v8403_v31, 5 }
 0x15e   : > { %v8412_v7 = vsel %vm8011_vm5, %v3541_v25, %v3542_v27  ;;  %v3075_v11 = vor.u32 %v3074_v33, %v8422_v50  ;;  %v8444_v27 = vrot.slane %v3078_v2, 5  ;;  %v8470_v33 = vld [vmem:[%s7914_s25 + $0xb0] sm:$0xff] }
 0x15f   : > { %v8428_v52 = vrot.slane %v3092_v15, 5  ;;  %v3098_v16 = vrot.slane %v3096_v47, 4  ;;  %v3548_v29 = vrot.slane %v3546_v37, 4 }
 0x161   : > { %2588 = vmatmul.mubr.bf16.gmra.mrb[40].mxu0 %v5636_v0  ;;  %v3065_v0 = vor.u32 %v3064_v9, %v3061_v45  ;;  %v3099_v42 = vor.u32 %v3098_v16, %v8428_v52  ;;  %v8454_v30 = vsel %vm8011_vm5, %v3548_v29, %v3549_v61  ;;  %v7029_v45 = vld [vmem:[%s7898_s29 + $0x288] sm:$0xff]   ;;  %v9393_v29 = vrot.slane %v8470_v33, 5  ;;  %v7035_v61 = vld [vmem:[%s7898_s29 + $0x310] sm:$0xff]  }
 0x162   : > { %2595 = vmatprep.mubr.bf16.mxu0 %v5639_v12  ;;  %v8436_v12 = vld [vmem:[%s7914_s25 + $0x90] sm:$0xff] }
 0x163   : > { %2215 = vmatmul.mubr.bf16.gmra.mrb[40].mxu1 %v5564_v35  ;;  %v3083_v35 = vshrl.u32 %v8395_v46, 16  ;;  %v3066_v14 = vrot.slane %v3065_v0, 4  ;;  %v3110_v15 = vshll.u32 %v8436_v12, 16 }
 0x164   : > { %2222 = vmatprep.mubr.bf16.mxu1 %v5567_v38  ;;  %v3086_v38 = vshll.u32 %v8395_v46, 16 }
 0x165   : > { %v3085_v63 = vrot.slane %v3083_v35, 4  ;;  %v3076_v35 = vrot.slane %v3075_v11, 4  ;;  %v8490_v0 = vrot.slane %v3110_v15, 5  ;;  %v3140_v15 = vshll.u32 %v8470_v33, 16 }
 0x166   : > { %v3088_v51 = vrot.slane %v3086_v38, 5  ;;  %v8462_v38 = vrot.slane %v3102_v22, 5  ;;  %v7033_v22 = vld [vmem:[%s7898_s29 + $0x290] sm:$0xff]   ;;  %v8532_v39 = vsel %vm7950_vm2, %v3066_v14, %v8422_v50 }
 0x168   : > { %v3089_v25 = vor.u32 %v3088_v51, %v3085_v63  ;;  %v8477_v63 = vrot.slane %v3099_v42, 4  ;;  %v5826_v42 = vld [vmem:[%s7914_s25 + $0x18] sm:$0xee] }
 0x169   : > { %2596 = vmatmul.mubr.bf16.gmra.mrb[44].mxu0 %v5638_v53  ;;  %v8450_v53 = vld [vmem:[%s7914_s25 + $0xa0] sm:$0x11] }
 0x16a   : > { %3403 = vmatprep.mubr.bf16.mxu0 %v5795_v54  ;;  %v3107_v54 = vshrl.u32 %v8436_v12, 16  ;;  %v8467_v9 = vrot.slane %v3089_v25, 4  ;;  %v3556_v2 = vrot.slane %v8450_v53, 5  ;;  %v3126_v16 = vshll.u32 %v8450_v53, 16 }
 0x16b   : > { %2223 = vmatmul.mubr.bf16.gmra.mrb[44].mxu1 %v5566_v60  ;;  %v8440_v60 = vld [vmem:[%s7914_s25 + $0x98] sm:$0xff]  ;;  %v8601_v26 = vsel %vm7950_vm2, %v8477_v63, %v8462_v38  ;;  %v8611_v38 = vld [vmem:[%s7914_s25 + $0xc0] sm:$0xff] }
 0x16c   : > { %2881 = vmatprep.mubr.bf16.mxu1 %v8213_v28  ;;  %v9394_v28 = vrot.slane %v8440_v60, 5  ;;  %v3116_v47 = vshll.u32 %v8440_v60, 16  ;;  %v3120_v51 = vshrl.u32 %v8440_v60, 16 }
 0x16e   : > { %v8492_v11 = vrot.slane %v3116_v47, 5  ;;  %v3144_v47 = vshrl.u32 %v8470_v33, 16 }
 0x171   : > { %3404 = vmatmul.mubr.bf16.vlgmr.msra.gmra.mrb[48].mxu0 %v5794_v18  ;;  %v8484_v18 = vrot.slane %v3107_v54, 4  ;;  %v3562_v54 = vrot.slane %v9393_v29, 4  ;;  %v7046_v29 = vld [vmem:[%s7898_s29 + $0x360] sm:$0xff]  }
 0x172   : > { %6630 = vmatpush3.bf16.msra.mxu0 %v7027_v17  ;;  %3411 = vmatprep.mubr.bf16.mxu0 %v5797_v40  ;;  %v3555_v40 = vrot.slane %v9394_v28, 4  ;;  %v7040_v17 = vld [vmem:[%s7898_s29 + $0x358] sm:$0xff]   ;;  %v8523_v28 = vld [vmem:[%s7914_s25 + $0xd0] sm:$0x11] }
 0x173   : > { %6631 = vmatprep.subr.bf16.mxu0 %v7030_v58  ;;  %2882 = vmatmul.mubr.bf16.vlgmr.msra.gmra.mrb[48].mxu1 %v8234_v48  ;;  %v8487_v48 = vld [vmem:[%s7914_s25 + $0xa8] sm:$0xff]  ;;  %v7038_v58 = vld [vmem:[%s7898_s29 + $0x2d8] sm:$0xff]  }
 0x174   : > { %6566 = vmatpush3.bf16.msra.mxu1 %v7025_v44  ;;  %2889 = vmatprep.mubr.bf16.mxu1 %v8239_v13  ;;  %v8496_v44 = vld [vmem:[%s7914_s25 + $0xb8] sm:$0x11]  ;;  %v8500_v13 = vsel %vm8011_vm5, %v3555_v40, %v3556_v2  ;;  %v3131_v25 = vshrl.u32 %v8487_v48, 16  ;;  %v8516_v40 = vld [vmem:[%s7914_s25 + $0xc8] sm:$0xff]  ;;  %v5834_v2 = vrot.slane %v5826_v42, 9  ;;  %v8553_v42 = vrot.slane %v3140_v15, 5 }
 0x175   : > { %6567 = vmatprep.subr.bf16.mxu1 %v7028_v21  ;;  %v3134_v21 = vshll.u32 %v8487_v48, 16  ;;  %v7052_v15 = vld [vmem:[%s7898_s29 + $0x368] sm:$0xff]  }
 0x176   : > { %6632 = vmatpush3.bf16.msra.mxu0 %v7031_v56  ;;  %v3563_v56 = vrot.slane %v8496_v44, 5 }
 0x177   : > { %6633 = vmatprep.subr.bf16.mxu0 %v7034_v57  ;;  %v7041_v57 = vld [vmem:[%s7898_s29 + $0x318] sm:$0xff]  }
 0x178   : > { %6568 = vmatpush3.bf16.msra.mxu1 %v7029_v45  ;;  %v8527_v36 = vsel %vm8011_vm5, %v3562_v54, %v3563_v56  ;;  %v8543_v45 = vsel %vm8011_vm5, %v5834_v2, %v8109_v3  ;;  %v3133_v3 = vrot.slane %v3131_v25, 4  ;;  %v3113_v54 = vor.u32 %v8490_v0, %v8484_v18  ;;  %v7047_v25 = vld [vmem:[%s7898_s29 + $0x320] sm:$0xff]  }
 0x179   : > { %3412 = vmatmul.mubr.bf16.gmra.mrb[52].mxu0 %v5796_v59  ;;  %6569 = vmatprep.subr.bf16.mxu1 %v7032_v4  ;;  %v8537_v59 = vsel %vm7950_vm2, %v3076_v35, %v8444_v27  ;;  %v7044_v4 = vld [vmem:[%s7898_s29 + $0x2e0] sm:$0xff]   ;;  %v5874_v50 = vcombine.low %v8543_v45, %v8321_v24  ;;  %v5875_v14 = vcombine.high %v8543_v45, %v8321_v24  ;;  %v3567_v27 = vrot.slane %v8516_v40, 5  ;;  %v7084_v24 = vld [vmem:[%s7898_s29 + $0x458] sm:$0xff]   ;;  %v7079_v45 = vld [vmem:[%s7898_s29 + $0x390] sm:$0xff]  }
 0x17a   : > { %3419 = vmatprep.mubr.bf16.mxu0 %v5799_v34  ;;  %6634 = vmatpush3.bf16.msra.mxu0 %v7035_v61  ;;  %v7039_v34 = vld [vmem:[%s7898_s29 + $0x298] sm:$0xff]   ;;  %v3122_v61 = vrot.slane %v3120_v51, 4  ;;  %v3136_v35 = vrot.slane %v3134_v21, 5  ;;  %v3570_v51 = vrot.slane %v8523_v28, 5  ;;  %v3146_v56 = vrot.slane %v3144_v47, 4 }
 0x17b   : > { %2890 = vmatmul.mubr.bf16.gmra.mrb[52].mxu1 %v8271_v43  ;;  %6635 = vmatprep.subr.bf16.mxu0 %v7040_v17  ;;  %v5827_v43 = vld [vmem:[%s7914_s25 + $0x30] sm:$0xee]  ;;  %v5801_v17 = vcombine.high %v8532_v39, %v8537_v59  ;;  %v3569_v21 = vrot.slane %v3567_v27, 4  ;;  %v3128_v0 = vrot.slane %v3126_v16, 5  ;;  %v3114_v20 = vrot.slane %v3113_v54, 4 }
 0x17c   : > { %2897 = vmatprep.mubr.bf16.mxu1 %v8276_v10  ;;  %6570 = vmatpush3.bf16.msra.mxu1 %v7033_v22  ;;  %v5835_v2 = vrot.slane %v5827_v43, 9  ;;  %v8563_v10 = vcombine.high %v8389_v5, %v8384_v41  ;;  %v7045_v22 = vld [vmem:[%s7898_s29 + $0x2a0] sm:$0xff]   ;;  %v3123_v18 = vor.u32 %v3122_v61, %v8492_v11  ;;  %v5828_v47 = vld [vmem:[%s7914_s25 + $0x48] sm:$0xee]  ;;  %v7058_v61 = vld [vmem:[%s7898_s29 + $0x370] sm:$0xff]   ;;  %v5800_v63 = vcombine.low %v8532_v39, %v8537_v59 }
 0x17d   : > { %6571 = vmatprep.subr.bf16.mxu1 %v7038_v58  ;;  %v8573_v58 = vsel %vm7950_vm2, %v8467_v9, %v8428_v52  ;;  %v7050_v52 = vld [vmem:[%s7898_s29 + $0x2e8] sm:$0xff]   ;;  %v3150_v9 = vshll.u32 %v8496_v44, 16  ;;  %v3147_v44 = vor.u32 %v3146_v56, %v8553_v42  ;;  %v5836_v43 = vrot.slane %v5828_v47, 9  ;;  %v5829_v59 = vld [vmem:[%s7914_s25 + $0x60] sm:$0xee] }
 0x17e   : > { %6636 = vmatpush3.bf16.msra.mxu0 %v7041_v57  ;;  %v8582_v57 = vsel %vm8011_vm5, %v5835_v2, %v8178_v55  ;;  %v8595_v55 = vsel %vm8011_vm5, %v3569_v21, %v3570_v51  ;;  %v3124_v51 = vrot.slane %v3123_v18, 4  ;;  %v5837_v21 = vrot.slane %v5829_v59, 9 }
 0x17f   : > { %6637 = vmatprep.subr.bf16.mxu0 %v7046_v29  ;;  %v5877_v53 = vcombine.high %v8582_v57, %v8337_v19  ;;  %v5876_v16 = vcombine.low %v8582_v57, %v8337_v19  ;;  %v3137_v29 = vor.u32 %v3136_v35, %v3133_v3  ;;  %v3152_v3 = vrot.slane %v3150_v9, 5  ;;  %v7059_v35 = vld [vmem:[%s7898_s29 + $0x330] sm:$0xff]   ;;  %v7087_v19 = vld [vmem:[%s7898_s29 + $0x3a0] sm:$0xff]   ;;  %v7090_v57 = vld [vmem:[%s7898_s29 + $0x3e8] sm:$0xff]  }
 0x180   : > { %6572 = vmatpush3.bf16.msra.mxu1 %v7039_v34  ;;  %v7051_v34 = vld [vmem:[%s7898_s29 + $0x2a8] sm:$0xff]   ;;  %v3148_v56 = vrot.slane %v3147_v44, 4  ;;  %v3158_v18 = vshll.u32 %v8611_v38, 16  ;;  %v3164_v9 = vshll.u32 %v8516_v40, 16  ;;  %v7065_v44 = vld [vmem:[%s7898_s29 + $0x338] sm:$0xff]  }
 0x181   : > { %3420 = vmatmul.mubr.bf16.gmra.mrb[56].mxu0 %v5798_v23  ;;  %6573 = vmatprep.subr.bf16.mxu1 %v7044_v4  ;;  %v7053_v23 = vld [vmem:[%s7898_s29 + $0x328] sm:$0xff]   ;;  %v5803_v4 = vcombine.high %v8573_v58, %v8601_v26  ;;  %v3138_v54 = vrot.slane %v3137_v29, 4  ;;  %v3168_v29 = vshrl.u32 %v8516_v40, 16 }
 0x182   : > { %3427 = vmatprep.mubr.bf16.mxu0 %v5801_v17  ;;  %6638 = vmatpush3.bf16.msra.mxu0 %v7047_v25  ;;  %v7056_v17 = vld [vmem:[%s7898_s29 + $0x2f0] sm:$0xff]   ;;  %v3155_v25 = vshrl.u32 %v8611_v38, 16  ;;  %v3160_v59 = vrot.slane %v3158_v18, 5 }
 0x183   : > { %2898 = vmatmul.mubr.bf16.gmra.mrb[56].mxu1 %v8300_v62  ;;  %6639 = vmatprep.subr.bf16.mxu0 %v7052_v15  ;;  %v8622_v62 = vsel %vm8011_vm5, %v5836_v43, %v8209_v49  ;;  %v8633_v49 = vcombine.low %v8389_v5, %v8384_v41  ;;  %v7064_v15 = vld [vmem:[%s7898_s29 + $0x378] sm:$0xff]   ;;  %v8647_v5 = vsel %vm8011_vm5, %v5837_v21, %v3539_v1  ;;  %v7070_v43 = vld [vmem:[%s7898_s29 + $0x440] sm:$0xff]   ;;  %v3170_v21 = vrot.slane %v3168_v29, 4 }
 0x184   : > { %2905 = vmatprep.mubr.bf16.mxu1 %v8563_v10  ;;  %6574 = vmatpush3.bf16.msra.mxu1 %v7045_v22  ;;  %v5879_v2 = vcombine.high %v8622_v62, %v8359_v32  ;;  %v5878_v39 = vcombine.low %v8622_v62, %v8359_v32  ;;  %v7057_v22 = vld [vmem:[%s7898_s29 + $0x2b0] sm:$0xff]   ;;  %v5881_v47 = vcombine.high %v8647_v5, %v8412_v7  ;;  %v7100_v62 = vld [vmem:[%s7898_s29 + $0x3f8] sm:$0xff]  }
 0x185   : > { %6575 = vmatprep.subr.bf16.mxu1 %v7050_v52  ;;  %v8639_v52 = vcombine.high %v8395_v46, %v8403_v31  ;;  %v3119_v41 = vsel %vm7950_vm2, %v3114_v20, %v8492_v11  ;;  %v3129_v1 = vsel %vm7950_vm2, %v3124_v51, %v3128_v0  ;;  %v7063_v11 = vld [vmem:[%s7898_s29 + $0x2b8] sm:$0xff]   ;;  %v7068_v0 = vld [vmem:[%s7898_s29 + $0x3c0] sm:$0xff]   ;;  %v3143_v18 = vsel %vm7950_vm2, %v3138_v54, %v8553_v42  ;;  %v5832_v54 = vld [vmem:[%s7914_s25 + $0xa8] sm:$0xee] }
 0x186   : > { %6640 = vmatpush3.bf16.msra.mxu0 %v7053_v23  ;;  %v7062_v23 = vld [vmem:[%s7898_s29 + $0x2f8] sm:$0xff]   ;;  %v5805_v20 = vcombine.high %v3119_v41, %v3129_v1  ;;  %v7095_v32 = vld [vmem:[%s7898_s29 + $0x3b0] sm:$0xff]  }
 0x187   : > { %6641 = vmatprep.subr.bf16.mxu0 %v7058_v61  ;;  %v5830_v61 = vld [vmem:[%s7914_s25 + $0x78] sm:$0xee] }
 0x188   : > { %6576 = vmatpush3.bf16.msra.mxu1 %v7051_v34  ;;  %v5880_v34 = vcombine.low %v8647_v5, %v8412_v7 }
 0x189   : > { %3428 = vmatmul.mubr.bf16.gmra.mrb[60].mxu0 %v5800_v63  ;;  %6577 = vmatprep.subr.bf16.mxu1 %v7056_v17  ;;  %v5838_v17 = vrot.slane %v5830_v61, 9  ;;  %v5802_v63 = vcombine.low %v8573_v58, %v8601_v26  ;;  %v5831_v26 = vld [vmem:[%s7914_s25 + $0x90] sm:$0xee] }
 0x18a   : > { %3435 = vmatprep.mubr.bf16.mxu0 %v5803_v4  ;;  %6642 = vmatpush3.bf16.msra.mxu0 %v7059_v35  ;;  %v3157_v4 = vrot.slane %v3155_v25, 4  ;;  %v3166_v35 = vrot.slane %v3164_v9, 5  ;;  %v5839_v25 = vrot.slane %v5831_v26, 9  ;;  %v3153_v9 = vsel %vm7950_vm2, %v3148_v56, %v3152_v3 }
 0x18b   : > { %2906 = vmatmul.mubr.bf16.gmra.mrb[60].mxu1 %v8633_v49  ;;  %6643 = vmatprep.subr.bf16.mxu0 %v7064_v15  ;;  %v8672_v51 = vsel %vm8011_vm5, %v5838_v17, %v3546_v37  ;;  %v8685_v37 = vcombine.high %v8436_v12, %v8440_v60  ;;  %v5804_v3 = vcombine.low %v3119_v41, %v3129_v1  ;;  %v9404_v17 = vrot.slane %v8470_v33, 5  ;;  %v5833_v41 = vld [vmem:[%s7914_s25 + $0xc0] sm:$0xee] }
 0x18c   : > { %2913 = vmatprep.mubr.bf16.mxu1 %v8639_v52  ;;  %6578 = vmatpush3.bf16.msra.mxu1 %v7057_v22  ;;  %v5883_v15 = vcombine.high %v8672_v51, %v8454_v30  ;;  %v5882_v58 = vcombine.low %v8672_v51, %v8454_v30  ;;  %v8681_v22 = vcombine.low %v8395_v46, %v8403_v31  ;;  %v3174_v46 = vshll.u32 %v8523_v28, 16 }
 0x18d   : > { %6579 = vmatprep.subr.bf16.mxu1 %v7062_v23  ;;  %v9403_v31 = vrot.slane %v8440_v60, 5  ;;  %v3161_v29 = vor.u32 %v3160_v59, %v3157_v4  ;;  %v5840_v28 = vrot.slane %v5832_v54, 9  ;;  %v5807_v56 = vcombine.high %v3143_v18, %v3153_v9  ;;  %v8753_v54 = vld [vmem:[%s7914_s25 + $0x38] sm:$0xff] }
 0x18e   : > { %6644 = vmatpush3.bf16.msra.mxu0 %v7065_v44  ;;  %v3171_v44 = vor.u32 %v3170_v21, %v3166_v35  ;;  %v8723_v1 = vcombine.high %v8487_v48, %v8470_v33  ;;  %v5841_v21 = vrot.slane %v5833_v41, 9  ;;  %v7075_v41 = vld [vmem:[%s7898_s29 + $0x388] sm:$0xff]   ;;  %v4254_v7 = vshll.u32 %v8753_v54, 16 }
 0x18f   : > { %6757 = vmatprep.subr.bf16.mxu0 %v7070_v43  ;;  %v8697_v23 = vsel %vm8011_vm5, %v5839_v25, %v9403_v31  ;;  %v3176_v43 = vrot.slane %v3174_v46, 5  ;;  %v3162_v4 = vrot.slane %v3161_v29, 4  ;;  %v8743_v29 = vcombine.low %v8487_v48, %v8470_v33 }
 0x190   : > { %6580 = vmatpush3.bf16.msra.mxu1 %v7063_v11  ;;  %v5885_v61 = vcombine.high %v8697_v23, %v8500_v13  ;;  %v5884_v42 = vcombine.low %v8697_v23, %v8500_v13  ;;  %v3172_v11 = vrot.slane %v3171_v44, 4  ;;  %v8750_v44 = vld [vmem:[%s7914_s25 + $0x30] sm:$0xff]  ;;  %v8761_v48 = vcombine.low %v8611_v38, %v8516_v40 }
 0x191   : > { %3436 = vmatmul.mubr.bf16.gmra.mrb[64].mxu0 %v5802_v63  ;;  %6693 = vmatprep.subr.bf16.mxu1 %v7068_v0  ;;  %v8710_v63 = vsel %vm8011_vm5, %v5840_v28, %v9404_v17  ;;  %v8718_v0 = vcombine.low %v8436_v12, %v8440_v60  ;;  %v3167_v26 = vsel %vm7950_vm2, %v3162_v4, %v3166_v35  ;;  %v8767_v28 = vld [vmem:[%s7914_s25 + $0x50] sm:$0xff]  ;;  %v7074_v17 = vld [vmem:[%s7898_s29 + $0x3c8] sm:$0xff]   ;;  %v4258_v5 = vshrl.u32 %v8753_v54, 16 }
 0x192   : > { %3443 = vmatprep.mubr.bf16.mxu0 %v5805_v20  ;;  %v5887_v20 = vcombine.high %v8710_v63, %v8527_v36  ;;  %v5886_v59 = vcombine.low %v8710_v63, %v8527_v36  ;;  %v3177_v25 = vsel %vm7950_vm2, %v3172_v11, %v3176_v43  ;;  %v8733_v12 = vsel %vm8011_vm5, %v5841_v21, %v3567_v27  ;;  %v7069_v43 = vld [vmem:[%s7898_s29 + $0x380] sm:$0xff]   ;;  %v7077_v4 = vld [vmem:[%s7898_s29 + $0x408] sm:$0xff]   ;;  %v7078_v21 = vld [vmem:[%s7898_s29 + $0x3d0] sm:$0xff]  }
 0x193   : > { %2914 = vmatmul.mubr.bf16.gmra.mrb[64].mxu1 %v8681_v22  ;;  %v5889_v60 = vcombine.high %v8733_v12, %v8595_v55  ;;  %v5888_v46 = vcombine.low %v8733_v12, %v8595_v55  ;;  %v5806_v35 = vcombine.low %v3143_v18, %v3153_v9  ;;  %v5809_v31 = vcombine.high %v3167_v26, %v3177_v25  ;;  %v8764_v9 = vld [vmem:[%s7914_s25 + $0x48] sm:$0xff] }
 0x194   : > { %2921 = vmatprep.mubr.bf16.mxu1 %v8685_v37  ;;  %v8747_v27 = vcombine.high %v8611_v38, %v8516_v40  ;;  %v5808_v18 = vcombine.low %v3167_v26, %v3177_v25  ;;  %v5957_v33 = vcombine.high %v8750_v44, %v8753_v54  ;;  %v7071_v40 = vld [vmem:[%s7898_s29 + $0x400] sm:$0xff]   ;;  %v5959_v38 = vcombine.high %v8764_v9, %v8767_v28  ;;  %v7081_v26 = vld [vmem:[%s7898_s29 + $0x410] sm:$0xff]   ;;  %v5999_v12 = vld [vmem:[%s7914_s25 + $0x88] sm:$0x11] }
 0x195   : > { %v5958_v11 = vcombine.low %v8764_v9, %v8767_v28  ;;  %v7088_v25 = vld [vmem:[%s7898_s29 + $0x460] sm:$0xff]   ;;  %v4278_v30 = vshll.u32 %v8767_v28, 16  ;;  %v4282_v51 = vshrl.u32 %v8767_v28, 16 }
 0x197   : > { %v4280_v23 = vrot.slane %v4278_v30, 5 }
 0x199   : > { %3444 = vmatmul.mubr.bf16.gmra.mrb[68].mxu0 %v5804_v3  ;;  %v5956_v3 = vcombine.low %v8750_v44, %v8753_v54 }
 0x19a   : > { %3451 = vmatprep.mubr.bf16.mxu0 %v5807_v56  ;;  %v7076_v56 = vld [vmem:[%s7898_s29 + $0x448] sm:$0xff]  }
 0x19b   : > { %2922 = vmatmul.mubr.bf16.gmra.mrb[68].mxu1 %v8718_v0 }
 0x19c   : > { %2929 = vmatprep.mubr.bf16.mxu1 %v8723_v1 }
 0x1a1   : > { %3452 = vmatmul.mubr.bf16.gmra.mrb[72].mxu0 %v5806_v35  ;;  %v7086_v35 = vld [vmem:[%s7898_s29 + $0x3e0] sm:$0xff]  }
 0x1a2   : > { %3459 = vmatprep.mubr.bf16.mxu0 %v5809_v31  ;;  %v7089_v31 = vld [vmem:[%s7898_s29 + $0x420] sm:$0xff]  }
 0x1a3   : > { %2930 = vmatmul.mubr.bf16.gmra.mrb[72].mxu1 %v8743_v29 }
 0x1a4   : > { %2937 = vmatprep.mubr.bf16.mxu1 %v8747_v27 }
 0x1a9   : > { %3460 = vmatmul.mubr.bf16.gmra.mrb[76].mxu0 %v5808_v18  ;;  %v7092_v18 = vld [vmem:[%s7898_s29 + $0x468] sm:$0xff]  }
 0x1aa   : > { %4139 = vmatprep.mubr.bf16.mxu0 %v5957_v33  ;;  %v7097_v33 = vld [vmem:[%s7898_s29 + $0x430] sm:$0xff]  }
 0x1ab   : > { %2938 = vmatmul.mubr.bf16.gmra.mrb[76].mxu1 %v8761_v48 }
 0x1ac   : > { %3797 = vmatprep.mubr.bf16.mxu1 %v5875_v14  ;;  %v7080_v14 = vld [vmem:[%s7898_s29 + $0x450] sm:$0xff]  }
 0x1b1   : > { %4140 = vmatmul.mubr.bf16.vlgmr.msra.gmra.mrb[80].mxu0 %v5956_v3  ;;  %v7102_v3 = vld [vmem:[%s7898_s29 + $0x478] sm:$0xff]  }
 0x1b2   : > { %6758 = vmatpush3.bf16.msra.mxu0 %v7071_v40  ;;  %4147 = vmatprep.mubr.bf16.mxu0 %v5959_v38  ;;  %v4269_v40 = vshrl.u32 %v8764_v9, 16  ;;  %v4272_v38 = vshll.u32 %v8764_v9, 16  ;;  %v6076_v9 = vld [vmem:[%s7914_s25 + $0x30] sm:$0xee] }
 0x1b3   : > { %6759 = vmatprep.subr.bf16.mxu0 %v7076_v56  ;;  %3798 = vmatmul.mubr.bf16.vlgmr.msra.gmra.mrb[80].mxu1 %v5874_v50  ;;  %v7082_v50 = vld [vmem:[%s7898_s29 + $0x3d8] sm:$0xff]  }
 0x1b4   : > { %6694 = vmatpush3.bf16.msra.mxu1 %v7069_v43  ;;  %3805 = vmatprep.mubr.bf16.mxu1 %v5877_v53  ;;  %v7085_v53 = vld [vmem:[%s7898_s29 + $0x418] sm:$0xff]   ;;  %v8861_v43 = vld [vmem:[%s7914_s25 + $0xe0] sm:$0xff] }
 0x1b5   : > { %6695 = vmatprep.subr.bf16.mxu1 %v7074_v17  ;;  %v8858_v56 = vld [vmem:[%s7914_s25 + $0xd8] sm:$0xff] }
 0x1b6   : > { %6760 = vmatpush3.bf16.msra.mxu0 %v7077_v4 }
 0x1b7   : > { %6761 = vmatprep.subr.bf16.mxu0 %v7080_v14 }
 0x1b8   : > { %6696 = vmatpush3.bf16.msra.mxu1 %v7075_v41 }
 0x1b9   : > { %4148 = vmatmul.mubr.bf16.gmra.mrb[84].mxu0 %v5958_v11  ;;  %6697 = vmatprep.subr.bf16.mxu1 %v7078_v21 }
 0x1ba   : > { %4155 = vmatprep.mubr.bf16.mxu0 %v8563_v10  ;;  %6762 = vmatpush3.bf16.msra.mxu0 %v7081_v26  ;;  %v7083_v10 = vld [vmem:[%s7898_s29 + $0x398] sm:$0xff]  }
 0x1bb   : > { %3806 = vmatmul.mubr.bf16.gmra.mrb[84].mxu1 %v5876_v16  ;;  %6763 = vmatprep.subr.bf16.mxu0 %v7084_v24  ;;  %v7093_v16 = vld [vmem:[%s7898_s29 + $0x428] sm:$0xff]   ;;  %v4271_v24 = vrot.slane %v4269_v40, 4 }
 0x1bc   : > { %3813 = vmatprep.mubr.bf16.mxu1 %v5879_v2  ;;  %6698 = vmatpush3.bf16.msra.mxu1 %v7079_v45  ;;  %v7096_v2 = vld [vmem:[%s7898_s29 + $0x470] sm:$0xff]   ;;  %v4274_v45 = vrot.slane %v4272_v38, 5 }
 0x1bd   : > { %6699 = vmatprep.subr.bf16.mxu1 %v7082_v50 }
 0x1be   : > { %6764 = vmatpush3.bf16.msra.mxu0 %v7085_v53 }
 0x1bf   : > { %6765 = vmatprep.subr.bf16.mxu0 %v7088_v25  ;;  %v5971_v25 = vcombine.high %v8858_v56, %v8861_v43 }
 0x1c0   : > { %6700 = vmatpush3.bf16.msra.mxu1 %v7083_v10 }
 0x1c1   : > { %4156 = vmatmul.mubr.bf16.gmra.mrb[88].mxu0 %v8633_v49  ;;  %6701 = vmatprep.subr.bf16.mxu1 %v7086_v35  ;;  %v7091_v49 = vld [vmem:[%s7898_s29 + $0x3a8] sm:$0xff]  }
 0x1c2   : > { %4163 = vmatprep.mubr.bf16.mxu0 %v8639_v52  ;;  %6766 = vmatpush3.bf16.msra.mxu0 %v7089_v31  ;;  %v7094_v52 = vld [vmem:[%s7898_s29 + $0x3f0] sm:$0xff]   ;;  %v6084_v31 = vrot.slane %v6076_v9, 9 }
 0x1c3   : > { %3814 = vmatmul.mubr.bf16.gmra.mrb[88].mxu1 %v5878_v39  ;;  %6767 = vmatprep.subr.bf16.mxu0 %v7092_v18  ;;  %v7103_v39 = vld [vmem:[%s7898_s29 + $0x438] sm:$0xff]  }
 0x1c4   : > { %3821 = vmatprep.mubr.bf16.mxu1 %v5881_v47  ;;  %6702 = vmatpush3.bf16.msra.mxu1 %v7087_v19  ;;  %v7101_v47 = vld [vmem:[%s7898_s29 + $0x3b8] sm:$0xff]   ;;  %s5483_s29 = sshll.u32 %s1400_s26, 6 }
 0x1c5   : > { %6703 = vmatprep.subr.bf16.mxu1 %v7090_v57  ;;  %v5993_v57 = vld [vmem:[%s7914_s25 + $0x58] sm:$0x11]  ;;  %s9294_s12 = scalar_lea.vmem [#allocation3], %s5483_s29 }
 0x1c6   : > { %6768 = vmatpush3.bf16.msra.mxu0 %v7093_v16  ;;  %v4275_v16 = vor.u32 %v4274_v45, %v4271_v24  ;;  %v5997_v45 = vld [vmem:[%s7914_s25 + $0x78] sm:$0xff] }
 0x1c7   : > { %6769 = vmatprep.subr.bf16.mxu0 %v7096_v2 }
 0x1c8   : > { %6704 = vmatpush3.bf16.msra.mxu1 %v7091_v49 }
 0x1c9   : > { %4164 = vmatmul.mubr.bf16.gmra.mrb[92].mxu0 %v8681_v22  ;;  %6705 = vmatprep.subr.bf16.mxu1 %v7094_v52  ;;  %v4245_v22 = vshrl.u32 %v8750_v44, 16 }
 0x1ca   : > { %4171 = vmatprep.mubr.bf16.mxu0 %v8685_v37  ;;  %6770 = vmatpush3.bf16.msra.mxu0 %v7097_v33  ;;  %v4248_v37 = vshll.u32 %v8750_v44, 16  ;;  %v4776_v44 = vrot.slane %v8753_v54, 5  ;;  %v5990_v54 = vld [vmem:[%s7914_s25 + $0x40] sm:$0x11] }
 0x1cb   : > { %3822 = vmatmul.mubr.bf16.gmra.mrb[92].mxu1 %v5880_v34  ;;  %6771 = vmatprep.subr.bf16.mxu0 %v7102_v3  ;;  %v4247_v34 = vrot.slane %v4245_v22, 4  ;;  %v4264_v13 = vshll.u32 %v5990_v54, 16  ;;  %v4779_v18 = vrot.slane %v5990_v54, 5  ;;  %v4786_v54 = vrot.slane %v5993_v57, 5 }
 0x1cc   : > { %3829 = vmatprep.mubr.bf16.mxu1 %v5883_v15  ;;  %6706 = vmatpush3.bf16.msra.mxu1 %v7095_v32  ;;  %v4250_v15 = vrot.slane %v4248_v37, 5  ;;  %v4778_v41 = vrot.slane %v4776_v44, 4  ;;  %v8886_v33 = vsel %vm8011_vm5, %v6084_v31, %v4776_v44  ;;  %v5994_v32 = vld [vmem:[%s7914_s25 + $0x60] sm:$0xff]  ;;  %v4276_v37 = vrot.slane %v4275_v16, 4 }
 0x1cd   : > { %6707 = vmatprep.subr.bf16.mxu1 %v7100_v62  ;;  %v4266_v52 = vrot.slane %v4264_v13, 5  ;;  %v4296_v40 = vshll.u32 %v5994_v32, 16 }
 0x1ce   : > { %6772 = vmatpush3.bf16.msra.mxu0 %v7103_v39  ;;  %v4251_v14 = vor.u32 %v4250_v15, %v4247_v34  ;;  %v8890_v3 = vsel %vm8011_vm5, %v4778_v41, %v4779_v18  ;;  %v4288_v39 = vshll.u32 %v5993_v57, 16  ;;  %v8928_v41 = vsel %vm7950_vm2, %v4276_v37, %v4280_v23 }
 0x1cf   : > { %v6125_v36 = vcombine.high %v8886_v33, %v8890_v3  ;;  %v6124_v31 = vcombine.low %v8886_v33, %v8890_v3 }
 0x1d0   : > { %6708 = vmatpush3.bf16.msra.mxu1 %v7101_v47  ;;  %v4252_v19 = vrot.slane %v4251_v14, 4  ;;  %v8894_v47 = vld [vmem:[%s7914_s25 + $0x68] sm:$0xff]  ;;  %v5996_v14 = vld [vmem:[%s7914_s25 + $0x70] sm:$0x11] }
 0x1d1   : > { %4172 = vmatmul.mubr.bf16.gmra.mrb[96].mxu0 %v8718_v0  ;;  %v4256_v0 = vrot.slane %v4254_v7, 5  ;;  %v6077_v7 = vld [vmem:[%s7914_s25 + $0x48] sm:$0xee]  ;;  %v4302_v38 = vshll.u32 %v8894_v47, 16  ;;  %v4790_v24 = vrot.slane %v8894_v47, 5  ;;  %v4312_v57 = vshll.u32 %v5996_v14, 16 }
 0x1d2   : > { %4179 = vmatprep.mubr.bf16.mxu0 %v8723_v1  ;;  %v4260_v1 = vrot.slane %v4258_v5, 4  ;;  %v4793_v33 = vrot.slane %v5996_v14, 5 }
 0x1d3   : > { %3830 = vmatmul.mubr.bf16.gmra.mrb[96].mxu1 %v5882_v58  ;;  %v8903_v22 = vsel %vm7950_vm2, %v4252_v19, %v4256_v0 }
 0x1d4   : > { %3837 = vmatprep.mubr.bf16.mxu1 %v5885_v61  ;;  %v4261_v11 = vor.u32 %v4260_v1, %v4256_v0 }
 0x1d6   : > { %v4262_v49 = vrot.slane %v4261_v11, 4 }
 0x1d8   : > { %v8915_v0 = vsel %vm7950_vm2, %v4262_v49, %v4266_v52  ;;  %v4320_v49 = vshll.u32 %v5997_v45, 16  ;;  %v4792_v52 = vrot.slane %v4790_v24, 4 }
 0x1d9   : > { %4180 = vmatmul.mubr.bf16.gmra.mrb[100].mxu0 %v8743_v29  ;;  %v6045_v9 = vcombine.high %v8903_v22, %v8915_v0  ;;  %v6044_v55 = vcombine.low %v8903_v22, %v8915_v0 }
 0x1da   : > { %4187 = vmatprep.mubr.bf16.mxu0 %v8747_v27  ;;  %v4322_v37 = vrot.slane %v4320_v49, 5 }
 0x1db   : > { %3838 = vmatmul.mubr.bf16.gmra.mrb[100].mxu1 %v5884_v42  ;;  %v4284_v42 = vrot.slane %v4282_v51, 4 }
 0x1dc   : > { %3845 = vmatprep.mubr.bf16.mxu1 %v5887_v20  ;;  %v4783_v20 = vrot.slane %v8767_v28, 5 }
 0x1dd   : > { %v4285_v2 = vor.u32 %v4284_v42, %v4280_v23  ;;  %v8936_v42 = vld [vmem:[%s7914_s25 + $0x80] sm:$0xff] }
 0x1de   : > { %v4785_v5 = vrot.slane %v4783_v20, 4  ;;  %v4330_v3 = vshrl.u32 %v8936_v42, 16 }
 0x1df   : > { %v6261_v58 = vpop.f32.mrb[0].mxu0  ;;  %v6285_v61 = vpop.f32.mrb[0].mxu1  ;;  %v4286_v63 = vrot.slane %v4285_v2, 4  ;;  %v4317_v2 = vshrl.u32 %v5997_v45, 16 }
 0x1e0   : > { %v6262_v17 = vpop.f32.mrb[1].mxu0  ;;  %v6286_v4 = vpop.f32.mrb[1].mxu1  ;;  %v8950_v19 = vsel %vm8011_vm5, %v4785_v5, %v4786_v54  ;;  %v4336_v54 = vshll.u32 %v5999_v12, 16 }
 0x1e1   : > { %v8868_v29 = vadd.f32 %v6262_v17, %v6261_v58  ;;  %v8870_v27 = vadd.f32 %v6286_v4, %v6285_v61  ;;  %v6264_v21 = vpop.f32.mrb[2].mxu0  ;;  %v6288_v26 = vpop.f32.mrb[2].mxu1  ;;  %4188 = vmatmul.mubr.bf16.gmra.mrb[104].mxu0 %v8761_v48  ;;  %v5970_v48 = vcombine.low %v8858_v56, %v8861_v43  ;;  %v4290_v58 = vrot.slane %v4288_v39, 5 }
 0x1e2   : > { %v6265_v50 = vpop.f32.mrb[3].mxu0  ;;  %v6289_v53 = vpop.f32.mrb[3].mxu1  ;;  %4195 = vmatprep.mubr.bf16.mxu0 %v5971_v25  ;;  %v6085_v61 = vrot.slane %v6077_v7, 9  ;;  %v4304_v25 = vrot.slane %v4302_v38, 5  ;;  %v6000_v7 = vld [vmem:[%s7914_s25 + $0x90] sm:$0xff] }
 0x1e3   : > { %v8877_v10 = vadd.f32 %v6265_v50, %v6264_v21  ;;  %v8879_v35 = vadd.f32 %v6289_v53, %v6288_v26  ;;  %3846 = vmatmul.mubr.bf16.gmra.mrb[104].mxu1 %v5886_v59  ;;  %v4293_v59 = vshrl.u32 %v5994_v32, 16  ;;  %v6078_v26 = vld [vmem:[%s7914_s25 + $0x60] sm:$0xee]  ;;  %v4298_v53 = vrot.slane %v4296_v40, 5  ;;  %v6079_v38 = vld [vmem:[%s7914_s25 + $0x78] sm:$0xee] }
 0x1e4   : > { %3853 = vmatprep.mubr.bf16.mxu1 %v5889_v60  ;;  %v4306_v60 = vshrl.u32 %v8894_v47, 16  ;;  %v8942_v23 = vsel %vm7950_vm2, %v4286_v63, %v4290_v58  ;;  %v8946_v18 = vsel %vm8011_vm5, %v6085_v61, %v4783_v20  ;;  %v6086_v16 = vrot.slane %v6078_v26, 9 }
 0x1e5   : > { %v4295_v21 = vrot.slane %v4293_v59, 4  ;;  %v4326_v20 = vshll.u32 %v8936_v42, 16  ;;  %v6127_v32 = vcombine.high %v8946_v18, %v8950_v19  ;;  %v6047_v47 = vcombine.high %v8928_v41, %v8942_v23  ;;  %v8974_v59 = vld [vmem:[%s7914_s25 + $0x98] sm:$0xff] }
 0x1e6   : > { %v4308_v13 = vrot.slane %v4306_v60, 4  ;;  %v4332_v63 = vrot.slane %v4330_v3, 4  ;;  %v4797_v60 = vrot.slane %v8936_v42, 5  ;;  %v6126_v61 = vcombine.low %v8946_v18, %v8950_v19 }
 0x1e7   : > { %v6267_v62 = vpop.f32.mrb[4].mxu0  ;;  %v6291_v1 = vpop.f32.mrb[4].mxu1  ;;  %v4328_v22 = vrot.slane %v4326_v20, 5  ;;  %v4344_v14 = vshll.u32 %v6000_v7, 16  ;;  %v4350_v26 = vshll.u32 %v8974_v59, 16  ;;  %v6003_v20 = vld [vmem:[%s7914_s25 + $0xa8] sm:$0xff]  ;;  %v6046_v3 = vcombine.low %v8928_v41, %v8942_v23 }
 0x1e8   : > { %v6268_v28 = vpop.f32.mrb[5].mxu0  ;;  %v6292_v30 = vpop.f32.mrb[5].mxu1  ;;  %v4309_v39 = vor.u32 %v4308_v13, %v4304_v25  ;;  %v6080_v23 = vld [vmem:[%s7914_s25 + $0x90] sm:$0xee] }
 0x1e9   : > { %v8909_v34 = vadd.f32 %v6268_v28, %v6267_v62  ;;  %v6270_v15 = vpop.f32.mrb[6].mxu0  ;;  %v8921_v17 = vadd.f32 %v6292_v30, %v6291_v1  ;;  %v6294_v4 = vpop.f32.mrb[6].mxu1  ;;  %4196 = vmatmul.mubr.bf16.gmra.mrb[108].mxu0 %v5970_v48  ;;  %v4299_v62 = vor.u32 %v4298_v53, %v4295_v21  ;;  %v4314_v48 = vrot.slane %v4312_v57, 5 }
 0x1ea   : > { %v6271_v44 = vpop.f32.mrb[7].mxu0  ;;  %v6295_v11 = vpop.f32.mrb[7].mxu1  ;;  %5055 = vmatprep.mubr.bf16.mxu0 %v6125_v36  ;;  %v4319_v28 = vrot.slane %v4317_v2, 4  ;;  %v8971_v36 = vsel %vm8011_vm5, %v4792_v52, %v4793_v33  ;;  %v4310_v40 = vrot.slane %v4309_v39, 4  ;;  %v4333_v42 = vor.u32 %v4332_v63, %v4328_v22 }
 0x1eb   : > { %v8919_v51 = vadd.f32 %v6271_v44, %v6270_v15  ;;  %v8933_v50 = vadd.f32 %v6295_v11, %v6294_v4  ;;  %3854 = vmatmul.mubr.bf16.gmra.mrb[108].mxu1 %v5888_v46  ;;  %v8967_v15 = vsel %vm8011_vm5, %v6086_v16, %v4790_v24  ;;  %v4300_v0 = vrot.slane %v4299_v62, 4  ;;  %v6002_v62 = vld [vmem:[%s7914_s25 + $0xa0] sm:$0x11] }
 0x1ec   : > { %4661 = vmatprep.mubr.bf16.mxu1 %v6045_v9  ;;  %v4341_v4 = vshrl.u32 %v6000_v7, 16  ;;  %v4323_v21 = vor.u32 %v4322_v37, %v4319_v28  ;;  %v4354_v24 = vshrl.u32 %v8974_v59, 16  ;;  %v6129_v13 = vcombine.high %v8967_v15, %v8971_v36 }
 0x1ed   : > { %v8992_v19 = vsel %vm7950_vm2, %v4300_v0, %v4304_v25  ;;  %v8996_v57 = vsel %vm7950_vm2, %v4310_v40, %v4314_v48  ;;  %v4799_v16 = vrot.slane %v4797_v60, 4  ;;  %v4800_v2 = vrot.slane %v5999_v12, 5  ;;  %v9011_v48 = vld [vmem:[%s7914_s25 + $0xb0] sm:$0xff] }
 0x1ee   : > { %v4343_v52 = vrot.slane %v4341_v4, 4  ;;  %v4346_v33 = vrot.slane %v4344_v14, 5  ;;  %v4352_v25 = vrot.slane %v4350_v26, 5  ;;  %v4356_v39 = vrot.slane %v4354_v24, 4 }
 0x1ef   : > { %v9015_v41 = vsel %vm8011_vm5, %v4799_v16, %v4800_v2  ;;  %v4804_v28 = vrot.slane %v8974_v59, 5  ;;  %v4365_v37 = vshrl.u32 %v6003_v20, 16  ;;  %v4368_v7 = vshll.u32 %v6003_v20, 16 }
 0x1f0   : > { %v4347_v63 = vor.u32 %v4346_v33, %v4343_v52  ;;  %v6048_v24 = vcombine.low %v8992_v19, %v8996_v57  ;;  %v6081_v33 = vld [vmem:[%s7914_s25 + $0xa8] sm:$0xee] }
 0x1f1   : > { %5056 = vmatmul.mubr.bf16.vlgmr.msra.gmra.mrb[112].mxu0 %v6124_v31  ;;  %v6087_v31 = vrot.slane %v6079_v38, 9  ;;  %v4357_v38 = vor.u32 %v4356_v39, %v4352_v25  ;;  %v4806_v4 = vrot.slane %v4804_v28, 4  ;;  %v4367_v14 = vrot.slane %v4365_v37, 4 }
 0x1f2   : > { %v6273_v46 = vpop.f32.mrb[8].mxu0  ;;  %5063 = vmatprep.mubr.bf16.mxu0 %v6127_v32  ;;  %v4324_v32 = vrot.slane %v4323_v21, 4 }
 0x1f3   : > { %v6274_v5 = vpop.f32.mrb[9].mxu0  ;;  %4662 = vmatmul.mubr.bf16.vlgmr.msra.gmra.mrb[112].mxu1 %v6044_v55  ;;  %v6049_v55 = vcombine.high %v8992_v19, %v8996_v57  ;;  %v9008_v12 = vsel %vm8011_vm5, %v6087_v31, %v4797_v60  ;;  %v4374_v60 = vshll.u32 %v9011_v48, 16  ;;  %v4358_v16 = vrot.slane %v4357_v38, 4  ;;  %v6006_v57 = vld [vmem:[%s7914_s25 + $0xc0] sm:$0xff] }
 0x1f4   : > { %v8976_v1 = vadd.f32 %v6274_v5, %v6273_v46  ;;  %v6276_v44 = vpop.f32.mrb[10].mxu0  ;;  %4669 = vmatprep.mubr.bf16.mxu1 %v6047_v47  ;;  %v4334_v46 = vrot.slane %v4333_v42, 4  ;;  %v4338_v47 = vrot.slane %v4336_v54, 5  ;;  %v6128_v5 = vcombine.low %v8967_v15, %v8971_v36  ;;  %v6005_v42 = vld [vmem:[%s7914_s25 + $0xb8] sm:$0x11] }
 0x1f5   : > { %v6297_v30 = vpop.f32.mrb[8].mxu1  ;;  %v6277_v58 = vpop.f32.mrb[11].mxu0  ;;  %v9023_v40 = vsel %vm7950_vm2, %v4324_v32, %v4328_v22  ;;  %v6131_v15 = vcombine.high %v9008_v12, %v9015_v41  ;;  %v6088_v36 = vrot.slane %v6080_v23, 9  ;;  %v4376_v2 = vrot.slane %v4374_v60, 5  ;;  %v9058_v23 = vld [vmem:[%s7914_s25 + $0xc8] sm:$0xff] }
 0x1f6   : > { %v6298_v11 = vpop.f32.mrb[9].mxu1  ;;  %v8982_v9 = vadd.f32 %v6277_v58, %v6276_v44  ;;  %v4360_v44 = vshll.u32 %v6002_v62, 16  ;;  %v9029_v59 = vsel %vm7950_vm2, %v4334_v46, %v4338_v47  ;;  %v4811_v19 = vrot.slane %v9011_v48, 5 }
 0x1f7   : > { %v8986_v45 = vadd.f32 %v6298_v11, %v6297_v30  ;;  %v6300_v53 = vpop.f32.mrb[10].mxu1  ;;  %v4378_v30 = vshrl.u32 %v9011_v48, 16  ;;  %v4370_v11 = vrot.slane %v4368_v7, 5  ;;  %v6051_v32 = vcombine.high %v9023_v40, %v9029_v59 }
 0x1f8   : > { %v6301_v18 = vpop.f32.mrb[11].mxu1  ;;  %v6130_v39 = vcombine.low %v9008_v12, %v9015_v41  ;;  %v4384_v7 = vshll.u32 %v6005_v42, 16  ;;  %v4813_v38 = vrot.slane %v4811_v19, 4  ;;  %v4814_v60 = vrot.slane %v6005_v42, 5  ;;  %v6008_v42 = vld [vmem:[%s7914_s25 + $0xd0] sm:$0x11] }
 0x1f9   : > { %v8998_v49 = vadd.f32 %v6301_v18, %v6300_v53  ;;  %5064 = vmatmul.mubr.bf16.gmra.mrb[116].mxu0 %v6126_v61  ;;  %v4807_v61 = vrot.slane %v6002_v62, 5  ;;  %v4348_v53 = vrot.slane %v4347_v63, 4  ;;  %v4380_v52 = vrot.slane %v4378_v30, 4 }
 0x1fa   : > { %5071 = vmatprep.mubr.bf16.mxu0 %v6129_v13  ;;  %v4362_v13 = vrot.slane %v4360_v44, 5  ;;  %v4371_v47 = vor.u32 %v4370_v11, %v4367_v14  ;;  %v4389_v63 = vshrl.u32 %v6006_v57, 16  ;;  %v4392_v44 = vshll.u32 %v6006_v57, 16 }
 0x1fb   : > { %4670 = vmatmul.mubr.bf16.gmra.mrb[116].mxu1 %v6046_v3  ;;  %v9055_v46 = vsel %vm8011_vm5, %v4806_v4, %v4807_v61  ;;  %v9064_v48 = vsel %vm7950_vm2, %v4348_v53, %v4352_v25  ;;  %v4398_v30 = vshll.u32 %v9058_v23, 16  ;;  %v4402_v25 = vshrl.u32 %v9058_v23, 16 }
 0x1fc   : > { %v6279_v0 = vpop.f32.mrb[12].mxu0  ;;  %4677 = vmatprep.mubr.bf16.mxu1 %v6049_v55  ;;  %v9051_v55 = vsel %vm8011_vm5, %v6088_v36, %v4804_v28  ;;  %v9068_v41 = vsel %vm7950_vm2, %v4358_v16, %v4362_v13  ;;  %v4381_v28 = vor.u32 %v4380_v52, %v4376_v2  ;;  %v4372_v61 = vrot.slane %v4371_v47, 4 }
 0x1fd   : > { %v6280_v58 = vpop.f32.mrb[13].mxu0  ;;  %v6133_v36 = vcombine.high %v9051_v55, %v9055_v46  ;;  %v6050_v14 = vcombine.low %v9023_v40, %v9029_v59  ;;  %v6053_v11 = vcombine.high %v9064_v48, %v9068_v41  ;;  %v4394_v16 = vrot.slane %v4392_v44, 5 }
 0x1fe   : > { %v9033_v54 = vadd.f32 %v6280_v58, %v6279_v0  ;;  %v6282_v22 = vpop.f32.mrb[14].mxu0  ;;  %v6303_v21 = vpop.f32.mrb[12].mxu1  ;;  %v4382_v13 = vrot.slane %v4381_v28, 4  ;;  %v9085_v40 = vsel %vm8011_vm5, %v4813_v38, %v4814_v60  ;;  %v4400_v59 = vrot.slane %v4398_v30, 5 }
 0x1ff   : > { %v6283_v26 = vpop.f32.mrb[15].mxu0  ;;  %v6304_v31 = vpop.f32.mrb[13].mxu1  ;;  %v4416_v30 = vshll.u32 %v8858_v56, 16 }
 0x200   : > { %v9038_v18 = vadd.f32 %v6283_v26, %v6282_v22  ;;  %v9041_v20 = vadd.f32 %v6304_v31, %v6303_v21  ;;  %v6306_v3 = vpop.f32.mrb[14].mxu1  ;;  %v4386_v21 = vrot.slane %v4384_v7, 5  ;;  %v4391_v31 = vrot.slane %v4389_v63, 4 }
 0x201   : > { %5072 = vmatmul.mubr.bf16.gmra.mrb[120].mxu0 %v6128_v5  ;;  %v6307_v62 = vpop.f32.mrb[15].mxu1  ;;  %v6089_v5 = vrot.slane %v6081_v33, 9 }
 0x202   : > { %5079 = vmatprep.mubr.bf16.mxu0 %v6131_v15  ;;  %v9060_v37 = vadd.f32 %v6307_v62, %v6306_v3  ;;  %v4404_v3 = vrot.slane %v4402_v25, 4  ;;  %v9092_v62 = vsel %vm7950_vm2, %v4372_v61, %v4376_v2  ;;  %v9098_v28 = vsel %vm7950_vm2, %v4382_v13, %v4386_v21 }
 0x203   : > { %4678 = vmatmul.mubr.bf16.gmra.mrb[120].mxu1 %v6048_v24  ;;  %v9080_v26 = vsel %vm8011_vm5, %v6089_v5, %v4811_v19  ;;  %v6132_v19 = vcombine.low %v9051_v55, %v9055_v46  ;;  %v4818_v5 = vrot.slane %v9058_v23, 5  ;;  %v4395_v55 = vor.u32 %v4394_v16, %v4391_v31 }
 0x204   : > { %v6389_v12 = vpop.f32.mrb[16].mxu0  ;;  %4685 = vmatprep.mubr.bf16.mxu1 %v6051_v32  ;;  %v6082_v32 = vld [vmem:[%s7914_s25 + $0xc0] sm:$0xee]  ;;  %v6135_v63 = vcombine.high %v9080_v26, %v9085_v40  ;;  %v4413_v23 = vshrl.u32 %v8858_v56, 16  ;;  %v4422_v25 = vshll.u32 %v8861_v43, 16  ;;  %v6055_v21 = vcombine.high %v9092_v62, %v9098_v28 }
 0x205   : > { %v6390_v0 = vpop.f32.mrb[17].mxu0  ;;  %v6090_v46 = vrot.slane %v6082_v32, 9  ;;  %v4396_v56 = vrot.slane %v4395_v55, 4 }
 0x206   : > { %v6391_v58 = vadd.f32 %v6390_v0, %v6389_v12  ;;  %v6392_v15 = vpop.f32.mrb[18].mxu0  ;;  %v6325_v22 = vpop.f32.mrb[16].mxu1  ;;  %v4405_v0 = vor.u32 %v4404_v3, %v4400_v59  ;;  %v4418_v3 = vrot.slane %v4416_v30, 5 }
 0x207   : > { %v6393_v4 = vpop.f32.mrb[19].mxu0  ;;  %v6326_v24 = vpop.f32.mrb[17].mxu1  ;;  %v9117_v16 = vsel %vm8011_vm5, %v6090_v46, %v4818_v5 }
 0x208   : > { %v6394_v53 = vadd.f32 %v6393_v4, %v6392_v15  ;;  %v6327_v52 = vadd.f32 %v6326_v24, %v6325_v22  ;;  %v6328_v33 = vpop.f32.mrb[18].mxu1  ;;  %v4426_v15 = vshrl.u32 %v8861_v43, 16  ;;  %v4820_v22 = vrot.slane %v4818_v5, 4 }
 0x209   : > { %5080 = vmatmul.mubr.bf16.gmra.mrb[124].mxu0 %v6130_v39  ;;  %v6329_v57 = vpop.f32.mrb[19].mxu1  ;;  %v4408_v39 = vshll.u32 %v6008_v42, 16  ;;  %v4406_v31 = vrot.slane %v4405_v0, 4  ;;  %v4401_v5 = vsel %vm7950_vm2, %v4396_v56, %v4400_v59 }
 0x20a   : > { %5087 = vmatprep.mubr.bf16.mxu0 %v6133_v36  ;;  %v2169_v47 = vadd.f32 %v6327_v52, %v8868_v29  ;;  %v6330_v7 = vadd.f32 %v6329_v57, %v6328_v33  ;;  %v4415_v33 = vrot.slane %v4413_v23, 4 }
 0x20b   : > { %4686 = vmatmul.mubr.bf16.gmra.mrb[124].mxu1 %v6050_v14 }
 0x20c   : > { %v6395_v12 = vpop.f32.mrb[20].mxu0  ;;  %v9102_v44 = vadd.f32 %v6391_v58, %v2169_v47  ;;  %v2172_v2 = vadd.f32 %v6330_v7, %v8877_v10  ;;  %4693 = vmatprep.mubr.bf16.mxu1 %v6053_v11  ;;  %v4821_v10 = vrot.slane %v6008_v42, 5  ;;  %v6052_v11 = vcombine.low %v9064_v48, %v9068_v41  ;;  %v6011_v42 = vld [vmem:[%s7914_s25 + $0xe8] sm:$0x11] }
 0x20d   : > { %v6396_v29 = vpop.f32.mrb[21].mxu0  ;;  %v4424_v48 = vrot.slane %v4422_v25, 5  ;;  %v4428_v41 = vrot.slane %v4426_v15, 4  ;;  %v4825_v47 = vrot.slane %v8861_v43, 5  ;;  %v4419_v23 = vor.u32 %v4418_v3, %v4415_v33 }
 0x20e   : > { %v6397_v38 = vadd.f32 %v6396_v29, %v6395_v12  ;;  %v6398_v60 = vpop.f32.mrb[22].mxu0  ;;  %v9109_v36 = vadd.f32 %v6394_v53, %v2172_v2  ;;  %v6331_v58 = vpop.f32.mrb[20].mxu1  ;;  %v4410_v53 = vrot.slane %v4408_v39, 5  ;;  %v6134_v39 = vcombine.low %v9080_v26, %v9085_v40  ;;  %v6083_v12 = vld [vmem:[%s7914_s25 + $0xd8] sm:$0xee] }
 0x20f   : > { %v6399_v61 = vpop.f32.mrb[23].mxu0  ;;  %v6332_v4 = vpop.f32.mrb[21].mxu1  ;;  %v4432_v2 = vshll.u32 %v6011_v42, 16  ;;  %v4429_v26 = vor.u32 %v4428_v41, %v4424_v48  ;;  %v4827_v30 = vrot.slane %v4825_v47, 4  ;;  %v4828_v25 = vrot.slane %v6011_v42, 5 }
 0x210   : > { %v6400_v14 = vadd.f32 %v6399_v61, %v6398_v60  ;;  %v6333_v24 = vadd.f32 %v6332_v4, %v6331_v58  ;;  %v6334_v13 = vpop.f32.mrb[22].mxu1  ;;  %v4411_v46 = vsel %vm7950_vm2, %v4406_v31, %v4410_v53  ;;  %v6054_v58 = vcombine.low %v9092_v62, %v9098_v28 }
 0x211   : > { %5088 = vmatmul.mubr.bf16.gmra.mrb[128].mxu0 %v6132_v19  ;;  %v6335_v52 = vpop.f32.mrb[23].mxu1  ;;  %v4822_v19 = vsel %vm8011_vm5, %v4820_v22, %v4821_v10  ;;  %v6057_v10 = vcombine.high %v4401_v5, %v4411_v46  ;;  %v4829_v31 = vsel %vm8011_vm5, %v4827_v30, %v4828_v25 }
 0x212   : > { %5095 = vmatprep.mubr.bf16.mxu0 %v6135_v63  ;;  %v2177_v32 = vadd.f32 %v6333_v24, %v8909_v34  ;;  %v6336_v57 = vadd.f32 %v6335_v52, %v6334_v13  ;;  %v6137_v0 = vcombine.high %v9117_v16, %v4822_v19  ;;  %v6136_v52 = vcombine.low %v9117_v16, %v4822_v19 }
 0x213   : > { %4694 = vmatmul.mubr.bf16.gmra.mrb[128].mxu1 %v6052_v11  ;;  %v4420_v11 = vrot.slane %v4419_v23, 4 }
 0x214   : > { %v6401_v7 = vpop.f32.mrb[24].mxu0  ;;  %v9129_v63 = vadd.f32 %v6397_v38, %v2177_v32  ;;  %v2180_v55 = vadd.f32 %v6336_v57, %v8919_v51  ;;  %4701 = vmatprep.mubr.bf16.mxu1 %v6055_v21  ;;  %v6091_v38 = vrot.slane %v6083_v12, 9  ;;  %v4430_v21 = vrot.slane %v4429_v26, 4 }
 0x215   : > { %v6402_v34 = vpop.f32.mrb[25].mxu0 }
 0x216   : > { %v6403_v43 = vadd.f32 %v6402_v34, %v6401_v7  ;;  %v6404_v29 = vpop.f32.mrb[26].mxu0  ;;  %v9135_v40 = vadd.f32 %v6400_v14, %v2180_v55  ;;  %v6337_v59 = vpop.f32.mrb[24].mxu1  ;;  %v4434_v14 = vrot.slane %v4432_v2, 5  ;;  %v4826_v13 = vsel %vm8011_vm5, %v6091_v38, %v4825_v47 }
 0x217   : > { %v6405_v60 = vpop.f32.mrb[27].mxu0  ;;  %v6338_v51 = vpop.f32.mrb[25].mxu1  ;;  %v6139_v8 = vcombine.high %v4826_v13, %v4829_v31 }
 0x218   : > { %v6406_v15 = vadd.f32 %v6405_v60, %v6404_v29  ;;  %v6339_v61 = vadd.f32 %v6338_v51, %v6337_v59  ;;  %v6340_v22 = vpop.f32.mrb[26].mxu1  ;;  %v4435_v41 = vsel %vm7950_vm2, %v4430_v21, %v4434_v14 }
 0x219   : > { %5096 = vmatmul.mubr.bf16.gmra.mrb[132].mxu0 %v6134_v39  ;;  %v6341_v4 = vpop.f32.mrb[27].mxu1 }
 0x21a   : > { %5103 = vmatprep.mubr.bf16.mxu0 %v6137_v0  ;;  %v2185_v56 = vadd.f32 %v6339_v61, %v8976_v1  ;;  %v6342_v24 = vadd.f32 %v6341_v4, %v6340_v22  ;;  %v4425_v1 = vsel %vm7950_vm2, %v4420_v11, %v4424_v48  ;;  %v6138_v0 = vcombine.low %v4826_v13, %v4829_v31 }
 0x21b   : > { %4702 = vmatmul.mubr.bf16.gmra.mrb[132].mxu1 %v6054_v58  ;;  %v6059_v16 = vcombine.high %v4425_v1, %v4435_v41  ;;  %v6058_v30 = vcombine.low %v4425_v1, %v4435_v41 }
 0x21c   : > { %v6407_v62 = vpop.f32.mrb[28].mxu0  ;;  %v9144_v28 = vadd.f32 %v6403_v43, %v2185_v56  ;;  %v2188_v53 = vadd.f32 %v6342_v24, %v8982_v9  ;;  %4709 = vmatprep.mubr.bf16.mxu1 %v6057_v10  ;;  %v6056_v9 = vcombine.low %v4401_v5, %v4411_v46 }
 0x21d   : > { %v6408_v42 = vpop.f32.mrb[29].mxu0 }
 0x21e   : > { %v6409_v33 = vadd.f32 %v6408_v42, %v6407_v62  ;;  %v6410_v3 = vpop.f32.mrb[30].mxu0  ;;  %v9152_v32 = vadd.f32 %v6406_v15, %v2188_v53  ;;  %v6343_v57 = vpop.f32.mrb[28].mxu1 }
 0x21f   : > { %v6411_v47 = vpop.f32.mrb[31].mxu0  ;;  %v6344_v7 = vpop.f32.mrb[29].mxu1 }
 0x220   : > { %v6412_v39 = vadd.f32 %v6411_v47, %v6410_v3  ;;  %v6345_v12 = vadd.f32 %v6344_v7, %v6343_v57  ;;  %v6346_v55 = vpop.f32.mrb[30].mxu1 }
 0x221   : > { %5104 = vmatmul.mubr.bf16.gmra.mrb[136].mxu0 %v6136_v52  ;;  %v6347_v19 = vpop.f32.mrb[31].mxu1 }
 0x222   : > { %5111 = vmatprep.mubr.bf16.mxu0 %v6139_v8  ;;  %v2193_v34 = vadd.f32 %v6345_v12, %v9033_v54  ;;  %v6348_v48 = vadd.f32 %v6347_v19, %v6346_v55 }
 0x223   : > { %4710 = vmatmul.mubr.bf16.gmra.mrb[136].mxu1 %v6056_v9 }
 0x224   : > { %v6413_v6 = vpop.f32.mrb[32].mxu0  ;;  %v9155_v2 = vadd.f32 %v6409_v33, %v2193_v34  ;;  %v2196_v43 = vadd.f32 %v6348_v48, %v9038_v18  ;;  %4717 = vmatprep.mubr.bf16.mxu1 %v6059_v16 }
 0x225   : > { %v6414_v29 = vpop.f32.mrb[33].mxu0 }
 0x226   : > { %v6415_v23 = vadd.f32 %v6414_v29, %v6413_v6  ;;  %v6416_v5 = vpop.f32.mrb[34].mxu0  ;;  %v9158_v46 = vadd.f32 %v6412_v39, %v2196_v43  ;;  %v6349_v26 = vpop.f32.mrb[32].mxu1 }
 0x227   : > { %v6417_v59 = vpop.f32.mrb[35].mxu0  ;;  %v6350_v60 = vpop.f32.mrb[33].mxu1 }
 0x228   : > { %v6418_v38 = vadd.f32 %v6417_v59, %v6416_v5  ;;  %v6351_v54 = vadd.f32 %v6350_v60, %v6349_v26  ;;  %v6352_v25 = vpop.f32.mrb[34].mxu1 }
 0x229   : > { %5112 = vmatmul.mubr.bf16.gmra.mrb[140].mxu0 %v6138_v0  ;;  %v6353_v51 = vpop.f32.mrb[35].mxu1 }
 0x22a   : > { %v2201_v15 = vadd.f32 %v6351_v54, %v8870_v27  ;;  %v6354_v58 = vadd.f32 %v6353_v51, %v6352_v25 }
 0x22b   : > { %4718 = vmatmul.mubr.bf16.gmra.mrb[140].mxu1 %v6058_v30 }
 0x22c   : > { %v6419_v18 = vpop.f32.mrb[36].mxu0  ;;  %v9161_v61 = vadd.f32 %v6415_v23, %v2201_v15  ;;  %v2204_v22 = vadd.f32 %v6354_v58, %v8879_v35 }
 0x22d   : > { %v6420_v10 = vpop.f32.mrb[37].mxu0 }
 0x22e   : > { %v6421_v4 = vadd.f32 %v6420_v10, %v6419_v18  ;;  %v6422_v11 = vpop.f32.mrb[38].mxu0  ;;  %v9164_v21 = vadd.f32 %v6418_v38, %v2204_v22  ;;  %v6355_v14 = vpop.f32.mrb[36].mxu1 }
 0x22f   : > { %v6423_v56 = vpop.f32.mrb[39].mxu0  ;;  %v6356_v24 = vpop.f32.mrb[37].mxu1 }
 0x230   : > { %v6424_v13 = vadd.f32 %v6423_v56, %v6422_v11  ;;  %v6357_v31 = vadd.f32 %v6356_v24, %v6355_v14  ;;  %v6358_v62 = vpop.f32.mrb[38].mxu1 }
 0x231   : > { %v6359_v53 = vpop.f32.mrb[39].mxu1 }
 0x232   : > { %v2209_v27 = vadd.f32 %v6357_v31, %v8921_v17  ;;  %v6360_v42 = vadd.f32 %v6359_v53, %v6358_v62 }
 0x234   : > { %v6425_v52 = vpop.f32.mrb[40].mxu0  ;;  %v9167_v33 = vadd.f32 %v6421_v4, %v2209_v27  ;;  %v2212_v35 = vadd.f32 %v6360_v42, %v8933_v50 }
 0x235   : > { %v6426_v3 = vpop.f32.mrb[41].mxu0 }
 0x236   : > { %v6427_v1 = vadd.f32 %v6426_v3, %v6425_v52  ;;  %v6428_v41 = vpop.f32.mrb[42].mxu0  ;;  %v9170_v8 = vadd.f32 %v6424_v13, %v2212_v35  ;;  %v6361_v57 = vpop.f32.mrb[40].mxu1 }
 0x237   : > { %v6429_v47 = vpop.f32.mrb[43].mxu0  ;;  %v6362_v7 = vpop.f32.mrb[41].mxu1 }
 0x238   : > { %v6430_v39 = vadd.f32 %v6429_v47, %v6428_v41  ;;  %v6363_v9 = vadd.f32 %v6362_v7, %v6361_v57  ;;  %v6364_v12 = vpop.f32.mrb[42].mxu1 }
 0x239   : > { %v6365_v55 = vpop.f32.mrb[43].mxu1 }
 0x23a   : > { %v2217_v17 = vadd.f32 %v6363_v9, %v8986_v45  ;;  %v6366_v16 = vadd.f32 %v6365_v55, %v6364_v12 }
 0x23c   : > { %v6431_v19 = vpop.f32.mrb[44].mxu0  ;;  %v9173_v34 = vadd.f32 %v6427_v1, %v2217_v17  ;;  %v2220_v50 = vadd.f32 %v6366_v16, %v8998_v49 }
 0x23d   : > { %v6432_v48 = vpop.f32.mrb[45].mxu0 }
 0x23e   : > { %v6433_v6 = vadd.f32 %v6432_v48, %v6431_v19  ;;  %v6434_v43 = vpop.f32.mrb[46].mxu0  ;;  %v9176_v29 = vadd.f32 %v6430_v39, %v2220_v50  ;;  %v6367_v0 = vpop.f32.mrb[44].mxu1 }
 0x23f   : > { %v6435_v23 = vpop.f32.mrb[47].mxu0  ;;  %v6368_v5 = vpop.f32.mrb[45].mxu1 }
 0x240   : > { %v6436_v26 = vadd.f32 %v6435_v23, %v6434_v43  ;;  %v6369_v59 = vadd.f32 %v6368_v5, %v6367_v0  ;;  %v6370_v60 = vpop.f32.mrb[46].mxu1 }
 0x241   : > { %v6371_v38 = vpop.f32.mrb[47].mxu1 }
 0x242   : > { %v2225_v45 = vadd.f32 %v6369_v59, %v9041_v20  ;;  %v6372_v30 = vadd.f32 %v6371_v38, %v6370_v60 }
 0x244   : > { %v6517_v54 = vpop.f32.mrb[48].mxu0  ;;  %v9179_v25 = vadd.f32 %v6433_v6, %v2225_v45  ;;  %v2228_v49 = vadd.f32 %v6372_v30, %v9060_v37 }
 0x245   : > { %v6518_v51 = vpop.f32.mrb[49].mxu0 }
 0x246   : > { %v6519_v15 = vadd.f32 %v6518_v51, %v6517_v54  ;;  %v6520_v58 = vpop.f32.mrb[50].mxu0  ;;  %v9182_v18 = vadd.f32 %v6436_v26, %v2228_v49  ;;  %v6453_v22 = vpop.f32.mrb[48].mxu1 }
 0x247   : > { %v6521_v10 = vpop.f32.mrb[51].mxu0  ;;  %v6454_v4 = vpop.f32.mrb[49].mxu1 }
 0x248   : > { %v6522_v11 = vadd.f32 %v6521_v10, %v6520_v58  ;;  %v6455_v14 = vadd.f32 %v6454_v4, %v6453_v22  ;;  %v6456_v56 = vpop.f32.mrb[50].mxu1 }
 0x249   : > { %v6457_v24 = vpop.f32.mrb[51].mxu1 }
 0x24a   : > { %v2946_v20 = vadd.f32 %v6455_v14, %v9102_v44  ;;  %v6458_v13 = vadd.f32 %v6457_v24, %v6456_v56 }
 0x24c   : > { %v6523_v31 = vpop.f32.mrb[52].mxu0  ;;  %v9185_v62 = vadd.f32 %v6519_v15, %v2946_v20  ;;  %v2947_v37 = vadd.f32 %v6458_v13, %v9109_v36 }
 0x24d   : > { %v6524_v53 = vpop.f32.mrb[53].mxu0 }
 0x24e   : > { %v6525_v27 = vadd.f32 %v6524_v53, %v6523_v31  ;;  %v6526_v42 = vpop.f32.mrb[54].mxu0  ;;  %v9188_v52 = vadd.f32 %v6522_v11, %v2947_v37  ;;  %v6459_v35 = vpop.f32.mrb[52].mxu1 }
 0x24f   : > { %v6527_v3 = vpop.f32.mrb[55].mxu0  ;;  %v6460_v1 = vpop.f32.mrb[53].mxu1 }
 0x250   : > { %v6528_v41 = vadd.f32 %v6527_v3, %v6526_v42  ;;  %v6461_v57 = vadd.f32 %v6460_v1, %v6459_v35  ;;  %v6462_v47 = vpop.f32.mrb[54].mxu1 }
 0x251   : > { %v6463_v7 = vpop.f32.mrb[55].mxu1 }
 0x252   : > { %v2948_v44 = vadd.f32 %v6461_v57, %v9129_v63  ;;  %v6464_v39 = vadd.f32 %v6463_v7, %v6462_v47 }
 0x254   : > { %v6529_v9 = vpop.f32.mrb[56].mxu0  ;;  %v9191_v12 = vadd.f32 %v6525_v27, %v2948_v44  ;;  %v2949_v36 = vadd.f32 %v6464_v39, %v9135_v40 }
 0x255   : > { %v6530_v55 = vpop.f32.mrb[57].mxu0 }
 0x256   : > { %v6531_v17 = vadd.f32 %v6530_v55, %v6529_v9  ;;  %v6532_v16 = vpop.f32.mrb[58].mxu0  ;;  %v9194_v19 = vadd.f32 %v6528_v41, %v2949_v36  ;;  %v6465_v50 = vpop.f32.mrb[56].mxu1 }
 0x257   : > { %v6533_v48 = vpop.f32.mrb[59].mxu0  ;;  %v6466_v6 = vpop.f32.mrb[57].mxu1 }
 0x258   : > { %v6534_v43 = vadd.f32 %v6533_v48, %v6532_v16  ;;  %v6467_v0 = vadd.f32 %v6466_v6, %v6465_v50  ;;  %v6468_v23 = vpop.f32.mrb[58].mxu1 }
 0x259   : > { %v6469_v5 = vpop.f32.mrb[59].mxu1 }
 0x25a   : > { %v2950_v63 = vadd.f32 %v6467_v0, %v9144_v28  ;;  %v6470_v26 = vadd.f32 %v6469_v5, %v6468_v23 }
 0x25c   : > { %v6535_v59 = vpop.f32.mrb[60].mxu0  ;;  %v9197_v60 = vadd.f32 %v6531_v17, %v2950_v63  ;;  %v2951_v40 = vadd.f32 %v6470_v26, %v9152_v32 }
 0x25d   : > { %v6536_v38 = vpop.f32.mrb[61].mxu0 }
 0x25e   : > { %v6537_v45 = vadd.f32 %v6536_v38, %v6535_v59  ;;  %v6538_v30 = vpop.f32.mrb[62].mxu0  ;;  %v9200_v54 = vadd.f32 %v6534_v43, %v2951_v40  ;;  %v6471_v49 = vpop.f32.mrb[60].mxu1 }
 0x25f   : > { %v6539_v51 = vpop.f32.mrb[63].mxu0  ;;  %v6472_v15 = vpop.f32.mrb[61].mxu1 }
 0x260   : > { %v6540_v58 = vadd.f32 %v6539_v51, %v6538_v30  ;;  %v6473_v22 = vadd.f32 %v6472_v15, %v6471_v49  ;;  %v6474_v10 = vpop.f32.mrb[62].mxu1 }
 0x261   : > { %v6475_v4 = vpop.f32.mrb[63].mxu1 }
 0x262   : > { %v2952_v28 = vadd.f32 %v6473_v22, %v9155_v2  ;;  %v6476_v11 = vadd.f32 %v6475_v4, %v6474_v10 }
 0x264   : > { %v6541_v14 = vpop.f32.mrb[64].mxu0  ;;  %v9203_v56 = vadd.f32 %v6537_v45, %v2952_v28  ;;  %v2953_v32 = vadd.f32 %v6476_v11, %v9158_v46 }
 0x265   : > { %v6542_v24 = vpop.f32.mrb[65].mxu0 }
 0x266   : > { %v6543_v20 = vadd.f32 %v6542_v24, %v6541_v14  ;;  %v6544_v13 = vpop.f32.mrb[66].mxu0  ;;  %v9206_v31 = vadd.f32 %v6540_v58, %v2953_v32  ;;  %v6477_v37 = vpop.f32.mrb[64].mxu1 }
 0x267   : > { %v6545_v53 = vpop.f32.mrb[67].mxu0  ;;  %v6478_v27 = vpop.f32.mrb[65].mxu1 }
 0x268   : > { %v6546_v42 = vadd.f32 %v6545_v53, %v6544_v13  ;;  %v6479_v35 = vadd.f32 %v6478_v27, %v6477_v37  ;;  %v6480_v3 = vpop.f32.mrb[66].mxu1 }
 0x269   : > { %v6481_v1 = vpop.f32.mrb[67].mxu1 }
 0x26a   : > { %v2954_v2 = vadd.f32 %v6479_v35, %v9161_v61  ;;  %v6482_v41 = vadd.f32 %v6481_v1, %v6480_v3 }
 0x26c   : > { %v6547_v57 = vpop.f32.mrb[68].mxu0  ;;  %v9209_v47 = vadd.f32 %v6543_v20, %v2954_v2  ;;  %v2955_v46 = vadd.f32 %v6482_v41, %v9164_v21 }
 0x26d   : > { %v6548_v7 = vpop.f32.mrb[69].mxu0 }
 0x26e   : > { %v6549_v44 = vadd.f32 %v6548_v7, %v6547_v57  ;;  %v6550_v39 = vpop.f32.mrb[70].mxu0  ;;  %v9212_v9 = vadd.f32 %v6546_v42, %v2955_v46  ;;  %v6483_v36 = vpop.f32.mrb[68].mxu1 }
 0x26f   : > { %v6551_v55 = vpop.f32.mrb[71].mxu0  ;;  %v6484_v17 = vpop.f32.mrb[69].mxu1 }
 0x270   : > { %v6552_v16 = vadd.f32 %v6551_v55, %v6550_v39  ;;  %v6485_v50 = vadd.f32 %v6484_v17, %v6483_v36  ;;  %v6486_v48 = vpop.f32.mrb[70].mxu1 }
 0x271   : > { %v6487_v6 = vpop.f32.mrb[71].mxu1 }
 0x272   : > { %v2956_v61 = vadd.f32 %v6485_v50, %v9167_v33  ;;  %v6488_v43 = vadd.f32 %v6487_v6, %v6486_v48 }
 0x274   : > { %v6553_v0 = vpop.f32.mrb[72].mxu0  ;;  %v9215_v23 = vadd.f32 %v6549_v44, %v2956_v61  ;;  %v2957_v21 = vadd.f32 %v6488_v43, %v9170_v8 }
 0x275   : > { %v6554_v5 = vpop.f32.mrb[73].mxu0 }
 0x276   : > { %v6555_v63 = vadd.f32 %v6554_v5, %v6553_v0  ;;  %v6556_v26 = vpop.f32.mrb[74].mxu0  ;;  %v9218_v59 = vadd.f32 %v6552_v16, %v2957_v21  ;;  %v6489_v40 = vpop.f32.mrb[72].mxu1 }
 0x277   : > { %v6557_v38 = vpop.f32.mrb[75].mxu0  ;;  %v6490_v45 = vpop.f32.mrb[73].mxu1 }
 0x278   : > { %v6558_v30 = vadd.f32 %v6557_v38, %v6556_v26  ;;  %v6491_v49 = vadd.f32 %v6490_v45, %v6489_v40  ;;  %v6492_v51 = vpop.f32.mrb[74].mxu1 }
 0x279   : > { %v6493_v15 = vpop.f32.mrb[75].mxu1 }
 0x27a   : > { %v2958_v33 = vadd.f32 %v6491_v49, %v9173_v34  ;;  %v6494_v58 = vadd.f32 %v6493_v15, %v6492_v51 }
 0x27c   : > { %v6559_v22 = vpop.f32.mrb[76].mxu0  ;;  %v9221_v10 = vadd.f32 %v6555_v63, %v2958_v33  ;;  %v2959_v8 = vadd.f32 %v6494_v58, %v9176_v29 }
 0x27d   : > { %v6560_v4 = vpop.f32.mrb[77].mxu0 }
 0x27e   : > { %v6561_v28 = vadd.f32 %v6560_v4, %v6559_v22  ;;  %v6562_v11 = vpop.f32.mrb[78].mxu0  ;;  %v9224_v14 = vadd.f32 %v6558_v30, %v2959_v8  ;;  %v6495_v32 = vpop.f32.mrb[76].mxu1 }
 0x27f   : > { %v6563_v24 = vpop.f32.mrb[79].mxu0  ;;  %v6496_v20 = vpop.f32.mrb[77].mxu1 }
 0x280   : > { %v6564_v13 = vadd.f32 %v6563_v24, %v6562_v11  ;;  %v6497_v37 = vadd.f32 %v6496_v20, %v6495_v32  ;;  %v6498_v53 = vpop.f32.mrb[78].mxu1 }
 0x281   : > { %v6499_v27 = vpop.f32.mrb[79].mxu1 }
 0x282   : > { %v2960_v34 = vadd.f32 %v6497_v37, %v9179_v25  ;;  %v6500_v42 = vadd.f32 %v6499_v27, %v6498_v53 }
 0x284   : > { %v6645_v35 = vpop.f32.mrb[80].mxu0  ;;  %v9227_v3 = vadd.f32 %v6561_v28, %v2960_v34  ;;  %v2961_v29 = vadd.f32 %v6500_v42, %v9182_v18 }
 0x285   : > { %v6646_v1 = vpop.f32.mrb[81].mxu0 }
 0x286   : > { %v6647_v2 = vadd.f32 %v6646_v1, %v6645_v35  ;;  %v6648_v41 = vpop.f32.mrb[82].mxu0  ;;  %v9230_v57 = vadd.f32 %v6564_v13, %v2961_v29  ;;  %v6581_v46 = vpop.f32.mrb[80].mxu1 }
 0x287   : > { %v6649_v7 = vpop.f32.mrb[83].mxu0  ;;  %v6582_v44 = vpop.f32.mrb[81].mxu1 }
 0x288   : > { %v6650_v39 = vadd.f32 %v6649_v7, %v6648_v41  ;;  %v6583_v36 = vadd.f32 %v6582_v44, %v6581_v46  ;;  %v6584_v55 = vpop.f32.mrb[82].mxu1 }
 0x289   : > { %v6585_v17 = vpop.f32.mrb[83].mxu1 }
 0x28a   : > { %v3862_v25 = vadd.f32 %v6583_v36, %v9185_v62  ;;  %v6586_v16 = vadd.f32 %v6585_v17, %v6584_v55 }
 0x28c   : > { %v6651_v50 = vpop.f32.mrb[84].mxu0  ;;  %v9233_v48 = vadd.f32 %v6647_v2, %v3862_v25  ;;  %v3863_v18 = vadd.f32 %v6586_v16, %v9188_v52 }
 0x28d   : > { %v6652_v6 = vpop.f32.mrb[85].mxu0 }
 0x28e   : > { %v6653_v61 = vadd.f32 %v6652_v6, %v6651_v50  ;;  %v6654_v43 = vpop.f32.mrb[86].mxu0  ;;  %v9236_v0 = vadd.f32 %v6650_v39, %v3863_v18  ;;  %v6587_v21 = vpop.f32.mrb[84].mxu1 }
 0x28f   : > { %v6655_v5 = vpop.f32.mrb[87].mxu0  ;;  %v6588_v63 = vpop.f32.mrb[85].mxu1 }
 0x290   : > { %v6656_v26 = vadd.f32 %v6655_v5, %v6654_v43  ;;  %v6589_v40 = vadd.f32 %v6588_v63, %v6587_v21  ;;  %v6590_v38 = vpop.f32.mrb[86].mxu1 }
 0x291   : > { %v6591_v45 = vpop.f32.mrb[87].mxu1 }
 0x292   : > { %v3864_v62 = vadd.f32 %v6589_v40, %v9191_v12  ;;  %v6592_v30 = vadd.f32 %v6591_v45, %v6590_v38 }
 0x294   : > { %v6657_v49 = vpop.f32.mrb[88].mxu0  ;;  %v9239_v51 = vadd.f32 %v6653_v61, %v3864_v62  ;;  %v3865_v52 = vadd.f32 %v6592_v30, %v9194_v19 }
 0x295   : > { %v6658_v15 = vpop.f32.mrb[89].mxu0 }
 0x296   : > { %v6659_v33 = vadd.f32 %v6658_v15, %v6657_v49  ;;  %v6660_v58 = vpop.f32.mrb[90].mxu0  ;;  %v9242_v22 = vadd.f32 %v6656_v26, %v3865_v52  ;;  %v6593_v8 = vpop.f32.mrb[88].mxu1 }
 0x297   : > { %v6661_v4 = vpop.f32.mrb[91].mxu0  ;;  %v6594_v28 = vpop.f32.mrb[89].mxu1 }
 0x298   : > { %v6662_v11 = vadd.f32 %v6661_v4, %v6660_v58  ;;  %v6595_v32 = vadd.f32 %v6594_v28, %v6593_v8  ;;  %v6596_v24 = vpop.f32.mrb[90].mxu1 }
 0x299   : > { %v6597_v20 = vpop.f32.mrb[91].mxu1 }
 0x29a   : > { %v3866_v12 = vadd.f32 %v6595_v32, %v9197_v60  ;;  %v6598_v13 = vadd.f32 %v6597_v20, %v6596_v24 }
 0x29c   : > { %v6663_v37 = vpop.f32.mrb[92].mxu0  ;;  %v9245_v53 = vadd.f32 %v6659_v33, %v3866_v12  ;;  %v3867_v19 = vadd.f32 %v6598_v13, %v9200_v54 }
 0x29d   : > { %v6664_v27 = vpop.f32.mrb[93].mxu0 }
 0x29e   : > { %v6665_v34 = vadd.f32 %v6664_v27, %v6663_v37  ;;  %v6666_v42 = vpop.f32.mrb[94].mxu0  ;;  %v9248_v35 = vadd.f32 %v6662_v11, %v3867_v19  ;;  %v6599_v29 = vpop.f32.mrb[92].mxu1 }
 0x29f   : > { %v6667_v1 = vpop.f32.mrb[95].mxu0  ;;  %v6600_v2 = vpop.f32.mrb[93].mxu1 }
 0x2a0   : > { %v6668_v41 = vadd.f32 %v6667_v1, %v6666_v42  ;;  %v6601_v46 = vadd.f32 %v6600_v2, %v6599_v29  ;;  %v6602_v7 = vpop.f32.mrb[94].mxu1 }
 0x2a1   : > { %v6603_v44 = vpop.f32.mrb[95].mxu1 }
 0x2a2   : > { %v3868_v60 = vadd.f32 %v6601_v46, %v9203_v56  ;;  %v6604_v39 = vadd.f32 %v6603_v44, %v6602_v7 }
 0x2a4   : > { %v6669_v36 = vpop.f32.mrb[96].mxu0  ;;  %v9251_v55 = vadd.f32 %v6665_v34, %v3868_v60  ;;  %v3869_v54 = vadd.f32 %v6604_v39, %v9206_v31 }
 0x2a5   : > { %v6670_v17 = vpop.f32.mrb[97].mxu0 }
 0x2a6   : > { %v6671_v25 = vadd.f32 %v6670_v17, %v6669_v36  ;;  %v6672_v16 = vpop.f32.mrb[98].mxu0  ;;  %v9254_v50 = vadd.f32 %v6668_v41, %v3869_v54  ;;  %v6605_v18 = vpop.f32.mrb[96].mxu1 }
 0x2a7   : > { %v6673_v6 = vpop.f32.mrb[99].mxu0  ;;  %v6606_v61 = vpop.f32.mrb[97].mxu1 }
 0x2a8   : > { %v6674_v43 = vadd.f32 %v6673_v6, %v6672_v16  ;;  %v6607_v21 = vadd.f32 %v6606_v61, %v6605_v18  ;;  %v6608_v5 = vpop.f32.mrb[98].mxu1 }
 0x2a9   : > { %v6609_v63 = vpop.f32.mrb[99].mxu1 }
 0x2aa   : > { %v3870_v56 = vadd.f32 %v6607_v21, %v9209_v47  ;;  %v6610_v26 = vadd.f32 %v6609_v63, %v6608_v5 }
 0x2ac   : > { %v6675_v40 = vpop.f32.mrb[100].mxu0  ;;  %v9257_v38 = vadd.f32 %v6671_v25, %v3870_v56  ;;  %v3871_v31 = vadd.f32 %v6610_v26, %v9212_v9 }
 0x2ad   : > { %v6676_v45 = vpop.f32.mrb[101].mxu0 }
 0x2ae   : > { %v6677_v62 = vadd.f32 %v6676_v45, %v6675_v40  ;;  %v6678_v30 = vpop.f32.mrb[102].mxu0  ;;  %v9260_v49 = vadd.f32 %v6674_v43, %v3871_v31  ;;  %v6611_v52 = vpop.f32.mrb[100].mxu1 }
 0x2af   : > { %v6679_v15 = vpop.f32.mrb[103].mxu0  ;;  %v6612_v33 = vpop.f32.mrb[101].mxu1 }
 0x2b0   : > { %v6680_v58 = vadd.f32 %v6679_v15, %v6678_v30  ;;  %v6613_v8 = vadd.f32 %v6612_v33, %v6611_v52  ;;  %v6614_v4 = vpop.f32.mrb[102].mxu1 }
 0x2b1   : > { %v6615_v28 = vpop.f32.mrb[103].mxu1 }
 0x2b2   : > { %v3872_v47 = vadd.f32 %v6613_v8, %v9215_v23  ;;  %v6616_v11 = vadd.f32 %v6615_v28, %v6614_v4 }
 0x2b4   : > { %v6681_v32 = vpop.f32.mrb[104].mxu0  ;;  %v9263_v24 = vadd.f32 %v6677_v62, %v3872_v47  ;;  %v3873_v9 = vadd.f32 %v6616_v11, %v9218_v59 }
 0x2b5   : > { %v6682_v20 = vpop.f32.mrb[105].mxu0 }
 0x2b6   : > { %v6683_v12 = vadd.f32 %v6682_v20, %v6681_v32  ;;  %v6684_v13 = vpop.f32.mrb[106].mxu0  ;;  %v9266_v37 = vadd.f32 %v6680_v58, %v3873_v9  ;;  %v6617_v19 = vpop.f32.mrb[104].mxu1  ;;  %v9286_v58 = vld [vmem:[%s1410_s24] ss:$0 sm:$0xff] }
 0x2b7   : > { %v6685_v27 = vpop.f32.mrb[107].mxu0  ;;  %v6618_v34 = vpop.f32.mrb[105].mxu1 }
 0x2b8   : > { %v6686_v42 = vadd.f32 %v6685_v27, %v6684_v13  ;;  %v6619_v29 = vadd.f32 %v6618_v34, %v6617_v19  ;;  %v6620_v1 = vpop.f32.mrb[106].mxu1 }
 0x2b9   : > { %v6621_v2 = vpop.f32.mrb[107].mxu1 }
 0x2ba   : > { %v3874_v23 = vadd.f32 %v6619_v29, %v9221_v10  ;;  %v6622_v41 = vadd.f32 %v6621_v2, %v6620_v1 }
 0x2bc   : > { %v6687_v46 = vpop.f32.mrb[108].mxu0  ;;  %v9269_v7 = vadd.f32 %v6683_v12, %v3874_v23  ;;  %v3875_v59 = vadd.f32 %v6622_v41, %v9224_v14 }
 0x2bd   : > { %v6688_v44 = vpop.f32.mrb[109].mxu0 }
 0x2be   : > { %v6689_v60 = vadd.f32 %v6688_v44, %v6687_v46  ;;  %v6690_v39 = vpop.f32.mrb[110].mxu0  ;;  %v9272_v36 = vadd.f32 %v6686_v42, %v3875_v59  ;;  %v6623_v54 = vpop.f32.mrb[108].mxu1 }
 0x2bf   : > { %v6691_v17 = vpop.f32.mrb[111].mxu0  ;;  %v6624_v25 = vpop.f32.mrb[109].mxu1 }
 0x2c0   : > { %v6692_v16 = vadd.f32 %v6691_v17, %v6690_v39  ;;  %v6625_v18 = vadd.f32 %v6624_v25, %v6623_v54  ;;  %v6626_v6 = vpop.f32.mrb[110].mxu1 }
 0x2c1   : > { %v6627_v10 = vpop.f32.mrb[111].mxu1 }
 0x2c2   : > { %v3876_v61 = vadd.f32 %v6625_v18, %v9227_v3  ;;  %v6628_v43 = vadd.f32 %v6627_v10, %v6626_v6 }
 0x2c4   : > { %v6773_v21 = vpop.f32.mrb[112].mxu0  ;;  %v9276_v5 = vadd.f32 %v6689_v60, %v3876_v61  ;;  %v3877_v14 = vadd.f32 %v6628_v43, %v9230_v57 }
 0x2c5   : > { %v6774_v63 = vpop.f32.mrb[113].mxu0 }
 0x2c6   : > { %v6775_v56 = vadd.f32 %v6774_v63, %v6773_v21  ;;  %v6776_v26 = vpop.f32.mrb[114].mxu0  ;;  %v9280_v40 = vadd.f32 %v6692_v16, %v3877_v14  ;;  %v6709_v31 = vpop.f32.mrb[112].mxu1 }
 0x2c7   : > { %v6777_v45 = vpop.f32.mrb[115].mxu0  ;;  %v6710_v62 = vpop.f32.mrb[113].mxu1 }
 0x2c8   : > { %v6778_v30 = vadd.f32 %v6777_v45, %v6776_v26  ;;  %v6711_v52 = vadd.f32 %v6710_v62, %v6709_v31  ;;  %v6712_v3 = vpop.f32.mrb[114].mxu1 }
 0x2c9   : > { %v6713_v15 = vpop.f32.mrb[115].mxu1 }
 0x2ca   : > { %v4726_v57 = vadd.f32 %v6711_v52, %v9233_v48  ;;  %v6714_v33 = vadd.f32 %v6713_v15, %v6712_v3 }
 0x2cc   : > { %v6779_v8 = vpop.f32.mrb[116].mxu0  ;;  %v5120_v4 = vadd.f32 %v6775_v56, %v4726_v57  ;;  %v4727_v28 = vadd.f32 %v6714_v33, %v9236_v0 }
 0x2cd   : > { %v6780_v47 = vpop.f32.mrb[117].mxu0 }
 0x2ce   : > { %v6781_v11 = vadd.f32 %v6780_v47, %v6779_v8  ;;  %v6782_v32 = vpop.f32.mrb[118].mxu0  ;;  %v5143_v9 = vadd.f32 %v9286_v58, %v5120_v4  ;;  %v5121_v20 = vadd.f32 %v6778_v30, %v4727_v28  ;;  %v6715_v12 = vpop.f32.mrb[116].mxu1 }
 0x2cf   : > { %v6783_v13 = vpop.f32.mrb[119].mxu0  ;;  %v6716_v19 = vpop.f32.mrb[117].mxu1 }
 0x2d0   : > { %v6784_v27 = vadd.f32 %v6783_v13, %v6782_v32  ;;  %v5144_v48 = vadd.f32 %v9286_v58, %v5121_v20  ;;  %v6717_v34 = vadd.f32 %v6716_v19, %v6715_v12  ;;  %v6718_v42 = vpop.f32.mrb[118].mxu1  ;;  %v5159_v1 = vmax.f32 %v5143_v9, 0.0 }
 0x2d1   : > { %v6719_v29 = vpop.f32.mrb[119].mxu1 }
 0x2d2   : > { %v5160_v2 = vmax.f32 %v5144_v48, 0.0  ;;  %v4728_v0 = vadd.f32 %v6717_v34, %v9239_v51  ;;  %v6720_v23 = vadd.f32 %v6719_v29, %v6718_v42 }
 0x2d4   : > { %v6785_v41 = vpop.f32.mrb[120].mxu0  ;;  %v6201_v46 = vpack.c.bf16 %v5160_v2, %v5159_v1  ;;  %v5122_v59 = vadd.f32 %v6781_v11, %v4728_v0  ;;  %v4729_v44 = vadd.f32 %v6720_v23, %v9242_v22 }
 0x2d5   : > { %v6786_v60 = vpop.f32.mrb[121].mxu0 }
 0x2d6   : > { %v6787_v39 = vadd.f32 %v6786_v60, %v6785_v41  ;;  %v6788_v54 = vpop.f32.mrb[122].mxu0  ;;  %6202 = vst [vmem:[%s9294_s12] sm:$0xff] %v6201_v46   ;;  %v5145_v17 = vadd.f32 %v9286_v58, %v5122_v59  ;;  %v5123_v25 = vadd.f32 %v6784_v27, %v4729_v44  ;;  %v6721_v16 = vpop.f32.mrb[120].mxu1 }
 0x2d7   : > { %v6789_v18 = vpop.f32.mrb[123].mxu0  ;;  %v6722_v6 = vpop.f32.mrb[121].mxu1 }
 0x2d8   : > { %v6790_v51 = vadd.f32 %v6789_v18, %v6788_v54  ;;  %v5146_v10 = vadd.f32 %v9286_v58, %v5123_v25  ;;  %v6723_v61 = vadd.f32 %v6722_v6, %v6721_v16  ;;  %v6724_v43 = vpop.f32.mrb[122].mxu1  ;;  %v5161_v21 = vmax.f32 %v5145_v17, 0.0 }
 0x2d9   : > { %v6725_v22 = vpop.f32.mrb[123].mxu1 }
 0x2da   : > { %v5162_v14 = vmax.f32 %v5146_v10, 0.0  ;;  %v4730_v63 = vadd.f32 %v6723_v61, %v9245_v53  ;;  %v6726_v56 = vadd.f32 %v6725_v22, %v6724_v43 }
 0x2dc   : > { %v6791_v26 = vpop.f32.mrb[124].mxu0  ;;  %v6206_v31 = vpack.c.bf16 %v5162_v14, %v5161_v21  ;;  %v5124_v45 = vadd.f32 %v6787_v39, %v4730_v63  ;;  %v4731_v62 = vadd.f32 %v6726_v56, %v9248_v35 }
 0x2dd   : > { %v6792_v30 = vpop.f32.mrb[125].mxu0 }
 0x2de   : > { %v6793_v52 = vadd.f32 %v6792_v30, %v6791_v26  ;;  %v6794_v3 = vpop.f32.mrb[126].mxu0  ;;  %6238 = vst [vmem:[%s9294_s12 + $0x8] sm:$0xff] %v6206_v31   ;;  %v5147_v15 = vadd.f32 %v9286_v58, %v5124_v45  ;;  %v5125_v57 = vadd.f32 %v6790_v51, %v4731_v62  ;;  %v6727_v33 = vpop.f32.mrb[124].mxu1 }
 0x2df   : > { %v6795_v8 = vpop.f32.mrb[127].mxu0  ;;  %v6728_v4 = vpop.f32.mrb[125].mxu1 }
 0x2e0   : > { %v6796_v28 = vadd.f32 %v6795_v8, %v6794_v3  ;;  %v5148_v53 = vadd.f32 %v9286_v58, %v5125_v57  ;;  %v6729_v47 = vadd.f32 %v6728_v4, %v6727_v33  ;;  %v6730_v11 = vpop.f32.mrb[126].mxu1  ;;  %v5163_v9 = vmax.f32 %v5147_v15, 0.0 }
 0x2e1   : > { %v6731_v32 = vpop.f32.mrb[127].mxu1 }
 0x2e2   : > { %v5164_v20 = vmax.f32 %v5148_v53, 0.0  ;;  %v4732_v35 = vadd.f32 %v6729_v47, %v9251_v55  ;;  %v6732_v12 = vadd.f32 %v6731_v32, %v6730_v11 }
 0x2e4   : > { %v6797_v13 = vpop.f32.mrb[128].mxu0  ;;  %v6211_v19 = vpack.c.bf16 %v5164_v20, %v5163_v9  ;;  %v5126_v27 = vadd.f32 %v6793_v52, %v4732_v35  ;;  %v4733_v48 = vadd.f32 %v6732_v12, %v9254_v50 }
 0x2e5   : > { %v6798_v34 = vpop.f32.mrb[129].mxu0 }
 0x2e6   : > { %v6799_v42 = vadd.f32 %v6798_v34, %v6797_v13  ;;  %v6800_v29 = vpop.f32.mrb[130].mxu0  ;;  %6239 = vst [vmem:[%s9294_s12 + $0x10] sm:$0xff] %v6211_v19   ;;  %v5149_v1 = vadd.f32 %v9286_v58, %v5126_v27  ;;  %v5127_v2 = vadd.f32 %v6796_v28, %v4733_v48  ;;  %v6733_v0 = vpop.f32.mrb[128].mxu1 }
 0x2e7   : > { %v6801_v23 = vpop.f32.mrb[131].mxu0  ;;  %v6734_v41 = vpop.f32.mrb[129].mxu1 }
 0x2e8   : > { %v6802_v46 = vadd.f32 %v6801_v23, %v6800_v29  ;;  %v5150_v55 = vadd.f32 %v9286_v58, %v5127_v2  ;;  %v6735_v59 = vadd.f32 %v6734_v41, %v6733_v0  ;;  %v6736_v44 = vpop.f32.mrb[130].mxu1  ;;  %v5165_v39 = vmax.f32 %v5149_v1, 0.0 }
 0x2e9   : > { %v6737_v60 = vpop.f32.mrb[131].mxu1 }
 0x2ea   : > { %v5166_v54 = vmax.f32 %v5150_v55, 0.0  ;;  %v4734_v50 = vadd.f32 %v6735_v59, %v9257_v38  ;;  %v6738_v17 = vadd.f32 %v6737_v60, %v6736_v44 }
 0x2ec   : > { %v6803_v25 = vpop.f32.mrb[132].mxu0  ;;  %v6216_v16 = vpack.c.bf16 %v5166_v54, %v5165_v39  ;;  %v5128_v18 = vadd.f32 %v6799_v42, %v4734_v50  ;;  %v4735_v6 = vadd.f32 %v6738_v17, %v9260_v49 }
 0x2ed   : > { %v6804_v51 = vpop.f32.mrb[133].mxu0 }
 0x2ee   : > { %v6805_v10 = vadd.f32 %v6804_v51, %v6803_v25  ;;  %v6806_v61 = vpop.f32.mrb[134].mxu0  ;;  %6240 = vst [vmem:[%s9294_s12 + $0x18] sm:$0xff] %v6216_v16   ;;  %v5151_v43 = vadd.f32 %v9286_v58, %v5128_v18  ;;  %v5129_v22 = vadd.f32 %v6802_v46, %v4735_v6  ;;  %v6739_v21 = vpop.f32.mrb[132].mxu1 }
 0x2ef   : > { %v6807_v14 = vpop.f32.mrb[135].mxu0  ;;  %v6740_v63 = vpop.f32.mrb[133].mxu1 }
 0x2f0   : > { %v6808_v56 = vadd.f32 %v6807_v14, %v6806_v61  ;;  %v5152_v38 = vadd.f32 %v9286_v58, %v5129_v22  ;;  %v6741_v26 = vadd.f32 %v6740_v63, %v6739_v21  ;;  %v6742_v31 = vpop.f32.mrb[134].mxu1  ;;  %v5167_v62 = vmax.f32 %v5151_v43, 0.0  ;;  %v5290_v63 = vld [vmem:[%s9294_s12 + $0xc] sm:$0xf] (%p7298_p9) }
 0x2f1   : > { %v6743_v45 = vpop.f32.mrb[135].mxu1  ;;  %5291 = vst [vmem:[%s5268_s16 + $0x18] sm:$0xf] (%p7298_p9), %v5290_v63 }
 0x2f2   : > { %v5168_v30 = vmax.f32 %v5152_v38, 0.0  ;;  %v4736_v49 = vadd.f32 %v6741_v26, %v9263_v24  ;;  %v6744_v52 = vadd.f32 %v6743_v45, %v6742_v31  ;;  %v5294_v38 = vld [vmem:[%s9294_s12 + $0x14] sm:$0xf] (%p7298_p9) }
 0x2f3   : > { %5295 = vst [vmem:[%s5268_s16 + $0x28] sm:$0xf] (%p7298_p9), %v5294_v38 }
 0x2f4   : > { %v6809_v3 = vpop.f32.mrb[136].mxu0  ;;  %v6221_v15 = vpack.c.bf16 %v5168_v30, %v5167_v62  ;;  %v5130_v57 = vadd.f32 %v6805_v10, %v4736_v49  ;;  %v4737_v33 = vadd.f32 %v6744_v52, %v9266_v37 }
 0x2f5   : > { %v6810_v8 = vpop.f32.mrb[137].mxu0  ;;  %v5296_v26 = vld [vmem:[%s9294_s12 + $0x18] sm:$0xf] (%p7298_p9)  ;;  %v5298_v31 = vld [vmem:[%s9294_s12 + $0x1c] sm:$0xf] (%p7298_p9) }
 0x2f6   : > { %v6811_v4 = vadd.f32 %v6810_v8, %v6809_v3  ;;  %v6812_v28 = vpop.f32.mrb[138].mxu0  ;;  %6241 = vst [vmem:[%s9294_s12 + $0x20] sm:$0xff] %v6221_v15   ;;  %v5153_v53 = vadd.f32 %v9286_v58, %v5130_v57  ;;  %v5131_v47 = vadd.f32 %v6808_v56, %v4737_v33  ;;  %v6745_v11 = vpop.f32.mrb[136].mxu1  ;;  %v5292_v56 = vld [vmem:[%s9294_s12 + $0x10] sm:$0xf] (%p7298_p9) }
 0x2f7   : > { %v6813_v32 = vpop.f32.mrb[139].mxu0  ;;  %v6746_v9 = vpop.f32.mrb[137].mxu1  ;;  %5293 = vst [vmem:[%s5268_s16 + $0x20] sm:$0xf] (%p7298_p9), %v5292_v56  ;;  %5297 = vst [vmem:[%s5268_s16 + $0x30] sm:$0xf] (%p7298_p9), %v5296_v26 }
 0x2f8   : > { %v6814_v20 = vadd.f32 %v6813_v32, %v6812_v28  ;;  %v5154_v24 = vadd.f32 %v9286_v58, %v5131_v47  ;;  %v6747_v35 = vadd.f32 %v6746_v9, %v6745_v11  ;;  %v6748_v12 = vpop.f32.mrb[138].mxu1  ;;  %v5169_v19 = vmax.f32 %v5153_v53, 0.0  ;;  %5299 = vst [vmem:[%s5268_s16 + $0x38] sm:$0xf] (%p7298_p9), %v5298_v31 }
 0x2f9   : > { %v6749_v13 = vpop.f32.mrb[139].mxu1 }
 0x2fa   : > { %v5170_v27 = vmax.f32 %v5154_v24, 0.0  ;;  %v4738_v37 = vadd.f32 %v6747_v35, %v9269_v7  ;;  %v6750_v48 = vadd.f32 %v6749_v13, %v6748_v12 }
 0x2fc   : > { %v6815_v34 = vpop.f32.mrb[140].mxu0  ;;  %v6226_v42 = vpack.c.bf16 %v5170_v27, %v5169_v19  ;;  %v5132_v29 = vadd.f32 %v6811_v4, %v4738_v37  ;;  %v4739_v1 = vadd.f32 %v6750_v48, %v9272_v36 }
 0x2fd   : > { %v6816_v2 = vpop.f32.mrb[141].mxu0  ;;  %v5300_v45 = vld [vmem:[%s9294_s12 + $0x20] sm:$0xf] (%p7298_p9)  ;;  %v5302_v62 = vld [vmem:[%s9294_s12 + $0x24] sm:$0xf] (%p7298_p9) }
 0x2fe   : > { %v6817_v0 = vadd.f32 %v6816_v2, %v6815_v34  ;;  %v6818_v23 = vpop.f32.mrb[142].mxu0  ;;  %6242 = vst [vmem:[%s9294_s12 + $0x28] sm:$0xff] %v6226_v42   ;;  %v5155_v41 = vadd.f32 %v9286_v58, %v5132_v29  ;;  %v5133_v46 = vadd.f32 %v6814_v20, %v4739_v1  ;;  %v6751_v55 = vpop.f32.mrb[140].mxu1  ;;  %5301 = vst [vmem:[%s5268_s16 + $0x40] sm:$0xf] (%p7298_p9), %v5300_v45 }
 0x2ff   : > { %v6819_v59 = vpop.f32.mrb[143].mxu0  ;;  %v6752_v44 = vpop.f32.mrb[141].mxu1  ;;  %5303 = vst [vmem:[%s5268_s16 + $0x48] sm:$0xf] (%p7298_p9), %v5302_v62 }
 0x300   : > { %v6820_v60 = vadd.f32 %v6819_v59, %v6818_v23  ;;  %v5156_v7 = vadd.f32 %v9286_v58, %v5133_v46  ;;  %v6753_v39 = vadd.f32 %v6752_v44, %v6751_v55  ;;  %v6754_v54 = vpop.f32.mrb[142].mxu1  ;;  %v5171_v17 = vmax.f32 %v5155_v41, 0.0 }
 0x301   : > { %v6755_v50 = vpop.f32.mrb[143].mxu1 }
 0x302   : > { %v5172_v36 = vmax.f32 %v5156_v7, 0.0  ;;  %v4740_v25 = vadd.f32 %v6753_v39, %v9276_v5  ;;  %v6756_v16 = vadd.f32 %v6755_v50, %v6754_v54  ;;  %v5284_v5 = vld [vmem:[%s9294_s12] sm:$0xf] (%p7298_p9) }
 0x303   : > { %5285 = vst [vmem:[%s5268_s16] sm:$0xf] (%p7298_p9), %v5284_v5 }
 0x304   : > { %v6231_v18 = vpack.c.bf16 %v5172_v36, %v5171_v17  ;;  %v5134_v6 = vadd.f32 %v6817_v0, %v4740_v25  ;;  %v4741_v51 = vadd.f32 %v6756_v16, %v9280_v40  ;;  %v5286_v40 = vld [vmem:[%s9294_s12 + $0x4] sm:$0xf] (%p7298_p9) }
 0x305   : > { %v5304_v30 = vld [vmem:[%s9294_s12 + $0x28] sm:$0xf] (%p7298_p9)  ;;  %v5306_v49 = vld [vmem:[%s9294_s12 + $0x2c] sm:$0xf] (%p7298_p9)  ;;  %5287 = vst [vmem:[%s5268_s16 + $0x8] sm:$0xf] (%p7298_p9), %v5286_v40 }
 0x306   : > { %6243 = vst [vmem:[%s9294_s12 + $0x30] sm:$0xff] %v6231_v18   ;;  %v5157_v10 = vadd.f32 %v9286_v58, %v5134_v6  ;;  %v5135_v61 = vadd.f32 %v6820_v60, %v4741_v51  ;;  %5305 = vst [vmem:[%s5268_s16 + $0x50] sm:$0xf] (%p7298_p9), %v5304_v30 }
 0x307   : > { %5307 = vst [vmem:[%s5268_s16 + $0x58] sm:$0xf] (%p7298_p9), %v5306_v49 }
 0x308   : > { %v5158_v43 = vadd.f32 %v9286_v58, %v5135_v61  ;;  %v5173_v22 = vmax.f32 %v5157_v10, 0.0  ;;  %5261 = sbr.rel (!%p7298_p9) target bundleno = 791 (0x317), region = 77  ;;  %v5288_v58 = vld [vmem:[%s9294_s12 + $0x8] sm:$0xf] (%p7298_p9) }
 0x309   : > { %5289 = vst [vmem:[%s5268_s16 + $0x10] sm:$0xf] (%p7298_p9), %v5288_v58 }
 0x30a   : > { %v5174_v21 = vmax.f32 %v5158_v43, 0.0 }
 0x30c   : > { %v6236_v14 = vpack.c.bf16 %v5174_v21, %v5173_v22 }
 0x30d   : > { %v5308_v52 = vld [vmem:[%s9294_s12 + $0x30] sm:$0xf] (%p7298_p9)  ;;  %v5310_v3 = vld [vmem:[%s9294_s12 + $0x34] sm:$0xf] (%p7298_p9) }
 0x30e   : > { %6244 = vst [vmem:[%s9294_s12 + $0x38] sm:$0xff] %v6236_v14   ;;  %5309 = vst [vmem:[%s5268_s16 + $0x60] sm:$0xf] (%p7298_p9), %v5308_v52 }
 0x30f   : > { %5311 = vst [vmem:[%s5268_s16 + $0x68] sm:$0xf] %v5310_v3 }
 0x315   : > { %v5312_v15 = vld [vmem:[%s9294_s12 + $0x38] sm:$0xf]  ;;  %v5314_v57 = vld [vmem:[%s9294_s12 + $0x3c] sm:$0xf] }
 0x316   : > { %5313 = vst [vmem:[%s5268_s16 + $0x70] sm:$0xf] %v5312_v15  ;;  %5315 = vst [vmem:[%s5268_s16 + $0x78] sm:$0xf] %v5314_v57 }
 0x317 PF: > { %s13_s22 = sadd.s32 1, %s7190_s22   ;;  %s9405_s25 = sld [smem:[#allocation4_spill]] }
 0x318   : > { %p10_p3 = scmp.ge.s32.totalorder %s13_s22, 10   ;;  %s9406_s27 = sld [smem:[#allocation5_spill]] }
 0x319   : > { %s9407_s12 = smov %s7154_s13  ;;  %s9408_s13 = smov %s7304_s10 }
 0x31a   : > { %s9409_s14 = smov %s7162_s15  ;;  %s9410_s15 = smov %s7294_s4 }
 0x31b   : > { %s9411_s16 = smov %s7178_s19  ;;  %s9412_s17 = smov %s7182_s20 }
 0x31c   : > { %s9413_s18 = smov %s7186_s21  ;;  %s9414_s19 = smov %s9418_s23 }
 0x31d   : > { %s9415_s20 = smov %s9405_s25  ;;  %12 = sbr.rel (!%p10_p3) target bundleno = 6 (0x6), region = 166 }
 0x31e   : > { %s9416_s21 = smov %s9406_s27 }

// kernel: reduction_b_forward.10
= control target key start
LH: loop header
LB: loop body
LE: loop exit
PB: predicated region body
PF: predicated region fallthrough
CT: control target
= control target key end

     0   :  { %s5556_s12 = smov 0   ;;  %s5558_s13 = smov 0   ;;  %s6678_s0 = inlined_call_operand.vmem [shape: bf16[2,36,9,256], index: 0, kind: input, shape index: {}]   ;;  %s6679_s1 = inlined_call_operand.vmem [shape: bf16[9,256,256], index: 1, kind: input, shape index: {}]   ;;  %s6680_s2 = inlined_call_operand.vmem [shape: f32[1,256], index: 2, kind: input, shape index: {}]   ;;  %s6681_s3 = inlined_call_operand.vmem [shape: bf16[2,64,256], index: 3, kind: output, shape index: {}]  }
   0x1   :  { %s5560_s14 = smov 0   ;;  %s5562_s15 = smov 0  }
   0x2   :  { %s5564_s16 = smov 0   ;;  %s5566_s17 = smov 0  }
   0x3   :  { %s5568_s18 = smov 0   ;;  %s5570_s19 = smov 0  }
   0x4   :  { %s5572_s20 = smov 0  }
   0x5 LB: > { %s4212_s21 = sadd.s32 4294967295, %s5534_s20   ;;  %s22_s22 = sadd.s32 1, %s5526_s18  ;;  %s5534_s20 = sphi %s5572_s20, %s13_s20   ;;  %s5530_s19 = sphi %s5570_s19, %s6692_s19   ;;  %s5526_s18 = sphi %s5568_s18, %s6691_s18   ;;  %s5522_s17 = sphi %s5566_s17, %s6690_s17   ;;  %s5518_s16 = sphi %s5564_s16, %s6689_s16   ;;  %s5514_s15 = sphi %s5562_s15, %s6688_s15   ;;  %s5510_s14 = sphi %s5560_s14, %s6687_s14   ;;  %s5506_s13 = sphi %s5558_s13, %s6686_s13   ;;  %s5502_s12 = sphi %s5556_s12, %s6685_s12  }
   0x6   : > { %p23_p0 = scmp.ge.s32.totalorder %s22_s22, 2  ;;  %s25_s23 = sadd.s32 1, %s5530_s19 }
   0x7   : > { %s58_s24 = sadd.s32 1, %s5514_s15  ;;  %p65_p1 = scmp.ne.s32.totalorder %s5514_s15, %s5510_s14 }
   0x8   : > { %s6694_s22 = smov (%p23_p0, %s22_s22), 0  ;;  %s6696_s23 = smov (!%p23_p0, %s25_s23), %s5530_s19 }
   0x9   : > { %s55_s25 = ssub.s32 %s5526_s18, %s6694_s22  ;;  %p66_p2 = scmp.eq.s32.totalorder %s5534_s20, 0 }
   0xa   : > { %p27_p3 = scmp.ge.s32.totalorder %s6696_s23, 2  ;;  %p56_p4 = scmp.eq.s32.totalorder %s55_s25, 0 }
   0xb   : > { %p67_p5 = por %p66_p2, %p65_p1  ;;  %s112_s26 = sadd.s32 1, %s5506_s13 }
   0xc   : > { %s6698_s23 = smov (%p27_p3, %s6696_s23), 0  ;;  %p122_p6 = scmp.ne.s32.totalorder %s5506_s13, %s5502_s12 }
   0xd   : > { %s5617_s27 = scalar_select %p56_p4, %s5514_s15, %s58_s24  }
   0xe   : > { %s107_s28 = ssub.s32 %s5530_s19, %s6698_s23  ;;  %p123_p7 = scmp.eq.s32.totalorder %s4212_s21, 3 }
   0xf   : > { %s109_s29 = sor.u32 %s107_s28, %s55_s25  ;;  %p4215_p10 = scmp.ge.s32.totalorder %s5534_s20, 4 }
  0x10   : > { %p110_p8 = scmp.eq.s32.totalorder %s109_s29, 0  ;;  %p5623_p9 = por %p123_p7, %p122_p6 }
  0x11   : > { %145 = sbr.rel (%p4215_p10) target bundleno = 220 (0xdc), region = 16 }
  0x12   : > { %s5628_s4 = scalar_select %p110_p8, %s5506_s13, %s112_s26  }
  0x18   : > { %156 = sbr.rel (!%p67_p5) target bundleno = 220 (0xdc), region = 24  ;;  %s158_s5 = sand.u32 (%p67_p5), 1, %s5514_s15  }
  0x19   : > { %s4216_s6 = sshll.u32 (%p67_p5), %s5526_s18, 2  ;;  %s5185_s7 = smul.u32 (%p67_p5), 1152, %s158_s5 }
  0x1a   : > { %s5636_s10 = scalar_lea.vmem (%p67_p5), %s6679_s1, %s4216_s6 }
  0x1b   : > { %v178_v0 = vld [vmem:[%s5636_s10] sm:$0xf] (%p67_p5)  ;;  %v180_v1 = vld [vmem:[%s5636_s10 + $0x8] sm:$0xf] (%p67_p5)  ;;  %v182_v2 = vld [vmem:[%s5636_s10 + $0x10] sm:$0xf] (%p67_p5) }
  0x1c   : > { %v184_v3 = vld [vmem:[%s5636_s10 + $0x18] sm:$0xf] (%p67_p5)  ;;  %v186_v4 = vld [vmem:[%s5636_s10 + $0x20] sm:$0xf] (%p67_p5)  ;;  %s5643_s11 = scalar_lea.vmem (%p67_p5), [#allocation2], %s5185_s7 }
  0x1d   : > { %179 = vst [vmem:[%s5643_s11] sm:$0xf] (%p67_p5), %v178_v0  ;;  %181 = vst [vmem:[%s5643_s11 + $0x4] sm:$0xf] (%p67_p5), %v180_v1  ;;  %v188_v5 = vld [vmem:[%s5636_s10 + $0x28] sm:$0xf] (%p67_p5) }
  0x1e   : > { %183 = vst [vmem:[%s5643_s11 + $0x8] sm:$0xf] (%p67_p5), %v182_v2  ;;  %185 = vst [vmem:[%s5643_s11 + $0xc] sm:$0xf] (%p67_p5), %v184_v3  ;;  %v190_v6 = vld [vmem:[%s5636_s10 + $0x30] sm:$0xf] (%p67_p5) }
  0x1f   : > { %187 = vst [vmem:[%s5643_s11 + $0x10] sm:$0xf] %v186_v4  ;;  %v192_v7 = vld [vmem:[%s5636_s10 + $0x38] sm:$0xf]  ;;  %189 = vst [vmem:[%s5643_s11 + $0x14] sm:$0xf] %v188_v5 }
  0x20   : > { %191 = vst [vmem:[%s5643_s11 + $0x18] sm:$0xf] %v190_v6  ;;  %193 = vst [vmem:[%s5643_s11 + $0x1c] sm:$0xf] %v192_v7  ;;  %v194_v8 = vld [vmem:[%s5636_s10 + $0x40] sm:$0xf] }
  0x21   : > { %v196_v9 = vld [vmem:[%s5636_s10 + $0x48] sm:$0xf]  ;;  %v198_v10 = vld [vmem:[%s5636_s10 + $0x50] sm:$0xf]  ;;  %195 = vst [vmem:[%s5643_s11 + $0x20] sm:$0xf] %v194_v8 }
  0x22   : > { %197 = vst [vmem:[%s5643_s11 + $0x24] sm:$0xf] %v196_v9  ;;  %199 = vst [vmem:[%s5643_s11 + $0x28] sm:$0xf] %v198_v10  ;;  %v200_v11 = vld [vmem:[%s5636_s10 + $0x58] sm:$0xf] }
  0x23   : > { %v202_v12 = vld [vmem:[%s5636_s10 + $0x60] sm:$0xf]  ;;  %v204_v13 = vld [vmem:[%s5636_s10 + $0x68] sm:$0xf]  ;;  %201 = vst [vmem:[%s5643_s11 + $0x2c] sm:$0xf] %v200_v11 }
  0x24   : > { %203 = vst [vmem:[%s5643_s11 + $0x30] sm:$0xf] %v202_v12  ;;  %205 = vst [vmem:[%s5643_s11 + $0x34] sm:$0xf] %v204_v13  ;;  %v206_v14 = vld [vmem:[%s5636_s10 + $0x70] sm:$0xf] }
  0x25   : > { %v208_v15 = vld [vmem:[%s5636_s10 + $0x78] sm:$0xf]  ;;  %v210_v16 = vld [vmem:[%s5636_s10 + $0x80] sm:$0xf]  ;;  %207 = vst [vmem:[%s5643_s11 + $0x38] sm:$0xf] %v206_v14 }
  0x26   : > { %209 = vst [vmem:[%s5643_s11 + $0x3c] sm:$0xf] %v208_v15  ;;  %211 = vst [vmem:[%s5643_s11 + $0x40] sm:$0xf] %v210_v16  ;;  %v212_v17 = vld [vmem:[%s5636_s10 + $0x88] sm:$0xf] }
  0x27   : > { %v214_v18 = vld [vmem:[%s5636_s10 + $0x90] sm:$0xf]  ;;  %v216_v19 = vld [vmem:[%s5636_s10 + $0x98] sm:$0xf]  ;;  %213 = vst [vmem:[%s5643_s11 + $0x44] sm:$0xf] %v212_v17 }
  0x28   : > { %215 = vst [vmem:[%s5643_s11 + $0x48] sm:$0xf] %v214_v18  ;;  %217 = vst [vmem:[%s5643_s11 + $0x4c] sm:$0xf] %v216_v19  ;;  %v218_v20 = vld [vmem:[%s5636_s10 + $0xa0] sm:$0xf] }
  0x29   : > { %v220_v21 = vld [vmem:[%s5636_s10 + $0xa8] sm:$0xf]  ;;  %v222_v22 = vld [vmem:[%s5636_s10 + $0xb0] sm:$0xf]  ;;  %219 = vst [vmem:[%s5643_s11 + $0x50] sm:$0xf] %v218_v20 }
  0x2a   : > { %221 = vst [vmem:[%s5643_s11 + $0x54] sm:$0xf] %v220_v21  ;;  %223 = vst [vmem:[%s5643_s11 + $0x58] sm:$0xf] %v222_v22  ;;  %v224_v23 = vld [vmem:[%s5636_s10 + $0xb8] sm:$0xf] }
  0x2b   : > { %v226_v24 = vld [vmem:[%s5636_s10 + $0xc0] sm:$0xf]  ;;  %v228_v25 = vld [vmem:[%s5636_s10 + $0xc8] sm:$0xf]  ;;  %225 = vst [vmem:[%s5643_s11 + $0x5c] sm:$0xf] %v224_v23 }
  0x2c   : > { %227 = vst [vmem:[%s5643_s11 + $0x60] sm:$0xf] %v226_v24  ;;  %229 = vst [vmem:[%s5643_s11 + $0x64] sm:$0xf] %v228_v25  ;;  %v230_v26 = vld [vmem:[%s5636_s10 + $0xd0] sm:$0xf] }
  0x2d   : > { %v232_v27 = vld [vmem:[%s5636_s10 + $0xd8] sm:$0xf]  ;;  %v234_v28 = vld [vmem:[%s5636_s10 + $0xe0] sm:$0xf]  ;;  %231 = vst [vmem:[%s5643_s11 + $0x68] sm:$0xf] %v230_v26 }
  0x2e   : > { %233 = vst [vmem:[%s5643_s11 + $0x6c] sm:$0xf] %v232_v27  ;;  %235 = vst [vmem:[%s5643_s11 + $0x70] sm:$0xf] %v234_v28  ;;  %v236_v29 = vld [vmem:[%s5636_s10 + $0xe8] sm:$0xf] }
  0x2f   : > { %v238_v30 = vld [vmem:[%s5636_s10 + $0xf0] sm:$0xf]  ;;  %v240_v31 = vld [vmem:[%s5636_s10 + $0xf8] sm:$0xf]  ;;  %237 = vst [vmem:[%s5643_s11 + $0x74] sm:$0xf] %v236_v29 }
  0x30   : > { %239 = vst [vmem:[%s5643_s11 + $0x78] sm:$0xf] %v238_v30  ;;  %241 = vst [vmem:[%s5643_s11 + $0x7c] sm:$0xf] %v240_v31  ;;  %v242_v32 = vld [vmem:[%s5636_s10 + $0x100] sm:$0xf] }
  0x31   : > { %v244_v33 = vld [vmem:[%s5636_s10 + $0x108] sm:$0xf]  ;;  %v246_v34 = vld [vmem:[%s5636_s10 + $0x110] sm:$0xf]  ;;  %243 = vst [vmem:[%s5643_s11 + $0x80] sm:$0xf] %v242_v32 }
  0x32   : > { %245 = vst [vmem:[%s5643_s11 + $0x84] sm:$0xf] %v244_v33  ;;  %247 = vst [vmem:[%s5643_s11 + $0x88] sm:$0xf] %v246_v34  ;;  %v248_v35 = vld [vmem:[%s5636_s10 + $0x118] sm:$0xf] }
  0x33   : > { %v250_v36 = vld [vmem:[%s5636_s10 + $0x120] sm:$0xf]  ;;  %v252_v37 = vld [vmem:[%s5636_s10 + $0x128] sm:$0xf]  ;;  %249 = vst [vmem:[%s5643_s11 + $0x8c] sm:$0xf] %v248_v35 }
  0x34   : > { %251 = vst [vmem:[%s5643_s11 + $0x90] sm:$0xf] %v250_v36  ;;  %253 = vst [vmem:[%s5643_s11 + $0x94] sm:$0xf] %v252_v37  ;;  %v254_v38 = vld [vmem:[%s5636_s10 + $0x130] sm:$0xf] }
  0x35   : > { %v256_v39 = vld [vmem:[%s5636_s10 + $0x138] sm:$0xf]  ;;  %v258_v40 = vld [vmem:[%s5636_s10 + $0x140] sm:$0xf]  ;;  %255 = vst [vmem:[%s5643_s11 + $0x98] sm:$0xf] %v254_v38 }
  0x36   : > { %257 = vst [vmem:[%s5643_s11 + $0x9c] sm:$0xf] %v256_v39  ;;  %259 = vst [vmem:[%s5643_s11 + $0xa0] sm:$0xf] %v258_v40  ;;  %v260_v41 = vld [vmem:[%s5636_s10 + $0x148] sm:$0xf] }
  0x37   : > { %v262_v42 = vld [vmem:[%s5636_s10 + $0x150] sm:$0xf]  ;;  %v264_v43 = vld [vmem:[%s5636_s10 + $0x158] sm:$0xf]  ;;  %261 = vst [vmem:[%s5643_s11 + $0xa4] sm:$0xf] %v260_v41 }
  0x38   : > { %263 = vst [vmem:[%s5643_s11 + $0xa8] sm:$0xf] %v262_v42  ;;  %265 = vst [vmem:[%s5643_s11 + $0xac] sm:$0xf] %v264_v43  ;;  %v266_v44 = vld [vmem:[%s5636_s10 + $0x160] sm:$0xf] }
  0x39   : > { %v268_v45 = vld [vmem:[%s5636_s10 + $0x168] sm:$0xf]  ;;  %v270_v46 = vld [vmem:[%s5636_s10 + $0x170] sm:$0xf]  ;;  %267 = vst [vmem:[%s5643_s11 + $0xb0] sm:$0xf] %v266_v44 }
  0x3a   : > { %269 = vst [vmem:[%s5643_s11 + $0xb4] sm:$0xf] %v268_v45  ;;  %271 = vst [vmem:[%s5643_s11 + $0xb8] sm:$0xf] %v270_v46  ;;  %v272_v47 = vld [vmem:[%s5636_s10 + $0x178] sm:$0xf] }
  0x3b   : > { %v274_v48 = vld [vmem:[%s5636_s10 + $0x180] sm:$0xf]  ;;  %v276_v49 = vld [vmem:[%s5636_s10 + $0x188] sm:$0xf]  ;;  %273 = vst [vmem:[%s5643_s11 + $0xbc] sm:$0xf] %v272_v47 }
  0x3c   : > { %275 = vst [vmem:[%s5643_s11 + $0xc0] sm:$0xf] %v274_v48  ;;  %277 = vst [vmem:[%s5643_s11 + $0xc4] sm:$0xf] %v276_v49  ;;  %v278_v50 = vld [vmem:[%s5636_s10 + $0x190] sm:$0xf] }
  0x3d   : > { %v280_v51 = vld [vmem:[%s5636_s10 + $0x198] sm:$0xf]  ;;  %v282_v52 = vld [vmem:[%s5636_s10 + $0x1a0] sm:$0xf]  ;;  %279 = vst [vmem:[%s5643_s11 + $0xc8] sm:$0xf] %v278_v50 }
  0x3e   : > { %281 = vst [vmem:[%s5643_s11 + $0xcc] sm:$0xf] %v280_v51  ;;  %283 = vst [vmem:[%s5643_s11 + $0xd0] sm:$0xf] %v282_v52  ;;  %v284_v53 = vld [vmem:[%s5636_s10 + $0x1a8] sm:$0xf] }
  0x3f   : > { %v286_v54 = vld [vmem:[%s5636_s10 + $0x1b0] sm:$0xf]  ;;  %v288_v55 = vld [vmem:[%s5636_s10 + $0x1b8] sm:$0xf]  ;;  %285 = vst [vmem:[%s5643_s11 + $0xd4] sm:$0xf] %v284_v53 }
  0x40   : > { %287 = vst [vmem:[%s5643_s11 + $0xd8] sm:$0xf] %v286_v54  ;;  %289 = vst [vmem:[%s5643_s11 + $0xdc] sm:$0xf] %v288_v55  ;;  %v290_v56 = vld [vmem:[%s5636_s10 + $0x1c0] sm:$0xf] }
  0x41   : > { %v292_v57 = vld [vmem:[%s5636_s10 + $0x1c8] sm:$0xf]  ;;  %v294_v58 = vld [vmem:[%s5636_s10 + $0x1d0] sm:$0xf]  ;;  %291 = vst [vmem:[%s5643_s11 + $0xe0] sm:$0xf] %v290_v56 }
  0x42   : > { %293 = vst [vmem:[%s5643_s11 + $0xe4] sm:$0xf] %v292_v57  ;;  %295 = vst [vmem:[%s5643_s11 + $0xe8] sm:$0xf] %v294_v58  ;;  %v296_v59 = vld [vmem:[%s5636_s10 + $0x1d8] sm:$0xf] }
  0x43   : > { %v298_v60 = vld [vmem:[%s5636_s10 + $0x1e0] sm:$0xf]  ;;  %v300_v61 = vld [vmem:[%s5636_s10 + $0x1e8] sm:$0xf]  ;;  %297 = vst [vmem:[%s5643_s11 + $0xec] sm:$0xf] %v296_v59 }
  0x44   : > { %299 = vst [vmem:[%s5643_s11 + $0xf0] sm:$0xf] %v298_v60  ;;  %301 = vst [vmem:[%s5643_s11 + $0xf4] sm:$0xf] %v300_v61  ;;  %v302_v62 = vld [vmem:[%s5636_s10 + $0x1f0] sm:$0xf] }
  0x45   : > { %v304_v63 = vld [vmem:[%s5636_s10 + $0x1f8] sm:$0xf]  ;;  %v306_v0 = vld [vmem:[%s5636_s10 + $0x200] sm:$0xf]  ;;  %303 = vst [vmem:[%s5643_s11 + $0xf8] sm:$0xf] %v302_v62 }
  0x46   : > { %305 = vst [vmem:[%s5643_s11 + $0xfc] sm:$0xf] %v304_v63  ;;  %307 = vst [vmem:[%s5643_s11 + $0x100] sm:$0xf] %v306_v0  ;;  %v308_v1 = vld [vmem:[%s5636_s10 + $0x208] sm:$0xf] }
  0x47   : > { %v310_v2 = vld [vmem:[%s5636_s10 + $0x210] sm:$0xf]  ;;  %v312_v3 = vld [vmem:[%s5636_s10 + $0x218] sm:$0xf]  ;;  %309 = vst [vmem:[%s5643_s11 + $0x104] sm:$0xf] %v308_v1 }
  0x48   : > { %311 = vst [vmem:[%s5643_s11 + $0x108] sm:$0xf] %v310_v2  ;;  %313 = vst [vmem:[%s5643_s11 + $0x10c] sm:$0xf] %v312_v3  ;;  %v314_v4 = vld [vmem:[%s5636_s10 + $0x220] sm:$0xf] }
  0x49   : > { %v316_v5 = vld [vmem:[%s5636_s10 + $0x228] sm:$0xf]  ;;  %v318_v6 = vld [vmem:[%s5636_s10 + $0x230] sm:$0xf]  ;;  %315 = vst [vmem:[%s5643_s11 + $0x110] sm:$0xf] %v314_v4 }
  0x4a   : > { %317 = vst [vmem:[%s5643_s11 + $0x114] sm:$0xf] %v316_v5  ;;  %319 = vst [vmem:[%s5643_s11 + $0x118] sm:$0xf] %v318_v6  ;;  %v320_v7 = vld [vmem:[%s5636_s10 + $0x238] sm:$0xf] }
  0x4b   : > { %v322_v8 = vld [vmem:[%s5636_s10 + $0x240] sm:$0xf]  ;;  %v324_v9 = vld [vmem:[%s5636_s10 + $0x248] sm:$0xf]  ;;  %321 = vst [vmem:[%s5643_s11 + $0x11c] sm:$0xf] %v320_v7 }
  0x4c   : > { %323 = vst [vmem:[%s5643_s11 + $0x120] sm:$0xf] %v322_v8  ;;  %325 = vst [vmem:[%s5643_s11 + $0x124] sm:$0xf] %v324_v9  ;;  %v326_v10 = vld [vmem:[%s5636_s10 + $0x250] sm:$0xf] }
  0x4d   : > { %v328_v11 = vld [vmem:[%s5636_s10 + $0x258] sm:$0xf]  ;;  %v330_v12 = vld [vmem:[%s5636_s10 + $0x260] sm:$0xf]  ;;  %327 = vst [vmem:[%s5643_s11 + $0x128] sm:$0xf] %v326_v10 }
  0x4e   : > { %329 = vst [vmem:[%s5643_s11 + $0x12c] sm:$0xf] %v328_v11  ;;  %331 = vst [vmem:[%s5643_s11 + $0x130] sm:$0xf] %v330_v12  ;;  %v332_v13 = vld [vmem:[%s5636_s10 + $0x268] sm:$0xf] }
  0x4f   : > { %v334_v14 = vld [vmem:[%s5636_s10 + $0x270] sm:$0xf]  ;;  %v336_v15 = vld [vmem:[%s5636_s10 + $0x278] sm:$0xf]  ;;  %333 = vst [vmem:[%s5643_s11 + $0x134] sm:$0xf] %v332_v13 }
  0x50   : > { %335 = vst [vmem:[%s5643_s11 + $0x138] sm:$0xf] %v334_v14  ;;  %337 = vst [vmem:[%s5643_s11 + $0x13c] sm:$0xf] %v336_v15  ;;  %v338_v16 = vld [vmem:[%s5636_s10 + $0x280] sm:$0xf] }
  0x51   : > { %v340_v17 = vld [vmem:[%s5636_s10 + $0x288] sm:$0xf]  ;;  %v342_v18 = vld [vmem:[%s5636_s10 + $0x290] sm:$0xf]  ;;  %339 = vst [vmem:[%s5643_s11 + $0x140] sm:$0xf] %v338_v16 }
  0x52   : > { %341 = vst [vmem:[%s5643_s11 + $0x144] sm:$0xf] %v340_v17  ;;  %343 = vst [vmem:[%s5643_s11 + $0x148] sm:$0xf] %v342_v18  ;;  %v344_v19 = vld [vmem:[%s5636_s10 + $0x298] sm:$0xf] }
  0x53   : > { %v346_v20 = vld [vmem:[%s5636_s10 + $0x2a0] sm:$0xf]  ;;  %v348_v21 = vld [vmem:[%s5636_s10 + $0x2a8] sm:$0xf]  ;;  %345 = vst [vmem:[%s5643_s11 + $0x14c] sm:$0xf] %v344_v19 }
  0x54   : > { %347 = vst [vmem:[%s5643_s11 + $0x150] sm:$0xf] %v346_v20  ;;  %349 = vst [vmem:[%s5643_s11 + $0x154] sm:$0xf] %v348_v21  ;;  %v350_v22 = vld [vmem:[%s5636_s10 + $0x2b0] sm:$0xf] }
  0x55   : > { %v352_v23 = vld [vmem:[%s5636_s10 + $0x2b8] sm:$0xf]  ;;  %v354_v24 = vld [vmem:[%s5636_s10 + $0x2c0] sm:$0xf]  ;;  %351 = vst [vmem:[%s5643_s11 + $0x158] sm:$0xf] %v350_v22 }
  0x56   : > { %353 = vst [vmem:[%s5643_s11 + $0x15c] sm:$0xf] %v352_v23  ;;  %355 = vst [vmem:[%s5643_s11 + $0x160] sm:$0xf] %v354_v24  ;;  %v356_v25 = vld [vmem:[%s5636_s10 + $0x2c8] sm:$0xf] }
  0x57   : > { %v358_v26 = vld [vmem:[%s5636_s10 + $0x2d0] sm:$0xf]  ;;  %v360_v27 = vld [vmem:[%s5636_s10 + $0x2d8] sm:$0xf]  ;;  %357 = vst [vmem:[%s5643_s11 + $0x164] sm:$0xf] %v356_v25 }
  0x58   : > { %359 = vst [vmem:[%s5643_s11 + $0x168] sm:$0xf] %v358_v26  ;;  %361 = vst [vmem:[%s5643_s11 + $0x16c] sm:$0xf] %v360_v27  ;;  %v362_v28 = vld [vmem:[%s5636_s10 + $0x2e0] sm:$0xf] }
  0x59   : > { %v364_v29 = vld [vmem:[%s5636_s10 + $0x2e8] sm:$0xf]  ;;  %v366_v30 = vld [vmem:[%s5636_s10 + $0x2f0] sm:$0xf]  ;;  %363 = vst [vmem:[%s5643_s11 + $0x170] sm:$0xf] %v362_v28 }
  0x5a   : > { %365 = vst [vmem:[%s5643_s11 + $0x174] sm:$0xf] %v364_v29  ;;  %367 = vst [vmem:[%s5643_s11 + $0x178] sm:$0xf] %v366_v30  ;;  %v368_v31 = vld [vmem:[%s5636_s10 + $0x2f8] sm:$0xf] }
  0x5b   : > { %v370_v32 = vld [vmem:[%s5636_s10 + $0x300] sm:$0xf]  ;;  %v372_v33 = vld [vmem:[%s5636_s10 + $0x308] sm:$0xf]  ;;  %369 = vst [vmem:[%s5643_s11 + $0x17c] sm:$0xf] %v368_v31 }
  0x5c   : > { %371 = vst [vmem:[%s5643_s11 + $0x180] sm:$0xf] %v370_v32  ;;  %373 = vst [vmem:[%s5643_s11 + $0x184] sm:$0xf] %v372_v33  ;;  %v374_v34 = vld [vmem:[%s5636_s10 + $0x310] sm:$0xf] }
  0x5d   : > { %v376_v35 = vld [vmem:[%s5636_s10 + $0x318] sm:$0xf]  ;;  %v378_v36 = vld [vmem:[%s5636_s10 + $0x320] sm:$0xf]  ;;  %375 = vst [vmem:[%s5643_s11 + $0x188] sm:$0xf] %v374_v34 }
  0x5e   : > { %377 = vst [vmem:[%s5643_s11 + $0x18c] sm:$0xf] %v376_v35  ;;  %379 = vst [vmem:[%s5643_s11 + $0x190] sm:$0xf] %v378_v36  ;;  %v380_v37 = vld [vmem:[%s5636_s10 + $0x328] sm:$0xf] }
  0x5f   : > { %v382_v38 = vld [vmem:[%s5636_s10 + $0x330] sm:$0xf]  ;;  %v384_v39 = vld [vmem:[%s5636_s10 + $0x338] sm:$0xf]  ;;  %381 = vst [vmem:[%s5643_s11 + $0x194] sm:$0xf] %v380_v37 }
  0x60   : > { %383 = vst [vmem:[%s5643_s11 + $0x198] sm:$0xf] %v382_v38  ;;  %385 = vst [vmem:[%s5643_s11 + $0x19c] sm:$0xf] %v384_v39  ;;  %v386_v40 = vld [vmem:[%s5636_s10 + $0x340] sm:$0xf] }
  0x61   : > { %v388_v41 = vld [vmem:[%s5636_s10 + $0x348] sm:$0xf]  ;;  %v390_v42 = vld [vmem:[%s5636_s10 + $0x350] sm:$0xf]  ;;  %387 = vst [vmem:[%s5643_s11 + $0x1a0] sm:$0xf] %v386_v40 }
  0x62   : > { %389 = vst [vmem:[%s5643_s11 + $0x1a4] sm:$0xf] %v388_v41  ;;  %391 = vst [vmem:[%s5643_s11 + $0x1a8] sm:$0xf] %v390_v42  ;;  %v392_v43 = vld [vmem:[%s5636_s10 + $0x358] sm:$0xf] }
  0x63   : > { %v394_v44 = vld [vmem:[%s5636_s10 + $0x360] sm:$0xf]  ;;  %v396_v45 = vld [vmem:[%s5636_s10 + $0x368] sm:$0xf]  ;;  %393 = vst [vmem:[%s5643_s11 + $0x1ac] sm:$0xf] %v392_v43 }
  0x64   : > { %395 = vst [vmem:[%s5643_s11 + $0x1b0] sm:$0xf] %v394_v44  ;;  %397 = vst [vmem:[%s5643_s11 + $0x1b4] sm:$0xf] %v396_v45  ;;  %v398_v46 = vld [vmem:[%s5636_s10 + $0x370] sm:$0xf] }
  0x65   : > { %v400_v47 = vld [vmem:[%s5636_s10 + $0x378] sm:$0xf]  ;;  %v402_v48 = vld [vmem:[%s5636_s10 + $0x380] sm:$0xf]  ;;  %399 = vst [vmem:[%s5643_s11 + $0x1b8] sm:$0xf] %v398_v46 }
  0x66   : > { %401 = vst [vmem:[%s5643_s11 + $0x1bc] sm:$0xf] %v400_v47  ;;  %403 = vst [vmem:[%s5643_s11 + $0x1c0] sm:$0xf] %v402_v48  ;;  %v404_v49 = vld [vmem:[%s5636_s10 + $0x388] sm:$0xf] }
  0x67   : > { %v406_v50 = vld [vmem:[%s5636_s10 + $0x390] sm:$0xf]  ;;  %v408_v51 = vld [vmem:[%s5636_s10 + $0x398] sm:$0xf]  ;;  %405 = vst [vmem:[%s5643_s11 + $0x1c4] sm:$0xf] %v404_v49 }
  0x68   : > { %407 = vst [vmem:[%s5643_s11 + $0x1c8] sm:$0xf] %v406_v50  ;;  %409 = vst [vmem:[%s5643_s11 + $0x1cc] sm:$0xf] %v408_v51  ;;  %v410_v52 = vld [vmem:[%s5636_s10 + $0x3a0] sm:$0xf] }
  0x69   : > { %v412_v53 = vld [vmem:[%s5636_s10 + $0x3a8] sm:$0xf]  ;;  %v414_v54 = vld [vmem:[%s5636_s10 + $0x3b0] sm:$0xf]  ;;  %411 = vst [vmem:[%s5643_s11 + $0x1d0] sm:$0xf] %v410_v52 }
  0x6a   : > { %413 = vst [vmem:[%s5643_s11 + $0x1d4] sm:$0xf] %v412_v53  ;;  %415 = vst [vmem:[%s5643_s11 + $0x1d8] sm:$0xf] %v414_v54  ;;  %v416_v55 = vld [vmem:[%s5636_s10 + $0x3b8] sm:$0xf] }
  0x6b   : > { %v418_v56 = vld [vmem:[%s5636_s10 + $0x3c0] sm:$0xf]  ;;  %v420_v57 = vld [vmem:[%s5636_s10 + $0x3c8] sm:$0xf]  ;;  %417 = vst [vmem:[%s5643_s11 + $0x1dc] sm:$0xf] %v416_v55 }
  0x6c   : > { %419 = vst [vmem:[%s5643_s11 + $0x1e0] sm:$0xf] %v418_v56  ;;  %421 = vst [vmem:[%s5643_s11 + $0x1e4] sm:$0xf] %v420_v57  ;;  %v422_v58 = vld [vmem:[%s5636_s10 + $0x3d0] sm:$0xf] }
  0x6d   : > { %v424_v59 = vld [vmem:[%s5636_s10 + $0x3d8] sm:$0xf]  ;;  %v426_v60 = vld [vmem:[%s5636_s10 + $0x3e0] sm:$0xf]  ;;  %423 = vst [vmem:[%s5643_s11 + $0x1e8] sm:$0xf] %v422_v58 }
  0x6e   : > { %425 = vst [vmem:[%s5643_s11 + $0x1ec] sm:$0xf] %v424_v59  ;;  %427 = vst [vmem:[%s5643_s11 + $0x1f0] sm:$0xf] %v426_v60  ;;  %v428_v61 = vld [vmem:[%s5636_s10 + $0x3e8] sm:$0xf] }
  0x6f   : > { %v430_v62 = vld [vmem:[%s5636_s10 + $0x3f0] sm:$0xf]  ;;  %v432_v63 = vld [vmem:[%s5636_s10 + $0x3f8] sm:$0xf]  ;;  %429 = vst [vmem:[%s5643_s11 + $0x1f4] sm:$0xf] %v428_v61 }
  0x70   : > { %431 = vst [vmem:[%s5643_s11 + $0x1f8] sm:$0xf] %v430_v62  ;;  %433 = vst [vmem:[%s5643_s11 + $0x1fc] sm:$0xf] %v432_v63  ;;  %v434_v0 = vld [vmem:[%s5636_s10 + $0x400] sm:$0xf] }
  0x71   : > { %v436_v1 = vld [vmem:[%s5636_s10 + $0x408] sm:$0xf]  ;;  %v438_v2 = vld [vmem:[%s5636_s10 + $0x410] sm:$0xf]  ;;  %435 = vst [vmem:[%s5643_s11 + $0x200] sm:$0xf] %v434_v0 }
  0x72   : > { %437 = vst [vmem:[%s5643_s11 + $0x204] sm:$0xf] %v436_v1  ;;  %439 = vst [vmem:[%s5643_s11 + $0x208] sm:$0xf] %v438_v2  ;;  %v440_v3 = vld [vmem:[%s5636_s10 + $0x418] sm:$0xf] }
  0x73   : > { %v442_v4 = vld [vmem:[%s5636_s10 + $0x420] sm:$0xf]  ;;  %v444_v5 = vld [vmem:[%s5636_s10 + $0x428] sm:$0xf]  ;;  %441 = vst [vmem:[%s5643_s11 + $0x20c] sm:$0xf] %v440_v3 }
  0x74   : > { %443 = vst [vmem:[%s5643_s11 + $0x210] sm:$0xf] %v442_v4  ;;  %445 = vst [vmem:[%s5643_s11 + $0x214] sm:$0xf] %v444_v5  ;;  %v446_v6 = vld [vmem:[%s5636_s10 + $0x430] sm:$0xf] }
  0x75   : > { %v448_v7 = vld [vmem:[%s5636_s10 + $0x438] sm:$0xf]  ;;  %v450_v8 = vld [vmem:[%s5636_s10 + $0x440] sm:$0xf]  ;;  %447 = vst [vmem:[%s5643_s11 + $0x218] sm:$0xf] %v446_v6 }
  0x76   : > { %449 = vst [vmem:[%s5643_s11 + $0x21c] sm:$0xf] %v448_v7  ;;  %451 = vst [vmem:[%s5643_s11 + $0x220] sm:$0xf] %v450_v8  ;;  %v452_v9 = vld [vmem:[%s5636_s10 + $0x448] sm:$0xf] }
  0x77   : > { %v454_v10 = vld [vmem:[%s5636_s10 + $0x450] sm:$0xf]  ;;  %v456_v11 = vld [vmem:[%s5636_s10 + $0x458] sm:$0xf]  ;;  %453 = vst [vmem:[%s5643_s11 + $0x224] sm:$0xf] %v452_v9 }
  0x78   : > { %455 = vst [vmem:[%s5643_s11 + $0x228] sm:$0xf] %v454_v10  ;;  %457 = vst [vmem:[%s5643_s11 + $0x22c] sm:$0xf] %v456_v11  ;;  %v458_v12 = vld [vmem:[%s5636_s10 + $0x460] sm:$0xf] }
  0x79   : > { %v460_v13 = vld [vmem:[%s5636_s10 + $0x468] sm:$0xf]  ;;  %v462_v14 = vld [vmem:[%s5636_s10 + $0x470] sm:$0xf]  ;;  %459 = vst [vmem:[%s5643_s11 + $0x230] sm:$0xf] %v458_v12 }
  0x7a   : > { %461 = vst [vmem:[%s5643_s11 + $0x234] sm:$0xf] %v460_v13  ;;  %463 = vst [vmem:[%s5643_s11 + $0x238] sm:$0xf] %v462_v14  ;;  %v464_v15 = vld [vmem:[%s5636_s10 + $0x478] sm:$0xf] }
  0x7b   : > { %v466_v16 = vld [vmem:[%s5636_s10 + $0x480] sm:$0xf]  ;;  %v468_v17 = vld [vmem:[%s5636_s10 + $0x488] sm:$0xf]  ;;  %465 = vst [vmem:[%s5643_s11 + $0x23c] sm:$0xf] %v464_v15 }
  0x7c   : > { %467 = vst [vmem:[%s5643_s11 + $0x240] sm:$0xf] %v466_v16  ;;  %469 = vst [vmem:[%s5643_s11 + $0x244] sm:$0xf] %v468_v17  ;;  %v470_v18 = vld [vmem:[%s5636_s10 + $0x490] sm:$0xf] }
  0x7d   : > { %v472_v19 = vld [vmem:[%s5636_s10 + $0x498] sm:$0xf]  ;;  %v474_v20 = vld [vmem:[%s5636_s10 + $0x4a0] sm:$0xf]  ;;  %471 = vst [vmem:[%s5643_s11 + $0x248] sm:$0xf] %v470_v18 }
  0x7e   : > { %473 = vst [vmem:[%s5643_s11 + $0x24c] sm:$0xf] %v472_v19  ;;  %475 = vst [vmem:[%s5643_s11 + $0x250] sm:$0xf] %v474_v20  ;;  %v476_v21 = vld [vmem:[%s5636_s10 + $0x4a8] sm:$0xf] }
  0x7f   : > { %v478_v22 = vld [vmem:[%s5636_s10 + $0x4b0] sm:$0xf]  ;;  %v480_v23 = vld [vmem:[%s5636_s10 + $0x4b8] sm:$0xf]  ;;  %477 = vst [vmem:[%s5643_s11 + $0x254] sm:$0xf] %v476_v21 }
  0x80   : > { %479 = vst [vmem:[%s5643_s11 + $0x258] sm:$0xf] %v478_v22  ;;  %481 = vst [vmem:[%s5643_s11 + $0x25c] sm:$0xf] %v480_v23  ;;  %v482_v24 = vld [vmem:[%s5636_s10 + $0x4c0] sm:$0xf] }
  0x81   : > { %v484_v25 = vld [vmem:[%s5636_s10 + $0x4c8] sm:$0xf]  ;;  %v486_v26 = vld [vmem:[%s5636_s10 + $0x4d0] sm:$0xf]  ;;  %483 = vst [vmem:[%s5643_s11 + $0x260] sm:$0xf] %v482_v24 }
  0x82   : > { %485 = vst [vmem:[%s5643_s11 + $0x264] sm:$0xf] %v484_v25  ;;  %487 = vst [vmem:[%s5643_s11 + $0x268] sm:$0xf] %v486_v26  ;;  %v488_v27 = vld [vmem:[%s5636_s10 + $0x4d8] sm:$0xf] }
  0x83   : > { %v490_v28 = vld [vmem:[%s5636_s10 + $0x4e0] sm:$0xf]  ;;  %v492_v29 = vld [vmem:[%s5636_s10 + $0x4e8] sm:$0xf]  ;;  %489 = vst [vmem:[%s5643_s11 + $0x26c] sm:$0xf] %v488_v27 }
  0x84   : > { %491 = vst [vmem:[%s5643_s11 + $0x270] sm:$0xf] %v490_v28  ;;  %493 = vst [vmem:[%s5643_s11 + $0x274] sm:$0xf] %v492_v29  ;;  %v494_v30 = vld [vmem:[%s5636_s10 + $0x4f0] sm:$0xf] }
  0x85   : > { %v496_v31 = vld [vmem:[%s5636_s10 + $0x4f8] sm:$0xf]  ;;  %v498_v32 = vld [vmem:[%s5636_s10 + $0x500] sm:$0xf]  ;;  %495 = vst [vmem:[%s5643_s11 + $0x278] sm:$0xf] %v494_v30 }
  0x86   : > { %497 = vst [vmem:[%s5643_s11 + $0x27c] sm:$0xf] %v496_v31  ;;  %499 = vst [vmem:[%s5643_s11 + $0x280] sm:$0xf] %v498_v32  ;;  %v500_v33 = vld [vmem:[%s5636_s10 + $0x508] sm:$0xf] }
  0x87   : > { %v502_v34 = vld [vmem:[%s5636_s10 + $0x510] sm:$0xf]  ;;  %v504_v35 = vld [vmem:[%s5636_s10 + $0x518] sm:$0xf]  ;;  %501 = vst [vmem:[%s5643_s11 + $0x284] sm:$0xf] %v500_v33 }
  0x88   : > { %503 = vst [vmem:[%s5643_s11 + $0x288] sm:$0xf] %v502_v34  ;;  %505 = vst [vmem:[%s5643_s11 + $0x28c] sm:$0xf] %v504_v35  ;;  %v506_v36 = vld [vmem:[%s5636_s10 + $0x520] sm:$0xf] }
  0x89   : > { %v508_v37 = vld [vmem:[%s5636_s10 + $0x528] sm:$0xf]  ;;  %v510_v38 = vld [vmem:[%s5636_s10 + $0x530] sm:$0xf]  ;;  %507 = vst [vmem:[%s5643_s11 + $0x290] sm:$0xf] %v506_v36 }
  0x8a   : > { %509 = vst [vmem:[%s5643_s11 + $0x294] sm:$0xf] %v508_v37  ;;  %511 = vst [vmem:[%s5643_s11 + $0x298] sm:$0xf] %v510_v38  ;;  %v512_v39 = vld [vmem:[%s5636_s10 + $0x538] sm:$0xf] }
  0x8b   : > { %v514_v40 = vld [vmem:[%s5636_s10 + $0x540] sm:$0xf]  ;;  %v516_v41 = vld [vmem:[%s5636_s10 + $0x548] sm:$0xf]  ;;  %513 = vst [vmem:[%s5643_s11 + $0x29c] sm:$0xf] %v512_v39 }
  0x8c   : > { %515 = vst [vmem:[%s5643_s11 + $0x2a0] sm:$0xf] %v514_v40  ;;  %517 = vst [vmem:[%s5643_s11 + $0x2a4] sm:$0xf] %v516_v41  ;;  %v518_v42 = vld [vmem:[%s5636_s10 + $0x550] sm:$0xf] }
  0x8d   : > { %v520_v43 = vld [vmem:[%s5636_s10 + $0x558] sm:$0xf]  ;;  %v522_v44 = vld [vmem:[%s5636_s10 + $0x560] sm:$0xf]  ;;  %519 = vst [vmem:[%s5643_s11 + $0x2a8] sm:$0xf] %v518_v42 }
  0x8e   : > { %521 = vst [vmem:[%s5643_s11 + $0x2ac] sm:$0xf] %v520_v43  ;;  %523 = vst [vmem:[%s5643_s11 + $0x2b0] sm:$0xf] %v522_v44  ;;  %v524_v45 = vld [vmem:[%s5636_s10 + $0x568] sm:$0xf] }
  0x8f   : > { %v526_v46 = vld [vmem:[%s5636_s10 + $0x570] sm:$0xf]  ;;  %v528_v47 = vld [vmem:[%s5636_s10 + $0x578] sm:$0xf]  ;;  %525 = vst [vmem:[%s5643_s11 + $0x2b4] sm:$0xf] %v524_v45 }
  0x90   : > { %527 = vst [vmem:[%s5643_s11 + $0x2b8] sm:$0xf] %v526_v46  ;;  %529 = vst [vmem:[%s5643_s11 + $0x2bc] sm:$0xf] %v528_v47  ;;  %v530_v48 = vld [vmem:[%s5636_s10 + $0x580] sm:$0xf] }
  0x91   : > { %v532_v49 = vld [vmem:[%s5636_s10 + $0x588] sm:$0xf]  ;;  %v534_v50 = vld [vmem:[%s5636_s10 + $0x590] sm:$0xf]  ;;  %531 = vst [vmem:[%s5643_s11 + $0x2c0] sm:$0xf] %v530_v48 }
  0x92   : > { %533 = vst [vmem:[%s5643_s11 + $0x2c4] sm:$0xf] %v532_v49  ;;  %535 = vst [vmem:[%s5643_s11 + $0x2c8] sm:$0xf] %v534_v50  ;;  %v536_v51 = vld [vmem:[%s5636_s10 + $0x598] sm:$0xf] }
  0x93   : > { %v538_v52 = vld [vmem:[%s5636_s10 + $0x5a0] sm:$0xf]  ;;  %v540_v53 = vld [vmem:[%s5636_s10 + $0x5a8] sm:$0xf]  ;;  %537 = vst [vmem:[%s5643_s11 + $0x2cc] sm:$0xf] %v536_v51 }
  0x94   : > { %539 = vst [vmem:[%s5643_s11 + $0x2d0] sm:$0xf] %v538_v52  ;;  %541 = vst [vmem:[%s5643_s11 + $0x2d4] sm:$0xf] %v540_v53  ;;  %v542_v54 = vld [vmem:[%s5636_s10 + $0x5b0] sm:$0xf] }
  0x95   : > { %v544_v55 = vld [vmem:[%s5636_s10 + $0x5b8] sm:$0xf]  ;;  %v546_v56 = vld [vmem:[%s5636_s10 + $0x5c0] sm:$0xf]  ;;  %543 = vst [vmem:[%s5643_s11 + $0x2d8] sm:$0xf] %v542_v54 }
  0x96   : > { %545 = vst [vmem:[%s5643_s11 + $0x2dc] sm:$0xf] %v544_v55  ;;  %547 = vst [vmem:[%s5643_s11 + $0x2e0] sm:$0xf] %v546_v56  ;;  %v548_v57 = vld [vmem:[%s5636_s10 + $0x5c8] sm:$0xf] }
  0x97   : > { %v550_v58 = vld [vmem:[%s5636_s10 + $0x5d0] sm:$0xf]  ;;  %v552_v59 = vld [vmem:[%s5636_s10 + $0x5d8] sm:$0xf]  ;;  %549 = vst [vmem:[%s5643_s11 + $0x2e4] sm:$0xf] %v548_v57 }
  0x98   : > { %551 = vst [vmem:[%s5643_s11 + $0x2e8] sm:$0xf] %v550_v58  ;;  %553 = vst [vmem:[%s5643_s11 + $0x2ec] sm:$0xf] %v552_v59  ;;  %v554_v60 = vld [vmem:[%s5636_s10 + $0x5e0] sm:$0xf] }
  0x99   : > { %v556_v61 = vld [vmem:[%s5636_s10 + $0x5e8] sm:$0xf]  ;;  %v558_v62 = vld [vmem:[%s5636_s10 + $0x5f0] sm:$0xf]  ;;  %555 = vst [vmem:[%s5643_s11 + $0x2f0] sm:$0xf] %v554_v60 }
  0x9a   : > { %557 = vst [vmem:[%s5643_s11 + $0x2f4] sm:$0xf] %v556_v61  ;;  %559 = vst [vmem:[%s5643_s11 + $0x2f8] sm:$0xf] %v558_v62  ;;  %v560_v63 = vld [vmem:[%s5636_s10 + $0x5f8] sm:$0xf] }
  0x9b   : > { %v562_v0 = vld [vmem:[%s5636_s10 + $0x600] sm:$0xf]  ;;  %v564_v1 = vld [vmem:[%s5636_s10 + $0x608] sm:$0xf]  ;;  %561 = vst [vmem:[%s5643_s11 + $0x2fc] sm:$0xf] %v560_v63 }
  0x9c   : > { %563 = vst [vmem:[%s5643_s11 + $0x300] sm:$0xf] %v562_v0  ;;  %565 = vst [vmem:[%s5643_s11 + $0x304] sm:$0xf] %v564_v1  ;;  %v566_v2 = vld [vmem:[%s5636_s10 + $0x610] sm:$0xf] }
  0x9d   : > { %v568_v3 = vld [vmem:[%s5636_s10 + $0x618] sm:$0xf]  ;;  %v570_v4 = vld [vmem:[%s5636_s10 + $0x620] sm:$0xf]  ;;  %567 = vst [vmem:[%s5643_s11 + $0x308] sm:$0xf] %v566_v2 }
  0x9e   : > { %569 = vst [vmem:[%s5643_s11 + $0x30c] sm:$0xf] %v568_v3  ;;  %571 = vst [vmem:[%s5643_s11 + $0x310] sm:$0xf] %v570_v4  ;;  %v572_v5 = vld [vmem:[%s5636_s10 + $0x628] sm:$0xf] }
  0x9f   : > { %v574_v6 = vld [vmem:[%s5636_s10 + $0x630] sm:$0xf]  ;;  %v576_v7 = vld [vmem:[%s5636_s10 + $0x638] sm:$0xf]  ;;  %573 = vst [vmem:[%s5643_s11 + $0x314] sm:$0xf] %v572_v5 }
  0xa0   : > { %575 = vst [vmem:[%s5643_s11 + $0x318] sm:$0xf] %v574_v6  ;;  %577 = vst [vmem:[%s5643_s11 + $0x31c] sm:$0xf] %v576_v7  ;;  %v578_v8 = vld [vmem:[%s5636_s10 + $0x640] sm:$0xf] }
  0xa1   : > { %v580_v9 = vld [vmem:[%s5636_s10 + $0x648] sm:$0xf]  ;;  %v582_v10 = vld [vmem:[%s5636_s10 + $0x650] sm:$0xf]  ;;  %579 = vst [vmem:[%s5643_s11 + $0x320] sm:$0xf] %v578_v8 }
  0xa2   : > { %581 = vst [vmem:[%s5643_s11 + $0x324] sm:$0xf] %v580_v9  ;;  %583 = vst [vmem:[%s5643_s11 + $0x328] sm:$0xf] %v582_v10  ;;  %v584_v11 = vld [vmem:[%s5636_s10 + $0x658] sm:$0xf] }
  0xa3   : > { %v586_v12 = vld [vmem:[%s5636_s10 + $0x660] sm:$0xf]  ;;  %v588_v13 = vld [vmem:[%s5636_s10 + $0x668] sm:$0xf]  ;;  %585 = vst [vmem:[%s5643_s11 + $0x32c] sm:$0xf] %v584_v11 }
  0xa4   : > { %587 = vst [vmem:[%s5643_s11 + $0x330] sm:$0xf] %v586_v12  ;;  %589 = vst [vmem:[%s5643_s11 + $0x334] sm:$0xf] %v588_v13  ;;  %v590_v14 = vld [vmem:[%s5636_s10 + $0x670] sm:$0xf] }
  0xa5   : > { %v592_v15 = vld [vmem:[%s5636_s10 + $0x678] sm:$0xf]  ;;  %v594_v16 = vld [vmem:[%s5636_s10 + $0x680] sm:$0xf]  ;;  %591 = vst [vmem:[%s5643_s11 + $0x338] sm:$0xf] %v590_v14 }
  0xa6   : > { %593 = vst [vmem:[%s5643_s11 + $0x33c] sm:$0xf] %v592_v15  ;;  %595 = vst [vmem:[%s5643_s11 + $0x340] sm:$0xf] %v594_v16  ;;  %v596_v17 = vld [vmem:[%s5636_s10 + $0x688] sm:$0xf] }
  0xa7   : > { %v598_v18 = vld [vmem:[%s5636_s10 + $0x690] sm:$0xf]  ;;  %v600_v19 = vld [vmem:[%s5636_s10 + $0x698] sm:$0xf]  ;;  %597 = vst [vmem:[%s5643_s11 + $0x344] sm:$0xf] %v596_v17 }
  0xa8   : > { %599 = vst [vmem:[%s5643_s11 + $0x348] sm:$0xf] %v598_v18  ;;  %601 = vst [vmem:[%s5643_s11 + $0x34c] sm:$0xf] %v600_v19  ;;  %v602_v20 = vld [vmem:[%s5636_s10 + $0x6a0] sm:$0xf] }
  0xa9   : > { %v604_v21 = vld [vmem:[%s5636_s10 + $0x6a8] sm:$0xf]  ;;  %v606_v22 = vld [vmem:[%s5636_s10 + $0x6b0] sm:$0xf]  ;;  %603 = vst [vmem:[%s5643_s11 + $0x350] sm:$0xf] %v602_v20 }
  0xaa   : > { %605 = vst [vmem:[%s5643_s11 + $0x354] sm:$0xf] %v604_v21  ;;  %607 = vst [vmem:[%s5643_s11 + $0x358] sm:$0xf] %v606_v22  ;;  %v608_v23 = vld [vmem:[%s5636_s10 + $0x6b8] sm:$0xf] }
  0xab   : > { %v610_v24 = vld [vmem:[%s5636_s10 + $0x6c0] sm:$0xf]  ;;  %v612_v25 = vld [vmem:[%s5636_s10 + $0x6c8] sm:$0xf]  ;;  %609 = vst [vmem:[%s5643_s11 + $0x35c] sm:$0xf] %v608_v23 }
  0xac   : > { %611 = vst [vmem:[%s5643_s11 + $0x360] sm:$0xf] %v610_v24  ;;  %613 = vst [vmem:[%s5643_s11 + $0x364] sm:$0xf] %v612_v25  ;;  %v614_v26 = vld [vmem:[%s5636_s10 + $0x6d0] sm:$0xf] }
  0xad   : > { %v616_v27 = vld [vmem:[%s5636_s10 + $0x6d8] sm:$0xf]  ;;  %v618_v28 = vld [vmem:[%s5636_s10 + $0x6e0] sm:$0xf]  ;;  %615 = vst [vmem:[%s5643_s11 + $0x368] sm:$0xf] %v614_v26 }
  0xae   : > { %617 = vst [vmem:[%s5643_s11 + $0x36c] sm:$0xf] %v616_v27  ;;  %619 = vst [vmem:[%s5643_s11 + $0x370] sm:$0xf] %v618_v28  ;;  %v620_v29 = vld [vmem:[%s5636_s10 + $0x6e8] sm:$0xf] }
  0xaf   : > { %v622_v30 = vld [vmem:[%s5636_s10 + $0x6f0] sm:$0xf]  ;;  %v624_v31 = vld [vmem:[%s5636_s10 + $0x6f8] sm:$0xf]  ;;  %621 = vst [vmem:[%s5643_s11 + $0x374] sm:$0xf] %v620_v29 }
  0xb0   : > { %623 = vst [vmem:[%s5643_s11 + $0x378] sm:$0xf] %v622_v30  ;;  %625 = vst [vmem:[%s5643_s11 + $0x37c] sm:$0xf] %v624_v31  ;;  %v626_v32 = vld [vmem:[%s5636_s10 + $0x700] sm:$0xf] }
  0xb1   : > { %v628_v33 = vld [vmem:[%s5636_s10 + $0x708] sm:$0xf]  ;;  %v630_v34 = vld [vmem:[%s5636_s10 + $0x710] sm:$0xf]  ;;  %627 = vst [vmem:[%s5643_s11 + $0x380] sm:$0xf] %v626_v32 }
  0xb2   : > { %629 = vst [vmem:[%s5643_s11 + $0x384] sm:$0xf] %v628_v33  ;;  %631 = vst [vmem:[%s5643_s11 + $0x388] sm:$0xf] %v630_v34  ;;  %v632_v35 = vld [vmem:[%s5636_s10 + $0x718] sm:$0xf] }
  0xb3   : > { %v634_v36 = vld [vmem:[%s5636_s10 + $0x720] sm:$0xf]  ;;  %v636_v37 = vld [vmem:[%s5636_s10 + $0x728] sm:$0xf]  ;;  %633 = vst [vmem:[%s5643_s11 + $0x38c] sm:$0xf] %v632_v35 }
  0xb4   : > { %635 = vst [vmem:[%s5643_s11 + $0x390] sm:$0xf] %v634_v36  ;;  %637 = vst [vmem:[%s5643_s11 + $0x394] sm:$0xf] %v636_v37  ;;  %v638_v38 = vld [vmem:[%s5636_s10 + $0x730] sm:$0xf] }
  0xb5   : > { %v640_v39 = vld [vmem:[%s5636_s10 + $0x738] sm:$0xf]  ;;  %v642_v40 = vld [vmem:[%s5636_s10 + $0x740] sm:$0xf]  ;;  %639 = vst [vmem:[%s5643_s11 + $0x398] sm:$0xf] %v638_v38 }
  0xb6   : > { %641 = vst [vmem:[%s5643_s11 + $0x39c] sm:$0xf] %v640_v39  ;;  %643 = vst [vmem:[%s5643_s11 + $0x3a0] sm:$0xf] %v642_v40  ;;  %v644_v41 = vld [vmem:[%s5636_s10 + $0x748] sm:$0xf] }
  0xb7   : > { %v646_v42 = vld [vmem:[%s5636_s10 + $0x750] sm:$0xf]  ;;  %v648_v43 = vld [vmem:[%s5636_s10 + $0x758] sm:$0xf]  ;;  %645 = vst [vmem:[%s5643_s11 + $0x3a4] sm:$0xf] %v644_v41 }
  0xb8   : > { %647 = vst [vmem:[%s5643_s11 + $0x3a8] sm:$0xf] %v646_v42  ;;  %649 = vst [vmem:[%s5643_s11 + $0x3ac] sm:$0xf] %v648_v43  ;;  %v650_v44 = vld [vmem:[%s5636_s10 + $0x760] sm:$0xf] }
  0xb9   : > { %v652_v45 = vld [vmem:[%s5636_s10 + $0x768] sm:$0xf]  ;;  %v654_v46 = vld [vmem:[%s5636_s10 + $0x770] sm:$0xf]  ;;  %651 = vst [vmem:[%s5643_s11 + $0x3b0] sm:$0xf] %v650_v44 }
  0xba   : > { %653 = vst [vmem:[%s5643_s11 + $0x3b4] sm:$0xf] %v652_v45  ;;  %655 = vst [vmem:[%s5643_s11 + $0x3b8] sm:$0xf] %v654_v46  ;;  %v656_v47 = vld [vmem:[%s5636_s10 + $0x778] sm:$0xf] }
  0xbb   : > { %v658_v48 = vld [vmem:[%s5636_s10 + $0x780] sm:$0xf]  ;;  %v660_v49 = vld [vmem:[%s5636_s10 + $0x788] sm:$0xf]  ;;  %657 = vst [vmem:[%s5643_s11 + $0x3bc] sm:$0xf] %v656_v47 }
  0xbc   : > { %659 = vst [vmem:[%s5643_s11 + $0x3c0] sm:$0xf] %v658_v48  ;;  %661 = vst [vmem:[%s5643_s11 + $0x3c4] sm:$0xf] %v660_v49  ;;  %v662_v50 = vld [vmem:[%s5636_s10 + $0x790] sm:$0xf] }
  0xbd   : > { %v664_v51 = vld [vmem:[%s5636_s10 + $0x798] sm:$0xf]  ;;  %v666_v52 = vld [vmem:[%s5636_s10 + $0x7a0] sm:$0xf]  ;;  %663 = vst [vmem:[%s5643_s11 + $0x3c8] sm:$0xf] %v662_v50 }
  0xbe   : > { %665 = vst [vmem:[%s5643_s11 + $0x3cc] sm:$0xf] %v664_v51  ;;  %667 = vst [vmem:[%s5643_s11 + $0x3d0] sm:$0xf] %v666_v52  ;;  %v668_v53 = vld [vmem:[%s5636_s10 + $0x7a8] sm:$0xf] }
  0xbf   : > { %v670_v54 = vld [vmem:[%s5636_s10 + $0x7b0] sm:$0xf]  ;;  %v672_v55 = vld [vmem:[%s5636_s10 + $0x7b8] sm:$0xf]  ;;  %669 = vst [vmem:[%s5643_s11 + $0x3d4] sm:$0xf] %v668_v53 }
  0xc0   : > { %671 = vst [vmem:[%s5643_s11 + $0x3d8] sm:$0xf] %v670_v54  ;;  %673 = vst [vmem:[%s5643_s11 + $0x3dc] sm:$0xf] %v672_v55  ;;  %v674_v56 = vld [vmem:[%s5636_s10 + $0x7c0] sm:$0xf] }
  0xc1   : > { %v676_v57 = vld [vmem:[%s5636_s10 + $0x7c8] sm:$0xf]  ;;  %v678_v58 = vld [vmem:[%s5636_s10 + $0x7d0] sm:$0xf]  ;;  %675 = vst [vmem:[%s5643_s11 + $0x3e0] sm:$0xf] %v674_v56 }
  0xc2   : > { %677 = vst [vmem:[%s5643_s11 + $0x3e4] sm:$0xf] %v676_v57  ;;  %679 = vst [vmem:[%s5643_s11 + $0x3e8] sm:$0xf] %v678_v58  ;;  %v680_v59 = vld [vmem:[%s5636_s10 + $0x7d8] sm:$0xf] }
  0xc3   : > { %v682_v60 = vld [vmem:[%s5636_s10 + $0x7e0] sm:$0xf]  ;;  %v684_v61 = vld [vmem:[%s5636_s10 + $0x7e8] sm:$0xf]  ;;  %681 = vst [vmem:[%s5643_s11 + $0x3ec] sm:$0xf] %v680_v59 }
  0xc4   : > { %683 = vst [vmem:[%s5643_s11 + $0x3f0] sm:$0xf] %v682_v60  ;;  %685 = vst [vmem:[%s5643_s11 + $0x3f4] sm:$0xf] %v684_v61  ;;  %v686_v62 = vld [vmem:[%s5636_s10 + $0x7f0] sm:$0xf] }
  0xc5   : > { %v688_v63 = vld [vmem:[%s5636_s10 + $0x7f8] sm:$0xf]  ;;  %v690_v0 = vld [vmem:[%s5636_s10 + $0x800] sm:$0xf]  ;;  %687 = vst [vmem:[%s5643_s11 + $0x3f8] sm:$0xf] %v686_v62 }
  0xc6   : > { %689 = vst [vmem:[%s5643_s11 + $0x3fc] sm:$0xf] %v688_v63  ;;  %691 = vst [vmem:[%s5643_s11 + $0x400] sm:$0xf] %v690_v0  ;;  %v692_v1 = vld [vmem:[%s5636_s10 + $0x808] sm:$0xf] }
  0xc7   : > { %v694_v2 = vld [vmem:[%s5636_s10 + $0x810] sm:$0xf]  ;;  %v696_v3 = vld [vmem:[%s5636_s10 + $0x818] sm:$0xf]  ;;  %693 = vst [vmem:[%s5643_s11 + $0x404] sm:$0xf] %v692_v1 }
  0xc8   : > { %695 = vst [vmem:[%s5643_s11 + $0x408] sm:$0xf] %v694_v2  ;;  %697 = vst [vmem:[%s5643_s11 + $0x40c] sm:$0xf] %v696_v3  ;;  %v698_v4 = vld [vmem:[%s5636_s10 + $0x820] sm:$0xf] }
  0xc9   : > { %v700_v5 = vld [vmem:[%s5636_s10 + $0x828] sm:$0xf]  ;;  %v702_v6 = vld [vmem:[%s5636_s10 + $0x830] sm:$0xf]  ;;  %699 = vst [vmem:[%s5643_s11 + $0x410] sm:$0xf] %v698_v4 }
  0xca   : > { %701 = vst [vmem:[%s5643_s11 + $0x414] sm:$0xf] %v700_v5  ;;  %703 = vst [vmem:[%s5643_s11 + $0x418] sm:$0xf] %v702_v6  ;;  %v704_v7 = vld [vmem:[%s5636_s10 + $0x838] sm:$0xf] }
  0xcb   : > { %v706_v8 = vld [vmem:[%s5636_s10 + $0x840] sm:$0xf]  ;;  %v708_v9 = vld [vmem:[%s5636_s10 + $0x848] sm:$0xf]  ;;  %705 = vst [vmem:[%s5643_s11 + $0x41c] sm:$0xf] %v704_v7 }
  0xcc   : > { %707 = vst [vmem:[%s5643_s11 + $0x420] sm:$0xf] %v706_v8  ;;  %709 = vst [vmem:[%s5643_s11 + $0x424] sm:$0xf] %v708_v9  ;;  %v710_v10 = vld [vmem:[%s5636_s10 + $0x850] sm:$0xf] }
  0xcd   : > { %v712_v11 = vld [vmem:[%s5636_s10 + $0x858] sm:$0xf]  ;;  %v714_v12 = vld [vmem:[%s5636_s10 + $0x860] sm:$0xf]  ;;  %711 = vst [vmem:[%s5643_s11 + $0x428] sm:$0xf] %v710_v10 }
  0xce   : > { %713 = vst [vmem:[%s5643_s11 + $0x42c] sm:$0xf] %v712_v11  ;;  %715 = vst [vmem:[%s5643_s11 + $0x430] sm:$0xf] %v714_v12  ;;  %v716_v13 = vld [vmem:[%s5636_s10 + $0x868] sm:$0xf] }
  0xcf   : > { %v718_v14 = vld [vmem:[%s5636_s10 + $0x870] sm:$0xf]  ;;  %v720_v15 = vld [vmem:[%s5636_s10 + $0x878] sm:$0xf]  ;;  %717 = vst [vmem:[%s5643_s11 + $0x434] sm:$0xf] %v716_v13 }
  0xd0   : > { %719 = vst [vmem:[%s5643_s11 + $0x438] sm:$0xf] %v718_v14  ;;  %721 = vst [vmem:[%s5643_s11 + $0x43c] sm:$0xf] %v720_v15  ;;  %v722_v16 = vld [vmem:[%s5636_s10 + $0x880] sm:$0xf] }
  0xd1   : > { %v724_v17 = vld [vmem:[%s5636_s10 + $0x888] sm:$0xf]  ;;  %v726_v18 = vld [vmem:[%s5636_s10 + $0x890] sm:$0xf]  ;;  %723 = vst [vmem:[%s5643_s11 + $0x440] sm:$0xf] %v722_v16 }
  0xd2   : > { %725 = vst [vmem:[%s5643_s11 + $0x444] sm:$0xf] %v724_v17  ;;  %727 = vst [vmem:[%s5643_s11 + $0x448] sm:$0xf] %v726_v18  ;;  %v728_v19 = vld [vmem:[%s5636_s10 + $0x898] sm:$0xf] }
  0xd3   : > { %v730_v20 = vld [vmem:[%s5636_s10 + $0x8a0] sm:$0xf]  ;;  %v732_v21 = vld [vmem:[%s5636_s10 + $0x8a8] sm:$0xf]  ;;  %729 = vst [vmem:[%s5643_s11 + $0x44c] sm:$0xf] %v728_v19 }
  0xd4   : > { %731 = vst [vmem:[%s5643_s11 + $0x450] sm:$0xf] %v730_v20  ;;  %733 = vst [vmem:[%s5643_s11 + $0x454] sm:$0xf] %v732_v21  ;;  %v734_v22 = vld [vmem:[%s5636_s10 + $0x8b0] sm:$0xf] }
  0xd5   : > { %v736_v23 = vld [vmem:[%s5636_s10 + $0x8b8] sm:$0xf]  ;;  %v738_v24 = vld [vmem:[%s5636_s10 + $0x8c0] sm:$0xf]  ;;  %735 = vst [vmem:[%s5643_s11 + $0x458] sm:$0xf] %v734_v22 }
  0xd6   : > { %737 = vst [vmem:[%s5643_s11 + $0x45c] sm:$0xf] %v736_v23  ;;  %739 = vst [vmem:[%s5643_s11 + $0x460] sm:$0xf] %v738_v24  ;;  %v740_v25 = vld [vmem:[%s5636_s10 + $0x8c8] sm:$0xf] }
  0xd7   : > { %v742_v26 = vld [vmem:[%s5636_s10 + $0x8d0] sm:$0xf]  ;;  %v744_v27 = vld [vmem:[%s5636_s10 + $0x8d8] sm:$0xf]  ;;  %741 = vst [vmem:[%s5643_s11 + $0x464] sm:$0xf] %v740_v25 }
  0xd8   : > { %743 = vst [vmem:[%s5643_s11 + $0x468] sm:$0xf] %v742_v26  ;;  %745 = vst [vmem:[%s5643_s11 + $0x46c] sm:$0xf] %v744_v27  ;;  %v746_v28 = vld [vmem:[%s5636_s10 + $0x8e0] sm:$0xf] }
  0xd9   : > { %v748_v29 = vld [vmem:[%s5636_s10 + $0x8e8] sm:$0xf]  ;;  %v750_v30 = vld [vmem:[%s5636_s10 + $0x8f0] sm:$0xf]  ;;  %747 = vst [vmem:[%s5643_s11 + $0x470] sm:$0xf] %v746_v28 }
  0xda   : > { %749 = vst [vmem:[%s5643_s11 + $0x474] sm:$0xf] %v748_v29  ;;  %751 = vst [vmem:[%s5643_s11 + $0x478] sm:$0xf] %v750_v30  ;;  %v752_v31 = vld [vmem:[%s5636_s10 + $0x8f8] sm:$0xf] }
  0xdb   : > { %753 = vst [vmem:[%s5643_s11 + $0x47c] sm:$0xf] %v752_v31 }
  0xdc PF: > { %p4217_p11 = scmp.ge.s32.totalorder %s5534_s20, 1  ;;  %p1357_p12 = scmp.lt.s32.totalorder %s5534_s20, 5 }
  0xde   : > { %p1358_p13 = pnand %p4217_p11, %p1357_p12 }
  0xdf   : > { %s1364_s21 = sand.u32 (!%p1358_p13), 1, %s5510_s14   ;;  %p1394_p0 = scmp.lt.s32.totalorder (!%p1358_p13), %s5522_s17, 1  ;;  %vm1903_vm0 = vsmask.f32 (!%p1358_p13), 3328  ;;  %vm1904_vm1 = vsmask.f32 (!%p1358_p13), 7440 }
  0xe0   : > { %1361 = sbr.rel (%p1358_p13) target bundleno = 634 (0x27a), region = 69  ;;  %vm6326_vm2 = vmor (!%p1358_p13), %vm1903_vm0, %vm1904_vm1  ;;  %p1399_p1 = scmp.lt.s32.totalorder (!%p1358_p13), %s5518_s16, 1 }
  0xe1   : > { %s5186_s24 = smul.u32 (!%p1358_p13), 1152, %s1364_s21  ;;  %s1391_s10 = sand.u32 (!%p1358_p13), 1, %s5502_s12  }
  0xe2   : > { %s4218_s11 = sshll.u32 (!%p1358_p13), %s1391_s10, 5 }
  0xe3   : > { %s6219_s25 = scalar_lea.vmem (!%p1358_p13), [#allocation2], %s5186_s24  ;;  %s6629_s12 = scalar_lea.vmem (!%p1358_p13), [#allocation3], %s4218_s11 }
  0xe4   : > { %v5260_v32 = vld [vmem:[%s6219_s25 + $0xc0] sm:$0xff] (!%p1358_p13)   ;;  %v5264_v36 = vld [vmem:[%s6219_s25 + $0xc8] sm:$0xff] (!%p1358_p13)   ;;  %v5268_v40 = vld [vmem:[%s6219_s25 + $0xd0] sm:$0xff] (!%p1358_p13)  }
  0xe5   : > { %v5261_v33 = vld [vmem:[%s6219_s25 + $0x40] sm:$0xff] (!%p1358_p13)   ;;  %4809 = vmatprep.subr.bf16.mxu0 (!%p1358_p13), %v5260_v32  ;;  %v5265_v37 = vld [vmem:[%s6219_s25 + $0x48] sm:$0xff] (!%p1358_p13)   ;;  %v5269_v41 = vld [vmem:[%s6219_s25 + $0x50] sm:$0xff] (!%p1358_p13)  }
  0xe6   : > { %v5262_v34 = vld [vmem:[%s6219_s25 + $0x80] sm:$0xff] (!%p1358_p13)   ;;  %4849 = vmatprep.subr.bf16.mxu1 (!%p1358_p13), %v5261_v33  ;;  %v5266_v38 = vld [vmem:[%s6219_s25 + $0x88] sm:$0xff] (!%p1358_p13)   ;;  %v5270_v42 = vld [vmem:[%s6219_s25 + $0x90] sm:$0xff] (!%p1358_p13)  }
  0xe7   : > { %v5263_v35 = vld [vmem:[%s6219_s25] sm:$0xff]   ;;  %4810 = vmatpush3.bf16.msra.mxu0 %v5262_v34  ;;  %v5267_v39 = vld [vmem:[%s6219_s25 + $0x8] sm:$0xff]   ;;  %v5271_v43 = vld [vmem:[%s6219_s25 + $0x10] sm:$0xff]   ;;  %s1395_s14 = scalar_select %p1394_p0, %s5522_s17, 1 }
  0xe8   : > { %4850 = vmatpush3.bf16.msra.mxu1 %v5263_v35  ;;  %4811 = vmatprep.subr.bf16.mxu0 %v5264_v36  ;;  %v5272_v44 = vld [vmem:[%s6219_s25 + $0xd8] sm:$0xff]   ;;  %v5276_v48 = vld [vmem:[%s6219_s25 + $0xe0] sm:$0xff]   ;;  %v5280_v52 = vld [vmem:[%s6219_s25 + $0xe8] sm:$0xff]   ;;  %s1400_s6 = scalar_select %p1399_p1, %s5518_s16, 1 }
  0xe9   : > { %4851 = vmatprep.subr.bf16.mxu1 %v5265_v37  ;;  %v5273_v45 = vld [vmem:[%s6219_s25 + $0x58] sm:$0xff]   ;;  %v5277_v49 = vld [vmem:[%s6219_s25 + $0x60] sm:$0xff]   ;;  %v5281_v53 = vld [vmem:[%s6219_s25 + $0x68] sm:$0xff]   ;;  %s5187_s26 = smul.u32 576, %s1395_s14  ;;  %s4774_s21 = sshll.u32 (%p5623_p9), %s5522_s17, 4 }
  0xea   : > { %v5274_v46 = vld [vmem:[%s6219_s25 + $0x98] sm:$0xff]   ;;  %v5278_v50 = vld [vmem:[%s6219_s25 + $0xa0] sm:$0xff]   ;;  %v5282_v54 = vld [vmem:[%s6219_s25 + $0xa8] sm:$0xff]   ;;  %s1401_s9 = scalar_lea.vmem %s6680_s2, %s1400_s6  ;;  %s4051_s24 = sadd.s32 (%p5623_p9), %s5518_s16, %s4774_s21 }
  0xeb   : > { %4812 = vmatpush3.bf16.msra.mxu0 %v5266_v38  ;;  %v5275_v47 = vld [vmem:[%s6219_s25 + $0x18] sm:$0xff]   ;;  %v5279_v51 = vld [vmem:[%s6219_s25 + $0x20] sm:$0xff]   ;;  %v5283_v55 = vld [vmem:[%s6219_s25 + $0x28] sm:$0xff]   ;;  %s6257_s5 = scalar_lea.vmem %s6678_s0, %s5187_s26 }
  0xec   : > { %4852 = vmatpush3.bf16.msra.mxu1 %v5267_v39  ;;  %4813 = vmatprep.subr.bf16.mxu0 %v5268_v40  ;;  %v5284_v56 = vld [vmem:[%s6219_s25 + $0xf0] sm:$0xff]   ;;  %v5288_v60 = vld [vmem:[%s6219_s25 + $0xf8] sm:$0xff]   ;;  %v1403_v2 = vld [vmem:[%s6257_s5] sm:$0xff] }
  0xed   : > { %4853 = vmatprep.subr.bf16.mxu1 %v5269_v41  ;;  %v5285_v57 = vld [vmem:[%s6219_s25 + $0x70] sm:$0xff]   ;;  %v5289_v61 = vld [vmem:[%s6219_s25 + $0x78] sm:$0xff]   ;;  %v5297_v6 = vld [vmem:[%s6219_s25 + $0x140] sm:$0xff]   ;;  %v1907_v12 = vshrl.u32 %v1403_v2, 16  ;;  %v1910_v14 = vshll.u32 %v1403_v2, 16 }
  0xee   : > { %v5286_v58 = vld [vmem:[%s6219_s25 + $0xb0] sm:$0xff]   ;;  %v5290_v62 = vld [vmem:[%s6219_s25 + $0xb8] sm:$0xff]   ;;  %v5298_v7 = vld [vmem:[%s6219_s25 + $0x1c0] sm:$0xff]  }
  0xef   : > { %4814 = vmatpush3.bf16.msra.mxu0 %v5270_v42  ;;  %v5287_v59 = vld [vmem:[%s6219_s25 + $0x30] sm:$0xff]   ;;  %v5291_v63 = vld [vmem:[%s6219_s25 + $0x38] sm:$0xff]   ;;  %v5299_v8 = vld [vmem:[%s6219_s25 + $0x100] sm:$0xff]   ;;  %v6276_v20 = vrot.slane %v1907_v12, 4  ;;  %v1912_v24 = vrot.slane %v1910_v14, 5 }
  0xf0   : > { %4854 = vmatpush3.bf16.msra.mxu1 %v5271_v43  ;;  %4815 = vmatprep.subr.bf16.mxu0 %v5272_v44  ;;  %v5292_v0 = vld [vmem:[%s6257_s5 + $0x90] ss:$16 sps:$4 sm:$0xff]   ;;  %v5294_v1 = vld [vmem:[%s6257_s5 + $0x94] ss:$16 sps:$4 sm:$0xff]   ;;  %v5301_v10 = vld [vmem:[%s6219_s25 + $0x148] sm:$0xff]  }
  0xf1   : > { %4855 = vmatprep.subr.bf16.mxu1 %v5273_v45  ;;  %v1404_v3 = vld [vmem:[%s6257_s5 + $0x10] sm:$0xff]  ;;  %1653 = vmatprep.mubr.bf16.mxu0 %v5294_v1  ;;  %v5300_v9 = vld [vmem:[%s6219_s25 + $0x180] sm:$0xff]   ;;  %v5302_v11 = vld [vmem:[%s6219_s25 + $0x1c8] sm:$0xff]  }
  0xf2   : > { %v4284_v4 = vcombine.low %v1403_v2, %v1404_v3  ;;  %v4285_v5 = vcombine.high %v1403_v2, %v1404_v3  ;;  %v5303_v13 = vld [vmem:[%s6219_s25 + $0x108] sm:$0xff]   ;;  %v5305_v16 = vld [vmem:[%s6257_s5 + $0xb4] ss:$16 sps:$4 sm:$0xff]   ;;  %v5308_v19 = vld [vmem:[%s6257_s5 + $0xb0] ss:$16 sps:$4 sm:$0xff]   ;;  %v1921_v26 = vshrl.u32 %v1404_v3, 16 }
  0xf3   : > { %4816 = vmatpush3.bf16.msra.mxu0 %v5274_v46  ;;  %v5304_v15 = vld [vmem:[%s6219_s25 + $0x188] sm:$0xff]   ;;  %v1405_v17 = vld [vmem:[%s6257_s5 + $0x20] sm:$0xff]  ;;  %v1406_v18 = vld [vmem:[%s6257_s5 + $0x30] sm:$0xff]  ;;  %v1924_v28 = vshll.u32 %v1404_v3, 16 }
  0xf4   : > { %4856 = vmatpush3.bf16.msra.mxu1 %v5275_v47  ;;  %4817 = vmatprep.subr.bf16.mxu0 %v5276_v48  ;;  %v4287_v21 = vcombine.high %v1405_v17, %v1406_v18  ;;  %v4286_v22 = vcombine.low %v1405_v17, %v1406_v18  ;;  %v5310_v23 = vld [vmem:[%s6219_s25 + $0x150] sm:$0xff]   ;;  %v1935_v30 = vshrl.u32 %v1405_v17, 16  ;;  %v5314_v31 = vld [vmem:[%s6219_s25 + $0x158] sm:$0xff]   ;;  %v1938_v32 = vshll.u32 %v1405_v17, 16  ;;  %v1407_v42 = vld [vmem:[%s6257_s5 + $0x40] sm:$0xff] }
  0xf5   : > { %4857 = vmatprep.subr.bf16.mxu1 %v5277_v49  ;;  %1854 = vmatprep.mubr.bf16.mxu1 %v4285_v5  ;;  %v5311_v25 = vld [vmem:[%s6219_s25 + $0x1d0] sm:$0xff]   ;;  %v5315_v33 = vld [vmem:[%s6219_s25 + $0x1d8] sm:$0xff]   ;;  %v1949_v34 = vshrl.u32 %v1406_v18, 16  ;;  %v1952_v36 = vshll.u32 %v1406_v18, 16  ;;  %v1923_v38 = vrot.slane %v1921_v26, 4  ;;  %v1926_v40 = vrot.slane %v1924_v28, 5 }
  0xf6   : > { %v5312_v27 = vld [vmem:[%s6219_s25 + $0x110] sm:$0xff]   ;;  %v5316_v35 = vld [vmem:[%s6219_s25 + $0x118] sm:$0xff]   ;;  %v1937_v41 = vrot.slane %v1935_v30, 4  ;;  %v1940_v45 = vrot.slane %v1938_v32, 5  ;;  %v5323_v49 = vld [vmem:[%s6219_s25 + $0x160] sm:$0xff]  }
  0xf7   : > { %4818 = vmatpush3.bf16.msra.mxu0 %v5278_v50  ;;  %v5313_v29 = vld [vmem:[%s6219_s25 + $0x190] sm:$0xff]   ;;  %v5317_v37 = vld [vmem:[%s6219_s25 + $0x198] sm:$0xff]   ;;  %v1951_v46 = vrot.slane %v1949_v34, 4  ;;  %v1954_v50 = vrot.slane %v1952_v36, 5  ;;  %v1409_v5 = vld [vmem:[%s6257_s5 + $0x60] sm:$0xff] }
  0xf8   : > { %4858 = vmatpush3.bf16.msra.mxu1 %v5279_v51  ;;  %4819 = vmatprep.subr.bf16.mxu0 %v5280_v52  ;;  %v5318_v39 = vld [vmem:[%s6257_s5 + $0xd4] ss:$16 sps:$4 sm:$0xff]   ;;  %v5321_v44 = vld [vmem:[%s6257_s5 + $0xd0] ss:$16 sps:$4 sm:$0xff]   ;;  %v1991_v18 = vshrl.u32 %v1409_v5, 16 }
  0xf9   : > { %4859 = vmatprep.subr.bf16.mxu1 %v5281_v53  ;;  %v6289_v43 = vld [vmem:[%s6257_s5 + $0x50] sm:$0xff]  ;;  %v5324_v51 = vld [vmem:[%s6219_s25 + $0x1e0] sm:$0xff]   ;;  %v1913_v53 = vor.u32 %v1912_v24, %v6276_v20  ;;  %v1994_v20 = vshll.u32 %v1409_v5, 16  ;;  %v1890_v30 = vld [vmem:[%s6257_s5 + $0x18] sm:$0x11] }
  0xfa   : > { %v4289_v47 = vcombine.high %v1407_v42, %v6289_v43  ;;  %v4288_v48 = vcombine.low %v1407_v42, %v6289_v43  ;;  %v5325_v52 = vld [vmem:[%s6219_s25 + $0x120] sm:$0xff]   ;;  %v5336_v12 = vld [vmem:[%s6219_s25 + $0x170] sm:$0xff]   ;;  %v1993_v26 = vrot.slane %v1991_v18, 4  ;;  %v1930_v34 = vshll.u32 %v1890_v30, 16 }
  0xfb   : > { %4820 = vmatpush3.bf16.msra.mxu0 %v5282_v54  ;;  %v5326_v54 = vld [vmem:[%s6219_s25 + $0x1a0] sm:$0xff]   ;;  %v5337_v14 = vld [vmem:[%s6219_s25 + $0x1f0] sm:$0xff]   ;;  %v1996_v28 = vrot.slane %v1994_v20, 5 }
  0xfc   : > { %4860 = vmatpush3.bf16.msra.mxu1 %v5283_v55  ;;  %4821 = vmatprep.subr.bf16.mxu0 %v5284_v56  ;;  %v1927_v55 = vor.u32 %v1926_v40, %v1923_v38  ;;  %v5327_v56 = vld [vmem:[%s6219_s25 + $0x168] sm:$0xff]   ;;  %v5331_v2 = vld [vmem:[%s6257_s5 + $0xf4] ss:$16 sps:$4 sm:$0xff]  }
  0xfd   : > { %4861 = vmatprep.subr.bf16.mxu1 %v5285_v57  ;;  %v1941_v57 = vor.u32 %v1940_v45, %v1937_v41  ;;  %v5346_v36 = vld [vmem:[%s6219_s25 + $0x240] sm:$0xff]   ;;  %v1932_v41 = vrot.slane %v1930_v34, 5  ;;  %v5359_v18 = vld [vmem:[%s6219_s25 + $0x290] sm:$0xff]  }
  0xfe   : > { %v6305_v1 = vrot.slane %v1927_v55, 4  ;;  %v1997_v55 = vor.u32 %v1996_v28, %v1993_v26  ;;  %v5363_v26 = vld [vmem:[%s6219_s25 + $0x298] sm:$0xff]  }
  0xff   : > { %4822 = vmatpush3.bf16.msra.mxu0 %v5286_v58  ;;  %v1955_v58 = vor.u32 %v1954_v50, %v1951_v46  ;;  %v6308_v3 = vrot.slane %v1941_v57, 4  ;;  %v5352_v57 = vld [vmem:[%s6219_s25 + $0x208] sm:$0xff]  }
 0x100   : > { %4862 = vmatpush3.bf16.msra.mxu1 %v5287_v59  ;;  %4823 = vmatprep.subr.bf16.mxu0 %v5288_v60  ;;  %v1963_v59 = vshrl.u32 %v1407_v42, 16  ;;  %v5328_v60 = vld [vmem:[%s6219_s25 + $0x1e8] sm:$0xff]  }
 0x101   : > { %4863 = vmatprep.subr.bf16.mxu1 %v5289_v61  ;;  %v1966_v61 = vshll.u32 %v1407_v42, 16  ;;  %v5347_v42 = vld [vmem:[%s6219_s25 + $0x2c0] sm:$0xff]  }
 0x103   : > { %4824 = vmatpush3.bf16.msra.mxu0 %v5290_v62  ;;  %v5329_v62 = vld [vmem:[%s6219_s25 + $0x128] sm:$0xff]  }
 0x104   : > { %4864 = vmatpush3.bf16.msra.mxu1 %v5291_v63  ;;  %4889 = vmatprep.subr.bf16.mxu0 %v5297_v6  ;;  %v6302_v63 = vrot.slane %v1913_v53, 4  ;;  %v6314_v6 = vld [vmem:[%s6257_s5 + $0x70] sm:$0xff] }
 0x105   : > { %4929 = vmatprep.subr.bf16.mxu1 %v5298_v7  ;;  %v5334_v7 = vld [vmem:[%s6257_s5 + $0xf0] ss:$16 sps:$4 sm:$0xff]   ;;  %v2005_v32 = vshrl.u32 %v6314_v6, 16 }
 0x106   : > { %1654 = vmatmul.mubr.bf16.vlgmr.msra.gmra.mrb[0].mxu0 %v5292_v0  ;;  %v5330_v0 = vld [vmem:[%s6219_s25 + $0x1a8] sm:$0xff]  }
 0x107   : > { %1855 = vmatmul.mubr.bf16.vlgmr.msra.gmra.mrb[0].mxu1 %v4284_v4  ;;  %4890 = vmatpush3.bf16.msra.mxu0 %v5299_v8  ;;  %v6310_v4 = vrot.slane %v1955_v58, 4  ;;  %v1965_v8 = vrot.slane %v1963_v59, 4  ;;  %v2007_v53 = vrot.slane %v2005_v32, 4  ;;  %v5353_v59 = vld [vmem:[%s6219_s25 + $0x288] sm:$0xff]   ;;  %v6411_v32 = vld [vmem:[%s6257_s5 + $0x170] sm:$0xff] }
 0x108   : > { %4930 = vmatpush3.bf16.msra.mxu1 %v5300_v9  ;;  %4891 = vmatprep.subr.bf16.mxu0 %v5301_v10  ;;  %v1968_v9 = vrot.slane %v1966_v61, 5  ;;  %v4291_v10 = vcombine.high %v1409_v5, %v6314_v6  ;;  %v1894_v61 = vld [vmem:[%s6257_s5 + $0x38] sm:$0x11] }
 0x109   : > { %4931 = vmatprep.subr.bf16.mxu1 %v5302_v11  ;;  %1661 = vmatprep.mubr.bf16.mxu0 %v5305_v16  ;;  %v4290_v11 = vcombine.low %v1409_v5, %v6314_v6  ;;  %v5338_v16 = vld [vmem:[%s6219_s25 + $0x130] sm:$0xff]  }
 0x10a   : > { %1862 = vmatprep.mubr.bf16.mxu1 %v4287_v21  ;;  %v5340_v21 = vld [vmem:[%s6219_s25 + $0x178] sm:$0xff]  }
 0x10b   : > { %4892 = vmatpush3.bf16.msra.mxu0 %v5303_v13  ;;  %v1977_v13 = vshrl.u32 %v6289_v43, 16 }
 0x10c   : > { %4932 = vmatpush3.bf16.msra.mxu1 %v5304_v15  ;;  %4893 = vmatprep.subr.bf16.mxu0 %v5310_v23  ;;  %v1980_v15 = vshll.u32 %v6289_v43, 16  ;;  %v5341_v23 = vld [vmem:[%s6219_s25 + $0x1f8] sm:$0xff]   ;;  %v2008_v43 = vshll.u32 %v6314_v6, 16 }
 0x10d   : > { %4933 = vmatprep.subr.bf16.mxu1 %v5311_v25  ;;  %v5342_v25 = vld [vmem:[%s6219_s25 + $0x138] sm:$0xff]  }
 0x10e   : > { %1662 = vmatmul.mubr.bf16.gmra.mrb[4].mxu0 %v5308_v19  ;;  %v5339_v19 = vld [vmem:[%s6219_s25 + $0x1b0] sm:$0xff]   ;;  %v1982_v24 = vrot.slane %v1980_v15, 5 }
 0x10f   : > { %1863 = vmatmul.mubr.bf16.gmra.mrb[4].mxu1 %v4286_v22  ;;  %4894 = vmatpush3.bf16.msra.mxu0 %v5312_v27  ;;  %v1979_v22 = vrot.slane %v1977_v13, 4  ;;  %v5343_v27 = vld [vmem:[%s6219_s25 + $0x1b8] sm:$0xff]  }
 0x110   : > { %4934 = vmatpush3.bf16.msra.mxu1 %v5313_v29  ;;  %4895 = vmatprep.subr.bf16.mxu0 %v5314_v31  ;;  %v1888_v29 = vld [vmem:[%s6257_s5 + $0x8] sm:$0x11]  ;;  %v6338_v31 = vld [vmem:[%s6257_s5 + $0x120] sm:$0xff] }
 0x111   : > { %4935 = vmatprep.subr.bf16.mxu1 %v5315_v33  ;;  %1669 = vmatprep.mubr.bf16.mxu0 %v5318_v39  ;;  %v1916_v33 = vshll.u32 %v1888_v29, 16  ;;  %v1983_v45 = vor.u32 %v1982_v24, %v1979_v22  ;;  %v2774_v13 = vshll.u32 %v6338_v31, 16  ;;  %v5360_v22 = vld [vmem:[%s6219_s25 + $0x258] sm:$0xff]  }
 0x112   : > { %1870 = vmatprep.mubr.bf16.mxu1 %v4289_v47  ;;  %v1933_v47 = vsel %vm6326_vm2, %v6305_v1, %v1932_v41  ;;  %v6371_v1 = vld [vmem:[%s6257_s5 + $0x140] sm:$0xff]  ;;  %v1898_v29 = vld [vmem:[%s6257_s5 + $0x58] sm:$0x11] }
 0x113   : > { %4896 = vmatpush3.bf16.msra.mxu0 %v5316_v35  ;;  %v6342_v35 = vld [vmem:[%s6257_s5 + $0x130] sm:$0xff]  ;;  %v1918_v40 = vrot.slane %v1916_v33, 5  ;;  %v6364_v58 = vrot.slane %v1983_v45, 4  ;;  %v6399_v24 = vrot.slane %v2774_v13, 5  ;;  %v2799_v33 = vshrl.u32 %v6371_v1, 16  ;;  %v5368_v41 = vld [vmem:[%s6219_s25 + $0x220] sm:$0xff]  }
 0x114   : > { %4936 = vmatpush3.bf16.msra.mxu1 %v5317_v37  ;;  %4897 = vmatprep.subr.bf16.mxu0 %v5323_v49  ;;  %v1969_v37 = vor.u32 %v1968_v9, %v1965_v8  ;;  %v4404_v38 = vcombine.low %v6338_v31, %v6342_v35  ;;  %v4405_v39 = vcombine.high %v6338_v31, %v6342_v35  ;;  %v6381_v8 = vrot.slane %v1997_v55, 4 }
 0x115   : > { %4937 = vmatprep.subr.bf16.mxu1 %v5324_v51  ;;  %v1919_v46 = vsel %vm6326_vm2, %v6302_v63, %v1918_v40  ;;  %v2788_v28 = vshll.u32 %v6342_v35, 16  ;;  %v1986_v34 = vshll.u32 %v1898_v29, 16 }
 0x116   : > { %1670 = vmatmul.mubr.bf16.gmra.mrb[8].mxu0 %v5321_v44  ;;  %v5348_v44 = vld [vmem:[%s6219_s25 + $0x200] sm:$0xff]   ;;  %v6359_v49 = vrot.slane %v1969_v37, 4  ;;  %v4340_v50 = vcombine.low %v1919_v46, %v1933_v47  ;;  %v4341_v51 = vcombine.high %v1919_v46, %v1933_v47  ;;  %v5370_v46 = vld [vmem:[%s6219_s25 + $0x268] sm:$0xff]  }
 0x117   : > { %1871 = vmatmul.mubr.bf16.gmra.mrb[8].mxu1 %v4288_v48  ;;  %4898 = vmatpush3.bf16.msra.mxu0 %v5325_v52  ;;  %v5349_v48 = vld [vmem:[%s6219_s25 + $0x280] sm:$0xff]   ;;  %v5350_v52 = vld [vmem:[%s6219_s25 + $0x248] sm:$0xff]   ;;  %v1988_v40 = vrot.slane %v1986_v34, 5  ;;  %v2790_v47 = vrot.slane %v2788_v28, 5 }
 0x118   : > { %4938 = vmatpush3.bf16.msra.mxu1 %v5326_v54  ;;  %4899 = vmatprep.subr.bf16.mxu0 %v5327_v56  ;;  %v5351_v54 = vld [vmem:[%s6219_s25 + $0x2c8] sm:$0xff]   ;;  %v2010_v56 = vrot.slane %v2008_v43, 5  ;;  %v5366_v37 = vld [vmem:[%s6219_s25 + $0x260] sm:$0xff]  }
 0x119   : > { %4939 = vmatprep.subr.bf16.mxu1 %v5328_v60  ;;  %1677 = vmatprep.mubr.bf16.mxu0 %v5331_v2  ;;  %v1892_v60 = vld [vmem:[%s6257_s5 + $0x28] sm:$0x11]  ;;  %v6374_v2 = vld [vmem:[%s6257_s5 + $0x150] sm:$0xff]  ;;  %v5369_v43 = vld [vmem:[%s6219_s25 + $0x2a0] sm:$0xff]   ;;  %v1989_v45 = vsel %vm6326_vm2, %v6364_v58, %v1988_v40  ;;  %v2841_v40 = vshrl.u32 %v6411_v32, 16 }
 0x11a   : > { %1878 = vmatprep.mubr.bf16.mxu1 %v4291_v10  ;;  %v1944_v63 = vshll.u32 %v1892_v60, 16  ;;  %v4407_v5 = vcombine.high %v6371_v1, %v6374_v2  ;;  %v4406_v6 = vcombine.low %v6371_v1, %v6374_v2  ;;  %v2011_v9 = vor.u32 %v2010_v56, %v2007_v53  ;;  %v1900_v56 = vld [vmem:[%s6257_s5 + $0x68] sm:$0x11]  ;;  %v6439_v58 = vld [vmem:[%s6257_s5 + $0x180] sm:$0xff] }
 0x11b   : > { %4900 = vmatpush3.bf16.msra.mxu0 %v5329_v62  ;;  %v2771_v62 = vshrl.u32 %v6338_v31, 16  ;;  %v6408_v31 = vld [vmem:[%s6257_s5 + $0x160] sm:$0xff]  ;;  %v2801_v53 = vrot.slane %v2799_v33, 4  ;;  %v2813_v55 = vshrl.u32 %v6374_v2, 16  ;;  %v2000_v60 = vshll.u32 %v1900_v56, 16 }
 0x11c   : > { %4940 = vmatpush3.bf16.msra.mxu1 %v5330_v0  ;;  %4901 = vmatprep.subr.bf16.mxu0 %v5336_v12  ;;  %v1958_v0 = vshll.u32 %v1894_v61, 16  ;;  %v1946_v10 = vrot.slane %v1944_v63, 5  ;;  %v5357_v12 = vld [vmem:[%s6219_s25 + $0x2d0] sm:$0xff]   ;;  %v2830_v29 = vshll.u32 %v6408_v31, 16  ;;  %v4495_v33 = vld [vmem:[%s6257_s5 + $0x138] sm:$0x11] }
 0x11d   : > { %4941 = vmatprep.subr.bf16.mxu1 %v5337_v14  ;;  %v5358_v14 = vld [vmem:[%s6219_s25 + $0x210] sm:$0xff]   ;;  %v2855_v56 = vshrl.u32 %v6439_v58, 16 }
 0x11e   : > { %1678 = vmatmul.mubr.bf16.gmra.mrb[12].mxu0 %v5334_v7  ;;  %v5356_v7 = vld [vmem:[%s6219_s25 + $0x250] sm:$0xff]   ;;  %v1947_v15 = vsel %vm6326_vm2, %v6308_v3, %v1946_v10  ;;  %v5361_v3 = vld [vmem:[%s6219_s25 + $0x2d8] sm:$0xff]  }
 0x11f   : > { %1879 = vmatmul.mubr.bf16.gmra.mrb[12].mxu1 %v4290_v11  ;;  %4902 = vmatpush3.bf16.msra.mxu0 %v5338_v16  ;;  %v1960_v11 = vrot.slane %v1958_v0, 5  ;;  %v5376_v63 = vld [vmem:[%s6219_s25 + $0x270] sm:$0xff]  }
 0x120   : > { %4942 = vmatpush3.bf16.msra.mxu1 %v5339_v19  ;;  %4903 = vmatprep.subr.bf16.mxu0 %v5340_v21  ;;  %v6393_v19 = vrot.slane %v2771_v62, 4  ;;  %v6442_v62 = vld [vmem:[%s6257_s5 + $0x190] sm:$0xff] }
 0x121   : > { %4943 = vmatprep.subr.bf16.mxu1 %v5341_v23  ;;  %2462 = vmatprep.mubr.bf16.mxu1 %v4405_v39  ;;  %v1961_v16 = vsel %vm6326_vm2, %v6310_v4, %v1960_v11  ;;  %v6396_v23 = vrot.slane %v2011_v9, 4  ;;  %v5362_v4 = vld [vmem:[%s6219_s25 + $0x218] sm:$0xff]   ;;  %v5367_v39 = vld [vmem:[%s6219_s25 + $0x2e0] sm:$0xff]   ;;  %v4411_v0 = vcombine.high %v6439_v58, %v6442_v62  ;;  %v5378_v9 = vld [vmem:[%s6219_s25 + $0x230] sm:$0xff]  }
 0x122   : > { %2211 = vmatprep.mubr.bf16.mxu0 %v4341_v51  ;;  %v4343_v20 = vcombine.high %v1947_v15, %v1961_v16  ;;  %v4342_v21 = vcombine.low %v1947_v15, %v1961_v16  ;;  %v2802_v51 = vshll.u32 %v6371_v1, 16  ;;  %v4410_v1 = vcombine.low %v6439_v58, %v6442_v62 }
 0x123   : > { %4904 = vmatpush3.bf16.msra.mxu0 %v5342_v25  ;;  %v2785_v25 = vshrl.u32 %v6342_v35, 16  ;;  %v4408_v35 = vcombine.low %v6408_v31, %v6411_v32  ;;  %v2777_v10 = vor.u32 %v6399_v24, %v6393_v19  ;;  %v2815_v16 = vrot.slane %v2813_v55, 4  ;;  %v5380_v19 = vld [vmem:[%s6219_s25 + $0x278] sm:$0xff]  }
 0x124   : > { %4944 = vmatpush3.bf16.msra.mxu1 %v5343_v27  ;;  %4969 = vmatprep.subr.bf16.mxu0 %v5346_v36  ;;  %v1896_v27 = vld [vmem:[%s6257_s5 + $0x48] sm:$0x11]  ;;  %v4409_v36 = vcombine.high %v6408_v31, %v6411_v32  ;;  %v5383_v24 = vld [vmem:[%s6219_s25 + $0x2b8] sm:$0xff]   ;;  %v2844_v55 = vshll.u32 %v6411_v32, 16 }
 0x125   : > { %5009 = vmatprep.subr.bf16.mxu1 %v5347_v42  ;;  %v1972_v30 = vshll.u32 %v1896_v27, 16  ;;  %v4493_v27 = vld [vmem:[%s6257_s5 + $0x128] sm:$0x11] }
 0x126   : > { %2212 = vmatmul.mubr.bf16.vlgmr.msra.gmra.mrb[16].mxu0 %v4340_v50  ;;  %v2780_v34 = vshll.u32 %v4493_v27, 16 }
 0x127   : > { %2463 = vmatmul.mubr.bf16.vlgmr.msra.gmra.mrb[16].mxu1 %v4404_v38  ;;  %4970 = vmatpush3.bf16.msra.mxu0 %v5348_v44  ;;  %v1974_v38 = vrot.slane %v1972_v30, 5  ;;  %v6425_v44 = vrot.slane %v2785_v25, 4  ;;  %v5384_v30 = vld [vmem:[%s6257_s5 + $0x1b0] ss:$16 sps:$4 sm:$0xff]  }
 0x128   : > { %5010 = vmatpush3.bf16.msra.mxu1 %v5349_v48  ;;  %4971 = vmatprep.subr.bf16.mxu0 %v5350_v52  ;;  %v5372_v52 = vld [vmem:[%s6219_s25 + $0x228] sm:$0xff]  }
 0x129   : > { %5011 = vmatprep.subr.bf16.mxu1 %v5351_v54  ;;  %2470 = vmatprep.mubr.bf16.mxu1 %v4407_v5  ;;  %v1975_v42 = vsel %vm6326_vm2, %v6359_v49, %v1974_v38  ;;  %v5371_v49 = vld [vmem:[%s6219_s25 + $0x2e8] sm:$0xff]   ;;  %v2002_v5 = vrot.slane %v2000_v60, 5  ;;  %v2791_v11 = vor.u32 %v2790_v47, %v6425_v44 }
 0x12a   : > { %2219 = vmatprep.mubr.bf16.mxu0 %v4343_v20  ;;  %v4345_v48 = vcombine.high %v1975_v42, %v1989_v45  ;;  %v4344_v50 = vcombine.low %v1975_v42, %v1989_v45  ;;  %v5373_v54 = vld [vmem:[%s6219_s25 + $0x2a8] sm:$0xff]  }
 0x12b   : > { %4972 = vmatpush3.bf16.msra.mxu0 %v5352_v57  ;;  %v1902_v57 = vld [vmem:[%s6257_s5 + $0x78] sm:$0x11]  ;;  %v2792_v25 = vrot.slane %v2791_v11, 4  ;;  %v5391_v45 = vld [vmem:[%s6219_s25 + $0x348] sm:$0xff]  }
 0x12c   : > { %5012 = vmatpush3.bf16.msra.mxu1 %v5353_v59  ;;  %4973 = vmatprep.subr.bf16.mxu0 %v5356_v7  ;;  %v2804_v59 = vrot.slane %v2802_v51, 5  ;;  %v2014_v61 = vshll.u32 %v1902_v57, 16  ;;  %v5377_v7 = vld [vmem:[%s6219_s25 + $0x2f0] sm:$0xff]   ;;  %v5393_v51 = vld [vmem:[%s6219_s25 + $0x308] sm:$0xff]   ;;  %v2858_v57 = vshll.u32 %v6439_v58, 16 }
 0x12d   : > { %5013 = vmatprep.subr.bf16.mxu1 %v5357_v12  ;;  %v2003_v12 = vsel %vm6326_vm2, %v6381_v8, %v2002_v5  ;;  %v5381_v8 = vld [vmem:[%s6219_s25 + $0x2f8] sm:$0xff]   ;;  %v4497_v60 = vld [vmem:[%s6257_s5 + $0x148] sm:$0x11]  ;;  %v5398_v5 = vld [vmem:[%s6219_s25 + $0x350] sm:$0xff]  }
 0x12e   : > { %2220 = vmatmul.mubr.bf16.gmra.mrb[20].mxu0 %v4342_v21  ;;  %v2805_v15 = vor.u32 %v2804_v59, %v2801_v53  ;;  %v2816_v21 = vshll.u32 %v6374_v2, 16  ;;  %v5394_v53 = vld [vmem:[%s6219_s25 + $0x388] sm:$0xff]   ;;  %v5395_v59 = vld [vmem:[%s6257_s5 + $0x1d4] ss:$16 sps:$4 sm:$0xff]  }
 0x12f   : > { %2471 = vmatmul.mubr.bf16.gmra.mrb[20].mxu1 %v4406_v6  ;;  %4974 = vmatpush3.bf16.msra.mxu0 %v5358_v14  ;;  %v2016_v6 = vrot.slane %v2014_v61, 5  ;;  %v5379_v14 = vld [vmem:[%s6219_s25 + $0x2b0] sm:$0xff]   ;;  %v4499_v61 = vld [vmem:[%s6257_s5 + $0x158] sm:$0x11] }
 0x130   : > { %5014 = vmatpush3.bf16.msra.mxu1 %v5359_v18  ;;  %4975 = vmatprep.subr.bf16.mxu0 %v5360_v22  ;;  %v2827_v22 = vshrl.u32 %v6408_v31, 16  ;;  %v2806_v2 = vrot.slane %v2805_v15, 4  ;;  %v5399_v58 = vld [vmem:[%s6219_s25 + $0x3d0] sm:$0xff]  }
 0x131   : > { %5015 = vmatprep.subr.bf16.mxu1 %v5361_v3  ;;  %2478 = vmatprep.mubr.bf16.mxu1 %v4409_v36  ;;  %v2017_v13 = vsel %vm6326_vm2, %v6396_v23, %v2016_v6  ;;  %v5382_v23 = vld [vmem:[%s6219_s25 + $0x238] sm:$0xff]   ;;  %v2818_v3 = vrot.slane %v2816_v21, 5  ;;  %v5387_v36 = vld [vmem:[%s6219_s25 + $0x340] sm:$0xff]   ;;  %v2860_v21 = vrot.slane %v2858_v57, 5  ;;  %v5421_v57 = vld [vmem:[%s6219_s25 + $0x3f0] sm:$0xff]  }
 0x132   : > { %2227 = vmatprep.mubr.bf16.mxu0 %v4345_v48  ;;  %v4347_v18 = vcombine.high %v2003_v12, %v2017_v13  ;;  %v4346_v20 = vcombine.low %v2003_v12, %v2017_v13  ;;  %v2829_v28 = vrot.slane %v2827_v22, 4  ;;  %v5401_v12 = vld [vmem:[%s6219_s25 + $0x390] sm:$0xff]   ;;  %v2846_v13 = vrot.slane %v2844_v55, 5 }
 0x133   : > { %4976 = vmatpush3.bf16.msra.mxu0 %v5362_v4  ;;  %v2778_v4 = vrot.slane %v2777_v10, 4  ;;  %v2819_v38 = vor.u32 %v2818_v3, %v2815_v16  ;;  %v5402_v16 = vld [vmem:[%s6219_s25 + $0x358] sm:$0xff]   ;;  %v2869_v22 = vshrl.u32 %v6442_v62, 16  ;;  %v5420_v55 = vld [vmem:[%s6219_s25 + $0x370] sm:$0xff]  }
 0x134   : > { %5016 = vmatpush3.bf16.msra.mxu1 %v5363_v26  ;;  %4977 = vmatprep.subr.bf16.mxu0 %v5366_v37  ;;  %v5386_v26 = vld [vmem:[%s6257_s5 + $0x1b4] ss:$16 sps:$4 sm:$0xff]  }
 0x135   : > { %5017 = vmatprep.subr.bf16.mxu1 %v5367_v39  ;;  %v5388_v37 = vld [vmem:[%s6219_s25 + $0x3c0] sm:$0xff]   ;;  %v2782_v39 = vrot.slane %v2780_v34, 5 }
 0x136   : > { %2228 = vmatmul.mubr.bf16.gmra.mrb[24].mxu0 %v4344_v50  ;;  %v5392_v50 = vld [vmem:[%s6219_s25 + $0x3c8] sm:$0xff]  }
 0x137   : > { %2479 = vmatmul.mubr.bf16.gmra.mrb[24].mxu1 %v4408_v35  ;;  %4978 = vmatpush3.bf16.msra.mxu0 %v5368_v41  ;;  %v2794_v35 = vshll.u32 %v4495_v33, 16  ;;  %v5389_v41 = vld [vmem:[%s6219_s25 + $0x300] sm:$0xff]   ;;  %v2783_v42 = vsel %vm6326_vm2, %v2778_v4, %v2782_v39  ;;  %v5413_v39 = vld [vmem:[%s6219_s25 + $0x368] sm:$0xff]  }
 0x138   : > { %5018 = vmatpush3.bf16.msra.mxu1 %v5369_v43  ;;  %4979 = vmatprep.subr.bf16.mxu0 %v5370_v46  ;;  %v5390_v43 = vld [vmem:[%s6219_s25 + $0x380] sm:$0xff]   ;;  %v2820_v46 = vrot.slane %v2819_v38, 4 }
 0x139   : > { %5019 = vmatprep.subr.bf16.mxu1 %v5371_v49  ;;  %2486 = vmatprep.mubr.bf16.mxu1 %v4411_v0  ;;  %v2796_v31 = vrot.slane %v2794_v35, 5  ;;  %v2832_v49 = vrot.slane %v2830_v29, 5  ;;  %v2822_v0 = vshll.u32 %v4499_v61, 16  ;;  %v5406_v4 = vld [vmem:[%s6257_s5 + $0x1f4] ss:$16 sps:$4 sm:$0xff]  }
 0x13a   : > { %2235 = vmatprep.mubr.bf16.mxu0 %v4347_v18  ;;  %v2857_v18 = vrot.slane %v2855_v56, 4  ;;  %v5409_v29 = vld [vmem:[%s6219_s25 + $0x360] sm:$0xff]  }
 0x13b   : > { %4980 = vmatpush3.bf16.msra.mxu0 %v5372_v52  ;;  %v2797_v44 = vsel %vm6326_vm2, %v2792_v25, %v2796_v31  ;;  %v2843_v52 = vrot.slane %v2841_v40, 4  ;;  %v4501_v25 = vld [vmem:[%s6257_s5 + $0x168] sm:$0x11]  ;;  %v5410_v33 = vld [vmem:[%s6219_s25 + $0x3e0] sm:$0xff]  }
 0x13c   : > { %5020 = vmatpush3.bf16.msra.mxu1 %v5373_v54  ;;  %4981 = vmatprep.subr.bf16.mxu0 %v5376_v63  ;;  %v4540_v47 = vcombine.low %v2783_v42, %v2797_v44  ;;  %v4541_v48 = vcombine.high %v2783_v42, %v2797_v44  ;;  %v2833_v54 = vor.u32 %v2832_v49, %v2829_v28  ;;  %v2808_v63 = vshll.u32 %v4497_v60, 16  ;;  %v5408_v28 = vld [vmem:[%s6257_s5 + $0x1f0] ss:$16 sps:$4 sm:$0xff]   ;;  %v5414_v42 = vld [vmem:[%s6219_s25 + $0x3e8] sm:$0xff]   ;;  %v4507_v49 = vld [vmem:[%s6257_s5 + $0x198] sm:$0x11] }
 0x13d   : > { %5021 = vmatprep.subr.bf16.mxu1 %v5377_v7  ;;  %v2824_v7 = vrot.slane %v2822_v0, 5  ;;  %v2836_v27 = vshll.u32 %v4501_v25, 16  ;;  %v5412_v35 = vld [vmem:[%s6219_s25 + $0x3a0] sm:$0xff]   ;;  %v2861_v40 = vor.u32 %v2860_v21, %v2857_v18  ;;  %v5415_v44 = vld [vmem:[%s6219_s25 + $0x328] sm:$0xff]   ;;  %v5422_v60 = vld [vmem:[%s6219_s25 + $0x330] sm:$0xff]  }
 0x13e   : > { %2236 = vmatmul.mubr.bf16.gmra.mrb[28].mxu0 %v4346_v20  ;;  %v2834_v6 = vrot.slane %v2833_v54, 4  ;;  %v2810_v32 = vrot.slane %v2808_v63, 5  ;;  %v5403_v20 = vld [vmem:[%s6219_s25 + $0x3d8] sm:$0xff]   ;;  %v2878_v54 = vshll.u32 %v4507_v49, 16  ;;  %v5423_v63 = vld [vmem:[%s6219_s25 + $0x3b0] sm:$0xff]   ;;  %v5453_v49 = vld [vmem:[%s6219_s25 + $0x468] sm:$0xff]  }
 0x13f   : > { %2487 = vmatmul.mubr.bf16.gmra.mrb[28].mxu1 %v4410_v1  ;;  %4982 = vmatpush3.bf16.msra.mxu0 %v5378_v9  ;;  %v5397_v1 = vld [vmem:[%s6257_s5 + $0x1d0] ss:$16 sps:$4 sm:$0xff]   ;;  %v2825_v11 = vsel %vm6326_vm2, %v2820_v46, %v2824_v7  ;;  %v2838_v34 = vrot.slane %v2836_v27, 5  ;;  %v5426_v7 = vld [vmem:[%s6219_s25 + $0x338] sm:$0xff]  }
 0x140   : > { %5022 = vmatpush3.bf16.msra.mxu1 %v5379_v14  ;;  %4983 = vmatprep.subr.bf16.mxu0 %v5380_v19  ;;  %v5400_v9 = vld [vmem:[%s6219_s25 + $0x310] sm:$0xff]   ;;  %v2811_v10 = vsel %vm6326_vm2, %v2806_v2, %v2810_v32  ;;  %v2847_v19 = vor.u32 %v2846_v13, %v2843_v52  ;;  %v2871_v2 = vrot.slane %v2869_v22, 4  ;;  %v5425_v32 = vld [vmem:[%s6219_s25 + $0x3f8] sm:$0xff]   ;;  %v6548_v22 = vld [vmem:[%s6257_s5 + $0x40] sm:$0xff] }
 0x141   : > { %5023 = vmatprep.subr.bf16.mxu1 %v5381_v8  ;;  %2713 = vmatprep.mubr.bf16.mxu0 %v5386_v26  ;;  %v4543_v14 = vcombine.high %v2811_v10, %v2825_v11  ;;  %v4542_v15 = vcombine.low %v2811_v10, %v2825_v11  ;;  %v5404_v8 = vld [vmem:[%s6219_s25 + $0x318] sm:$0xff]   ;;  %v4565_v10 = vld [vmem:[%s6257_s5 + $0x20] sm:$0xff]  ;;  %v5443_v27 = vld [vmem:[%s6219_s25 + $0x410] sm:$0xff]  }
 0x142   : > { %3075 = vmatprep.mubr.bf16.mxu1 %v4541_v48  ;;  %v2848_v3 = vrot.slane %v2847_v19, 4  ;;  %v4503_v26 = vld [vmem:[%s6257_s5 + $0x178] sm:$0x11]  ;;  %v4505_v48 = vld [vmem:[%s6257_s5 + $0x188] sm:$0x11] }
 0x143   : > { %4984 = vmatpush3.bf16.msra.mxu0 %v5382_v23  ;;  %v5405_v23 = vld [vmem:[%s6219_s25 + $0x398] sm:$0xff]   ;;  %v5432_v13 = vld [vmem:[%s6257_s5 + $0xa4] ss:$16 sps:$4 sm:$0xff]   ;;  %v5436_v19 = vld [vmem:[%s6219_s25 + $0x408] sm:$0xff]  }
 0x144   : > { %5024 = vmatpush3.bf16.msra.mxu1 %v5383_v24  ;;  %5049 = vmatprep.subr.bf16.mxu0 %v5387_v36  ;;  %v2872_v24 = vshll.u32 %v6442_v62, 16  ;;  %v5411_v62 = vld [vmem:[%s6219_s25 + $0x320] sm:$0xff]  }
 0x145   : > { %5089 = vmatprep.subr.bf16.mxu1 %v5388_v37  ;;  %v2839_v37 = vsel %vm6326_vm2, %v2834_v6, %v2838_v34  ;;  %v4568_v34 = vld [vmem:[%s6257_s5 + $0x50] sm:$0xff] }
 0x146   : > { %2714 = vmatmul.mubr.bf16.vlgmr.msra.gmra.mrb[32].mxu0 %v5384_v30  ;;  %v2850_v30 = vshll.u32 %v4503_v26, 16  ;;  %v3652_v26 = vshll.u32 %v4565_v10, 16 }
 0x147   : > { %5050 = vmatpush3.bf16.msra.mxu0 %v5389_v41  ;;  %3076 = vmatmul.mubr.bf16.vlgmr.msra.gmra.mrb[32].mxu1 %v4540_v47  ;;  %v5417_v47 = vld [vmem:[%s6257_s5 + $0x214] ss:$16 sps:$4 sm:$0xff]  }
 0x148   : > { %5051 = vmatprep.subr.bf16.mxu0 %v5391_v45  ;;  %5090 = vmatpush3.bf16.msra.mxu1 %v5390_v43  ;;  %v2852_v36 = vrot.slane %v2850_v30, 5  ;;  %v2874_v43 = vrot.slane %v2872_v24, 5  ;;  %v5416_v45 = vld [vmem:[%s6219_s25 + $0x3a8] sm:$0xff]  }
 0x149   : > { %5091 = vmatprep.subr.bf16.mxu1 %v5392_v50  ;;  %2721 = vmatprep.mubr.bf16.mxu0 %v5395_v59  ;;  %v2862_v50 = vrot.slane %v2861_v40, 4  ;;  %v2880_v59 = vrot.slane %v2878_v54, 5 }
 0x14a   : > { %3083 = vmatprep.mubr.bf16.mxu1 %v4543_v14  ;;  %v2853_v38 = vsel %vm6326_vm2, %v2848_v3, %v2852_v36  ;;  %v2875_v46 = vor.u32 %v2874_v43, %v2871_v2  ;;  %v5430_v14 = vld [vmem:[%s6257_s5 + $0xa0] ss:$16 sps:$4 sm:$0xff]   ;;  %v5438_v3 = vld [vmem:[%s6257_s5 + $0xc4] ss:$16 sps:$4 sm:$0xff]  }
 0x14b   : > { %5052 = vmatpush3.bf16.msra.mxu0 %v5393_v51  ;;  %v4545_v31 = vcombine.high %v2839_v37, %v2853_v38  ;;  %v4544_v41 = vcombine.low %v2839_v37, %v2853_v38  ;;  %v2864_v51 = vshll.u32 %v4505_v48, 16  ;;  %v5442_v2 = vld [vmem:[%s6219_s25 + $0x450] sm:$0xff]   ;;  %v5445_v37 = vld [vmem:[%s6219_s25 + $0x418] sm:$0xff]   ;;  %v5451_v43 = vld [vmem:[%s6219_s25 + $0x460] sm:$0xff]  }
 0x14c   : > { %5053 = vmatprep.subr.bf16.mxu0 %v5398_v5  ;;  %5092 = vmatpush3.bf16.msra.mxu1 %v5394_v53  ;;  %v2876_v52 = vrot.slane %v2875_v46, 4  ;;  %v5419_v53 = vld [vmem:[%s6257_s5 + $0x210] ss:$16 sps:$4 sm:$0xff]  }
 0x14d   : > { %5093 = vmatprep.subr.bf16.mxu1 %v5399_v58  ;;  %v2866_v56 = vrot.slane %v2864_v51, 5  ;;  %v5427_v58 = vld [vmem:[%s6219_s25 + $0x3b8] sm:$0xff]  }
 0x14e   : > { %2722 = vmatmul.mubr.bf16.gmra.mrb[36].mxu0 %v5397_v1  ;;  %v2881_v0 = vsel %vm6326_vm2, %v2876_v52, %v2880_v59  ;;  %v5424_v1 = vld [vmem:[%s6219_s25 + $0x378] sm:$0xff]   ;;  %v6566_v52 = vld [vmem:[%s6257_s5 + $0x70] sm:$0xff] }
 0x14f   : > { %5054 = vmatpush3.bf16.msra.mxu0 %v5400_v9  ;;  %3084 = vmatmul.mubr.bf16.gmra.mrb[36].mxu1 %v4542_v15  ;;  %v2867_v61 = vsel %vm6326_vm2, %v2862_v50, %v2866_v56  ;;  %v4564_v9 = vld [vmem:[%s6257_s5 + $0x10] sm:$0xff]  ;;  %v5433_v15 = vld [vmem:[%s6219_s25 + $0x440] sm:$0xff]  }
 0x150   : > { %5055 = vmatprep.subr.bf16.mxu0 %v5402_v16  ;;  %5094 = vmatpush3.bf16.msra.mxu1 %v5401_v12  ;;  %v4547_v5 = vcombine.high %v2867_v61, %v2881_v0  ;;  %v4546_v6 = vcombine.low %v2867_v61, %v2881_v0  ;;  %v4604_v11 = vcombine.low %v4564_v9, %v4565_v10  ;;  %v5434_v16 = vld [vmem:[%s6219_s25 + $0x400] sm:$0xff]   ;;  %v3635_v18 = vshrl.u32 %v4564_v9, 16 }
 0x151   : > { %5095 = vmatprep.subr.bf16.mxu1 %v5403_v20  ;;  %2729 = vmatprep.mubr.bf16.mxu0 %v5406_v4  ;;  %v4605_v12 = vcombine.high %v4564_v9, %v4565_v10  ;;  %v5435_v20 = vld [vmem:[%s6219_s25 + $0x448] sm:$0xff]   ;;  %v3638_v21 = vshll.u32 %v4564_v9, 16  ;;  %v3649_v4 = vshrl.u32 %v4565_v10, 16  ;;  %v5456_v0 = vld [vmem:[%s6257_s5 + $0x104] ss:$16 sps:$4 sm:$0xff]  }
 0x152   : > { %3091 = vmatprep.mubr.bf16.mxu1 %v4545_v31  ;;  %v3637_v24 = vrot.slane %v3635_v18, 4  ;;  %v5461_v10 = vld [vmem:[%s6219_s25 + $0x430] sm:$0xff]   ;;  %v4701_v18 = vld [vmem:[%s6257_s5 + $0x58] sm:$0x11] }
 0x153   : > { %5056 = vmatpush3.bf16.msra.mxu0 %v5404_v8  ;;  %v4566_v8 = vld [vmem:[%s6257_s5 + $0x30] sm:$0xff]  ;;  %v3651_v36 = vrot.slane %v3649_v4, 4  ;;  %v4697_v4 = vld [vmem:[%s6257_s5 + $0x38] sm:$0x11] }
 0x154   : > { %5057 = vmatprep.subr.bf16.mxu0 %v5409_v29  ;;  %5096 = vmatpush3.bf16.msra.mxu1 %v5405_v23  ;;  %v4607_v23 = vcombine.high %v4566_v8, %v6548_v22  ;;  %v4606_v25 = vcombine.low %v4566_v8, %v6548_v22  ;;  %v5444_v29 = vld [vmem:[%s6219_s25 + $0x458] sm:$0xff]   ;;  %v3663_v30 = vshrl.u32 %v4566_v8, 16  ;;  %v3666_v31 = vshll.u32 %v4566_v8, 16  ;;  %v4703_v8 = vld [vmem:[%s6257_s5 + $0x68] sm:$0x11] }
 0x155   : > { %5097 = vmatprep.subr.bf16.mxu1 %v5410_v33  ;;  %v5441_v33 = vld [vmem:[%s6257_s5 + $0xc0] ss:$16 sps:$4 sm:$0xff]  }
 0x156   : > { %2730 = vmatmul.mubr.bf16.gmra.mrb[40].mxu0 %v5408_v28  ;;  %v3640_v28 = vrot.slane %v3638_v21, 5  ;;  %v3665_v40 = vrot.slane %v3663_v30, 4  ;;  %v3668_v56 = vrot.slane %v3666_v31, 5 }
 0x157   : > { %5058 = vmatpush3.bf16.msra.mxu0 %v5411_v62  ;;  %3092 = vmatmul.mubr.bf16.gmra.mrb[40].mxu1 %v4544_v41  ;;  %v4569_v62 = vld [vmem:[%s6257_s5 + $0x60] sm:$0xff]  ;;  %v3691_v41 = vshrl.u32 %v4568_v34, 16 }
 0x158   : > { %5098 = vmatpush3.bf16.msra.mxu1 %v5412_v35  ;;  %5059 = vmatprep.subr.bf16.mxu0 %v5413_v39  ;;  %v3654_v35 = vrot.slane %v3652_v26, 5  ;;  %v4609_v38 = vcombine.high %v4568_v34, %v4569_v62  ;;  %v5447_v39 = vld [vmem:[%s6257_s5 + $0xe4] ss:$16 sps:$4 sm:$0xff]   ;;  %v4608_v46 = vcombine.low %v4568_v34, %v4569_v62  ;;  %v3705_v54 = vshrl.u32 %v4569_v62, 16 }
 0x159   : > { %5099 = vmatprep.subr.bf16.mxu1 %v5414_v42  ;;  %2737 = vmatprep.mubr.bf16.mxu0 %v5417_v47  ;;  %v3677_v42 = vshrl.u32 %v6548_v22, 16  ;;  %v5452_v47 = vld [vmem:[%s6219_s25 + $0x420] sm:$0xff]   ;;  %v3693_v50 = vrot.slane %v3691_v41, 4 }
 0x15a   : > { %3099 = vmatprep.mubr.bf16.mxu1 %v4547_v5  ;;  %v3655_v48 = vor.u32 %v3654_v35, %v3651_v36  ;;  %v3707_v5 = vrot.slane %v3705_v54, 4  ;;  %v5463_v36 = vld [vmem:[%s6219_s25 + $0x438] sm:$0xff]  }
 0x15b   : > { %5060 = vmatpush3.bf16.msra.mxu0 %v5415_v44  ;;  %v3641_v44 = vor.u32 %v3640_v28, %v3637_v24  ;;  %v3714_v24 = vshll.u32 %v4703_v8, 16  ;;  %v3672_v28 = vshll.u32 %v4697_v4, 16 }
 0x15c   : > { %5100 = vmatpush3.bf16.msra.mxu1 %v5416_v45  ;;  %5061 = vmatprep.subr.bf16.mxu0 %v5420_v55  ;;  %v3694_v45 = vshll.u32 %v4568_v34, 16  ;;  %v3708_v55 = vshll.u32 %v4569_v62, 16  ;;  %v3719_v62 = vshrl.u32 %v6566_v52, 16 }
 0x15d   : > { %5101 = vmatprep.subr.bf16.mxu1 %v5421_v57  ;;  %v5450_v57 = vld [vmem:[%s6257_s5 + $0xe0] ss:$16 sps:$4 sm:$0xff]   ;;  %v3716_v30 = vrot.slane %v3714_v24, 5 }
 0x15e   : > { %2738 = vmatmul.mubr.bf16.gmra.mrb[44].mxu0 %v5419_v53  ;;  %v3696_v51 = vrot.slane %v3694_v45, 5  ;;  %v6569_v53 = vld [vmem:[%s6257_s5 + $0x80] sm:$0xff]  ;;  %v3710_v9 = vrot.slane %v3708_v55, 5 }
 0x15f   : > { %5062 = vmatpush3.bf16.msra.mxu0 %v5422_v60  ;;  %3100 = vmatmul.mubr.bf16.gmra.mrb[44].mxu1 %v4546_v6  ;;  %v4611_v59 = vcombine.high %v6566_v52, %v6569_v53  ;;  %v3642_v60 = vrot.slane %v3641_v44, 4  ;;  %v3669_v6 = vor.u32 %v3668_v56, %v3665_v40  ;;  %v4705_v40 = vld [vmem:[%s6257_s5 + $0x78] sm:$0x11]  ;;  %v3736_v55 = vshll.u32 %v6569_v53, 16 }
 0x160   : > { %5102 = vmatpush3.bf16.msra.mxu1 %v5423_v63  ;;  %5063 = vmatprep.subr.bf16.mxu0 %v5424_v1  ;;  %v3697_v61 = vor.u32 %v3696_v51, %v3693_v50  ;;  %v3680_v63 = vshll.u32 %v6548_v22, 16  ;;  %v3656_v1 = vrot.slane %v3655_v48, 4  ;;  %v3700_v22 = vshll.u32 %v4701_v18, 16 }
 0x161   : > { %5103 = vmatprep.subr.bf16.mxu1 %v5425_v32  ;;  %3326 = vmatprep.mubr.bf16.mxu0 %v4605_v12  ;;  %v5454_v32 = vld [vmem:[%s6219_s25 + $0x428] sm:$0xff]   ;;  %v3670_v12 = vrot.slane %v3669_v6, 4  ;;  %v3721_v48 = vrot.slane %v3719_v62, 4  ;;  %v3722_v50 = vshll.u32 %v6566_v52, 16  ;;  %v3733_v51 = vshrl.u32 %v6569_v53, 16 }
 0x162   : > { %3577 = vmatprep.mubr.bf16.mxu1 %v5432_v13  ;;  %v4610_v13 = vcombine.low %v6566_v52, %v6569_v53 }
 0x163   : > { %5064 = vmatpush3.bf16.msra.mxu0 %v5426_v7  ;;  %v3679_v7 = vrot.slane %v3677_v42, 4 }
 0x164   : > { %5104 = vmatpush3.bf16.msra.mxu1 %v5427_v58  ;;  %5129 = vmatprep.subr.bf16.mxu0 %v5433_v15  ;;  %v5460_v58 = vld [vmem:[%s6219_s25 + $0x470] sm:$0xff]  }
 0x165   : > { %5169 = vmatprep.subr.bf16.mxu1 %v5433_v15  ;;  %v4693_v15 = vld [vmem:[%s6257_s5 + $0x18] sm:$0x11] }
 0x166   : > { %3327 = vmatmul.mubr.bf16.vlgmr.msra.gmra.mrb[48].mxu0 %v4604_v11  ;;  %v3698_v11 = vrot.slane %v3697_v61, 4  ;;  %v3738_v61 = vrot.slane %v3736_v55, 5 }
 0x167   : > { %5130 = vmatpush3.bf16.msra.mxu0 %v5434_v16  ;;  %3578 = vmatmul.mubr.bf16.vlgmr.msra.gmra.mrb[48].mxu1 %v5430_v14  ;;  %v5462_v14 = vld [vmem:[%s6219_s25 + $0x478] sm:$0xff]   ;;  %s4775_s25 = sshll.u32 (%p5623_p9), %s4051_s24, 2 }
 0x168   : > { %5131 = vmatprep.subr.bf16.mxu0 %v5435_v20  ;;  %5177 = vmatpush3.bf16.msra.mxu1 %v5434_v16  ;;  %v4695_v16 = vld [vmem:[%s6257_s5 + $0x28] sm:$0x11]  ;;  %s4053_s26 = scalar_lea.vmem (%p5623_p9), %s6681_s3, %s4775_s25 }
 0x169   : > { %5170 = vmatprep.subr.bf16.mxu1 %v5435_v20  ;;  %3334 = vmatprep.mubr.bf16.mxu0 %v4607_v23  ;;  %v3711_v20 = vor.u32 %v3710_v9, %v3707_v5  ;;  %v3658_v21 = vshll.u32 %v4695_v16, 16  ;;  %v3682_v23 = vrot.slane %v3680_v63, 5 }
 0x16a   : > { %3585 = vmatprep.mubr.bf16.mxu1 %v5438_v3 }
 0x16b   : > { %5132 = vmatpush3.bf16.msra.mxu0 %v5436_v19  ;;  %v3712_v3 = vrot.slane %v3711_v20, 4  ;;  %v3660_v26 = vrot.slane %v3658_v21, 5 }
 0x16c   : > { %5133 = vmatprep.subr.bf16.mxu0 %v5442_v2  ;;  %5178 = vmatpush3.bf16.msra.mxu1 %v5436_v19  ;;  %v3644_v19 = vshll.u32 %v4693_v15, 16 }
 0x16d   : > { %5171 = vmatprep.subr.bf16.mxu1 %v5442_v2  ;;  %v3717_v41 = vsel %vm6326_vm2, %v3712_v3, %v3716_v30 }
 0x16e   : > { %3335 = vmatmul.mubr.bf16.gmra.mrb[52].mxu0 %v4606_v25  ;;  %v4699_v25 = vld [vmem:[%s6257_s5 + $0x48] sm:$0x11]  ;;  %v3646_v2 = vrot.slane %v3644_v19, 5 }
 0x16f   : > { %5134 = vmatpush3.bf16.msra.mxu0 %v5443_v27  ;;  %3342 = vmatprep.mubr.bf16.mxu0 %v4609_v38  ;;  %v3686_v34 = vshll.u32 %v4699_v25, 16 }
 0x170   : > { %5135 = vmatprep.subr.bf16.mxu0 %v5444_v29  ;;  %3586 = vmatmul.mubr.bf16.gmra.mrb[52].mxu1 %v5441_v33  ;;  %v3683_v33 = vor.u32 %v3682_v23, %v3679_v7  ;;  %v3647_v35 = vsel %vm6326_vm2, %v3642_v60, %v3646_v2  ;;  %v3735_v60 = vrot.slane %v3733_v51, 4 }
 0x171   : > { %5179 = vmatpush3.bf16.msra.mxu1 %v5443_v27  ;;  %3593 = vmatprep.mubr.bf16.mxu1 %v5447_v39  ;;  %v3702_v27 = vrot.slane %v3700_v22, 5  ;;  %v3674_v39 = vrot.slane %v3672_v28, 5 }
 0x172   : > { %5172 = vmatprep.subr.bf16.mxu1 %v5444_v29  ;;  %v5459_v29 = vld [vmem:[%s6257_s5 + $0x100] ss:$16 sps:$4 sm:$0xff]   ;;  %v3684_v42 = vrot.slane %v3683_v33, 4 }
 0x173   : > { %5136 = vmatpush3.bf16.msra.mxu0 %v5445_v37  ;;  %v3703_v38 = vsel %vm6326_vm2, %v3698_v11, %v3702_v27 }
 0x174   : > { %5137 = vmatprep.subr.bf16.mxu0 %v5451_v43  ;;  %v4745_v45 = vcombine.high %v3703_v38, %v3717_v41  ;;  %v4744_v63 = vcombine.low %v3703_v38, %v3717_v41 }
 0x175   : > { %5180 = vmatpush3.bf16.msra.mxu1 %v5445_v37  ;;  %v3661_v37 = vsel %vm6326_vm2, %v3656_v1, %v3660_v26  ;;  %v3739_v1 = vor.u32 %v3738_v61, %v3735_v60 }
 0x176   : > { %3343 = vmatmul.mubr.bf16.gmra.mrb[56].mxu0 %v4608_v46  ;;  %5173 = vmatprep.subr.bf16.mxu1 %v5451_v43  ;;  %v4741_v31 = vcombine.high %v3647_v35, %v3661_v37  ;;  %v4707_v43 = vld [vmem:[%s6257_s5 + $0x88] sm:$0x11]  ;;  %v4740_v44 = vcombine.low %v3647_v35, %v3661_v37  ;;  %v3675_v46 = vsel %vm6326_vm2, %v3670_v12, %v3674_v39 }
 0x177   : > { %5138 = vmatpush3.bf16.msra.mxu0 %v5452_v47  ;;  %3350 = vmatprep.mubr.bf16.mxu0 %v4611_v59  ;;  %v3742_v56 = vshll.u32 %v4707_v43, 16  ;;  %v3724_v59 = vrot.slane %v3722_v50, 5 }
 0x178   : > { %5139 = vmatprep.subr.bf16.mxu0 %v5453_v49  ;;  %3594 = vmatmul.mubr.bf16.gmra.mrb[56].mxu1 %v5450_v57 }
 0x179   : > { %5181 = vmatpush3.bf16.msra.mxu1 %v5452_v47  ;;  %3601 = vmatprep.mubr.bf16.mxu1 %v5456_v0  ;;  %v3688_v47 = vrot.slane %v3686_v34, 5  ;;  %v3725_v52 = vor.u32 %v3724_v59, %v3721_v48  ;;  %v3744_v5 = vrot.slane %v3742_v56, 5 }
 0x17a   : > { %5174 = vmatprep.subr.bf16.mxu1 %v5453_v49  ;;  %v3728_v49 = vshll.u32 %v4705_v40, 16 }
 0x17b   : > { %5140 = vmatpush3.bf16.msra.mxu0 %v5454_v32  ;;  %v3689_v54 = vsel %vm6326_vm2, %v3684_v42, %v3688_v47  ;;  %v3726_v6 = vrot.slane %v3725_v52, 4 }
 0x17c   : > { %5141 = vmatprep.subr.bf16.mxu0 %v5460_v58  ;;  %v4743_v57 = vcombine.high %v3675_v46, %v3689_v54  ;;  %v3730_v0 = vrot.slane %v3728_v49, 5  ;;  %v4742_v7 = vcombine.low %v3675_v46, %v3689_v54 }
 0x17d   : > { %5182 = vmatpush3.bf16.msra.mxu1 %v5454_v32  ;;  %v3740_v32 = vrot.slane %v3739_v1, 4 }
 0x17e   : > { %3351 = vmatmul.mubr.bf16.gmra.mrb[60].mxu0 %v4610_v13  ;;  %5175 = vmatprep.subr.bf16.mxu1 %v5460_v58  ;;  %v3731_v53 = vsel %vm6326_vm2, %v3726_v6, %v3730_v0 }
 0x17f   : > { %5142 = vmatpush3.bf16.msra.mxu0 %v5461_v10  ;;  %3939 = vmatprep.mubr.bf16.mxu0 %v4741_v31  ;;  %v3745_v58 = vsel %vm6326_vm2, %v3740_v32, %v3744_v5 }
 0x180   : > { %5143 = vmatprep.subr.bf16.mxu0 %v5462_v14  ;;  %3602 = vmatmul.mubr.bf16.gmra.mrb[60].mxu1 %v5459_v29  ;;  %v4747_v9 = vcombine.high %v3731_v53, %v3745_v58 }
 0x181   : > { %5183 = vmatpush3.bf16.msra.mxu1 %v5461_v10  ;;  %3955 = vmatprep.mubr.bf16.mxu1 %v4745_v45  ;;  %v4746_v10 = vcombine.low %v3731_v53, %v3745_v58 }
 0x182   : > { %5176 = vmatprep.subr.bf16.mxu1 %v5462_v14 }
 0x183   : > { %5144 = vmatpush3.bf16.msra.mxu0 %v5463_v36 }
 0x185   : > { %5184 = vmatpush3.bf16.msra.mxu1 %v5463_v36 }
 0x186   : > { %3940 = vmatmul.mubr.bf16.vlgmr.msra.gmra.mrb[64].mxu0 %v4740_v44 }
 0x187   : > { %3947 = vmatprep.mubr.bf16.mxu0 %v4743_v57 }
 0x188   : > { %3956 = vmatmul.mubr.bf16.vlgmr.msra.gmra.mrb[64].mxu1 %v4744_v63 }
 0x189   : > { %3963 = vmatprep.mubr.bf16.mxu1 %v4747_v9 }
 0x18e   : > { %3948 = vmatmul.mubr.bf16.gmra.mrb[68].mxu0 %v4742_v7 }
 0x190   : > { %3964 = vmatmul.mubr.bf16.gmra.mrb[68].mxu1 %v4746_v10 }
 0x1d9   : > { %v4825_v11 = vpop.f32.mrb[0].mxu0 }
 0x1da   : > { %v4865_v12 = vpop.f32.mrb[0].mxu1  ;;  %v4826_v13 = vpop.f32.mrb[1].mxu0 }
 0x1db   : > { %v4827_v14 = vadd.f32 %v4826_v13, %v4825_v11  ;;  %v4866_v15 = vpop.f32.mrb[1].mxu1  ;;  %v4828_v16 = vpop.f32.mrb[2].mxu0 }
 0x1dc   : > { %v4867_v18 = vadd.f32 %v4866_v15, %v4865_v12  ;;  %v4868_v20 = vpop.f32.mrb[2].mxu1  ;;  %v4829_v19 = vpop.f32.mrb[3].mxu0 }
 0x1dd   : > { %v4830_v21 = vadd.f32 %v4829_v19, %v4828_v16  ;;  %v4869_v8 = vpop.f32.mrb[3].mxu1 }
 0x1de   : > { %v1857_v22 = vadd.f32 %v4867_v18, %v4827_v14  ;;  %v4870_v23 = vadd.f32 %v4869_v8, %v4868_v20 }
 0x1e0   : > { %v1860_v17 = vadd.f32 %v4870_v23, %v4830_v21 }
 0x1e1   : > { %v4831_v3 = vpop.f32.mrb[4].mxu0 }
 0x1e2   : > { %v4832_v24 = vpop.f32.mrb[5].mxu0  ;;  %v4871_v4 = vpop.f32.mrb[4].mxu1 }
 0x1e3   : > { %v4833_v25 = vadd.f32 %v4832_v24, %v4831_v3  ;;  %v4834_v2 = vpop.f32.mrb[6].mxu0  ;;  %v4872_v26 = vpop.f32.mrb[5].mxu1 }
 0x1e4   : > { %v4835_v27 = vpop.f32.mrb[7].mxu0  ;;  %v4873_v28 = vadd.f32 %v4872_v26, %v4871_v4  ;;  %v4874_v29 = vpop.f32.mrb[6].mxu1 }
 0x1e5   : > { %v4836_v30 = vadd.f32 %v4835_v27, %v4834_v2  ;;  %v4875_v33 = vpop.f32.mrb[7].mxu1 }
 0x1e6   : > { %v1865_v34 = vadd.f32 %v4873_v28, %v4833_v25  ;;  %v4876_v62 = vadd.f32 %v4875_v33, %v4874_v29 }
 0x1e8   : > { %v1868_v36 = vadd.f32 %v4876_v62, %v4836_v30 }
 0x1e9   : > { %v4837_v35 = vpop.f32.mrb[8].mxu0 }
 0x1ea   : > { %v4838_v37 = vpop.f32.mrb[9].mxu0  ;;  %v4877_v38 = vpop.f32.mrb[8].mxu1 }
 0x1eb   : > { %v4839_v39 = vadd.f32 %v4838_v37, %v4837_v35  ;;  %v4840_v40 = vpop.f32.mrb[10].mxu0  ;;  %v4878_v31 = vpop.f32.mrb[9].mxu1 }
 0x1ec   : > { %v4841_v41 = vpop.f32.mrb[11].mxu0  ;;  %v4879_v42 = vadd.f32 %v4878_v31, %v4877_v38  ;;  %v4880_v43 = vpop.f32.mrb[10].mxu1 }
 0x1ed   : > { %v4842_v44 = vadd.f32 %v4841_v41, %v4840_v40  ;;  %v4881_v45 = vpop.f32.mrb[11].mxu1 }
 0x1ee   : > { %v1873_v46 = vadd.f32 %v4879_v42, %v4839_v39  ;;  %v4882_v47 = vadd.f32 %v4881_v45, %v4880_v43 }
 0x1f0   : > { %v1876_v48 = vadd.f32 %v4882_v47, %v4842_v44 }
 0x1f1   : > { %v4843_v50 = vpop.f32.mrb[12].mxu0 }
 0x1f2   : > { %v4844_v49 = vpop.f32.mrb[13].mxu0  ;;  %v4883_v51 = vpop.f32.mrb[12].mxu1 }
 0x1f3   : > { %v4845_v54 = vadd.f32 %v4844_v49, %v4843_v50  ;;  %v4846_v55 = vpop.f32.mrb[14].mxu0  ;;  %v4884_v56 = vpop.f32.mrb[13].mxu1 }
 0x1f4   : > { %v4847_v57 = vpop.f32.mrb[15].mxu0  ;;  %v4885_v59 = vadd.f32 %v4884_v56, %v4883_v51  ;;  %v4886_v60 = vpop.f32.mrb[14].mxu1 }
 0x1f5   : > { %v4848_v61 = vadd.f32 %v4847_v57, %v4846_v55  ;;  %v4887_v63 = vpop.f32.mrb[15].mxu1 }
 0x1f6   : > { %v1881_v52 = vadd.f32 %v4885_v59, %v4845_v54  ;;  %v4888_v0 = vadd.f32 %v4887_v63, %v4886_v60 }
 0x1f8   : > { %v6612_v1 = vadd.f32 %v4888_v0, %v4848_v61 }
 0x1f9   : > { %v4905_v58 = vpop.f32.mrb[16].mxu0 }
 0x1fa   : > { %v4945_v5 = vpop.f32.mrb[16].mxu1  ;;  %v4906_v10 = vpop.f32.mrb[17].mxu0 }
 0x1fb   : > { %v4946_v6 = vpop.f32.mrb[17].mxu1  ;;  %v4907_v11 = vadd.f32 %v4906_v10, %v4905_v58  ;;  %v4908_v12 = vpop.f32.mrb[18].mxu0 }
 0x1fc   : > { %v4947_v32 = vadd.f32 %v4946_v6, %v4945_v5  ;;  %v4948_v53 = vpop.f32.mrb[18].mxu1  ;;  %v4909_v13 = vpop.f32.mrb[19].mxu0 }
 0x1fd   : > { %v4949_v7 = vpop.f32.mrb[19].mxu1  ;;  %v2244_v14 = vadd.f32 %v4907_v11, %v1857_v22  ;;  %v4910_v15 = vadd.f32 %v4909_v13, %v4908_v12 }
 0x1fe   : > { %v4950_v9 = vadd.f32 %v4949_v7, %v4948_v53 }
 0x1ff   : > { %v2495_v18 = vadd.f32 %v4947_v32, %v2244_v14  ;;  %v2245_v20 = vadd.f32 %v4910_v15, %v1860_v17 }
 0x201   : > { %v2496_v23 = vadd.f32 %v4950_v9, %v2245_v20  ;;  %v4911_v24 = vpop.f32.mrb[20].mxu0 }
 0x202   : > { %v4951_v16 = vpop.f32.mrb[20].mxu1  ;;  %v4912_v25 = vpop.f32.mrb[21].mxu0 }
 0x203   : > { %v4952_v19 = vpop.f32.mrb[21].mxu1  ;;  %v4913_v2 = vadd.f32 %v4912_v25, %v4911_v24  ;;  %v4914_v26 = vpop.f32.mrb[22].mxu0 }
 0x204   : > { %v4953_v21 = vadd.f32 %v4952_v19, %v4951_v16  ;;  %v4954_v8 = vpop.f32.mrb[22].mxu1  ;;  %v4915_v27 = vpop.f32.mrb[23].mxu0 }
 0x205   : > { %v4955_v3 = vpop.f32.mrb[23].mxu1  ;;  %v2246_v28 = vadd.f32 %v4913_v2, %v1865_v34  ;;  %v4916_v29 = vadd.f32 %v4915_v27, %v4914_v26 }
 0x206   : > { %v4956_v4 = vadd.f32 %v4955_v3, %v4954_v8 }
 0x207   : > { %v2497_v33 = vadd.f32 %v4953_v21, %v2246_v28  ;;  %v2247_v22 = vadd.f32 %v4916_v29, %v1868_v36 }
 0x209   : > { %v2498_v17 = vadd.f32 %v4956_v4, %v2247_v22  ;;  %v4917_v40 = vpop.f32.mrb[24].mxu0 }
 0x20a   : > { %v4957_v30 = vpop.f32.mrb[24].mxu1  ;;  %v4918_v31 = vpop.f32.mrb[25].mxu0 }
 0x20b   : > { %v4958_v62 = vpop.f32.mrb[25].mxu1  ;;  %v4919_v41 = vadd.f32 %v4918_v31, %v4917_v40  ;;  %v4920_v42 = vpop.f32.mrb[26].mxu0 }
 0x20c   : > { %v4959_v35 = vadd.f32 %v4958_v62, %v4957_v30  ;;  %v4960_v37 = vpop.f32.mrb[26].mxu1  ;;  %v4921_v43 = vpop.f32.mrb[27].mxu0 }
 0x20d   : > { %v4961_v38 = vpop.f32.mrb[27].mxu1  ;;  %v2248_v44 = vadd.f32 %v4919_v41, %v1873_v46  ;;  %v4922_v45 = vadd.f32 %v4921_v43, %v4920_v42 }
 0x20e   : > { %v4962_v39 = vadd.f32 %v4961_v38, %v4960_v37 }
 0x20f   : > { %v2499_v50 = vadd.f32 %v4959_v35, %v2248_v44  ;;  %v2249_v34 = vadd.f32 %v4922_v45, %v1876_v48 }
 0x211   : > { %v2500_v36 = vadd.f32 %v4962_v39, %v2249_v34  ;;  %v4923_v56 = vpop.f32.mrb[28].mxu0 }
 0x212   : > { %v4963_v47 = vpop.f32.mrb[28].mxu1  ;;  %v4924_v59 = vpop.f32.mrb[29].mxu0 }
 0x213   : > { %v4964_v49 = vpop.f32.mrb[29].mxu1  ;;  %v4925_v60 = vadd.f32 %v4924_v59, %v4923_v56  ;;  %v4926_v61 = vpop.f32.mrb[30].mxu0 }
 0x214   : > { %v4965_v51 = vadd.f32 %v4964_v49, %v4963_v47  ;;  %v4966_v54 = vpop.f32.mrb[30].mxu1  ;;  %v4927_v63 = vpop.f32.mrb[31].mxu0 }
 0x215   : > { %v4967_v55 = vpop.f32.mrb[31].mxu1  ;;  %v2250_v0 = vadd.f32 %v4925_v60, %v1881_v52  ;;  %v4928_v5 = vadd.f32 %v4927_v63, %v4926_v61 }
 0x216   : > { %v4968_v57 = vadd.f32 %v4967_v55, %v4966_v54 }
 0x217   : > { %v2501_v6 = vadd.f32 %v4965_v51, %v2250_v0  ;;  %v2251_v46 = vadd.f32 %v4928_v5, %v6612_v1 }
 0x219   : > { %v2502_v32 = vadd.f32 %v4968_v57, %v2251_v46  ;;  %v4985_v53 = vpop.f32.mrb[32].mxu0 }
 0x21a   : > { %v4986_v7 = vpop.f32.mrb[33].mxu0  ;;  %v5025_v9 = vpop.f32.mrb[32].mxu1 }
 0x21b   : > { %v4987_v48 = vadd.f32 %v4986_v7, %v4985_v53  ;;  %v4988_v58 = vpop.f32.mrb[34].mxu0  ;;  %v5026_v12 = vpop.f32.mrb[33].mxu1 }
 0x21c   : > { %v4989_v10 = vpop.f32.mrb[35].mxu0  ;;  %v5027_v14 = vadd.f32 %v5026_v12, %v5025_v9  ;;  %v5028_v15 = vpop.f32.mrb[34].mxu1 }
 0x21d   : > { %v2746_v11 = vadd.f32 %v4987_v48, %v2495_v18  ;;  %v4990_v13 = vadd.f32 %v4989_v10, %v4988_v58  ;;  %v5029_v20 = vpop.f32.mrb[35].mxu1 }
 0x21e   : > { %v5030_v52 = vadd.f32 %v5029_v20, %v5028_v15 }
 0x21f   : > { %v2747_v16 = vadd.f32 %v4990_v13, %v2496_v23  ;;  %v3108_v19 = vadd.f32 %v5027_v14, %v2746_v11 }
 0x221   : > { %v4991_v21 = vpop.f32.mrb[36].mxu0  ;;  %v3109_v8 = vadd.f32 %v5030_v52, %v2747_v16 }
 0x222   : > { %v4992_v3 = vpop.f32.mrb[37].mxu0  ;;  %v5031_v25 = vpop.f32.mrb[36].mxu1 }
 0x223   : > { %v4993_v1 = vadd.f32 %v4992_v3, %v4991_v21  ;;  %v4994_v24 = vpop.f32.mrb[38].mxu0  ;;  %v5032_v27 = vpop.f32.mrb[37].mxu1 }
 0x224   : > { %v4995_v4 = vpop.f32.mrb[39].mxu0  ;;  %v5033_v28 = vadd.f32 %v5032_v27, %v5031_v25  ;;  %v5034_v18 = vpop.f32.mrb[38].mxu1 }
 0x225   : > { %v2748_v2 = vadd.f32 %v4993_v1, %v2497_v33  ;;  %v4996_v26 = vadd.f32 %v4995_v4, %v4994_v24  ;;  %v5035_v30 = vpop.f32.mrb[39].mxu1 }
 0x226   : > { %v5036_v62 = vadd.f32 %v5035_v30, %v5034_v18 }
 0x227   : > { %v2749_v29 = vadd.f32 %v4996_v26, %v2498_v17  ;;  %v3110_v22 = vadd.f32 %v5033_v28, %v2748_v2 }
 0x229   : > { %v4997_v23 = vpop.f32.mrb[40].mxu0  ;;  %v3111_v37 = vadd.f32 %v5036_v62, %v2749_v29 }
 0x22a   : > { %v4998_v35 = vpop.f32.mrb[41].mxu0  ;;  %v5037_v43 = vpop.f32.mrb[40].mxu1 }
 0x22b   : > { %v4999_v38 = vadd.f32 %v4998_v35, %v4997_v23  ;;  %v5000_v39 = vpop.f32.mrb[42].mxu0  ;;  %v5038_v44 = vpop.f32.mrb[41].mxu1 }
 0x22c   : > { %v5001_v40 = vpop.f32.mrb[43].mxu0  ;;  %v5039_v33 = vadd.f32 %v5038_v44, %v5037_v43  ;;  %v5040_v45 = vpop.f32.mrb[42].mxu1 }
 0x22d   : > { %v2750_v31 = vadd.f32 %v4999_v38, %v2499_v50  ;;  %v5002_v41 = vadd.f32 %v5001_v40, %v5000_v39  ;;  %v5041_v47 = vpop.f32.mrb[43].mxu1 }
 0x22e   : > { %v5042_v17 = vadd.f32 %v5041_v47, %v5040_v45 }
 0x22f   : > { %v2751_v42 = vadd.f32 %v5002_v41, %v2500_v36  ;;  %v3112_v49 = vadd.f32 %v5039_v33, %v2750_v31 }
 0x231   : > { %v5003_v34 = vpop.f32.mrb[44].mxu0  ;;  %v3113_v56 = vadd.f32 %v5042_v17, %v2751_v42 }
 0x232   : > { %v5004_v51 = vpop.f32.mrb[45].mxu0  ;;  %v5043_v63 = vpop.f32.mrb[44].mxu1 }
 0x233   : > { %v5005_v54 = vadd.f32 %v5004_v51, %v5003_v34  ;;  %v5006_v55 = vpop.f32.mrb[46].mxu0  ;;  %v5044_v50 = vpop.f32.mrb[45].mxu1 }
 0x234   : > { %v5007_v57 = vpop.f32.mrb[47].mxu0  ;;  %v5045_v0 = vadd.f32 %v5044_v50, %v5043_v63  ;;  %v5046_v36 = vpop.f32.mrb[46].mxu1 }
 0x235   : > { %v2752_v59 = vadd.f32 %v5005_v54, %v2501_v6  ;;  %v5008_v60 = vadd.f32 %v5007_v57, %v5006_v55  ;;  %v5047_v5 = vpop.f32.mrb[47].mxu1 }
 0x236   : > { %v5048_v53 = vadd.f32 %v5047_v5, %v5046_v36 }
 0x237   : > { %v2753_v61 = vadd.f32 %v5008_v60, %v2502_v32  ;;  %v3114_v46 = vadd.f32 %v5045_v0, %v2752_v59 }
 0x239   : > { %v5065_v7 = vpop.f32.mrb[48].mxu0  ;;  %v3115_v58 = vadd.f32 %v5048_v53, %v2753_v61 }
 0x23a   : > { %v5066_v48 = vpop.f32.mrb[49].mxu0  ;;  %v5105_v12 = vpop.f32.mrb[48].mxu1 }
 0x23b   : > { %v5067_v9 = vadd.f32 %v5066_v48, %v5065_v7  ;;  %v5068_v10 = vpop.f32.mrb[50].mxu0  ;;  %v5106_v15 = vpop.f32.mrb[49].mxu1 }
 0x23c   : > { %v5069_v11 = vpop.f32.mrb[51].mxu0  ;;  %v5107_v6 = vadd.f32 %v5106_v15, %v5105_v12  ;;  %v5108_v16 = vpop.f32.mrb[50].mxu1 }
 0x23d   : > { %v3359_v13 = vadd.f32 %v5067_v9, %v3108_v19  ;;  %v5070_v14 = vadd.f32 %v5069_v11, %v5068_v10  ;;  %v5109_v20 = vpop.f32.mrb[51].mxu1 }
 0x23e   : > { %v5110_v21 = vadd.f32 %v5109_v20, %v5108_v16 }
 0x23f   : > { %v3360_v32 = vadd.f32 %v5070_v14, %v3109_v8  ;;  %v3610_v52 = vadd.f32 %v5107_v6, %v3359_v13 }
 0x241   : > { %v5071_v3 = vpop.f32.mrb[52].mxu0  ;;  %v6615_v24 = vadd.f32 %v5110_v21, %v3360_v32 }
 0x242   : > { %v5072_v1 = vpop.f32.mrb[53].mxu0 }
 0x243   : > { %v5073_v4 = vadd.f32 %v5072_v1, %v5071_v3  ;;  %v5074_v25 = vpop.f32.mrb[54].mxu0  ;;  %v5111_v26 = vpop.f32.mrb[52].mxu1 }
 0x244   : > { %v5075_v2 = vpop.f32.mrb[55].mxu0  ;;  %v5112_v18 = vpop.f32.mrb[53].mxu1 }
 0x245   : > { %v3361_v27 = vadd.f32 %v5073_v4, %v3110_v22  ;;  %v5076_v28 = vadd.f32 %v5075_v2, %v5074_v25  ;;  %v5113_v19 = vadd.f32 %v5112_v18, %v5111_v26  ;;  %v5114_v29 = vpop.f32.mrb[54].mxu1 }
 0x246   : > { %v5115_v62 = vpop.f32.mrb[55].mxu1 }
 0x247   : > { %v3362_v30 = vadd.f32 %v5076_v28, %v3111_v37  ;;  %v6617_v23 = vadd.f32 %v5113_v19, %v3361_v27  ;;  %v5116_v8 = vadd.f32 %v5115_v62, %v5114_v29 }
 0x249   : > { %v5077_v35 = vpop.f32.mrb[56].mxu0  ;;  %v6619_v39 = vadd.f32 %v5116_v8, %v3362_v30 }
 0x24a   : > { %v5078_v38 = vpop.f32.mrb[57].mxu0 }
 0x24b   : > { %v5079_v40 = vadd.f32 %v5078_v38, %v5077_v35  ;;  %v5080_v31 = vpop.f32.mrb[58].mxu0  ;;  %v5117_v42 = vpop.f32.mrb[56].mxu1 }
 0x24c   : > { %v5081_v41 = vpop.f32.mrb[59].mxu0  ;;  %v5118_v44 = vpop.f32.mrb[57].mxu1 }
 0x24d   : > { %v3363_v43 = vadd.f32 %v5079_v40, %v3112_v49  ;;  %v5082_v22 = vadd.f32 %v5081_v41, %v5080_v31  ;;  %v5119_v33 = vadd.f32 %v5118_v44, %v5117_v42  ;;  %v5120_v45 = vpop.f32.mrb[58].mxu1 }
 0x24e   : > { %v5121_v47 = vpop.f32.mrb[59].mxu1 }
 0x24f   : > { %v3364_v37 = vadd.f32 %v5082_v22, %v3113_v56  ;;  %v3614_v34 = vadd.f32 %v5119_v33, %v3363_v43  ;;  %v5122_v17 = vadd.f32 %v5121_v47, %v5120_v45 }
 0x251   : > { %v5083_v51 = vpop.f32.mrb[60].mxu0  ;;  %v3615_v55 = vadd.f32 %v5122_v17, %v3364_v37 }
 0x252   : > { %v5084_v54 = vpop.f32.mrb[61].mxu0 }
 0x253   : > { %v5085_v57 = vadd.f32 %v5084_v54, %v5083_v51  ;;  %v5086_v59 = vpop.f32.mrb[62].mxu0  ;;  %v5123_v61 = vpop.f32.mrb[60].mxu1 }
 0x254   : > { %v5087_v60 = vpop.f32.mrb[63].mxu0  ;;  %v5124_v49 = vpop.f32.mrb[61].mxu1 }
 0x255   : > { %v3365_v63 = vadd.f32 %v5085_v57, %v3114_v46  ;;  %v5088_v50 = vadd.f32 %v5087_v60, %v5086_v59  ;;  %v5125_v0 = vadd.f32 %v5124_v49, %v5123_v61  ;;  %v5126_v36 = vpop.f32.mrb[62].mxu1  ;;  %v4764_v46 = vld [vmem:[%s1401_s9] ss:$0 sm:$0xff] }
 0x256   : > { %v5127_v56 = vpop.f32.mrb[63].mxu1 }
 0x257   : > { %v3366_v5 = vadd.f32 %v5088_v50, %v3115_v58  ;;  %v3616_v53 = vadd.f32 %v5125_v0, %v3365_v63  ;;  %v5128_v7 = vadd.f32 %v5127_v56, %v5126_v36 }
 0x259   : > { %v5145_v48 = vpop.f32.mrb[64].mxu0  ;;  %v3617_v10 = vadd.f32 %v5128_v7, %v3366_v5 }
 0x25a   : > { %v5146_v9 = vpop.f32.mrb[65].mxu0 }
 0x25b   : > { %v5147_v11 = vadd.f32 %v5146_v9, %v5145_v48  ;;  %v5148_v12 = vpop.f32.mrb[66].mxu0  ;;  %v5157_v14 = vpop.f32.mrb[64].mxu1 }
 0x25c   : > { %v5149_v13 = vpop.f32.mrb[67].mxu0  ;;  %v5158_v16 = vpop.f32.mrb[65].mxu1 }
 0x25d   : > { %v3972_v15 = vadd.f32 %v5147_v11, %v3610_v52  ;;  %v5150_v6 = vadd.f32 %v5149_v13, %v5148_v12  ;;  %v5159_v32 = vadd.f32 %v5158_v16, %v5157_v14  ;;  %v5160_v20 = vpop.f32.mrb[66].mxu1 }
 0x25e   : > { %v5161_v3 = vpop.f32.mrb[67].mxu1 }
 0x25f   : > { %v3987_v58 = vadd.f32 %v4764_v46, %v3972_v15  ;;  %v3973_v21 = vadd.f32 %v5150_v6, %v6615_v24  ;;  %v3976_v1 = vadd.f32 %v5159_v32, %v3614_v34  ;;  %v5162_v25 = vadd.f32 %v5161_v3, %v5160_v20 }
 0x261   : > { %v3988_v4 = vadd.f32 %v4764_v46, %v3973_v21  ;;  %v5151_v2 = vpop.f32.mrb[68].mxu0  ;;  %v3995_v26 = vmax.f32 %v3987_v58, 0.0  ;;  %v3991_v28 = vadd.f32 %v4764_v46, %v3976_v1  ;;  %v3977_v19 = vadd.f32 %v5162_v25, %v3615_v55 }
 0x262   : > { %v5152_v27 = vpop.f32.mrb[69].mxu0 }
 0x263   : > { %v3996_v18 = vmax.f32 %v3988_v4, 0.0  ;;  %v5153_v52 = vadd.f32 %v5152_v27, %v5151_v2  ;;  %v5154_v29 = vpop.f32.mrb[70].mxu0  ;;  %v3992_v8 = vadd.f32 %v4764_v46, %v3977_v19  ;;  %v5163_v35 = vpop.f32.mrb[68].mxu1  ;;  %v3999_v31 = vmax.f32 %v3991_v28, 0.0 }
 0x264   : > { %v5155_v30 = vpop.f32.mrb[71].mxu0  ;;  %v5164_v24 = vpop.f32.mrb[69].mxu1 }
 0x265   : > { %v4789_v62 = vpack.c.bf16 %v3996_v18, %v3995_v26  ;;  %v3974_v38 = vadd.f32 %v5153_v52, %v6617_v23  ;;  %v5156_v40 = vadd.f32 %v5155_v30, %v5154_v29  ;;  %v4000_v41 = vmax.f32 %v3992_v8, 0.0  ;;  %v5166_v43 = vpop.f32.mrb[70].mxu1 }
 0x266   : > { %v5165_v42 = vadd.f32 %v5164_v24, %v5163_v35  ;;  %v5167_v33 = vpop.f32.mrb[71].mxu1 }
 0x267   : > { %4790 = vst [vmem:[%s6629_s12] sm:$0xff] %v4789_v62   ;;  %v3989_v22 = vadd.f32 %v4764_v46, %v3974_v38  ;;  %v3975_v44 = vadd.f32 %v5156_v40, %v6619_v39  ;;  %v4799_v45 = vpack.c.bf16 %v4000_v41, %v3999_v31  ;;  %v5168_v23 = vadd.f32 %v5167_v33, %v5166_v43 }
 0x268   : > { %v3978_v37 = vadd.f32 %v5165_v42, %v3616_v53 }
 0x269   : > { %v3990_v47 = vadd.f32 %v4764_v46, %v3975_v44  ;;  %4807 = vst [vmem:[%s6629_s12 + $0x10] sm:$0xff] %v4799_v45   ;;  %v3979_v17 = vadd.f32 %v5168_v23, %v3617_v10  ;;  %v3997_v51 = vmax.f32 %v3989_v22, 0.0 }
 0x26a   : > { %v3993_v34 = vadd.f32 %v4764_v46, %v3978_v37 }
 0x26b   : > { %v3998_v54 = vmax.f32 %v3990_v47, 0.0  ;;  %v3994_v55 = vadd.f32 %v4764_v46, %v3979_v17  ;;  %4049 = sbr.rel (!%p5623_p9) target bundleno = 634 (0x27a), region = 77 }
 0x26c   : > { %v4001_v59 = vmax.f32 %v3993_v34, 0.0 }
 0x26d   : > { %v4794_v57 = vpack.c.bf16 %v3998_v54, %v3997_v51  ;;  %v4002_v60 = vmax.f32 %v3994_v55, 0.0 }
 0x26e   : > { %v4069_v39 = vld [vmem:[%s6629_s12] sm:$0xf] (%p5623_p9)  ;;  %v4071_v63 = vld [vmem:[%s6629_s12 + $0x4] sm:$0xf] (%p5623_p9) }
 0x26f   : > { %4806 = vst [vmem:[%s6629_s12 + $0x8] sm:$0xff] %v4794_v57   ;;  %v4804_v61 = vpack.c.bf16 %v4002_v60, %v4001_v59  ;;  %4070 = vst [vmem:[%s4053_s26] sm:$0xf] (%p5623_p9), %v4069_v39 }
 0x270   : > { %v4077_v0 = vld [vmem:[%s6629_s12 + $0x10] sm:$0xf] (%p5623_p9)  ;;  %v4079_v36 = vld [vmem:[%s6629_s12 + $0x14] sm:$0xf] (%p5623_p9)  ;;  %4072 = vst [vmem:[%s4053_s26 + $0x8] sm:$0xf] (%p5623_p9), %v4071_v63 }
 0x271   : > { %4808 = vst [vmem:[%s6629_s12 + $0x18] sm:$0xff] %v4804_v61   ;;  %4078 = vst [vmem:[%s4053_s26 + $0x20] sm:$0xf] (%p5623_p9), %v4077_v0 }
 0x272   : > { %4080 = vst [vmem:[%s4053_s26 + $0x28] sm:$0xf] %v4079_v36 }
 0x276   : > { %v4073_v50 = vld [vmem:[%s6629_s12 + $0x8] sm:$0xf]  ;;  %v4075_v49 = vld [vmem:[%s6629_s12 + $0xc] sm:$0xf] }
 0x277   : > { %4074 = vst [vmem:[%s4053_s26 + $0x10] sm:$0xf] %v4073_v50  ;;  %4076 = vst [vmem:[%s4053_s26 + $0x18] sm:$0xf] %v4075_v49 }
 0x278   : > { %v4081_v5 = vld [vmem:[%s6629_s12 + $0x18] sm:$0xf]  ;;  %v4083_v56 = vld [vmem:[%s6629_s12 + $0x1c] sm:$0xf] }
 0x279   : > { %4082 = vst [vmem:[%s4053_s26 + $0x30] sm:$0xf] %v4081_v5  ;;  %4084 = vst [vmem:[%s4053_s26 + $0x38] sm:$0xf] %v4083_v56 }
 0x27a PF: > { %s13_s20 = sadd.s32 1, %s5534_s20   ;;  %s6685_s12 = smov %s5506_s13 }
 0x27b   : > { %p10_p2 = scmp.ge.s32.totalorder %s13_s20, 6   ;;  %s6686_s13 = smov %s5628_s4 }
 0x27c   : > { %s6687_s14 = smov %s5514_s15  ;;  %s6688_s15 = smov %s5617_s27 }
 0x27d   : > { %s6689_s16 = smov %s5526_s18  ;;  %s6690_s17 = smov %s5530_s19 }
 0x27e   : > { %s6691_s18 = smov %s6694_s22  ;;  %s6692_s19 = smov %s6698_s23 }
 0x27f   :  { %12 = sbr.rel (!%p10_p2) target bundleno = 5 (0x5), region = 168 }

// kernel: reduction_b_forward.7
= control target key start
LH: loop header
LB: loop body
LE: loop exit
PB: predicated region body
PF: predicated region fallthrough
CT: control target
= control target key end

     0   :  { %s5556_s12 = smov 0   ;;  %s5558_s13 = smov 0   ;;  %s6678_s0 = inlined_call_operand.vmem [shape: bf16[2,36,9,256], index: 0, kind: input, shape index: {}]   ;;  %s6679_s1 = inlined_call_operand.vmem [shape: bf16[9,256,384], index: 1, kind: input, shape index: {}]   ;;  %s6680_s2 = inlined_call_operand.vmem [shape: f32[1,384], index: 2, kind: input, shape index: {}]   ;;  %s6681_s3 = inlined_call_operand.vmem [shape: bf16[2,64,384], index: 3, kind: output, shape index: {}]  }
   0x1   :  { %s5560_s14 = smov 0   ;;  %s5562_s15 = smov 0  }
   0x2   :  { %s5564_s16 = smov 0   ;;  %s5566_s17 = smov 0  }
   0x3   :  { %s5568_s18 = smov 0   ;;  %s5570_s19 = smov 0  }
   0x4   :  { %s5572_s20 = smov 0  }
   0x5 LB: > { %s4212_s21 = sadd.s32 4294967295, %s5534_s20   ;;  %s22_s22 = sadd.s32 1, %s5526_s18  ;;  %s5534_s20 = sphi %s5572_s20, %s13_s20   ;;  %s5530_s19 = sphi %s5570_s19, %s6692_s19   ;;  %s5526_s18 = sphi %s5568_s18, %s6691_s18   ;;  %s5522_s17 = sphi %s5566_s17, %s6690_s17   ;;  %s5518_s16 = sphi %s5564_s16, %s6689_s16   ;;  %s5514_s15 = sphi %s5562_s15, %s6688_s15   ;;  %s5510_s14 = sphi %s5560_s14, %s6687_s14   ;;  %s5506_s13 = sphi %s5558_s13, %s6686_s13   ;;  %s5502_s12 = sphi %s5556_s12, %s6685_s12  }
   0x6   : > { %p23_p0 = scmp.ge.s32.totalorder %s22_s22, 3  ;;  %s25_s23 = sadd.s32 1, %s5530_s19 }
   0x7   : > { %s58_s24 = sadd.s32 1, %s5514_s15  ;;  %p65_p1 = scmp.ne.s32.totalorder %s5514_s15, %s5510_s14 }
   0x8   : > { %s6694_s22 = smov (%p23_p0, %s22_s22), 0  ;;  %s6696_s23 = smov (!%p23_p0, %s25_s23), %s5530_s19 }
   0x9   : > { %s55_s25 = ssub.s32 %s5526_s18, %s6694_s22  ;;  %p66_p2 = scmp.eq.s32.totalorder %s5534_s20, 0 }
   0xa   : > { %p27_p3 = scmp.ge.s32.totalorder %s6696_s23, 2  ;;  %p56_p4 = scmp.eq.s32.totalorder %s55_s25, 0 }
   0xb   : > { %p67_p5 = por %p66_p2, %p65_p1  ;;  %s112_s26 = sadd.s32 1, %s5506_s13 }
   0xc   : > { %s6698_s23 = smov (%p27_p3, %s6696_s23), 0  ;;  %p122_p6 = scmp.ne.s32.totalorder %s5506_s13, %s5502_s12 }
   0xd   : > { %s5617_s27 = scalar_select %p56_p4, %s5514_s15, %s58_s24  }
   0xe   : > { %s107_s28 = ssub.s32 %s5530_s19, %s6698_s23  ;;  %p123_p7 = scmp.eq.s32.totalorder %s4212_s21, 5 }
   0xf   : > { %s109_s29 = sor.u32 %s107_s28, %s55_s25  ;;  %p4215_p10 = scmp.ge.s32.totalorder %s5534_s20, 6 }
  0x10   : > { %p110_p8 = scmp.eq.s32.totalorder %s109_s29, 0  ;;  %p5623_p9 = por %p123_p7, %p122_p6 }
  0x11   : > { %145 = sbr.rel (%p4215_p10) target bundleno = 220 (0xdc), region = 16 }
  0x12   : > { %s5628_s4 = scalar_select %p110_p8, %s5506_s13, %s112_s26  }
  0x18   : > { %156 = sbr.rel (!%p67_p5) target bundleno = 220 (0xdc), region = 24  ;;  %s158_s5 = sand.u32 (%p67_p5), 1, %s5514_s15  }
  0x19   : > { %s4216_s6 = sshll.u32 (%p67_p5), %s5526_s18, 2  ;;  %s5184_s7 = smul.u32 (%p67_p5), 1152, %s158_s5 }
  0x1a   : > { %s5636_s10 = scalar_lea.vmem (%p67_p5), %s6679_s1, %s4216_s6 }
  0x1b   : > { %v178_v0 = vld [vmem:[%s5636_s10] sm:$0xf] (%p67_p5)  ;;  %v180_v1 = vld [vmem:[%s5636_s10 + $0xc] sm:$0xf] (%p67_p5)  ;;  %v182_v2 = vld [vmem:[%s5636_s10 + $0x18] sm:$0xf] (%p67_p5) }
  0x1c   : > { %v184_v3 = vld [vmem:[%s5636_s10 + $0x24] sm:$0xf] (%p67_p5)  ;;  %v186_v4 = vld [vmem:[%s5636_s10 + $0x30] sm:$0xf] (%p67_p5)  ;;  %s5643_s11 = scalar_lea.vmem (%p67_p5), [#allocation2], %s5184_s7 }
  0x1d   : > { %179 = vst [vmem:[%s5643_s11] sm:$0xf] (%p67_p5), %v178_v0  ;;  %181 = vst [vmem:[%s5643_s11 + $0x4] sm:$0xf] (%p67_p5), %v180_v1  ;;  %v188_v5 = vld [vmem:[%s5636_s10 + $0x3c] sm:$0xf] (%p67_p5) }
  0x1e   : > { %183 = vst [vmem:[%s5643_s11 + $0x8] sm:$0xf] (%p67_p5), %v182_v2  ;;  %185 = vst [vmem:[%s5643_s11 + $0xc] sm:$0xf] (%p67_p5), %v184_v3  ;;  %v190_v6 = vld [vmem:[%s5636_s10 + $0x48] sm:$0xf] (%p67_p5) }
  0x1f   : > { %187 = vst [vmem:[%s5643_s11 + $0x10] sm:$0xf] %v186_v4  ;;  %v192_v7 = vld [vmem:[%s5636_s10 + $0x54] sm:$0xf]  ;;  %189 = vst [vmem:[%s5643_s11 + $0x14] sm:$0xf] %v188_v5 }
  0x20   : > { %191 = vst [vmem:[%s5643_s11 + $0x18] sm:$0xf] %v190_v6  ;;  %193 = vst [vmem:[%s5643_s11 + $0x1c] sm:$0xf] %v192_v7  ;;  %v194_v8 = vld [vmem:[%s5636_s10 + $0x60] sm:$0xf] }
  0x21   : > { %v196_v9 = vld [vmem:[%s5636_s10 + $0x6c] sm:$0xf]  ;;  %v198_v10 = vld [vmem:[%s5636_s10 + $0x78] sm:$0xf]  ;;  %195 = vst [vmem:[%s5643_s11 + $0x20] sm:$0xf] %v194_v8 }
  0x22   : > { %197 = vst [vmem:[%s5643_s11 + $0x24] sm:$0xf] %v196_v9  ;;  %199 = vst [vmem:[%s5643_s11 + $0x28] sm:$0xf] %v198_v10  ;;  %v200_v11 = vld [vmem:[%s5636_s10 + $0x84] sm:$0xf] }
  0x23   : > { %v202_v12 = vld [vmem:[%s5636_s10 + $0x90] sm:$0xf]  ;;  %v204_v13 = vld [vmem:[%s5636_s10 + $0x9c] sm:$0xf]  ;;  %201 = vst [vmem:[%s5643_s11 + $0x2c] sm:$0xf] %v200_v11 }
  0x24   : > { %203 = vst [vmem:[%s5643_s11 + $0x30] sm:$0xf] %v202_v12  ;;  %205 = vst [vmem:[%s5643_s11 + $0x34] sm:$0xf] %v204_v13  ;;  %v206_v14 = vld [vmem:[%s5636_s10 + $0xa8] sm:$0xf] }
  0x25   : > { %v208_v15 = vld [vmem:[%s5636_s10 + $0xb4] sm:$0xf]  ;;  %v210_v16 = vld [vmem:[%s5636_s10 + $0xc0] sm:$0xf]  ;;  %207 = vst [vmem:[%s5643_s11 + $0x38] sm:$0xf] %v206_v14 }
  0x26   : > { %209 = vst [vmem:[%s5643_s11 + $0x3c] sm:$0xf] %v208_v15  ;;  %211 = vst [vmem:[%s5643_s11 + $0x40] sm:$0xf] %v210_v16  ;;  %v212_v17 = vld [vmem:[%s5636_s10 + $0xcc] sm:$0xf] }
  0x27   : > { %v214_v18 = vld [vmem:[%s5636_s10 + $0xd8] sm:$0xf]  ;;  %v216_v19 = vld [vmem:[%s5636_s10 + $0xe4] sm:$0xf]  ;;  %213 = vst [vmem:[%s5643_s11 + $0x44] sm:$0xf] %v212_v17 }
  0x28   : > { %215 = vst [vmem:[%s5643_s11 + $0x48] sm:$0xf] %v214_v18  ;;  %217 = vst [vmem:[%s5643_s11 + $0x4c] sm:$0xf] %v216_v19  ;;  %v218_v20 = vld [vmem:[%s5636_s10 + $0xf0] sm:$0xf] }
  0x29   : > { %v220_v21 = vld [vmem:[%s5636_s10 + $0xfc] sm:$0xf]  ;;  %v222_v22 = vld [vmem:[%s5636_s10 + $0x108] sm:$0xf]  ;;  %219 = vst [vmem:[%s5643_s11 + $0x50] sm:$0xf] %v218_v20 }
  0x2a   : > { %221 = vst [vmem:[%s5643_s11 + $0x54] sm:$0xf] %v220_v21  ;;  %223 = vst [vmem:[%s5643_s11 + $0x58] sm:$0xf] %v222_v22  ;;  %v224_v23 = vld [vmem:[%s5636_s10 + $0x114] sm:$0xf] }
  0x2b   : > { %v226_v24 = vld [vmem:[%s5636_s10 + $0x120] sm:$0xf]  ;;  %v228_v25 = vld [vmem:[%s5636_s10 + $0x12c] sm:$0xf]  ;;  %225 = vst [vmem:[%s5643_s11 + $0x5c] sm:$0xf] %v224_v23 }
  0x2c   : > { %227 = vst [vmem:[%s5643_s11 + $0x60] sm:$0xf] %v226_v24  ;;  %229 = vst [vmem:[%s5643_s11 + $0x64] sm:$0xf] %v228_v25  ;;  %v230_v26 = vld [vmem:[%s5636_s10 + $0x138] sm:$0xf] }
  0x2d   : > { %v232_v27 = vld [vmem:[%s5636_s10 + $0x144] sm:$0xf]  ;;  %v234_v28 = vld [vmem:[%s5636_s10 + $0x150] sm:$0xf]  ;;  %231 = vst [vmem:[%s5643_s11 + $0x68] sm:$0xf] %v230_v26 }
  0x2e   : > { %233 = vst [vmem:[%s5643_s11 + $0x6c] sm:$0xf] %v232_v27  ;;  %235 = vst [vmem:[%s5643_s11 + $0x70] sm:$0xf] %v234_v28  ;;  %v236_v29 = vld [vmem:[%s5636_s10 + $0x15c] sm:$0xf] }
  0x2f   : > { %v238_v30 = vld [vmem:[%s5636_s10 + $0x168] sm:$0xf]  ;;  %v240_v31 = vld [vmem:[%s5636_s10 + $0x174] sm:$0xf]  ;;  %237 = vst [vmem:[%s5643_s11 + $0x74] sm:$0xf] %v236_v29 }
  0x30   : > { %239 = vst [vmem:[%s5643_s11 + $0x78] sm:$0xf] %v238_v30  ;;  %241 = vst [vmem:[%s5643_s11 + $0x7c] sm:$0xf] %v240_v31  ;;  %v242_v32 = vld [vmem:[%s5636_s10 + $0x180] sm:$0xf] }
  0x31   : > { %v244_v33 = vld [vmem:[%s5636_s10 + $0x18c] sm:$0xf]  ;;  %v246_v34 = vld [vmem:[%s5636_s10 + $0x198] sm:$0xf]  ;;  %243 = vst [vmem:[%s5643_s11 + $0x80] sm:$0xf] %v242_v32 }
  0x32   : > { %245 = vst [vmem:[%s5643_s11 + $0x84] sm:$0xf] %v244_v33  ;;  %247 = vst [vmem:[%s5643_s11 + $0x88] sm:$0xf] %v246_v34  ;;  %v248_v35 = vld [vmem:[%s5636_s10 + $0x1a4] sm:$0xf] }
  0x33   : > { %v250_v36 = vld [vmem:[%s5636_s10 + $0x1b0] sm:$0xf]  ;;  %v252_v37 = vld [vmem:[%s5636_s10 + $0x1bc] sm:$0xf]  ;;  %249 = vst [vmem:[%s5643_s11 + $0x8c] sm:$0xf] %v248_v35 }
  0x34   : > { %251 = vst [vmem:[%s5643_s11 + $0x90] sm:$0xf] %v250_v36  ;;  %253 = vst [vmem:[%s5643_s11 + $0x94] sm:$0xf] %v252_v37  ;;  %v254_v38 = vld [vmem:[%s5636_s10 + $0x1c8] sm:$0xf] }
  0x35   : > { %v256_v39 = vld [vmem:[%s5636_s10 + $0x1d4] sm:$0xf]  ;;  %v258_v40 = vld [vmem:[%s5636_s10 + $0x1e0] sm:$0xf]  ;;  %255 = vst [vmem:[%s5643_s11 + $0x98] sm:$0xf] %v254_v38 }
  0x36   : > { %257 = vst [vmem:[%s5643_s11 + $0x9c] sm:$0xf] %v256_v39  ;;  %259 = vst [vmem:[%s5643_s11 + $0xa0] sm:$0xf] %v258_v40  ;;  %v260_v41 = vld [vmem:[%s5636_s10 + $0x1ec] sm:$0xf] }
  0x37   : > { %v262_v42 = vld [vmem:[%s5636_s10 + $0x1f8] sm:$0xf]  ;;  %v264_v43 = vld [vmem:[%s5636_s10 + $0x204] sm:$0xf]  ;;  %261 = vst [vmem:[%s5643_s11 + $0xa4] sm:$0xf] %v260_v41 }
  0x38   : > { %263 = vst [vmem:[%s5643_s11 + $0xa8] sm:$0xf] %v262_v42  ;;  %265 = vst [vmem:[%s5643_s11 + $0xac] sm:$0xf] %v264_v43  ;;  %v266_v44 = vld [vmem:[%s5636_s10 + $0x210] sm:$0xf] }
  0x39   : > { %v268_v45 = vld [vmem:[%s5636_s10 + $0x21c] sm:$0xf]  ;;  %v270_v46 = vld [vmem:[%s5636_s10 + $0x228] sm:$0xf]  ;;  %267 = vst [vmem:[%s5643_s11 + $0xb0] sm:$0xf] %v266_v44 }
  0x3a   : > { %269 = vst [vmem:[%s5643_s11 + $0xb4] sm:$0xf] %v268_v45  ;;  %271 = vst [vmem:[%s5643_s11 + $0xb8] sm:$0xf] %v270_v46  ;;  %v272_v47 = vld [vmem:[%s5636_s10 + $0x234] sm:$0xf] }
  0x3b   : > { %v274_v48 = vld [vmem:[%s5636_s10 + $0x240] sm:$0xf]  ;;  %v276_v49 = vld [vmem:[%s5636_s10 + $0x24c] sm:$0xf]  ;;  %273 = vst [vmem:[%s5643_s11 + $0xbc] sm:$0xf] %v272_v47 }
  0x3c   : > { %275 = vst [vmem:[%s5643_s11 + $0xc0] sm:$0xf] %v274_v48  ;;  %277 = vst [vmem:[%s5643_s11 + $0xc4] sm:$0xf] %v276_v49  ;;  %v278_v50 = vld [vmem:[%s5636_s10 + $0x258] sm:$0xf] }
  0x3d   : > { %v280_v51 = vld [vmem:[%s5636_s10 + $0x264] sm:$0xf]  ;;  %v282_v52 = vld [vmem:[%s5636_s10 + $0x270] sm:$0xf]  ;;  %279 = vst [vmem:[%s5643_s11 + $0xc8] sm:$0xf] %v278_v50 }
  0x3e   : > { %281 = vst [vmem:[%s5643_s11 + $0xcc] sm:$0xf] %v280_v51  ;;  %283 = vst [vmem:[%s5643_s11 + $0xd0] sm:$0xf] %v282_v52  ;;  %v284_v53 = vld [vmem:[%s5636_s10 + $0x27c] sm:$0xf] }
  0x3f   : > { %v286_v54 = vld [vmem:[%s5636_s10 + $0x288] sm:$0xf]  ;;  %v288_v55 = vld [vmem:[%s5636_s10 + $0x294] sm:$0xf]  ;;  %285 = vst [vmem:[%s5643_s11 + $0xd4] sm:$0xf] %v284_v53 }
  0x40   : > { %287 = vst [vmem:[%s5643_s11 + $0xd8] sm:$0xf] %v286_v54  ;;  %289 = vst [vmem:[%s5643_s11 + $0xdc] sm:$0xf] %v288_v55  ;;  %v290_v56 = vld [vmem:[%s5636_s10 + $0x2a0] sm:$0xf] }
  0x41   : > { %v292_v57 = vld [vmem:[%s5636_s10 + $0x2ac] sm:$0xf]  ;;  %v294_v58 = vld [vmem:[%s5636_s10 + $0x2b8] sm:$0xf]  ;;  %291 = vst [vmem:[%s5643_s11 + $0xe0] sm:$0xf] %v290_v56 }
  0x42   : > { %293 = vst [vmem:[%s5643_s11 + $0xe4] sm:$0xf] %v292_v57  ;;  %295 = vst [vmem:[%s5643_s11 + $0xe8] sm:$0xf] %v294_v58  ;;  %v296_v59 = vld [vmem:[%s5636_s10 + $0x2c4] sm:$0xf] }
  0x43   : > { %v298_v60 = vld [vmem:[%s5636_s10 + $0x2d0] sm:$0xf]  ;;  %v300_v61 = vld [vmem:[%s5636_s10 + $0x2dc] sm:$0xf]  ;;  %297 = vst [vmem:[%s5643_s11 + $0xec] sm:$0xf] %v296_v59 }
  0x44   : > { %299 = vst [vmem:[%s5643_s11 + $0xf0] sm:$0xf] %v298_v60  ;;  %301 = vst [vmem:[%s5643_s11 + $0xf4] sm:$0xf] %v300_v61  ;;  %v302_v62 = vld [vmem:[%s5636_s10 + $0x2e8] sm:$0xf] }
  0x45   : > { %v304_v63 = vld [vmem:[%s5636_s10 + $0x2f4] sm:$0xf]  ;;  %v306_v0 = vld [vmem:[%s5636_s10 + $0x300] sm:$0xf]  ;;  %303 = vst [vmem:[%s5643_s11 + $0xf8] sm:$0xf] %v302_v62 }
  0x46   : > { %305 = vst [vmem:[%s5643_s11 + $0xfc] sm:$0xf] %v304_v63  ;;  %307 = vst [vmem:[%s5643_s11 + $0x100] sm:$0xf] %v306_v0  ;;  %v308_v1 = vld [vmem:[%s5636_s10 + $0x30c] sm:$0xf] }
  0x47   : > { %v310_v2 = vld [vmem:[%s5636_s10 + $0x318] sm:$0xf]  ;;  %v312_v3 = vld [vmem:[%s5636_s10 + $0x324] sm:$0xf]  ;;  %309 = vst [vmem:[%s5643_s11 + $0x104] sm:$0xf] %v308_v1 }
  0x48   : > { %311 = vst [vmem:[%s5643_s11 + $0x108] sm:$0xf] %v310_v2  ;;  %313 = vst [vmem:[%s5643_s11 + $0x10c] sm:$0xf] %v312_v3  ;;  %v314_v4 = vld [vmem:[%s5636_s10 + $0x330] sm:$0xf] }
  0x49   : > { %v316_v5 = vld [vmem:[%s5636_s10 + $0x33c] sm:$0xf]  ;;  %v318_v6 = vld [vmem:[%s5636_s10 + $0x348] sm:$0xf]  ;;  %315 = vst [vmem:[%s5643_s11 + $0x110] sm:$0xf] %v314_v4 }
  0x4a   : > { %317 = vst [vmem:[%s5643_s11 + $0x114] sm:$0xf] %v316_v5  ;;  %319 = vst [vmem:[%s5643_s11 + $0x118] sm:$0xf] %v318_v6  ;;  %v320_v7 = vld [vmem:[%s5636_s10 + $0x354] sm:$0xf] }
  0x4b   : > { %v322_v8 = vld [vmem:[%s5636_s10 + $0x360] sm:$0xf]  ;;  %v324_v9 = vld [vmem:[%s5636_s10 + $0x36c] sm:$0xf]  ;;  %321 = vst [vmem:[%s5643_s11 + $0x11c] sm:$0xf] %v320_v7 }
  0x4c   : > { %323 = vst [vmem:[%s5643_s11 + $0x120] sm:$0xf] %v322_v8  ;;  %325 = vst [vmem:[%s5643_s11 + $0x124] sm:$0xf] %v324_v9  ;;  %v326_v10 = vld [vmem:[%s5636_s10 + $0x378] sm:$0xf] }
  0x4d   : > { %v328_v11 = vld [vmem:[%s5636_s10 + $0x384] sm:$0xf]  ;;  %v330_v12 = vld [vmem:[%s5636_s10 + $0x390] sm:$0xf]  ;;  %327 = vst [vmem:[%s5643_s11 + $0x128] sm:$0xf] %v326_v10 }
  0x4e   : > { %329 = vst [vmem:[%s5643_s11 + $0x12c] sm:$0xf] %v328_v11  ;;  %331 = vst [vmem:[%s5643_s11 + $0x130] sm:$0xf] %v330_v12  ;;  %v332_v13 = vld [vmem:[%s5636_s10 + $0x39c] sm:$0xf] }
  0x4f   : > { %v334_v14 = vld [vmem:[%s5636_s10 + $0x3a8] sm:$0xf]  ;;  %v336_v15 = vld [vmem:[%s5636_s10 + $0x3b4] sm:$0xf]  ;;  %333 = vst [vmem:[%s5643_s11 + $0x134] sm:$0xf] %v332_v13 }
  0x50   : > { %335 = vst [vmem:[%s5643_s11 + $0x138] sm:$0xf] %v334_v14  ;;  %337 = vst [vmem:[%s5643_s11 + $0x13c] sm:$0xf] %v336_v15  ;;  %v338_v16 = vld [vmem:[%s5636_s10 + $0x3c0] sm:$0xf] }
  0x51   : > { %v340_v17 = vld [vmem:[%s5636_s10 + $0x3cc] sm:$0xf]  ;;  %v342_v18 = vld [vmem:[%s5636_s10 + $0x3d8] sm:$0xf]  ;;  %339 = vst [vmem:[%s5643_s11 + $0x140] sm:$0xf] %v338_v16 }
  0x52   : > { %341 = vst [vmem:[%s5643_s11 + $0x144] sm:$0xf] %v340_v17  ;;  %343 = vst [vmem:[%s5643_s11 + $0x148] sm:$0xf] %v342_v18  ;;  %v344_v19 = vld [vmem:[%s5636_s10 + $0x3e4] sm:$0xf] }
  0x53   : > { %v346_v20 = vld [vmem:[%s5636_s10 + $0x3f0] sm:$0xf]  ;;  %v348_v21 = vld [vmem:[%s5636_s10 + $0x3fc] sm:$0xf]  ;;  %345 = vst [vmem:[%s5643_s11 + $0x14c] sm:$0xf] %v344_v19 }
  0x54   : > { %347 = vst [vmem:[%s5643_s11 + $0x150] sm:$0xf] %v346_v20  ;;  %349 = vst [vmem:[%s5643_s11 + $0x154] sm:$0xf] %v348_v21  ;;  %v350_v22 = vld [vmem:[%s5636_s10 + $0x408] sm:$0xf] }
  0x55   : > { %v352_v23 = vld [vmem:[%s5636_s10 + $0x414] sm:$0xf]  ;;  %v354_v24 = vld [vmem:[%s5636_s10 + $0x420] sm:$0xf]  ;;  %351 = vst [vmem:[%s5643_s11 + $0x158] sm:$0xf] %v350_v22 }
  0x56   : > { %353 = vst [vmem:[%s5643_s11 + $0x15c] sm:$0xf] %v352_v23  ;;  %355 = vst [vmem:[%s5643_s11 + $0x160] sm:$0xf] %v354_v24  ;;  %v356_v25 = vld [vmem:[%s5636_s10 + $0x42c] sm:$0xf] }
  0x57   : > { %v358_v26 = vld [vmem:[%s5636_s10 + $0x438] sm:$0xf]  ;;  %v360_v27 = vld [vmem:[%s5636_s10 + $0x444] sm:$0xf]  ;;  %357 = vst [vmem:[%s5643_s11 + $0x164] sm:$0xf] %v356_v25 }
  0x58   : > { %359 = vst [vmem:[%s5643_s11 + $0x168] sm:$0xf] %v358_v26  ;;  %361 = vst [vmem:[%s5643_s11 + $0x16c] sm:$0xf] %v360_v27  ;;  %v362_v28 = vld [vmem:[%s5636_s10 + $0x450] sm:$0xf] }
  0x59   : > { %v364_v29 = vld [vmem:[%s5636_s10 + $0x45c] sm:$0xf]  ;;  %v366_v30 = vld [vmem:[%s5636_s10 + $0x468] sm:$0xf]  ;;  %363 = vst [vmem:[%s5643_s11 + $0x170] sm:$0xf] %v362_v28 }
  0x5a   : > { %365 = vst [vmem:[%s5643_s11 + $0x174] sm:$0xf] %v364_v29  ;;  %367 = vst [vmem:[%s5643_s11 + $0x178] sm:$0xf] %v366_v30  ;;  %v368_v31 = vld [vmem:[%s5636_s10 + $0x474] sm:$0xf] }
  0x5b   : > { %v370_v32 = vld [vmem:[%s5636_s10 + $0x480] sm:$0xf]  ;;  %v372_v33 = vld [vmem:[%s5636_s10 + $0x48c] sm:$0xf]  ;;  %369 = vst [vmem:[%s5643_s11 + $0x17c] sm:$0xf] %v368_v31 }
  0x5c   : > { %371 = vst [vmem:[%s5643_s11 + $0x180] sm:$0xf] %v370_v32  ;;  %373 = vst [vmem:[%s5643_s11 + $0x184] sm:$0xf] %v372_v33  ;;  %v374_v34 = vld [vmem:[%s5636_s10 + $0x498] sm:$0xf] }
  0x5d   : > { %v376_v35 = vld [vmem:[%s5636_s10 + $0x4a4] sm:$0xf]  ;;  %v378_v36 = vld [vmem:[%s5636_s10 + $0x4b0] sm:$0xf]  ;;  %375 = vst [vmem:[%s5643_s11 + $0x188] sm:$0xf] %v374_v34 }
  0x5e   : > { %377 = vst [vmem:[%s5643_s11 + $0x18c] sm:$0xf] %v376_v35  ;;  %379 = vst [vmem:[%s5643_s11 + $0x190] sm:$0xf] %v378_v36  ;;  %v380_v37 = vld [vmem:[%s5636_s10 + $0x4bc] sm:$0xf] }
  0x5f   : > { %v382_v38 = vld [vmem:[%s5636_s10 + $0x4c8] sm:$0xf]  ;;  %v384_v39 = vld [vmem:[%s5636_s10 + $0x4d4] sm:$0xf]  ;;  %381 = vst [vmem:[%s5643_s11 + $0x194] sm:$0xf] %v380_v37 }
  0x60   : > { %383 = vst [vmem:[%s5643_s11 + $0x198] sm:$0xf] %v382_v38  ;;  %385 = vst [vmem:[%s5643_s11 + $0x19c] sm:$0xf] %v384_v39  ;;  %v386_v40 = vld [vmem:[%s5636_s10 + $0x4e0] sm:$0xf] }
  0x61   : > { %v388_v41 = vld [vmem:[%s5636_s10 + $0x4ec] sm:$0xf]  ;;  %v390_v42 = vld [vmem:[%s5636_s10 + $0x4f8] sm:$0xf]  ;;  %387 = vst [vmem:[%s5643_s11 + $0x1a0] sm:$0xf] %v386_v40 }
  0x62   : > { %389 = vst [vmem:[%s5643_s11 + $0x1a4] sm:$0xf] %v388_v41  ;;  %391 = vst [vmem:[%s5643_s11 + $0x1a8] sm:$0xf] %v390_v42  ;;  %v392_v43 = vld [vmem:[%s5636_s10 + $0x504] sm:$0xf] }
  0x63   : > { %v394_v44 = vld [vmem:[%s5636_s10 + $0x510] sm:$0xf]  ;;  %v396_v45 = vld [vmem:[%s5636_s10 + $0x51c] sm:$0xf]  ;;  %393 = vst [vmem:[%s5643_s11 + $0x1ac] sm:$0xf] %v392_v43 }
  0x64   : > { %395 = vst [vmem:[%s5643_s11 + $0x1b0] sm:$0xf] %v394_v44  ;;  %397 = vst [vmem:[%s5643_s11 + $0x1b4] sm:$0xf] %v396_v45  ;;  %v398_v46 = vld [vmem:[%s5636_s10 + $0x528] sm:$0xf] }
  0x65   : > { %v400_v47 = vld [vmem:[%s5636_s10 + $0x534] sm:$0xf]  ;;  %v402_v48 = vld [vmem:[%s5636_s10 + $0x540] sm:$0xf]  ;;  %399 = vst [vmem:[%s5643_s11 + $0x1b8] sm:$0xf] %v398_v46 }
  0x66   : > { %401 = vst [vmem:[%s5643_s11 + $0x1bc] sm:$0xf] %v400_v47  ;;  %403 = vst [vmem:[%s5643_s11 + $0x1c0] sm:$0xf] %v402_v48  ;;  %v404_v49 = vld [vmem:[%s5636_s10 + $0x54c] sm:$0xf] }
  0x67   : > { %v406_v50 = vld [vmem:[%s5636_s10 + $0x558] sm:$0xf]  ;;  %v408_v51 = vld [vmem:[%s5636_s10 + $0x564] sm:$0xf]  ;;  %405 = vst [vmem:[%s5643_s11 + $0x1c4] sm:$0xf] %v404_v49 }
  0x68   : > { %407 = vst [vmem:[%s5643_s11 + $0x1c8] sm:$0xf] %v406_v50  ;;  %409 = vst [vmem:[%s5643_s11 + $0x1cc] sm:$0xf] %v408_v51  ;;  %v410_v52 = vld [vmem:[%s5636_s10 + $0x570] sm:$0xf] }
  0x69   : > { %v412_v53 = vld [vmem:[%s5636_s10 + $0x57c] sm:$0xf]  ;;  %v414_v54 = vld [vmem:[%s5636_s10 + $0x588] sm:$0xf]  ;;  %411 = vst [vmem:[%s5643_s11 + $0x1d0] sm:$0xf] %v410_v52 }
  0x6a   : > { %413 = vst [vmem:[%s5643_s11 + $0x1d4] sm:$0xf] %v412_v53  ;;  %415 = vst [vmem:[%s5643_s11 + $0x1d8] sm:$0xf] %v414_v54  ;;  %v416_v55 = vld [vmem:[%s5636_s10 + $0x594] sm:$0xf] }
  0x6b   : > { %v418_v56 = vld [vmem:[%s5636_s10 + $0x5a0] sm:$0xf]  ;;  %v420_v57 = vld [vmem:[%s5636_s10 + $0x5ac] sm:$0xf]  ;;  %417 = vst [vmem:[%s5643_s11 + $0x1dc] sm:$0xf] %v416_v55 }
  0x6c   : > { %419 = vst [vmem:[%s5643_s11 + $0x1e0] sm:$0xf] %v418_v56  ;;  %421 = vst [vmem:[%s5643_s11 + $0x1e4] sm:$0xf] %v420_v57  ;;  %v422_v58 = vld [vmem:[%s5636_s10 + $0x5b8] sm:$0xf] }
  0x6d   : > { %v424_v59 = vld [vmem:[%s5636_s10 + $0x5c4] sm:$0xf]  ;;  %v426_v60 = vld [vmem:[%s5636_s10 + $0x5d0] sm:$0xf]  ;;  %423 = vst [vmem:[%s5643_s11 + $0x1e8] sm:$0xf] %v422_v58 }
  0x6e   : > { %425 = vst [vmem:[%s5643_s11 + $0x1ec] sm:$0xf] %v424_v59  ;;  %427 = vst [vmem:[%s5643_s11 + $0x1f0] sm:$0xf] %v426_v60  ;;  %v428_v61 = vld [vmem:[%s5636_s10 + $0x5dc] sm:$0xf] }
  0x6f   : > { %v430_v62 = vld [vmem:[%s5636_s10 + $0x5e8] sm:$0xf]  ;;  %v432_v63 = vld [vmem:[%s5636_s10 + $0x5f4] sm:$0xf]  ;;  %429 = vst [vmem:[%s5643_s11 + $0x1f4] sm:$0xf] %v428_v61 }
  0x70   : > { %431 = vst [vmem:[%s5643_s11 + $0x1f8] sm:$0xf] %v430_v62  ;;  %433 = vst [vmem:[%s5643_s11 + $0x1fc] sm:$0xf] %v432_v63  ;;  %v434_v0 = vld [vmem:[%s5636_s10 + $0x600] sm:$0xf] }
  0x71   : > { %v436_v1 = vld [vmem:[%s5636_s10 + $0x60c] sm:$0xf]  ;;  %v438_v2 = vld [vmem:[%s5636_s10 + $0x618] sm:$0xf]  ;;  %435 = vst [vmem:[%s5643_s11 + $0x200] sm:$0xf] %v434_v0 }
  0x72   : > { %437 = vst [vmem:[%s5643_s11 + $0x204] sm:$0xf] %v436_v1  ;;  %439 = vst [vmem:[%s5643_s11 + $0x208] sm:$0xf] %v438_v2  ;;  %v440_v3 = vld [vmem:[%s5636_s10 + $0x624] sm:$0xf] }
  0x73   : > { %v442_v4 = vld [vmem:[%s5636_s10 + $0x630] sm:$0xf]  ;;  %v444_v5 = vld [vmem:[%s5636_s10 + $0x63c] sm:$0xf]  ;;  %441 = vst [vmem:[%s5643_s11 + $0x20c] sm:$0xf] %v440_v3 }
  0x74   : > { %443 = vst [vmem:[%s5643_s11 + $0x210] sm:$0xf] %v442_v4  ;;  %445 = vst [vmem:[%s5643_s11 + $0x214] sm:$0xf] %v444_v5  ;;  %v446_v6 = vld [vmem:[%s5636_s10 + $0x648] sm:$0xf] }
  0x75   : > { %v448_v7 = vld [vmem:[%s5636_s10 + $0x654] sm:$0xf]  ;;  %v450_v8 = vld [vmem:[%s5636_s10 + $0x660] sm:$0xf]  ;;  %447 = vst [vmem:[%s5643_s11 + $0x218] sm:$0xf] %v446_v6 }
  0x76   : > { %449 = vst [vmem:[%s5643_s11 + $0x21c] sm:$0xf] %v448_v7  ;;  %451 = vst [vmem:[%s5643_s11 + $0x220] sm:$0xf] %v450_v8  ;;  %v452_v9 = vld [vmem:[%s5636_s10 + $0x66c] sm:$0xf] }
  0x77   : > { %v454_v10 = vld [vmem:[%s5636_s10 + $0x678] sm:$0xf]  ;;  %v456_v11 = vld [vmem:[%s5636_s10 + $0x684] sm:$0xf]  ;;  %453 = vst [vmem:[%s5643_s11 + $0x224] sm:$0xf] %v452_v9 }
  0x78   : > { %455 = vst [vmem:[%s5643_s11 + $0x228] sm:$0xf] %v454_v10  ;;  %457 = vst [vmem:[%s5643_s11 + $0x22c] sm:$0xf] %v456_v11  ;;  %v458_v12 = vld [vmem:[%s5636_s10 + $0x690] sm:$0xf] }
  0x79   : > { %v460_v13 = vld [vmem:[%s5636_s10 + $0x69c] sm:$0xf]  ;;  %v462_v14 = vld [vmem:[%s5636_s10 + $0x6a8] sm:$0xf]  ;;  %459 = vst [vmem:[%s5643_s11 + $0x230] sm:$0xf] %v458_v12 }
  0x7a   : > { %461 = vst [vmem:[%s5643_s11 + $0x234] sm:$0xf] %v460_v13  ;;  %463 = vst [vmem:[%s5643_s11 + $0x238] sm:$0xf] %v462_v14  ;;  %v464_v15 = vld [vmem:[%s5636_s10 + $0x6b4] sm:$0xf] }
  0x7b   : > { %v466_v16 = vld [vmem:[%s5636_s10 + $0x6c0] sm:$0xf]  ;;  %v468_v17 = vld [vmem:[%s5636_s10 + $0x6cc] sm:$0xf]  ;;  %465 = vst [vmem:[%s5643_s11 + $0x23c] sm:$0xf] %v464_v15 }
  0x7c   : > { %467 = vst [vmem:[%s5643_s11 + $0x240] sm:$0xf] %v466_v16  ;;  %469 = vst [vmem:[%s5643_s11 + $0x244] sm:$0xf] %v468_v17  ;;  %v470_v18 = vld [vmem:[%s5636_s10 + $0x6d8] sm:$0xf] }
  0x7d   : > { %v472_v19 = vld [vmem:[%s5636_s10 + $0x6e4] sm:$0xf]  ;;  %v474_v20 = vld [vmem:[%s5636_s10 + $0x6f0] sm:$0xf]  ;;  %471 = vst [vmem:[%s5643_s11 + $0x248] sm:$0xf] %v470_v18 }
  0x7e   : > { %473 = vst [vmem:[%s5643_s11 + $0x24c] sm:$0xf] %v472_v19  ;;  %475 = vst [vmem:[%s5643_s11 + $0x250] sm:$0xf] %v474_v20  ;;  %v476_v21 = vld [vmem:[%s5636_s10 + $0x6fc] sm:$0xf] }
  0x7f   : > { %v478_v22 = vld [vmem:[%s5636_s10 + $0x708] sm:$0xf]  ;;  %v480_v23 = vld [vmem:[%s5636_s10 + $0x714] sm:$0xf]  ;;  %477 = vst [vmem:[%s5643_s11 + $0x254] sm:$0xf] %v476_v21 }
  0x80   : > { %479 = vst [vmem:[%s5643_s11 + $0x258] sm:$0xf] %v478_v22  ;;  %481 = vst [vmem:[%s5643_s11 + $0x25c] sm:$0xf] %v480_v23  ;;  %v482_v24 = vld [vmem:[%s5636_s10 + $0x720] sm:$0xf] }
  0x81   : > { %v484_v25 = vld [vmem:[%s5636_s10 + $0x72c] sm:$0xf]  ;;  %v486_v26 = vld [vmem:[%s5636_s10 + $0x738] sm:$0xf]  ;;  %483 = vst [vmem:[%s5643_s11 + $0x260] sm:$0xf] %v482_v24 }
  0x82   : > { %485 = vst [vmem:[%s5643_s11 + $0x264] sm:$0xf] %v484_v25  ;;  %487 = vst [vmem:[%s5643_s11 + $0x268] sm:$0xf] %v486_v26  ;;  %v488_v27 = vld [vmem:[%s5636_s10 + $0x744] sm:$0xf] }
  0x83   : > { %v490_v28 = vld [vmem:[%s5636_s10 + $0x750] sm:$0xf]  ;;  %v492_v29 = vld [vmem:[%s5636_s10 + $0x75c] sm:$0xf]  ;;  %489 = vst [vmem:[%s5643_s11 + $0x26c] sm:$0xf] %v488_v27 }
  0x84   : > { %491 = vst [vmem:[%s5643_s11 + $0x270] sm:$0xf] %v490_v28  ;;  %493 = vst [vmem:[%s5643_s11 + $0x274] sm:$0xf] %v492_v29  ;;  %v494_v30 = vld [vmem:[%s5636_s10 + $0x768] sm:$0xf] }
  0x85   : > { %v496_v31 = vld [vmem:[%s5636_s10 + $0x774] sm:$0xf]  ;;  %v498_v32 = vld [vmem:[%s5636_s10 + $0x780] sm:$0xf]  ;;  %495 = vst [vmem:[%s5643_s11 + $0x278] sm:$0xf] %v494_v30 }
  0x86   : > { %497 = vst [vmem:[%s5643_s11 + $0x27c] sm:$0xf] %v496_v31  ;;  %499 = vst [vmem:[%s5643_s11 + $0x280] sm:$0xf] %v498_v32  ;;  %v500_v33 = vld [vmem:[%s5636_s10 + $0x78c] sm:$0xf] }
  0x87   : > { %v502_v34 = vld [vmem:[%s5636_s10 + $0x798] sm:$0xf]  ;;  %v504_v35 = vld [vmem:[%s5636_s10 + $0x7a4] sm:$0xf]  ;;  %501 = vst [vmem:[%s5643_s11 + $0x284] sm:$0xf] %v500_v33 }
  0x88   : > { %503 = vst [vmem:[%s5643_s11 + $0x288] sm:$0xf] %v502_v34  ;;  %505 = vst [vmem:[%s5643_s11 + $0x28c] sm:$0xf] %v504_v35  ;;  %v506_v36 = vld [vmem:[%s5636_s10 + $0x7b0] sm:$0xf] }
  0x89   : > { %v508_v37 = vld [vmem:[%s5636_s10 + $0x7bc] sm:$0xf]  ;;  %v510_v38 = vld [vmem:[%s5636_s10 + $0x7c8] sm:$0xf]  ;;  %507 = vst [vmem:[%s5643_s11 + $0x290] sm:$0xf] %v506_v36 }
  0x8a   : > { %509 = vst [vmem:[%s5643_s11 + $0x294] sm:$0xf] %v508_v37  ;;  %511 = vst [vmem:[%s5643_s11 + $0x298] sm:$0xf] %v510_v38  ;;  %v512_v39 = vld [vmem:[%s5636_s10 + $0x7d4] sm:$0xf] }
  0x8b   : > { %v514_v40 = vld [vmem:[%s5636_s10 + $0x7e0] sm:$0xf]  ;;  %v516_v41 = vld [vmem:[%s5636_s10 + $0x7ec] sm:$0xf]  ;;  %513 = vst [vmem:[%s5643_s11 + $0x29c] sm:$0xf] %v512_v39 }
  0x8c   : > { %515 = vst [vmem:[%s5643_s11 + $0x2a0] sm:$0xf] %v514_v40  ;;  %517 = vst [vmem:[%s5643_s11 + $0x2a4] sm:$0xf] %v516_v41  ;;  %v518_v42 = vld [vmem:[%s5636_s10 + $0x7f8] sm:$0xf] }
  0x8d   : > { %v520_v43 = vld [vmem:[%s5636_s10 + $0x804] sm:$0xf]  ;;  %v522_v44 = vld [vmem:[%s5636_s10 + $0x810] sm:$0xf]  ;;  %519 = vst [vmem:[%s5643_s11 + $0x2a8] sm:$0xf] %v518_v42 }
  0x8e   : > { %521 = vst [vmem:[%s5643_s11 + $0x2ac] sm:$0xf] %v520_v43  ;;  %523 = vst [vmem:[%s5643_s11 + $0x2b0] sm:$0xf] %v522_v44  ;;  %v524_v45 = vld [vmem:[%s5636_s10 + $0x81c] sm:$0xf] }
  0x8f   : > { %v526_v46 = vld [vmem:[%s5636_s10 + $0x828] sm:$0xf]  ;;  %v528_v47 = vld [vmem:[%s5636_s10 + $0x834] sm:$0xf]  ;;  %525 = vst [vmem:[%s5643_s11 + $0x2b4] sm:$0xf] %v524_v45 }
  0x90   : > { %527 = vst [vmem:[%s5643_s11 + $0x2b8] sm:$0xf] %v526_v46  ;;  %529 = vst [vmem:[%s5643_s11 + $0x2bc] sm:$0xf] %v528_v47  ;;  %v530_v48 = vld [vmem:[%s5636_s10 + $0x840] sm:$0xf] }
  0x91   : > { %v532_v49 = vld [vmem:[%s5636_s10 + $0x84c] sm:$0xf]  ;;  %v534_v50 = vld [vmem:[%s5636_s10 + $0x858] sm:$0xf]  ;;  %531 = vst [vmem:[%s5643_s11 + $0x2c0] sm:$0xf] %v530_v48 }
  0x92   : > { %533 = vst [vmem:[%s5643_s11 + $0x2c4] sm:$0xf] %v532_v49  ;;  %535 = vst [vmem:[%s5643_s11 + $0x2c8] sm:$0xf] %v534_v50  ;;  %v536_v51 = vld [vmem:[%s5636_s10 + $0x864] sm:$0xf] }
  0x93   : > { %v538_v52 = vld [vmem:[%s5636_s10 + $0x870] sm:$0xf]  ;;  %v540_v53 = vld [vmem:[%s5636_s10 + $0x87c] sm:$0xf]  ;;  %537 = vst [vmem:[%s5643_s11 + $0x2cc] sm:$0xf] %v536_v51 }
  0x94   : > { %539 = vst [vmem:[%s5643_s11 + $0x2d0] sm:$0xf] %v538_v52  ;;  %541 = vst [vmem:[%s5643_s11 + $0x2d4] sm:$0xf] %v540_v53  ;;  %v542_v54 = vld [vmem:[%s5636_s10 + $0x888] sm:$0xf] }
  0x95   : > { %v544_v55 = vld [vmem:[%s5636_s10 + $0x894] sm:$0xf]  ;;  %v546_v56 = vld [vmem:[%s5636_s10 + $0x8a0] sm:$0xf]  ;;  %543 = vst [vmem:[%s5643_s11 + $0x2d8] sm:$0xf] %v542_v54 }
  0x96   : > { %545 = vst [vmem:[%s5643_s11 + $0x2dc] sm:$0xf] %v544_v55  ;;  %547 = vst [vmem:[%s5643_s11 + $0x2e0] sm:$0xf] %v546_v56  ;;  %v548_v57 = vld [vmem:[%s5636_s10 + $0x8ac] sm:$0xf] }
  0x97   : > { %v550_v58 = vld [vmem:[%s5636_s10 + $0x8b8] sm:$0xf]  ;;  %v552_v59 = vld [vmem:[%s5636_s10 + $0x8c4] sm:$0xf]  ;;  %549 = vst [vmem:[%s5643_s11 + $0x2e4] sm:$0xf] %v548_v57 }
  0x98   : > { %551 = vst [vmem:[%s5643_s11 + $0x2e8] sm:$0xf] %v550_v58  ;;  %553 = vst [vmem:[%s5643_s11 + $0x2ec] sm:$0xf] %v552_v59  ;;  %v554_v60 = vld [vmem:[%s5636_s10 + $0x8d0] sm:$0xf] }
  0x99   : > { %v556_v61 = vld [vmem:[%s5636_s10 + $0x8dc] sm:$0xf]  ;;  %v558_v62 = vld [vmem:[%s5636_s10 + $0x8e8] sm:$0xf]  ;;  %555 = vst [vmem:[%s5643_s11 + $0x2f0] sm:$0xf] %v554_v60 }
  0x9a   : > { %557 = vst [vmem:[%s5643_s11 + $0x2f4] sm:$0xf] %v556_v61  ;;  %559 = vst [vmem:[%s5643_s11 + $0x2f8] sm:$0xf] %v558_v62  ;;  %v560_v63 = vld [vmem:[%s5636_s10 + $0x8f4] sm:$0xf] }
  0x9b   : > { %v562_v0 = vld [vmem:[%s5636_s10 + $0x900] sm:$0xf]  ;;  %v564_v1 = vld [vmem:[%s5636_s10 + $0x90c] sm:$0xf]  ;;  %561 = vst [vmem:[%s5643_s11 + $0x2fc] sm:$0xf] %v560_v63 }
  0x9c   : > { %563 = vst [vmem:[%s5643_s11 + $0x300] sm:$0xf] %v562_v0  ;;  %565 = vst [vmem:[%s5643_s11 + $0x304] sm:$0xf] %v564_v1  ;;  %v566_v2 = vld [vmem:[%s5636_s10 + $0x918] sm:$0xf] }
  0x9d   : > { %v568_v3 = vld [vmem:[%s5636_s10 + $0x924] sm:$0xf]  ;;  %v570_v4 = vld [vmem:[%s5636_s10 + $0x930] sm:$0xf]  ;;  %567 = vst [vmem:[%s5643_s11 + $0x308] sm:$0xf] %v566_v2 }
  0x9e   : > { %569 = vst [vmem:[%s5643_s11 + $0x30c] sm:$0xf] %v568_v3  ;;  %571 = vst [vmem:[%s5643_s11 + $0x310] sm:$0xf] %v570_v4  ;;  %v572_v5 = vld [vmem:[%s5636_s10 + $0x93c] sm:$0xf] }
  0x9f   : > { %v574_v6 = vld [vmem:[%s5636_s10 + $0x948] sm:$0xf]  ;;  %v576_v7 = vld [vmem:[%s5636_s10 + $0x954] sm:$0xf]  ;;  %573 = vst [vmem:[%s5643_s11 + $0x314] sm:$0xf] %v572_v5 }
  0xa0   : > { %575 = vst [vmem:[%s5643_s11 + $0x318] sm:$0xf] %v574_v6  ;;  %577 = vst [vmem:[%s5643_s11 + $0x31c] sm:$0xf] %v576_v7  ;;  %v578_v8 = vld [vmem:[%s5636_s10 + $0x960] sm:$0xf] }
  0xa1   : > { %v580_v9 = vld [vmem:[%s5636_s10 + $0x96c] sm:$0xf]  ;;  %v582_v10 = vld [vmem:[%s5636_s10 + $0x978] sm:$0xf]  ;;  %579 = vst [vmem:[%s5643_s11 + $0x320] sm:$0xf] %v578_v8 }
  0xa2   : > { %581 = vst [vmem:[%s5643_s11 + $0x324] sm:$0xf] %v580_v9  ;;  %583 = vst [vmem:[%s5643_s11 + $0x328] sm:$0xf] %v582_v10  ;;  %v584_v11 = vld [vmem:[%s5636_s10 + $0x984] sm:$0xf] }
  0xa3   : > { %v586_v12 = vld [vmem:[%s5636_s10 + $0x990] sm:$0xf]  ;;  %v588_v13 = vld [vmem:[%s5636_s10 + $0x99c] sm:$0xf]  ;;  %585 = vst [vmem:[%s5643_s11 + $0x32c] sm:$0xf] %v584_v11 }
  0xa4   : > { %587 = vst [vmem:[%s5643_s11 + $0x330] sm:$0xf] %v586_v12  ;;  %589 = vst [vmem:[%s5643_s11 + $0x334] sm:$0xf] %v588_v13  ;;  %v590_v14 = vld [vmem:[%s5636_s10 + $0x9a8] sm:$0xf] }
  0xa5   : > { %v592_v15 = vld [vmem:[%s5636_s10 + $0x9b4] sm:$0xf]  ;;  %v594_v16 = vld [vmem:[%s5636_s10 + $0x9c0] sm:$0xf]  ;;  %591 = vst [vmem:[%s5643_s11 + $0x338] sm:$0xf] %v590_v14 }
  0xa6   : > { %593 = vst [vmem:[%s5643_s11 + $0x33c] sm:$0xf] %v592_v15  ;;  %595 = vst [vmem:[%s5643_s11 + $0x340] sm:$0xf] %v594_v16  ;;  %v596_v17 = vld [vmem:[%s5636_s10 + $0x9cc] sm:$0xf] }
  0xa7   : > { %v598_v18 = vld [vmem:[%s5636_s10 + $0x9d8] sm:$0xf]  ;;  %v600_v19 = vld [vmem:[%s5636_s10 + $0x9e4] sm:$0xf]  ;;  %597 = vst [vmem:[%s5643_s11 + $0x344] sm:$0xf] %v596_v17 }
  0xa8   : > { %599 = vst [vmem:[%s5643_s11 + $0x348] sm:$0xf] %v598_v18  ;;  %601 = vst [vmem:[%s5643_s11 + $0x34c] sm:$0xf] %v600_v19  ;;  %v602_v20 = vld [vmem:[%s5636_s10 + $0x9f0] sm:$0xf] }
  0xa9   : > { %v604_v21 = vld [vmem:[%s5636_s10 + $0x9fc] sm:$0xf]  ;;  %v606_v22 = vld [vmem:[%s5636_s10 + $0xa08] sm:$0xf]  ;;  %603 = vst [vmem:[%s5643_s11 + $0x350] sm:$0xf] %v602_v20 }
  0xaa   : > { %605 = vst [vmem:[%s5643_s11 + $0x354] sm:$0xf] %v604_v21  ;;  %607 = vst [vmem:[%s5643_s11 + $0x358] sm:$0xf] %v606_v22  ;;  %v608_v23 = vld [vmem:[%s5636_s10 + $0xa14] sm:$0xf] }
  0xab   : > { %v610_v24 = vld [vmem:[%s5636_s10 + $0xa20] sm:$0xf]  ;;  %v612_v25 = vld [vmem:[%s5636_s10 + $0xa2c] sm:$0xf]  ;;  %609 = vst [vmem:[%s5643_s11 + $0x35c] sm:$0xf] %v608_v23 }
  0xac   : > { %611 = vst [vmem:[%s5643_s11 + $0x360] sm:$0xf] %v610_v24  ;;  %613 = vst [vmem:[%s5643_s11 + $0x364] sm:$0xf] %v612_v25  ;;  %v614_v26 = vld [vmem:[%s5636_s10 + $0xa38] sm:$0xf] }
  0xad   : > { %v616_v27 = vld [vmem:[%s5636_s10 + $0xa44] sm:$0xf]  ;;  %v618_v28 = vld [vmem:[%s5636_s10 + $0xa50] sm:$0xf]  ;;  %615 = vst [vmem:[%s5643_s11 + $0x368] sm:$0xf] %v614_v26 }
  0xae   : > { %617 = vst [vmem:[%s5643_s11 + $0x36c] sm:$0xf] %v616_v27  ;;  %619 = vst [vmem:[%s5643_s11 + $0x370] sm:$0xf] %v618_v28  ;;  %v620_v29 = vld [vmem:[%s5636_s10 + $0xa5c] sm:$0xf] }
  0xaf   : > { %v622_v30 = vld [vmem:[%s5636_s10 + $0xa68] sm:$0xf]  ;;  %v624_v31 = vld [vmem:[%s5636_s10 + $0xa74] sm:$0xf]  ;;  %621 = vst [vmem:[%s5643_s11 + $0x374] sm:$0xf] %v620_v29 }
  0xb0   : > { %623 = vst [vmem:[%s5643_s11 + $0x378] sm:$0xf] %v622_v30  ;;  %625 = vst [vmem:[%s5643_s11 + $0x37c] sm:$0xf] %v624_v31  ;;  %v626_v32 = vld [vmem:[%s5636_s10 + $0xa80] sm:$0xf] }
  0xb1   : > { %v628_v33 = vld [vmem:[%s5636_s10 + $0xa8c] sm:$0xf]  ;;  %v630_v34 = vld [vmem:[%s5636_s10 + $0xa98] sm:$0xf]  ;;  %627 = vst [vmem:[%s5643_s11 + $0x380] sm:$0xf] %v626_v32 }
  0xb2   : > { %629 = vst [vmem:[%s5643_s11 + $0x384] sm:$0xf] %v628_v33  ;;  %631 = vst [vmem:[%s5643_s11 + $0x388] sm:$0xf] %v630_v34  ;;  %v632_v35 = vld [vmem:[%s5636_s10 + $0xaa4] sm:$0xf] }
  0xb3   : > { %v634_v36 = vld [vmem:[%s5636_s10 + $0xab0] sm:$0xf]  ;;  %v636_v37 = vld [vmem:[%s5636_s10 + $0xabc] sm:$0xf]  ;;  %633 = vst [vmem:[%s5643_s11 + $0x38c] sm:$0xf] %v632_v35 }
  0xb4   : > { %635 = vst [vmem:[%s5643_s11 + $0x390] sm:$0xf] %v634_v36  ;;  %637 = vst [vmem:[%s5643_s11 + $0x394] sm:$0xf] %v636_v37  ;;  %v638_v38 = vld [vmem:[%s5636_s10 + $0xac8] sm:$0xf] }
  0xb5   : > { %v640_v39 = vld [vmem:[%s5636_s10 + $0xad4] sm:$0xf]  ;;  %v642_v40 = vld [vmem:[%s5636_s10 + $0xae0] sm:$0xf]  ;;  %639 = vst [vmem:[%s5643_s11 + $0x398] sm:$0xf] %v638_v38 }
  0xb6   : > { %641 = vst [vmem:[%s5643_s11 + $0x39c] sm:$0xf] %v640_v39  ;;  %643 = vst [vmem:[%s5643_s11 + $0x3a0] sm:$0xf] %v642_v40  ;;  %v644_v41 = vld [vmem:[%s5636_s10 + $0xaec] sm:$0xf] }
  0xb7   : > { %v646_v42 = vld [vmem:[%s5636_s10 + $0xaf8] sm:$0xf]  ;;  %v648_v43 = vld [vmem:[%s5636_s10 + $0xb04] sm:$0xf]  ;;  %645 = vst [vmem:[%s5643_s11 + $0x3a4] sm:$0xf] %v644_v41 }
  0xb8   : > { %647 = vst [vmem:[%s5643_s11 + $0x3a8] sm:$0xf] %v646_v42  ;;  %649 = vst [vmem:[%s5643_s11 + $0x3ac] sm:$0xf] %v648_v43  ;;  %v650_v44 = vld [vmem:[%s5636_s10 + $0xb10] sm:$0xf] }
  0xb9   : > { %v652_v45 = vld [vmem:[%s5636_s10 + $0xb1c] sm:$0xf]  ;;  %v654_v46 = vld [vmem:[%s5636_s10 + $0xb28] sm:$0xf]  ;;  %651 = vst [vmem:[%s5643_s11 + $0x3b0] sm:$0xf] %v650_v44 }
  0xba   : > { %653 = vst [vmem:[%s5643_s11 + $0x3b4] sm:$0xf] %v652_v45  ;;  %655 = vst [vmem:[%s5643_s11 + $0x3b8] sm:$0xf] %v654_v46  ;;  %v656_v47 = vld [vmem:[%s5636_s10 + $0xb34] sm:$0xf] }
  0xbb   : > { %v658_v48 = vld [vmem:[%s5636_s10 + $0xb40] sm:$0xf]  ;;  %v660_v49 = vld [vmem:[%s5636_s10 + $0xb4c] sm:$0xf]  ;;  %657 = vst [vmem:[%s5643_s11 + $0x3bc] sm:$0xf] %v656_v47 }
  0xbc   : > { %659 = vst [vmem:[%s5643_s11 + $0x3c0] sm:$0xf] %v658_v48  ;;  %661 = vst [vmem:[%s5643_s11 + $0x3c4] sm:$0xf] %v660_v49  ;;  %v662_v50 = vld [vmem:[%s5636_s10 + $0xb58] sm:$0xf] }
  0xbd   : > { %v664_v51 = vld [vmem:[%s5636_s10 + $0xb64] sm:$0xf]  ;;  %v666_v52 = vld [vmem:[%s5636_s10 + $0xb70] sm:$0xf]  ;;  %663 = vst [vmem:[%s5643_s11 + $0x3c8] sm:$0xf] %v662_v50 }
  0xbe   : > { %665 = vst [vmem:[%s5643_s11 + $0x3cc] sm:$0xf] %v664_v51  ;;  %667 = vst [vmem:[%s5643_s11 + $0x3d0] sm:$0xf] %v666_v52  ;;  %v668_v53 = vld [vmem:[%s5636_s10 + $0xb7c] sm:$0xf] }
  0xbf   : > { %v670_v54 = vld [vmem:[%s5636_s10 + $0xb88] sm:$0xf]  ;;  %v672_v55 = vld [vmem:[%s5636_s10 + $0xb94] sm:$0xf]  ;;  %669 = vst [vmem:[%s5643_s11 + $0x3d4] sm:$0xf] %v668_v53 }
  0xc0   : > { %671 = vst [vmem:[%s5643_s11 + $0x3d8] sm:$0xf] %v670_v54  ;;  %673 = vst [vmem:[%s5643_s11 + $0x3dc] sm:$0xf] %v672_v55  ;;  %v674_v56 = vld [vmem:[%s5636_s10 + $0xba0] sm:$0xf] }
  0xc1   : > { %v676_v57 = vld [vmem:[%s5636_s10 + $0xbac] sm:$0xf]  ;;  %v678_v58 = vld [vmem:[%s5636_s10 + $0xbb8] sm:$0xf]  ;;  %675 = vst [vmem:[%s5643_s11 + $0x3e0] sm:$0xf] %v674_v56 }
  0xc2   : > { %677 = vst [vmem:[%s5643_s11 + $0x3e4] sm:$0xf] %v676_v57  ;;  %679 = vst [vmem:[%s5643_s11 + $0x3e8] sm:$0xf] %v678_v58  ;;  %v680_v59 = vld [vmem:[%s5636_s10 + $0xbc4] sm:$0xf] }
  0xc3   : > { %v682_v60 = vld [vmem:[%s5636_s10 + $0xbd0] sm:$0xf]  ;;  %v684_v61 = vld [vmem:[%s5636_s10 + $0xbdc] sm:$0xf]  ;;  %681 = vst [vmem:[%s5643_s11 + $0x3ec] sm:$0xf] %v680_v59 }
  0xc4   : > { %683 = vst [vmem:[%s5643_s11 + $0x3f0] sm:$0xf] %v682_v60  ;;  %685 = vst [vmem:[%s5643_s11 + $0x3f4] sm:$0xf] %v684_v61  ;;  %v686_v62 = vld [vmem:[%s5636_s10 + $0xbe8] sm:$0xf] }
  0xc5   : > { %v688_v63 = vld [vmem:[%s5636_s10 + $0xbf4] sm:$0xf]  ;;  %v690_v0 = vld [vmem:[%s5636_s10 + $0xc00] sm:$0xf]  ;;  %687 = vst [vmem:[%s5643_s11 + $0x3f8] sm:$0xf] %v686_v62 }
  0xc6   : > { %689 = vst [vmem:[%s5643_s11 + $0x3fc] sm:$0xf] %v688_v63  ;;  %691 = vst [vmem:[%s5643_s11 + $0x400] sm:$0xf] %v690_v0  ;;  %v692_v1 = vld [vmem:[%s5636_s10 + $0xc0c] sm:$0xf] }
  0xc7   : > { %v694_v2 = vld [vmem:[%s5636_s10 + $0xc18] sm:$0xf]  ;;  %v696_v3 = vld [vmem:[%s5636_s10 + $0xc24] sm:$0xf]  ;;  %693 = vst [vmem:[%s5643_s11 + $0x404] sm:$0xf] %v692_v1 }
  0xc8   : > { %695 = vst [vmem:[%s5643_s11 + $0x408] sm:$0xf] %v694_v2  ;;  %697 = vst [vmem:[%s5643_s11 + $0x40c] sm:$0xf] %v696_v3  ;;  %v698_v4 = vld [vmem:[%s5636_s10 + $0xc30] sm:$0xf] }
  0xc9   : > { %v700_v5 = vld [vmem:[%s5636_s10 + $0xc3c] sm:$0xf]  ;;  %v702_v6 = vld [vmem:[%s5636_s10 + $0xc48] sm:$0xf]  ;;  %699 = vst [vmem:[%s5643_s11 + $0x410] sm:$0xf] %v698_v4 }
  0xca   : > { %701 = vst [vmem:[%s5643_s11 + $0x414] sm:$0xf] %v700_v5  ;;  %703 = vst [vmem:[%s5643_s11 + $0x418] sm:$0xf] %v702_v6  ;;  %v704_v7 = vld [vmem:[%s5636_s10 + $0xc54] sm:$0xf] }
  0xcb   : > { %v706_v8 = vld [vmem:[%s5636_s10 + $0xc60] sm:$0xf]  ;;  %v708_v9 = vld [vmem:[%s5636_s10 + $0xc6c] sm:$0xf]  ;;  %705 = vst [vmem:[%s5643_s11 + $0x41c] sm:$0xf] %v704_v7 }
  0xcc   : > { %707 = vst [vmem:[%s5643_s11 + $0x420] sm:$0xf] %v706_v8  ;;  %709 = vst [vmem:[%s5643_s11 + $0x424] sm:$0xf] %v708_v9  ;;  %v710_v10 = vld [vmem:[%s5636_s10 + $0xc78] sm:$0xf] }
  0xcd   : > { %v712_v11 = vld [vmem:[%s5636_s10 + $0xc84] sm:$0xf]  ;;  %v714_v12 = vld [vmem:[%s5636_s10 + $0xc90] sm:$0xf]  ;;  %711 = vst [vmem:[%s5643_s11 + $0x428] sm:$0xf] %v710_v10 }
  0xce   : > { %713 = vst [vmem:[%s5643_s11 + $0x42c] sm:$0xf] %v712_v11  ;;  %715 = vst [vmem:[%s5643_s11 + $0x430] sm:$0xf] %v714_v12  ;;  %v716_v13 = vld [vmem:[%s5636_s10 + $0xc9c] sm:$0xf] }
  0xcf   : > { %v718_v14 = vld [vmem:[%s5636_s10 + $0xca8] sm:$0xf]  ;;  %v720_v15 = vld [vmem:[%s5636_s10 + $0xcb4] sm:$0xf]  ;;  %717 = vst [vmem:[%s5643_s11 + $0x434] sm:$0xf] %v716_v13 }
  0xd0   : > { %719 = vst [vmem:[%s5643_s11 + $0x438] sm:$0xf] %v718_v14  ;;  %721 = vst [vmem:[%s5643_s11 + $0x43c] sm:$0xf] %v720_v15  ;;  %v722_v16 = vld [vmem:[%s5636_s10 + $0xcc0] sm:$0xf] }
  0xd1   : > { %v724_v17 = vld [vmem:[%s5636_s10 + $0xccc] sm:$0xf]  ;;  %v726_v18 = vld [vmem:[%s5636_s10 + $0xcd8] sm:$0xf]  ;;  %723 = vst [vmem:[%s5643_s11 + $0x440] sm:$0xf] %v722_v16 }
  0xd2   : > { %725 = vst [vmem:[%s5643_s11 + $0x444] sm:$0xf] %v724_v17  ;;  %727 = vst [vmem:[%s5643_s11 + $0x448] sm:$0xf] %v726_v18  ;;  %v728_v19 = vld [vmem:[%s5636_s10 + $0xce4] sm:$0xf] }
  0xd3   : > { %v730_v20 = vld [vmem:[%s5636_s10 + $0xcf0] sm:$0xf]  ;;  %v732_v21 = vld [vmem:[%s5636_s10 + $0xcfc] sm:$0xf]  ;;  %729 = vst [vmem:[%s5643_s11 + $0x44c] sm:$0xf] %v728_v19 }
  0xd4   : > { %731 = vst [vmem:[%s5643_s11 + $0x450] sm:$0xf] %v730_v20  ;;  %733 = vst [vmem:[%s5643_s11 + $0x454] sm:$0xf] %v732_v21  ;;  %v734_v22 = vld [vmem:[%s5636_s10 + $0xd08] sm:$0xf] }
  0xd5   : > { %v736_v23 = vld [vmem:[%s5636_s10 + $0xd14] sm:$0xf]  ;;  %v738_v24 = vld [vmem:[%s5636_s10 + $0xd20] sm:$0xf]  ;;  %735 = vst [vmem:[%s5643_s11 + $0x458] sm:$0xf] %v734_v22 }
  0xd6   : > { %737 = vst [vmem:[%s5643_s11 + $0x45c] sm:$0xf] %v736_v23  ;;  %739 = vst [vmem:[%s5643_s11 + $0x460] sm:$0xf] %v738_v24  ;;  %v740_v25 = vld [vmem:[%s5636_s10 + $0xd2c] sm:$0xf] }
  0xd7   : > { %v742_v26 = vld [vmem:[%s5636_s10 + $0xd38] sm:$0xf]  ;;  %v744_v27 = vld [vmem:[%s5636_s10 + $0xd44] sm:$0xf]  ;;  %741 = vst [vmem:[%s5643_s11 + $0x464] sm:$0xf] %v740_v25 }
  0xd8   : > { %743 = vst [vmem:[%s5643_s11 + $0x468] sm:$0xf] %v742_v26  ;;  %745 = vst [vmem:[%s5643_s11 + $0x46c] sm:$0xf] %v744_v27  ;;  %v746_v28 = vld [vmem:[%s5636_s10 + $0xd50] sm:$0xf] }
  0xd9   : > { %v748_v29 = vld [vmem:[%s5636_s10 + $0xd5c] sm:$0xf]  ;;  %v750_v30 = vld [vmem:[%s5636_s10 + $0xd68] sm:$0xf]  ;;  %747 = vst [vmem:[%s5643_s11 + $0x470] sm:$0xf] %v746_v28 }
  0xda   : > { %749 = vst [vmem:[%s5643_s11 + $0x474] sm:$0xf] %v748_v29  ;;  %751 = vst [vmem:[%s5643_s11 + $0x478] sm:$0xf] %v750_v30  ;;  %v752_v31 = vld [vmem:[%s5636_s10 + $0xd74] sm:$0xf] }
  0xdb   : > { %753 = vst [vmem:[%s5643_s11 + $0x47c] sm:$0xf] %v752_v31 }
  0xdc PF: > { %p4217_p11 = scmp.ge.s32.totalorder %s5534_s20, 1  ;;  %p1357_p12 = scmp.lt.s32.totalorder %s5534_s20, 7 }
  0xde   : > { %p1358_p13 = pnand %p4217_p11, %p1357_p12 }
  0xdf   : > { %s1364_s21 = sand.u32 (!%p1358_p13), 1, %s5510_s14   ;;  %p1394_p0 = scmp.lt.s32.totalorder (!%p1358_p13), %s5522_s17, 1  ;;  %vm1903_vm0 = vsmask.f32 (!%p1358_p13), 3328  ;;  %vm1904_vm1 = vsmask.f32 (!%p1358_p13), 7440 }
  0xe0   : > { %1361 = sbr.rel (%p1358_p13) target bundleno = 634 (0x27a), region = 69  ;;  %vm6326_vm2 = vmor (!%p1358_p13), %vm1903_vm0, %vm1904_vm1  ;;  %p1399_p1 = scmp.lt.s32.totalorder (!%p1358_p13), %s5518_s16, 2 }
  0xe1   : > { %s5185_s24 = smul.u32 (!%p1358_p13), 1152, %s1364_s21  ;;  %s1391_s10 = sand.u32 (!%p1358_p13), 1, %s5502_s12  }
  0xe2   : > { %s4218_s11 = sshll.u32 (!%p1358_p13), %s1391_s10, 5 }
  0xe3   : > { %s6219_s25 = scalar_lea.vmem (!%p1358_p13), [#allocation2], %s5185_s24  ;;  %s6629_s12 = scalar_lea.vmem (!%p1358_p13), [#allocation3], %s4218_s11 }
  0xe4   : > { %v5260_v32 = vld [vmem:[%s6219_s25 + $0xc0] sm:$0xff] (!%p1358_p13)   ;;  %v5264_v36 = vld [vmem:[%s6219_s25 + $0xc8] sm:$0xff] (!%p1358_p13)   ;;  %v5268_v40 = vld [vmem:[%s6219_s25 + $0xd0] sm:$0xff] (!%p1358_p13)  }
  0xe5   : > { %v5261_v33 = vld [vmem:[%s6219_s25 + $0x40] sm:$0xff] (!%p1358_p13)   ;;  %4808 = vmatprep.subr.bf16.mxu0 (!%p1358_p13), %v5260_v32  ;;  %v5265_v37 = vld [vmem:[%s6219_s25 + $0x48] sm:$0xff] (!%p1358_p13)   ;;  %v5269_v41 = vld [vmem:[%s6219_s25 + $0x50] sm:$0xff] (!%p1358_p13)  }
  0xe6   : > { %v5262_v34 = vld [vmem:[%s6219_s25 + $0x80] sm:$0xff] (!%p1358_p13)   ;;  %4848 = vmatprep.subr.bf16.mxu1 (!%p1358_p13), %v5261_v33  ;;  %v5266_v38 = vld [vmem:[%s6219_s25 + $0x88] sm:$0xff] (!%p1358_p13)   ;;  %v5270_v42 = vld [vmem:[%s6219_s25 + $0x90] sm:$0xff] (!%p1358_p13)  }
  0xe7   : > { %v5263_v35 = vld [vmem:[%s6219_s25] sm:$0xff]   ;;  %4809 = vmatpush3.bf16.msra.mxu0 %v5262_v34  ;;  %v5267_v39 = vld [vmem:[%s6219_s25 + $0x8] sm:$0xff]   ;;  %v5271_v43 = vld [vmem:[%s6219_s25 + $0x10] sm:$0xff]   ;;  %s1395_s14 = scalar_select %p1394_p0, %s5522_s17, 1 }
  0xe8   : > { %4849 = vmatpush3.bf16.msra.mxu1 %v5263_v35  ;;  %4810 = vmatprep.subr.bf16.mxu0 %v5264_v36  ;;  %v5272_v44 = vld [vmem:[%s6219_s25 + $0xd8] sm:$0xff]   ;;  %v5276_v48 = vld [vmem:[%s6219_s25 + $0xe0] sm:$0xff]   ;;  %v5280_v52 = vld [vmem:[%s6219_s25 + $0xe8] sm:$0xff]   ;;  %s1400_s6 = scalar_select %p1399_p1, %s5518_s16, 2 }
  0xe9   : > { %4850 = vmatprep.subr.bf16.mxu1 %v5265_v37  ;;  %v5273_v45 = vld [vmem:[%s6219_s25 + $0x58] sm:$0xff]   ;;  %v5277_v49 = vld [vmem:[%s6219_s25 + $0x60] sm:$0xff]   ;;  %v5281_v53 = vld [vmem:[%s6219_s25 + $0x68] sm:$0xff]   ;;  %s5186_s26 = smul.u32 576, %s1395_s14 }
  0xea   : > { %v5274_v46 = vld [vmem:[%s6219_s25 + $0x98] sm:$0xff]   ;;  %v5278_v50 = vld [vmem:[%s6219_s25 + $0xa0] sm:$0xff]   ;;  %v5282_v54 = vld [vmem:[%s6219_s25 + $0xa8] sm:$0xff]   ;;  %s1401_s9 = scalar_lea.vmem %s6680_s2, %s1400_s6  ;;  %s5187_s21 = smul.u32 (%p5623_p9), 24, %s5522_s17 }
  0xeb   : > { %4811 = vmatpush3.bf16.msra.mxu0 %v5266_v38  ;;  %v5275_v47 = vld [vmem:[%s6219_s25 + $0x18] sm:$0xff]   ;;  %v5279_v51 = vld [vmem:[%s6219_s25 + $0x20] sm:$0xff]   ;;  %v5283_v55 = vld [vmem:[%s6219_s25 + $0x28] sm:$0xff]   ;;  %s6257_s5 = scalar_lea.vmem %s6678_s0, %s5186_s26 }
  0xec   : > { %4851 = vmatpush3.bf16.msra.mxu1 %v5267_v39  ;;  %4812 = vmatprep.subr.bf16.mxu0 %v5268_v40  ;;  %v5284_v56 = vld [vmem:[%s6219_s25 + $0xf0] sm:$0xff]   ;;  %v5288_v60 = vld [vmem:[%s6219_s25 + $0xf8] sm:$0xff]   ;;  %v1403_v2 = vld [vmem:[%s6257_s5] sm:$0xff]  ;;  %s4051_s24 = sadd.s32 (%p5623_p9), %s5518_s16, %s5187_s21 }
  0xed   : > { %4852 = vmatprep.subr.bf16.mxu1 %v5269_v41  ;;  %v5285_v57 = vld [vmem:[%s6219_s25 + $0x70] sm:$0xff]   ;;  %v5289_v61 = vld [vmem:[%s6219_s25 + $0x78] sm:$0xff]   ;;  %v5297_v6 = vld [vmem:[%s6219_s25 + $0x140] sm:$0xff]   ;;  %v1907_v12 = vshrl.u32 %v1403_v2, 16  ;;  %v1910_v14 = vshll.u32 %v1403_v2, 16  ;;  %s4774_s30 = sshll.u32 (%p5623_p9), %s4051_s24, 2 }
  0xee   : > { %v5286_v58 = vld [vmem:[%s6219_s25 + $0xb0] sm:$0xff]   ;;  %v5290_v62 = vld [vmem:[%s6219_s25 + $0xb8] sm:$0xff]   ;;  %v5298_v7 = vld [vmem:[%s6219_s25 + $0x1c0] sm:$0xff]   ;;  %s4053_s26 = scalar_lea.vmem (%p5623_p9), %s6681_s3, %s4774_s30 }
  0xef   : > { %4813 = vmatpush3.bf16.msra.mxu0 %v5270_v42  ;;  %v5287_v59 = vld [vmem:[%s6219_s25 + $0x30] sm:$0xff]   ;;  %v5291_v63 = vld [vmem:[%s6219_s25 + $0x38] sm:$0xff]   ;;  %v5299_v8 = vld [vmem:[%s6219_s25 + $0x100] sm:$0xff]   ;;  %v6276_v20 = vrot.slane %v1907_v12, 4  ;;  %v1912_v24 = vrot.slane %v1910_v14, 5 }
  0xf0   : > { %4853 = vmatpush3.bf16.msra.mxu1 %v5271_v43  ;;  %4814 = vmatprep.subr.bf16.mxu0 %v5272_v44  ;;  %v5292_v0 = vld [vmem:[%s6257_s5 + $0x90] ss:$16 sps:$4 sm:$0xff]   ;;  %v5294_v1 = vld [vmem:[%s6257_s5 + $0x94] ss:$16 sps:$4 sm:$0xff]   ;;  %v5301_v10 = vld [vmem:[%s6219_s25 + $0x148] sm:$0xff]  }
  0xf1   : > { %4854 = vmatprep.subr.bf16.mxu1 %v5273_v45  ;;  %v1404_v3 = vld [vmem:[%s6257_s5 + $0x10] sm:$0xff]  ;;  %1653 = vmatprep.mubr.bf16.mxu0 %v5294_v1  ;;  %v5300_v9 = vld [vmem:[%s6219_s25 + $0x180] sm:$0xff]   ;;  %v5302_v11 = vld [vmem:[%s6219_s25 + $0x1c8] sm:$0xff]  }
  0xf2   : > { %v4284_v4 = vcombine.low %v1403_v2, %v1404_v3  ;;  %v4285_v5 = vcombine.high %v1403_v2, %v1404_v3  ;;  %v5303_v13 = vld [vmem:[%s6219_s25 + $0x108] sm:$0xff]   ;;  %v5305_v16 = vld [vmem:[%s6257_s5 + $0xb4] ss:$16 sps:$4 sm:$0xff]   ;;  %v5308_v19 = vld [vmem:[%s6257_s5 + $0xb0] ss:$16 sps:$4 sm:$0xff]   ;;  %v1921_v26 = vshrl.u32 %v1404_v3, 16 }
  0xf3   : > { %4815 = vmatpush3.bf16.msra.mxu0 %v5274_v46  ;;  %v5304_v15 = vld [vmem:[%s6219_s25 + $0x188] sm:$0xff]   ;;  %v1405_v17 = vld [vmem:[%s6257_s5 + $0x20] sm:$0xff]  ;;  %v1406_v18 = vld [vmem:[%s6257_s5 + $0x30] sm:$0xff]  ;;  %v1924_v28 = vshll.u32 %v1404_v3, 16 }
  0xf4   : > { %4855 = vmatpush3.bf16.msra.mxu1 %v5275_v47  ;;  %4816 = vmatprep.subr.bf16.mxu0 %v5276_v48  ;;  %v4287_v21 = vcombine.high %v1405_v17, %v1406_v18  ;;  %v4286_v22 = vcombine.low %v1405_v17, %v1406_v18  ;;  %v5310_v23 = vld [vmem:[%s6219_s25 + $0x150] sm:$0xff]   ;;  %v1935_v30 = vshrl.u32 %v1405_v17, 16  ;;  %v5314_v31 = vld [vmem:[%s6219_s25 + $0x158] sm:$0xff]   ;;  %v1938_v32 = vshll.u32 %v1405_v17, 16  ;;  %v1407_v42 = vld [vmem:[%s6257_s5 + $0x40] sm:$0xff] }
  0xf5   : > { %4856 = vmatprep.subr.bf16.mxu1 %v5277_v49  ;;  %1854 = vmatprep.mubr.bf16.mxu1 %v4285_v5  ;;  %v5311_v25 = vld [vmem:[%s6219_s25 + $0x1d0] sm:$0xff]   ;;  %v5315_v33 = vld [vmem:[%s6219_s25 + $0x1d8] sm:$0xff]   ;;  %v1949_v34 = vshrl.u32 %v1406_v18, 16  ;;  %v1952_v36 = vshll.u32 %v1406_v18, 16  ;;  %v1923_v38 = vrot.slane %v1921_v26, 4  ;;  %v1926_v40 = vrot.slane %v1924_v28, 5 }
  0xf6   : > { %v5312_v27 = vld [vmem:[%s6219_s25 + $0x110] sm:$0xff]   ;;  %v5316_v35 = vld [vmem:[%s6219_s25 + $0x118] sm:$0xff]   ;;  %v1937_v41 = vrot.slane %v1935_v30, 4  ;;  %v1940_v45 = vrot.slane %v1938_v32, 5  ;;  %v5323_v49 = vld [vmem:[%s6219_s25 + $0x160] sm:$0xff]  }
  0xf7   : > { %4817 = vmatpush3.bf16.msra.mxu0 %v5278_v50  ;;  %v5313_v29 = vld [vmem:[%s6219_s25 + $0x190] sm:$0xff]   ;;  %v5317_v37 = vld [vmem:[%s6219_s25 + $0x198] sm:$0xff]   ;;  %v1951_v46 = vrot.slane %v1949_v34, 4  ;;  %v1954_v50 = vrot.slane %v1952_v36, 5  ;;  %v1409_v5 = vld [vmem:[%s6257_s5 + $0x60] sm:$0xff] }
  0xf8   : > { %4857 = vmatpush3.bf16.msra.mxu1 %v5279_v51  ;;  %4818 = vmatprep.subr.bf16.mxu0 %v5280_v52  ;;  %v5318_v39 = vld [vmem:[%s6257_s5 + $0xd4] ss:$16 sps:$4 sm:$0xff]   ;;  %v5321_v44 = vld [vmem:[%s6257_s5 + $0xd0] ss:$16 sps:$4 sm:$0xff]   ;;  %v1991_v18 = vshrl.u32 %v1409_v5, 16 }
  0xf9   : > { %4858 = vmatprep.subr.bf16.mxu1 %v5281_v53  ;;  %v6289_v43 = vld [vmem:[%s6257_s5 + $0x50] sm:$0xff]  ;;  %v5324_v51 = vld [vmem:[%s6219_s25 + $0x1e0] sm:$0xff]   ;;  %v1913_v53 = vor.u32 %v1912_v24, %v6276_v20  ;;  %v1994_v20 = vshll.u32 %v1409_v5, 16  ;;  %v1890_v30 = vld [vmem:[%s6257_s5 + $0x18] sm:$0x11] }
  0xfa   : > { %v4289_v47 = vcombine.high %v1407_v42, %v6289_v43  ;;  %v4288_v48 = vcombine.low %v1407_v42, %v6289_v43  ;;  %v5325_v52 = vld [vmem:[%s6219_s25 + $0x120] sm:$0xff]   ;;  %v5336_v12 = vld [vmem:[%s6219_s25 + $0x170] sm:$0xff]   ;;  %v1993_v26 = vrot.slane %v1991_v18, 4  ;;  %v1930_v34 = vshll.u32 %v1890_v30, 16 }
  0xfb   : > { %4819 = vmatpush3.bf16.msra.mxu0 %v5282_v54  ;;  %v5326_v54 = vld [vmem:[%s6219_s25 + $0x1a0] sm:$0xff]   ;;  %v5337_v14 = vld [vmem:[%s6219_s25 + $0x1f0] sm:$0xff]   ;;  %v1996_v28 = vrot.slane %v1994_v20, 5 }
  0xfc   : > { %4859 = vmatpush3.bf16.msra.mxu1 %v5283_v55  ;;  %4820 = vmatprep.subr.bf16.mxu0 %v5284_v56  ;;  %v1927_v55 = vor.u32 %v1926_v40, %v1923_v38  ;;  %v5327_v56 = vld [vmem:[%s6219_s25 + $0x168] sm:$0xff]   ;;  %v5331_v2 = vld [vmem:[%s6257_s5 + $0xf4] ss:$16 sps:$4 sm:$0xff]  }
  0xfd   : > { %4860 = vmatprep.subr.bf16.mxu1 %v5285_v57  ;;  %v1941_v57 = vor.u32 %v1940_v45, %v1937_v41  ;;  %v5346_v36 = vld [vmem:[%s6219_s25 + $0x240] sm:$0xff]   ;;  %v1932_v41 = vrot.slane %v1930_v34, 5  ;;  %v5359_v18 = vld [vmem:[%s6219_s25 + $0x290] sm:$0xff]  }
  0xfe   : > { %v6305_v1 = vrot.slane %v1927_v55, 4  ;;  %v1997_v55 = vor.u32 %v1996_v28, %v1993_v26  ;;  %v5363_v26 = vld [vmem:[%s6219_s25 + $0x298] sm:$0xff]  }
  0xff   : > { %4821 = vmatpush3.bf16.msra.mxu0 %v5286_v58  ;;  %v1955_v58 = vor.u32 %v1954_v50, %v1951_v46  ;;  %v6308_v3 = vrot.slane %v1941_v57, 4  ;;  %v5352_v57 = vld [vmem:[%s6219_s25 + $0x208] sm:$0xff]  }
 0x100   : > { %4861 = vmatpush3.bf16.msra.mxu1 %v5287_v59  ;;  %4822 = vmatprep.subr.bf16.mxu0 %v5288_v60  ;;  %v1963_v59 = vshrl.u32 %v1407_v42, 16  ;;  %v5328_v60 = vld [vmem:[%s6219_s25 + $0x1e8] sm:$0xff]  }
 0x101   : > { %4862 = vmatprep.subr.bf16.mxu1 %v5289_v61  ;;  %v1966_v61 = vshll.u32 %v1407_v42, 16  ;;  %v5347_v42 = vld [vmem:[%s6219_s25 + $0x2c0] sm:$0xff]  }
 0x103   : > { %4823 = vmatpush3.bf16.msra.mxu0 %v5290_v62  ;;  %v5329_v62 = vld [vmem:[%s6219_s25 + $0x128] sm:$0xff]  }
 0x104   : > { %4863 = vmatpush3.bf16.msra.mxu1 %v5291_v63  ;;  %4888 = vmatprep.subr.bf16.mxu0 %v5297_v6  ;;  %v6302_v63 = vrot.slane %v1913_v53, 4  ;;  %v6314_v6 = vld [vmem:[%s6257_s5 + $0x70] sm:$0xff] }
 0x105   : > { %4928 = vmatprep.subr.bf16.mxu1 %v5298_v7  ;;  %v5334_v7 = vld [vmem:[%s6257_s5 + $0xf0] ss:$16 sps:$4 sm:$0xff]   ;;  %v2005_v32 = vshrl.u32 %v6314_v6, 16 }
 0x106   : > { %1654 = vmatmul.mubr.bf16.vlgmr.msra.gmra.mrb[0].mxu0 %v5292_v0  ;;  %v5330_v0 = vld [vmem:[%s6219_s25 + $0x1a8] sm:$0xff]  }
 0x107   : > { %1855 = vmatmul.mubr.bf16.vlgmr.msra.gmra.mrb[0].mxu1 %v4284_v4  ;;  %4889 = vmatpush3.bf16.msra.mxu0 %v5299_v8  ;;  %v6310_v4 = vrot.slane %v1955_v58, 4  ;;  %v1965_v8 = vrot.slane %v1963_v59, 4  ;;  %v2007_v53 = vrot.slane %v2005_v32, 4  ;;  %v5353_v59 = vld [vmem:[%s6219_s25 + $0x288] sm:$0xff]   ;;  %v6411_v32 = vld [vmem:[%s6257_s5 + $0x170] sm:$0xff] }
 0x108   : > { %4929 = vmatpush3.bf16.msra.mxu1 %v5300_v9  ;;  %4890 = vmatprep.subr.bf16.mxu0 %v5301_v10  ;;  %v1968_v9 = vrot.slane %v1966_v61, 5  ;;  %v4291_v10 = vcombine.high %v1409_v5, %v6314_v6  ;;  %v1894_v61 = vld [vmem:[%s6257_s5 + $0x38] sm:$0x11] }
 0x109   : > { %4930 = vmatprep.subr.bf16.mxu1 %v5302_v11  ;;  %1661 = vmatprep.mubr.bf16.mxu0 %v5305_v16  ;;  %v4290_v11 = vcombine.low %v1409_v5, %v6314_v6  ;;  %v5338_v16 = vld [vmem:[%s6219_s25 + $0x130] sm:$0xff]  }
 0x10a   : > { %1862 = vmatprep.mubr.bf16.mxu1 %v4287_v21  ;;  %v5340_v21 = vld [vmem:[%s6219_s25 + $0x178] sm:$0xff]  }
 0x10b   : > { %4891 = vmatpush3.bf16.msra.mxu0 %v5303_v13  ;;  %v1977_v13 = vshrl.u32 %v6289_v43, 16 }
 0x10c   : > { %4931 = vmatpush3.bf16.msra.mxu1 %v5304_v15  ;;  %4892 = vmatprep.subr.bf16.mxu0 %v5310_v23  ;;  %v1980_v15 = vshll.u32 %v6289_v43, 16  ;;  %v5341_v23 = vld [vmem:[%s6219_s25 + $0x1f8] sm:$0xff]   ;;  %v2008_v43 = vshll.u32 %v6314_v6, 16 }
 0x10d   : > { %4932 = vmatprep.subr.bf16.mxu1 %v5311_v25  ;;  %v5342_v25 = vld [vmem:[%s6219_s25 + $0x138] sm:$0xff]  }
 0x10e   : > { %1662 = vmatmul.mubr.bf16.gmra.mrb[4].mxu0 %v5308_v19  ;;  %v5339_v19 = vld [vmem:[%s6219_s25 + $0x1b0] sm:$0xff]   ;;  %v1982_v24 = vrot.slane %v1980_v15, 5 }
 0x10f   : > { %1863 = vmatmul.mubr.bf16.gmra.mrb[4].mxu1 %v4286_v22  ;;  %4893 = vmatpush3.bf16.msra.mxu0 %v5312_v27  ;;  %v1979_v22 = vrot.slane %v1977_v13, 4  ;;  %v5343_v27 = vld [vmem:[%s6219_s25 + $0x1b8] sm:$0xff]  }
 0x110   : > { %4933 = vmatpush3.bf16.msra.mxu1 %v5313_v29  ;;  %4894 = vmatprep.subr.bf16.mxu0 %v5314_v31  ;;  %v1888_v29 = vld [vmem:[%s6257_s5 + $0x8] sm:$0x11]  ;;  %v6338_v31 = vld [vmem:[%s6257_s5 + $0x120] sm:$0xff] }
 0x111   : > { %4934 = vmatprep.subr.bf16.mxu1 %v5315_v33  ;;  %1669 = vmatprep.mubr.bf16.mxu0 %v5318_v39  ;;  %v1916_v33 = vshll.u32 %v1888_v29, 16  ;;  %v1983_v45 = vor.u32 %v1982_v24, %v1979_v22  ;;  %v2774_v13 = vshll.u32 %v6338_v31, 16  ;;  %v5360_v22 = vld [vmem:[%s6219_s25 + $0x258] sm:$0xff]  }
 0x112   : > { %1870 = vmatprep.mubr.bf16.mxu1 %v4289_v47  ;;  %v1933_v47 = vsel %vm6326_vm2, %v6305_v1, %v1932_v41  ;;  %v6371_v1 = vld [vmem:[%s6257_s5 + $0x140] sm:$0xff]  ;;  %v1898_v29 = vld [vmem:[%s6257_s5 + $0x58] sm:$0x11] }
 0x113   : > { %4895 = vmatpush3.bf16.msra.mxu0 %v5316_v35  ;;  %v6342_v35 = vld [vmem:[%s6257_s5 + $0x130] sm:$0xff]  ;;  %v1918_v40 = vrot.slane %v1916_v33, 5  ;;  %v6364_v58 = vrot.slane %v1983_v45, 4  ;;  %v6399_v24 = vrot.slane %v2774_v13, 5  ;;  %v2799_v33 = vshrl.u32 %v6371_v1, 16  ;;  %v5368_v41 = vld [vmem:[%s6219_s25 + $0x220] sm:$0xff]  }
 0x114   : > { %4935 = vmatpush3.bf16.msra.mxu1 %v5317_v37  ;;  %4896 = vmatprep.subr.bf16.mxu0 %v5323_v49  ;;  %v1969_v37 = vor.u32 %v1968_v9, %v1965_v8  ;;  %v4404_v38 = vcombine.low %v6338_v31, %v6342_v35  ;;  %v4405_v39 = vcombine.high %v6338_v31, %v6342_v35  ;;  %v6381_v8 = vrot.slane %v1997_v55, 4 }
 0x115   : > { %4936 = vmatprep.subr.bf16.mxu1 %v5324_v51  ;;  %v1919_v46 = vsel %vm6326_vm2, %v6302_v63, %v1918_v40  ;;  %v2788_v28 = vshll.u32 %v6342_v35, 16  ;;  %v1986_v34 = vshll.u32 %v1898_v29, 16 }
 0x116   : > { %1670 = vmatmul.mubr.bf16.gmra.mrb[8].mxu0 %v5321_v44  ;;  %v5348_v44 = vld [vmem:[%s6219_s25 + $0x200] sm:$0xff]   ;;  %v6359_v49 = vrot.slane %v1969_v37, 4  ;;  %v4340_v50 = vcombine.low %v1919_v46, %v1933_v47  ;;  %v4341_v51 = vcombine.high %v1919_v46, %v1933_v47  ;;  %v5370_v46 = vld [vmem:[%s6219_s25 + $0x268] sm:$0xff]  }
 0x117   : > { %1871 = vmatmul.mubr.bf16.gmra.mrb[8].mxu1 %v4288_v48  ;;  %4897 = vmatpush3.bf16.msra.mxu0 %v5325_v52  ;;  %v5349_v48 = vld [vmem:[%s6219_s25 + $0x280] sm:$0xff]   ;;  %v5350_v52 = vld [vmem:[%s6219_s25 + $0x248] sm:$0xff]   ;;  %v1988_v40 = vrot.slane %v1986_v34, 5  ;;  %v2790_v47 = vrot.slane %v2788_v28, 5 }
 0x118   : > { %4937 = vmatpush3.bf16.msra.mxu1 %v5326_v54  ;;  %4898 = vmatprep.subr.bf16.mxu0 %v5327_v56  ;;  %v5351_v54 = vld [vmem:[%s6219_s25 + $0x2c8] sm:$0xff]   ;;  %v2010_v56 = vrot.slane %v2008_v43, 5  ;;  %v5366_v37 = vld [vmem:[%s6219_s25 + $0x260] sm:$0xff]  }
 0x119   : > { %4938 = vmatprep.subr.bf16.mxu1 %v5328_v60  ;;  %1677 = vmatprep.mubr.bf16.mxu0 %v5331_v2  ;;  %v1892_v60 = vld [vmem:[%s6257_s5 + $0x28] sm:$0x11]  ;;  %v6374_v2 = vld [vmem:[%s6257_s5 + $0x150] sm:$0xff]  ;;  %v5369_v43 = vld [vmem:[%s6219_s25 + $0x2a0] sm:$0xff]   ;;  %v1989_v45 = vsel %vm6326_vm2, %v6364_v58, %v1988_v40  ;;  %v2841_v40 = vshrl.u32 %v6411_v32, 16 }
 0x11a   : > { %1878 = vmatprep.mubr.bf16.mxu1 %v4291_v10  ;;  %v1944_v63 = vshll.u32 %v1892_v60, 16  ;;  %v4407_v5 = vcombine.high %v6371_v1, %v6374_v2  ;;  %v4406_v6 = vcombine.low %v6371_v1, %v6374_v2  ;;  %v2011_v9 = vor.u32 %v2010_v56, %v2007_v53  ;;  %v1900_v56 = vld [vmem:[%s6257_s5 + $0x68] sm:$0x11]  ;;  %v6439_v58 = vld [vmem:[%s6257_s5 + $0x180] sm:$0xff] }
 0x11b   : > { %4899 = vmatpush3.bf16.msra.mxu0 %v5329_v62  ;;  %v2771_v62 = vshrl.u32 %v6338_v31, 16  ;;  %v6408_v31 = vld [vmem:[%s6257_s5 + $0x160] sm:$0xff]  ;;  %v2801_v53 = vrot.slane %v2799_v33, 4  ;;  %v2813_v55 = vshrl.u32 %v6374_v2, 16  ;;  %v2000_v60 = vshll.u32 %v1900_v56, 16 }
 0x11c   : > { %4939 = vmatpush3.bf16.msra.mxu1 %v5330_v0  ;;  %4900 = vmatprep.subr.bf16.mxu0 %v5336_v12  ;;  %v1958_v0 = vshll.u32 %v1894_v61, 16  ;;  %v1946_v10 = vrot.slane %v1944_v63, 5  ;;  %v5357_v12 = vld [vmem:[%s6219_s25 + $0x2d0] sm:$0xff]   ;;  %v2830_v29 = vshll.u32 %v6408_v31, 16  ;;  %v4495_v33 = vld [vmem:[%s6257_s5 + $0x138] sm:$0x11] }
 0x11d   : > { %4940 = vmatprep.subr.bf16.mxu1 %v5337_v14  ;;  %v5358_v14 = vld [vmem:[%s6219_s25 + $0x210] sm:$0xff]   ;;  %v2855_v56 = vshrl.u32 %v6439_v58, 16 }
 0x11e   : > { %1678 = vmatmul.mubr.bf16.gmra.mrb[12].mxu0 %v5334_v7  ;;  %v5356_v7 = vld [vmem:[%s6219_s25 + $0x250] sm:$0xff]   ;;  %v1947_v15 = vsel %vm6326_vm2, %v6308_v3, %v1946_v10  ;;  %v5361_v3 = vld [vmem:[%s6219_s25 + $0x2d8] sm:$0xff]  }
 0x11f   : > { %1879 = vmatmul.mubr.bf16.gmra.mrb[12].mxu1 %v4290_v11  ;;  %4901 = vmatpush3.bf16.msra.mxu0 %v5338_v16  ;;  %v1960_v11 = vrot.slane %v1958_v0, 5  ;;  %v5376_v63 = vld [vmem:[%s6219_s25 + $0x270] sm:$0xff]  }
 0x120   : > { %4941 = vmatpush3.bf16.msra.mxu1 %v5339_v19  ;;  %4902 = vmatprep.subr.bf16.mxu0 %v5340_v21  ;;  %v6393_v19 = vrot.slane %v2771_v62, 4  ;;  %v6442_v62 = vld [vmem:[%s6257_s5 + $0x190] sm:$0xff] }
 0x121   : > { %4942 = vmatprep.subr.bf16.mxu1 %v5341_v23  ;;  %2462 = vmatprep.mubr.bf16.mxu1 %v4405_v39  ;;  %v1961_v16 = vsel %vm6326_vm2, %v6310_v4, %v1960_v11  ;;  %v6396_v23 = vrot.slane %v2011_v9, 4  ;;  %v5362_v4 = vld [vmem:[%s6219_s25 + $0x218] sm:$0xff]   ;;  %v5367_v39 = vld [vmem:[%s6219_s25 + $0x2e0] sm:$0xff]   ;;  %v4411_v0 = vcombine.high %v6439_v58, %v6442_v62  ;;  %v5378_v9 = vld [vmem:[%s6219_s25 + $0x230] sm:$0xff]  }
 0x122   : > { %2211 = vmatprep.mubr.bf16.mxu0 %v4341_v51  ;;  %v4343_v20 = vcombine.high %v1947_v15, %v1961_v16  ;;  %v4342_v21 = vcombine.low %v1947_v15, %v1961_v16  ;;  %v2802_v51 = vshll.u32 %v6371_v1, 16  ;;  %v4410_v1 = vcombine.low %v6439_v58, %v6442_v62 }
 0x123   : > { %4903 = vmatpush3.bf16.msra.mxu0 %v5342_v25  ;;  %v2785_v25 = vshrl.u32 %v6342_v35, 16  ;;  %v4408_v35 = vcombine.low %v6408_v31, %v6411_v32  ;;  %v2777_v10 = vor.u32 %v6399_v24, %v6393_v19  ;;  %v2815_v16 = vrot.slane %v2813_v55, 4  ;;  %v5380_v19 = vld [vmem:[%s6219_s25 + $0x278] sm:$0xff]  }
 0x124   : > { %4943 = vmatpush3.bf16.msra.mxu1 %v5343_v27  ;;  %4968 = vmatprep.subr.bf16.mxu0 %v5346_v36  ;;  %v1896_v27 = vld [vmem:[%s6257_s5 + $0x48] sm:$0x11]  ;;  %v4409_v36 = vcombine.high %v6408_v31, %v6411_v32  ;;  %v5383_v24 = vld [vmem:[%s6219_s25 + $0x2b8] sm:$0xff]   ;;  %v2844_v55 = vshll.u32 %v6411_v32, 16 }
 0x125   : > { %5008 = vmatprep.subr.bf16.mxu1 %v5347_v42  ;;  %v1972_v30 = vshll.u32 %v1896_v27, 16  ;;  %v4493_v27 = vld [vmem:[%s6257_s5 + $0x128] sm:$0x11] }
 0x126   : > { %2212 = vmatmul.mubr.bf16.vlgmr.msra.gmra.mrb[16].mxu0 %v4340_v50  ;;  %v2780_v34 = vshll.u32 %v4493_v27, 16 }
 0x127   : > { %2463 = vmatmul.mubr.bf16.vlgmr.msra.gmra.mrb[16].mxu1 %v4404_v38  ;;  %4969 = vmatpush3.bf16.msra.mxu0 %v5348_v44  ;;  %v1974_v38 = vrot.slane %v1972_v30, 5  ;;  %v6425_v44 = vrot.slane %v2785_v25, 4  ;;  %v5384_v30 = vld [vmem:[%s6257_s5 + $0x1b0] ss:$16 sps:$4 sm:$0xff]  }
 0x128   : > { %5009 = vmatpush3.bf16.msra.mxu1 %v5349_v48  ;;  %4970 = vmatprep.subr.bf16.mxu0 %v5350_v52  ;;  %v5372_v52 = vld [vmem:[%s6219_s25 + $0x228] sm:$0xff]  }
 0x129   : > { %5010 = vmatprep.subr.bf16.mxu1 %v5351_v54  ;;  %2470 = vmatprep.mubr.bf16.mxu1 %v4407_v5  ;;  %v1975_v42 = vsel %vm6326_vm2, %v6359_v49, %v1974_v38  ;;  %v5371_v49 = vld [vmem:[%s6219_s25 + $0x2e8] sm:$0xff]   ;;  %v2002_v5 = vrot.slane %v2000_v60, 5  ;;  %v2791_v11 = vor.u32 %v2790_v47, %v6425_v44 }
 0x12a   : > { %2219 = vmatprep.mubr.bf16.mxu0 %v4343_v20  ;;  %v4345_v48 = vcombine.high %v1975_v42, %v1989_v45  ;;  %v4344_v50 = vcombine.low %v1975_v42, %v1989_v45  ;;  %v5373_v54 = vld [vmem:[%s6219_s25 + $0x2a8] sm:$0xff]  }
 0x12b   : > { %4971 = vmatpush3.bf16.msra.mxu0 %v5352_v57  ;;  %v1902_v57 = vld [vmem:[%s6257_s5 + $0x78] sm:$0x11]  ;;  %v2792_v25 = vrot.slane %v2791_v11, 4  ;;  %v5391_v45 = vld [vmem:[%s6219_s25 + $0x348] sm:$0xff]  }
 0x12c   : > { %5011 = vmatpush3.bf16.msra.mxu1 %v5353_v59  ;;  %4972 = vmatprep.subr.bf16.mxu0 %v5356_v7  ;;  %v2804_v59 = vrot.slane %v2802_v51, 5  ;;  %v2014_v61 = vshll.u32 %v1902_v57, 16  ;;  %v5377_v7 = vld [vmem:[%s6219_s25 + $0x2f0] sm:$0xff]   ;;  %v5393_v51 = vld [vmem:[%s6219_s25 + $0x308] sm:$0xff]   ;;  %v2858_v57 = vshll.u32 %v6439_v58, 16 }
 0x12d   : > { %5012 = vmatprep.subr.bf16.mxu1 %v5357_v12  ;;  %v2003_v12 = vsel %vm6326_vm2, %v6381_v8, %v2002_v5  ;;  %v5381_v8 = vld [vmem:[%s6219_s25 + $0x2f8] sm:$0xff]   ;;  %v4497_v60 = vld [vmem:[%s6257_s5 + $0x148] sm:$0x11]  ;;  %v5398_v5 = vld [vmem:[%s6219_s25 + $0x350] sm:$0xff]  }
 0x12e   : > { %2220 = vmatmul.mubr.bf16.gmra.mrb[20].mxu0 %v4342_v21  ;;  %v2805_v15 = vor.u32 %v2804_v59, %v2801_v53  ;;  %v2816_v21 = vshll.u32 %v6374_v2, 16  ;;  %v5394_v53 = vld [vmem:[%s6219_s25 + $0x388] sm:$0xff]   ;;  %v5395_v59 = vld [vmem:[%s6257_s5 + $0x1d4] ss:$16 sps:$4 sm:$0xff]  }
 0x12f   : > { %2471 = vmatmul.mubr.bf16.gmra.mrb[20].mxu1 %v4406_v6  ;;  %4973 = vmatpush3.bf16.msra.mxu0 %v5358_v14  ;;  %v2016_v6 = vrot.slane %v2014_v61, 5  ;;  %v5379_v14 = vld [vmem:[%s6219_s25 + $0x2b0] sm:$0xff]   ;;  %v4499_v61 = vld [vmem:[%s6257_s5 + $0x158] sm:$0x11] }
 0x130   : > { %5013 = vmatpush3.bf16.msra.mxu1 %v5359_v18  ;;  %4974 = vmatprep.subr.bf16.mxu0 %v5360_v22  ;;  %v2827_v22 = vshrl.u32 %v6408_v31, 16  ;;  %v2806_v2 = vrot.slane %v2805_v15, 4  ;;  %v5399_v58 = vld [vmem:[%s6219_s25 + $0x3d0] sm:$0xff]  }
 0x131   : > { %5014 = vmatprep.subr.bf16.mxu1 %v5361_v3  ;;  %2478 = vmatprep.mubr.bf16.mxu1 %v4409_v36  ;;  %v2017_v13 = vsel %vm6326_vm2, %v6396_v23, %v2016_v6  ;;  %v5382_v23 = vld [vmem:[%s6219_s25 + $0x238] sm:$0xff]   ;;  %v2818_v3 = vrot.slane %v2816_v21, 5  ;;  %v5387_v36 = vld [vmem:[%s6219_s25 + $0x340] sm:$0xff]   ;;  %v2860_v21 = vrot.slane %v2858_v57, 5  ;;  %v5421_v57 = vld [vmem:[%s6219_s25 + $0x3f0] sm:$0xff]  }
 0x132   : > { %2227 = vmatprep.mubr.bf16.mxu0 %v4345_v48  ;;  %v4347_v18 = vcombine.high %v2003_v12, %v2017_v13  ;;  %v4346_v20 = vcombine.low %v2003_v12, %v2017_v13  ;;  %v2829_v28 = vrot.slane %v2827_v22, 4  ;;  %v5401_v12 = vld [vmem:[%s6219_s25 + $0x390] sm:$0xff]   ;;  %v2846_v13 = vrot.slane %v2844_v55, 5 }
 0x133   : > { %4975 = vmatpush3.bf16.msra.mxu0 %v5362_v4  ;;  %v2778_v4 = vrot.slane %v2777_v10, 4  ;;  %v2819_v38 = vor.u32 %v2818_v3, %v2815_v16  ;;  %v5402_v16 = vld [vmem:[%s6219_s25 + $0x358] sm:$0xff]   ;;  %v2869_v22 = vshrl.u32 %v6442_v62, 16  ;;  %v5420_v55 = vld [vmem:[%s6219_s25 + $0x370] sm:$0xff]  }
 0x134   : > { %5015 = vmatpush3.bf16.msra.mxu1 %v5363_v26  ;;  %4976 = vmatprep.subr.bf16.mxu0 %v5366_v37  ;;  %v5386_v26 = vld [vmem:[%s6257_s5 + $0x1b4] ss:$16 sps:$4 sm:$0xff]  }
 0x135   : > { %5016 = vmatprep.subr.bf16.mxu1 %v5367_v39  ;;  %v5388_v37 = vld [vmem:[%s6219_s25 + $0x3c0] sm:$0xff]   ;;  %v2782_v39 = vrot.slane %v2780_v34, 5 }
 0x136   : > { %2228 = vmatmul.mubr.bf16.gmra.mrb[24].mxu0 %v4344_v50  ;;  %v5392_v50 = vld [vmem:[%s6219_s25 + $0x3c8] sm:$0xff]  }
 0x137   : > { %2479 = vmatmul.mubr.bf16.gmra.mrb[24].mxu1 %v4408_v35  ;;  %4977 = vmatpush3.bf16.msra.mxu0 %v5368_v41  ;;  %v2794_v35 = vshll.u32 %v4495_v33, 16  ;;  %v5389_v41 = vld [vmem:[%s6219_s25 + $0x300] sm:$0xff]   ;;  %v2783_v42 = vsel %vm6326_vm2, %v2778_v4, %v2782_v39  ;;  %v5413_v39 = vld [vmem:[%s6219_s25 + $0x368] sm:$0xff]  }
 0x138   : > { %5017 = vmatpush3.bf16.msra.mxu1 %v5369_v43  ;;  %4978 = vmatprep.subr.bf16.mxu0 %v5370_v46  ;;  %v5390_v43 = vld [vmem:[%s6219_s25 + $0x380] sm:$0xff]   ;;  %v2820_v46 = vrot.slane %v2819_v38, 4 }
 0x139   : > { %5018 = vmatprep.subr.bf16.mxu1 %v5371_v49  ;;  %2486 = vmatprep.mubr.bf16.mxu1 %v4411_v0  ;;  %v2796_v31 = vrot.slane %v2794_v35, 5  ;;  %v2832_v49 = vrot.slane %v2830_v29, 5  ;;  %v2822_v0 = vshll.u32 %v4499_v61, 16  ;;  %v5406_v4 = vld [vmem:[%s6257_s5 + $0x1f4] ss:$16 sps:$4 sm:$0xff]  }
 0x13a   : > { %2235 = vmatprep.mubr.bf16.mxu0 %v4347_v18  ;;  %v2857_v18 = vrot.slane %v2855_v56, 4  ;;  %v5409_v29 = vld [vmem:[%s6219_s25 + $0x360] sm:$0xff]  }
 0x13b   : > { %4979 = vmatpush3.bf16.msra.mxu0 %v5372_v52  ;;  %v2797_v44 = vsel %vm6326_vm2, %v2792_v25, %v2796_v31  ;;  %v2843_v52 = vrot.slane %v2841_v40, 4  ;;  %v4501_v25 = vld [vmem:[%s6257_s5 + $0x168] sm:$0x11]  ;;  %v5410_v33 = vld [vmem:[%s6219_s25 + $0x3e0] sm:$0xff]  }
 0x13c   : > { %5019 = vmatpush3.bf16.msra.mxu1 %v5373_v54  ;;  %4980 = vmatprep.subr.bf16.mxu0 %v5376_v63  ;;  %v4540_v47 = vcombine.low %v2783_v42, %v2797_v44  ;;  %v4541_v48 = vcombine.high %v2783_v42, %v2797_v44  ;;  %v2833_v54 = vor.u32 %v2832_v49, %v2829_v28  ;;  %v2808_v63 = vshll.u32 %v4497_v60, 16  ;;  %v5408_v28 = vld [vmem:[%s6257_s5 + $0x1f0] ss:$16 sps:$4 sm:$0xff]   ;;  %v5414_v42 = vld [vmem:[%s6219_s25 + $0x3e8] sm:$0xff]   ;;  %v4507_v49 = vld [vmem:[%s6257_s5 + $0x198] sm:$0x11] }
 0x13d   : > { %5020 = vmatprep.subr.bf16.mxu1 %v5377_v7  ;;  %v2824_v7 = vrot.slane %v2822_v0, 5  ;;  %v2836_v27 = vshll.u32 %v4501_v25, 16  ;;  %v5412_v35 = vld [vmem:[%s6219_s25 + $0x3a0] sm:$0xff]   ;;  %v2861_v40 = vor.u32 %v2860_v21, %v2857_v18  ;;  %v5415_v44 = vld [vmem:[%s6219_s25 + $0x328] sm:$0xff]   ;;  %v5422_v60 = vld [vmem:[%s6219_s25 + $0x330] sm:$0xff]  }
 0x13e   : > { %2236 = vmatmul.mubr.bf16.gmra.mrb[28].mxu0 %v4346_v20  ;;  %v2834_v6 = vrot.slane %v2833_v54, 4  ;;  %v2810_v32 = vrot.slane %v2808_v63, 5  ;;  %v5403_v20 = vld [vmem:[%s6219_s25 + $0x3d8] sm:$0xff]   ;;  %v2878_v54 = vshll.u32 %v4507_v49, 16  ;;  %v5423_v63 = vld [vmem:[%s6219_s25 + $0x3b0] sm:$0xff]   ;;  %v5453_v49 = vld [vmem:[%s6219_s25 + $0x468] sm:$0xff]  }
 0x13f   : > { %2487 = vmatmul.mubr.bf16.gmra.mrb[28].mxu1 %v4410_v1  ;;  %4981 = vmatpush3.bf16.msra.mxu0 %v5378_v9  ;;  %v5397_v1 = vld [vmem:[%s6257_s5 + $0x1d0] ss:$16 sps:$4 sm:$0xff]   ;;  %v2825_v11 = vsel %vm6326_vm2, %v2820_v46, %v2824_v7  ;;  %v2838_v34 = vrot.slane %v2836_v27, 5  ;;  %v5426_v7 = vld [vmem:[%s6219_s25 + $0x338] sm:$0xff]  }
 0x140   : > { %5021 = vmatpush3.bf16.msra.mxu1 %v5379_v14  ;;  %4982 = vmatprep.subr.bf16.mxu0 %v5380_v19  ;;  %v5400_v9 = vld [vmem:[%s6219_s25 + $0x310] sm:$0xff]   ;;  %v2811_v10 = vsel %vm6326_vm2, %v2806_v2, %v2810_v32  ;;  %v2847_v19 = vor.u32 %v2846_v13, %v2843_v52  ;;  %v2871_v2 = vrot.slane %v2869_v22, 4  ;;  %v5425_v32 = vld [vmem:[%s6219_s25 + $0x3f8] sm:$0xff]   ;;  %v6548_v22 = vld [vmem:[%s6257_s5 + $0x40] sm:$0xff] }
 0x141   : > { %5022 = vmatprep.subr.bf16.mxu1 %v5381_v8  ;;  %2713 = vmatprep.mubr.bf16.mxu0 %v5386_v26  ;;  %v4543_v14 = vcombine.high %v2811_v10, %v2825_v11  ;;  %v4542_v15 = vcombine.low %v2811_v10, %v2825_v11  ;;  %v5404_v8 = vld [vmem:[%s6219_s25 + $0x318] sm:$0xff]   ;;  %v4565_v10 = vld [vmem:[%s6257_s5 + $0x20] sm:$0xff]  ;;  %v5443_v27 = vld [vmem:[%s6219_s25 + $0x410] sm:$0xff]  }
 0x142   : > { %3075 = vmatprep.mubr.bf16.mxu1 %v4541_v48  ;;  %v2848_v3 = vrot.slane %v2847_v19, 4  ;;  %v4503_v26 = vld [vmem:[%s6257_s5 + $0x178] sm:$0x11]  ;;  %v4505_v48 = vld [vmem:[%s6257_s5 + $0x188] sm:$0x11] }
 0x143   : > { %4983 = vmatpush3.bf16.msra.mxu0 %v5382_v23  ;;  %v5405_v23 = vld [vmem:[%s6219_s25 + $0x398] sm:$0xff]   ;;  %v5432_v13 = vld [vmem:[%s6257_s5 + $0xa4] ss:$16 sps:$4 sm:$0xff]   ;;  %v5436_v19 = vld [vmem:[%s6219_s25 + $0x408] sm:$0xff]  }
 0x144   : > { %5023 = vmatpush3.bf16.msra.mxu1 %v5383_v24  ;;  %5048 = vmatprep.subr.bf16.mxu0 %v5387_v36  ;;  %v2872_v24 = vshll.u32 %v6442_v62, 16  ;;  %v5411_v62 = vld [vmem:[%s6219_s25 + $0x320] sm:$0xff]  }
 0x145   : > { %5088 = vmatprep.subr.bf16.mxu1 %v5388_v37  ;;  %v2839_v37 = vsel %vm6326_vm2, %v2834_v6, %v2838_v34  ;;  %v4568_v34 = vld [vmem:[%s6257_s5 + $0x50] sm:$0xff] }
 0x146   : > { %2714 = vmatmul.mubr.bf16.vlgmr.msra.gmra.mrb[32].mxu0 %v5384_v30  ;;  %v2850_v30 = vshll.u32 %v4503_v26, 16  ;;  %v3652_v26 = vshll.u32 %v4565_v10, 16 }
 0x147   : > { %5049 = vmatpush3.bf16.msra.mxu0 %v5389_v41  ;;  %3076 = vmatmul.mubr.bf16.vlgmr.msra.gmra.mrb[32].mxu1 %v4540_v47  ;;  %v5417_v47 = vld [vmem:[%s6257_s5 + $0x214] ss:$16 sps:$4 sm:$0xff]  }
 0x148   : > { %5050 = vmatprep.subr.bf16.mxu0 %v5391_v45  ;;  %5089 = vmatpush3.bf16.msra.mxu1 %v5390_v43  ;;  %v2852_v36 = vrot.slane %v2850_v30, 5  ;;  %v2874_v43 = vrot.slane %v2872_v24, 5  ;;  %v5416_v45 = vld [vmem:[%s6219_s25 + $0x3a8] sm:$0xff]  }
 0x149   : > { %5090 = vmatprep.subr.bf16.mxu1 %v5392_v50  ;;  %2721 = vmatprep.mubr.bf16.mxu0 %v5395_v59  ;;  %v2862_v50 = vrot.slane %v2861_v40, 4  ;;  %v2880_v59 = vrot.slane %v2878_v54, 5 }
 0x14a   : > { %3083 = vmatprep.mubr.bf16.mxu1 %v4543_v14  ;;  %v2853_v38 = vsel %vm6326_vm2, %v2848_v3, %v2852_v36  ;;  %v2875_v46 = vor.u32 %v2874_v43, %v2871_v2  ;;  %v5430_v14 = vld [vmem:[%s6257_s5 + $0xa0] ss:$16 sps:$4 sm:$0xff]   ;;  %v5438_v3 = vld [vmem:[%s6257_s5 + $0xc4] ss:$16 sps:$4 sm:$0xff]  }
 0x14b   : > { %5051 = vmatpush3.bf16.msra.mxu0 %v5393_v51  ;;  %v4545_v31 = vcombine.high %v2839_v37, %v2853_v38  ;;  %v4544_v41 = vcombine.low %v2839_v37, %v2853_v38  ;;  %v2864_v51 = vshll.u32 %v4505_v48, 16  ;;  %v5442_v2 = vld [vmem:[%s6219_s25 + $0x450] sm:$0xff]   ;;  %v5445_v37 = vld [vmem:[%s6219_s25 + $0x418] sm:$0xff]   ;;  %v5451_v43 = vld [vmem:[%s6219_s25 + $0x460] sm:$0xff]  }
 0x14c   : > { %5052 = vmatprep.subr.bf16.mxu0 %v5398_v5  ;;  %5091 = vmatpush3.bf16.msra.mxu1 %v5394_v53  ;;  %v2876_v52 = vrot.slane %v2875_v46, 4  ;;  %v5419_v53 = vld [vmem:[%s6257_s5 + $0x210] ss:$16 sps:$4 sm:$0xff]  }
 0x14d   : > { %5092 = vmatprep.subr.bf16.mxu1 %v5399_v58  ;;  %v2866_v56 = vrot.slane %v2864_v51, 5  ;;  %v5427_v58 = vld [vmem:[%s6219_s25 + $0x3b8] sm:$0xff]  }
 0x14e   : > { %2722 = vmatmul.mubr.bf16.gmra.mrb[36].mxu0 %v5397_v1  ;;  %v2881_v0 = vsel %vm6326_vm2, %v2876_v52, %v2880_v59  ;;  %v5424_v1 = vld [vmem:[%s6219_s25 + $0x378] sm:$0xff]   ;;  %v6566_v52 = vld [vmem:[%s6257_s5 + $0x70] sm:$0xff] }
 0x14f   : > { %5053 = vmatpush3.bf16.msra.mxu0 %v5400_v9  ;;  %3084 = vmatmul.mubr.bf16.gmra.mrb[36].mxu1 %v4542_v15  ;;  %v2867_v61 = vsel %vm6326_vm2, %v2862_v50, %v2866_v56  ;;  %v4564_v9 = vld [vmem:[%s6257_s5 + $0x10] sm:$0xff]  ;;  %v5433_v15 = vld [vmem:[%s6219_s25 + $0x440] sm:$0xff]  }
 0x150   : > { %5054 = vmatprep.subr.bf16.mxu0 %v5402_v16  ;;  %5093 = vmatpush3.bf16.msra.mxu1 %v5401_v12  ;;  %v4547_v5 = vcombine.high %v2867_v61, %v2881_v0  ;;  %v4546_v6 = vcombine.low %v2867_v61, %v2881_v0  ;;  %v4604_v11 = vcombine.low %v4564_v9, %v4565_v10  ;;  %v5434_v16 = vld [vmem:[%s6219_s25 + $0x400] sm:$0xff]   ;;  %v3635_v18 = vshrl.u32 %v4564_v9, 16 }
 0x151   : > { %5094 = vmatprep.subr.bf16.mxu1 %v5403_v20  ;;  %2729 = vmatprep.mubr.bf16.mxu0 %v5406_v4  ;;  %v4605_v12 = vcombine.high %v4564_v9, %v4565_v10  ;;  %v5435_v20 = vld [vmem:[%s6219_s25 + $0x448] sm:$0xff]   ;;  %v3638_v21 = vshll.u32 %v4564_v9, 16  ;;  %v3649_v4 = vshrl.u32 %v4565_v10, 16  ;;  %v5456_v0 = vld [vmem:[%s6257_s5 + $0x104] ss:$16 sps:$4 sm:$0xff]  }
 0x152   : > { %3091 = vmatprep.mubr.bf16.mxu1 %v4545_v31  ;;  %v3637_v24 = vrot.slane %v3635_v18, 4  ;;  %v5461_v10 = vld [vmem:[%s6219_s25 + $0x430] sm:$0xff]   ;;  %v4701_v18 = vld [vmem:[%s6257_s5 + $0x58] sm:$0x11] }
 0x153   : > { %5055 = vmatpush3.bf16.msra.mxu0 %v5404_v8  ;;  %v4566_v8 = vld [vmem:[%s6257_s5 + $0x30] sm:$0xff]  ;;  %v3651_v36 = vrot.slane %v3649_v4, 4  ;;  %v4697_v4 = vld [vmem:[%s6257_s5 + $0x38] sm:$0x11] }
 0x154   : > { %5056 = vmatprep.subr.bf16.mxu0 %v5409_v29  ;;  %5095 = vmatpush3.bf16.msra.mxu1 %v5405_v23  ;;  %v4607_v23 = vcombine.high %v4566_v8, %v6548_v22  ;;  %v4606_v25 = vcombine.low %v4566_v8, %v6548_v22  ;;  %v5444_v29 = vld [vmem:[%s6219_s25 + $0x458] sm:$0xff]   ;;  %v3663_v30 = vshrl.u32 %v4566_v8, 16  ;;  %v3666_v31 = vshll.u32 %v4566_v8, 16  ;;  %v4703_v8 = vld [vmem:[%s6257_s5 + $0x68] sm:$0x11] }
 0x155   : > { %5096 = vmatprep.subr.bf16.mxu1 %v5410_v33  ;;  %v5441_v33 = vld [vmem:[%s6257_s5 + $0xc0] ss:$16 sps:$4 sm:$0xff]  }
 0x156   : > { %2730 = vmatmul.mubr.bf16.gmra.mrb[40].mxu0 %v5408_v28  ;;  %v3640_v28 = vrot.slane %v3638_v21, 5  ;;  %v3665_v40 = vrot.slane %v3663_v30, 4  ;;  %v3668_v56 = vrot.slane %v3666_v31, 5 }
 0x157   : > { %5057 = vmatpush3.bf16.msra.mxu0 %v5411_v62  ;;  %3092 = vmatmul.mubr.bf16.gmra.mrb[40].mxu1 %v4544_v41  ;;  %v4569_v62 = vld [vmem:[%s6257_s5 + $0x60] sm:$0xff]  ;;  %v3691_v41 = vshrl.u32 %v4568_v34, 16 }
 0x158   : > { %5097 = vmatpush3.bf16.msra.mxu1 %v5412_v35  ;;  %5058 = vmatprep.subr.bf16.mxu0 %v5413_v39  ;;  %v3654_v35 = vrot.slane %v3652_v26, 5  ;;  %v4609_v38 = vcombine.high %v4568_v34, %v4569_v62  ;;  %v5447_v39 = vld [vmem:[%s6257_s5 + $0xe4] ss:$16 sps:$4 sm:$0xff]   ;;  %v4608_v46 = vcombine.low %v4568_v34, %v4569_v62  ;;  %v3705_v54 = vshrl.u32 %v4569_v62, 16 }
 0x159   : > { %5098 = vmatprep.subr.bf16.mxu1 %v5414_v42  ;;  %2737 = vmatprep.mubr.bf16.mxu0 %v5417_v47  ;;  %v3677_v42 = vshrl.u32 %v6548_v22, 16  ;;  %v5452_v47 = vld [vmem:[%s6219_s25 + $0x420] sm:$0xff]   ;;  %v3693_v50 = vrot.slane %v3691_v41, 4 }
 0x15a   : > { %3099 = vmatprep.mubr.bf16.mxu1 %v4547_v5  ;;  %v3655_v48 = vor.u32 %v3654_v35, %v3651_v36  ;;  %v3707_v5 = vrot.slane %v3705_v54, 4  ;;  %v5463_v36 = vld [vmem:[%s6219_s25 + $0x438] sm:$0xff]  }
 0x15b   : > { %5059 = vmatpush3.bf16.msra.mxu0 %v5415_v44  ;;  %v3641_v44 = vor.u32 %v3640_v28, %v3637_v24  ;;  %v3714_v24 = vshll.u32 %v4703_v8, 16  ;;  %v3672_v28 = vshll.u32 %v4697_v4, 16 }
 0x15c   : > { %5099 = vmatpush3.bf16.msra.mxu1 %v5416_v45  ;;  %5060 = vmatprep.subr.bf16.mxu0 %v5420_v55  ;;  %v3694_v45 = vshll.u32 %v4568_v34, 16  ;;  %v3708_v55 = vshll.u32 %v4569_v62, 16  ;;  %v3719_v62 = vshrl.u32 %v6566_v52, 16 }
 0x15d   : > { %5100 = vmatprep.subr.bf16.mxu1 %v5421_v57  ;;  %v5450_v57 = vld [vmem:[%s6257_s5 + $0xe0] ss:$16 sps:$4 sm:$0xff]   ;;  %v3716_v30 = vrot.slane %v3714_v24, 5 }
 0x15e   : > { %2738 = vmatmul.mubr.bf16.gmra.mrb[44].mxu0 %v5419_v53  ;;  %v3696_v51 = vrot.slane %v3694_v45, 5  ;;  %v6569_v53 = vld [vmem:[%s6257_s5 + $0x80] sm:$0xff]  ;;  %v3710_v9 = vrot.slane %v3708_v55, 5 }
 0x15f   : > { %5061 = vmatpush3.bf16.msra.mxu0 %v5422_v60  ;;  %3100 = vmatmul.mubr.bf16.gmra.mrb[44].mxu1 %v4546_v6  ;;  %v4611_v59 = vcombine.high %v6566_v52, %v6569_v53  ;;  %v3642_v60 = vrot.slane %v3641_v44, 4  ;;  %v3669_v6 = vor.u32 %v3668_v56, %v3665_v40  ;;  %v4705_v40 = vld [vmem:[%s6257_s5 + $0x78] sm:$0x11]  ;;  %v3736_v55 = vshll.u32 %v6569_v53, 16 }
 0x160   : > { %5101 = vmatpush3.bf16.msra.mxu1 %v5423_v63  ;;  %5062 = vmatprep.subr.bf16.mxu0 %v5424_v1  ;;  %v3697_v61 = vor.u32 %v3696_v51, %v3693_v50  ;;  %v3680_v63 = vshll.u32 %v6548_v22, 16  ;;  %v3656_v1 = vrot.slane %v3655_v48, 4  ;;  %v3700_v22 = vshll.u32 %v4701_v18, 16 }
 0x161   : > { %5102 = vmatprep.subr.bf16.mxu1 %v5425_v32  ;;  %3326 = vmatprep.mubr.bf16.mxu0 %v4605_v12  ;;  %v5454_v32 = vld [vmem:[%s6219_s25 + $0x428] sm:$0xff]   ;;  %v3670_v12 = vrot.slane %v3669_v6, 4  ;;  %v3721_v48 = vrot.slane %v3719_v62, 4  ;;  %v3722_v50 = vshll.u32 %v6566_v52, 16  ;;  %v3733_v51 = vshrl.u32 %v6569_v53, 16 }
 0x162   : > { %3577 = vmatprep.mubr.bf16.mxu1 %v5432_v13  ;;  %v4610_v13 = vcombine.low %v6566_v52, %v6569_v53 }
 0x163   : > { %5063 = vmatpush3.bf16.msra.mxu0 %v5426_v7  ;;  %v3679_v7 = vrot.slane %v3677_v42, 4 }
 0x164   : > { %5103 = vmatpush3.bf16.msra.mxu1 %v5427_v58  ;;  %5128 = vmatprep.subr.bf16.mxu0 %v5433_v15  ;;  %v5460_v58 = vld [vmem:[%s6219_s25 + $0x470] sm:$0xff]  }
 0x165   : > { %5168 = vmatprep.subr.bf16.mxu1 %v5433_v15  ;;  %v4693_v15 = vld [vmem:[%s6257_s5 + $0x18] sm:$0x11] }
 0x166   : > { %3327 = vmatmul.mubr.bf16.vlgmr.msra.gmra.mrb[48].mxu0 %v4604_v11  ;;  %v3698_v11 = vrot.slane %v3697_v61, 4  ;;  %v3738_v61 = vrot.slane %v3736_v55, 5 }
 0x167   : > { %5129 = vmatpush3.bf16.msra.mxu0 %v5434_v16  ;;  %3578 = vmatmul.mubr.bf16.vlgmr.msra.gmra.mrb[48].mxu1 %v5430_v14  ;;  %v5462_v14 = vld [vmem:[%s6219_s25 + $0x478] sm:$0xff]  }
 0x168   : > { %5130 = vmatprep.subr.bf16.mxu0 %v5435_v20  ;;  %5176 = vmatpush3.bf16.msra.mxu1 %v5434_v16  ;;  %v4695_v16 = vld [vmem:[%s6257_s5 + $0x28] sm:$0x11] }
 0x169   : > { %5169 = vmatprep.subr.bf16.mxu1 %v5435_v20  ;;  %3334 = vmatprep.mubr.bf16.mxu0 %v4607_v23  ;;  %v3711_v20 = vor.u32 %v3710_v9, %v3707_v5  ;;  %v3658_v21 = vshll.u32 %v4695_v16, 16  ;;  %v3682_v23 = vrot.slane %v3680_v63, 5 }
 0x16a   : > { %3585 = vmatprep.mubr.bf16.mxu1 %v5438_v3 }
 0x16b   : > { %5131 = vmatpush3.bf16.msra.mxu0 %v5436_v19  ;;  %v3712_v3 = vrot.slane %v3711_v20, 4  ;;  %v3660_v26 = vrot.slane %v3658_v21, 5 }
 0x16c   : > { %5132 = vmatprep.subr.bf16.mxu0 %v5442_v2  ;;  %5177 = vmatpush3.bf16.msra.mxu1 %v5436_v19  ;;  %v3644_v19 = vshll.u32 %v4693_v15, 16 }
 0x16d   : > { %5170 = vmatprep.subr.bf16.mxu1 %v5442_v2  ;;  %v3717_v41 = vsel %vm6326_vm2, %v3712_v3, %v3716_v30 }
 0x16e   : > { %3335 = vmatmul.mubr.bf16.gmra.mrb[52].mxu0 %v4606_v25  ;;  %v4699_v25 = vld [vmem:[%s6257_s5 + $0x48] sm:$0x11]  ;;  %v3646_v2 = vrot.slane %v3644_v19, 5 }
 0x16f   : > { %5133 = vmatpush3.bf16.msra.mxu0 %v5443_v27  ;;  %3342 = vmatprep.mubr.bf16.mxu0 %v4609_v38  ;;  %v3686_v34 = vshll.u32 %v4699_v25, 16 }
 0x170   : > { %5134 = vmatprep.subr.bf16.mxu0 %v5444_v29  ;;  %3586 = vmatmul.mubr.bf16.gmra.mrb[52].mxu1 %v5441_v33  ;;  %v3683_v33 = vor.u32 %v3682_v23, %v3679_v7  ;;  %v3647_v35 = vsel %vm6326_vm2, %v3642_v60, %v3646_v2  ;;  %v3735_v60 = vrot.slane %v3733_v51, 4 }
 0x171   : > { %5178 = vmatpush3.bf16.msra.mxu1 %v5443_v27  ;;  %3593 = vmatprep.mubr.bf16.mxu1 %v5447_v39  ;;  %v3702_v27 = vrot.slane %v3700_v22, 5  ;;  %v3674_v39 = vrot.slane %v3672_v28, 5 }
 0x172   : > { %5171 = vmatprep.subr.bf16.mxu1 %v5444_v29  ;;  %v5459_v29 = vld [vmem:[%s6257_s5 + $0x100] ss:$16 sps:$4 sm:$0xff]   ;;  %v3684_v42 = vrot.slane %v3683_v33, 4 }
 0x173   : > { %5135 = vmatpush3.bf16.msra.mxu0 %v5445_v37  ;;  %v3703_v38 = vsel %vm6326_vm2, %v3698_v11, %v3702_v27 }
 0x174   : > { %5136 = vmatprep.subr.bf16.mxu0 %v5451_v43  ;;  %v4745_v45 = vcombine.high %v3703_v38, %v3717_v41  ;;  %v4744_v63 = vcombine.low %v3703_v38, %v3717_v41 }
 0x175   : > { %5179 = vmatpush3.bf16.msra.mxu1 %v5445_v37  ;;  %v3661_v37 = vsel %vm6326_vm2, %v3656_v1, %v3660_v26  ;;  %v3739_v1 = vor.u32 %v3738_v61, %v3735_v60 }
 0x176   : > { %3343 = vmatmul.mubr.bf16.gmra.mrb[56].mxu0 %v4608_v46  ;;  %5172 = vmatprep.subr.bf16.mxu1 %v5451_v43  ;;  %v4741_v31 = vcombine.high %v3647_v35, %v3661_v37  ;;  %v4707_v43 = vld [vmem:[%s6257_s5 + $0x88] sm:$0x11]  ;;  %v4740_v44 = vcombine.low %v3647_v35, %v3661_v37  ;;  %v3675_v46 = vsel %vm6326_vm2, %v3670_v12, %v3674_v39 }
 0x177   : > { %5137 = vmatpush3.bf16.msra.mxu0 %v5452_v47  ;;  %3350 = vmatprep.mubr.bf16.mxu0 %v4611_v59  ;;  %v3742_v56 = vshll.u32 %v4707_v43, 16  ;;  %v3724_v59 = vrot.slane %v3722_v50, 5 }
 0x178   : > { %5138 = vmatprep.subr.bf16.mxu0 %v5453_v49  ;;  %3594 = vmatmul.mubr.bf16.gmra.mrb[56].mxu1 %v5450_v57 }
 0x179   : > { %5180 = vmatpush3.bf16.msra.mxu1 %v5452_v47  ;;  %3601 = vmatprep.mubr.bf16.mxu1 %v5456_v0  ;;  %v3688_v47 = vrot.slane %v3686_v34, 5  ;;  %v3725_v52 = vor.u32 %v3724_v59, %v3721_v48  ;;  %v3744_v5 = vrot.slane %v3742_v56, 5 }
 0x17a   : > { %5173 = vmatprep.subr.bf16.mxu1 %v5453_v49  ;;  %v3728_v49 = vshll.u32 %v4705_v40, 16 }
 0x17b   : > { %5139 = vmatpush3.bf16.msra.mxu0 %v5454_v32  ;;  %v3689_v54 = vsel %vm6326_vm2, %v3684_v42, %v3688_v47  ;;  %v3726_v6 = vrot.slane %v3725_v52, 4 }
 0x17c   : > { %5140 = vmatprep.subr.bf16.mxu0 %v5460_v58  ;;  %v4743_v57 = vcombine.high %v3675_v46, %v3689_v54  ;;  %v3730_v0 = vrot.slane %v3728_v49, 5  ;;  %v4742_v7 = vcombine.low %v3675_v46, %v3689_v54 }
 0x17d   : > { %5181 = vmatpush3.bf16.msra.mxu1 %v5454_v32  ;;  %v3740_v32 = vrot.slane %v3739_v1, 4 }
 0x17e   : > { %3351 = vmatmul.mubr.bf16.gmra.mrb[60].mxu0 %v4610_v13  ;;  %5174 = vmatprep.subr.bf16.mxu1 %v5460_v58  ;;  %v3731_v53 = vsel %vm6326_vm2, %v3726_v6, %v3730_v0 }
 0x17f   : > { %5141 = vmatpush3.bf16.msra.mxu0 %v5461_v10  ;;  %3939 = vmatprep.mubr.bf16.mxu0 %v4741_v31  ;;  %v3745_v58 = vsel %vm6326_vm2, %v3740_v32, %v3744_v5 }
 0x180   : > { %5142 = vmatprep.subr.bf16.mxu0 %v5462_v14  ;;  %3602 = vmatmul.mubr.bf16.gmra.mrb[60].mxu1 %v5459_v29  ;;  %v4747_v9 = vcombine.high %v3731_v53, %v3745_v58 }
 0x181   : > { %5182 = vmatpush3.bf16.msra.mxu1 %v5461_v10  ;;  %3955 = vmatprep.mubr.bf16.mxu1 %v4745_v45  ;;  %v4746_v10 = vcombine.low %v3731_v53, %v3745_v58 }
 0x182   : > { %5175 = vmatprep.subr.bf16.mxu1 %v5462_v14 }
 0x183   : > { %5143 = vmatpush3.bf16.msra.mxu0 %v5463_v36 }
 0x185   : > { %5183 = vmatpush3.bf16.msra.mxu1 %v5463_v36 }
 0x186   : > { %3940 = vmatmul.mubr.bf16.vlgmr.msra.gmra.mrb[64].mxu0 %v4740_v44 }
 0x187   : > { %3947 = vmatprep.mubr.bf16.mxu0 %v4743_v57 }
 0x188   : > { %3956 = vmatmul.mubr.bf16.vlgmr.msra.gmra.mrb[64].mxu1 %v4744_v63 }
 0x189   : > { %3963 = vmatprep.mubr.bf16.mxu1 %v4747_v9 }
 0x18e   : > { %3948 = vmatmul.mubr.bf16.gmra.mrb[68].mxu0 %v4742_v7 }
 0x190   : > { %3964 = vmatmul.mubr.bf16.gmra.mrb[68].mxu1 %v4746_v10 }
 0x1d9   : > { %v4824_v11 = vpop.f32.mrb[0].mxu0 }
 0x1da   : > { %v4864_v12 = vpop.f32.mrb[0].mxu1  ;;  %v4825_v13 = vpop.f32.mrb[1].mxu0 }
 0x1db   : > { %v4826_v14 = vadd.f32 %v4825_v13, %v4824_v11  ;;  %v4865_v15 = vpop.f32.mrb[1].mxu1  ;;  %v4827_v16 = vpop.f32.mrb[2].mxu0 }
 0x1dc   : > { %v4866_v18 = vadd.f32 %v4865_v15, %v4864_v12  ;;  %v4867_v20 = vpop.f32.mrb[2].mxu1  ;;  %v4828_v19 = vpop.f32.mrb[3].mxu0 }
 0x1dd   : > { %v4829_v21 = vadd.f32 %v4828_v19, %v4827_v16  ;;  %v4868_v8 = vpop.f32.mrb[3].mxu1 }
 0x1de   : > { %v1857_v22 = vadd.f32 %v4866_v18, %v4826_v14  ;;  %v4869_v23 = vadd.f32 %v4868_v8, %v4867_v20 }
 0x1e0   : > { %v1860_v17 = vadd.f32 %v4869_v23, %v4829_v21 }
 0x1e1   : > { %v4830_v3 = vpop.f32.mrb[4].mxu0 }
 0x1e2   : > { %v4831_v24 = vpop.f32.mrb[5].mxu0  ;;  %v4870_v4 = vpop.f32.mrb[4].mxu1 }
 0x1e3   : > { %v4832_v25 = vadd.f32 %v4831_v24, %v4830_v3  ;;  %v4833_v2 = vpop.f32.mrb[6].mxu0  ;;  %v4871_v26 = vpop.f32.mrb[5].mxu1 }
 0x1e4   : > { %v4834_v27 = vpop.f32.mrb[7].mxu0  ;;  %v4872_v28 = vadd.f32 %v4871_v26, %v4870_v4  ;;  %v4873_v29 = vpop.f32.mrb[6].mxu1 }
 0x1e5   : > { %v4835_v30 = vadd.f32 %v4834_v27, %v4833_v2  ;;  %v4874_v33 = vpop.f32.mrb[7].mxu1 }
 0x1e6   : > { %v1865_v34 = vadd.f32 %v4872_v28, %v4832_v25  ;;  %v4875_v62 = vadd.f32 %v4874_v33, %v4873_v29 }
 0x1e8   : > { %v1868_v36 = vadd.f32 %v4875_v62, %v4835_v30 }
 0x1e9   : > { %v4836_v35 = vpop.f32.mrb[8].mxu0 }
 0x1ea   : > { %v4837_v37 = vpop.f32.mrb[9].mxu0  ;;  %v4876_v38 = vpop.f32.mrb[8].mxu1 }
 0x1eb   : > { %v4838_v39 = vadd.f32 %v4837_v37, %v4836_v35  ;;  %v4839_v40 = vpop.f32.mrb[10].mxu0  ;;  %v4877_v31 = vpop.f32.mrb[9].mxu1 }
 0x1ec   : > { %v4840_v41 = vpop.f32.mrb[11].mxu0  ;;  %v4878_v42 = vadd.f32 %v4877_v31, %v4876_v38  ;;  %v4879_v43 = vpop.f32.mrb[10].mxu1 }
 0x1ed   : > { %v4841_v44 = vadd.f32 %v4840_v41, %v4839_v40  ;;  %v4880_v45 = vpop.f32.mrb[11].mxu1 }
 0x1ee   : > { %v1873_v46 = vadd.f32 %v4878_v42, %v4838_v39  ;;  %v4881_v47 = vadd.f32 %v4880_v45, %v4879_v43 }
 0x1f0   : > { %v1876_v48 = vadd.f32 %v4881_v47, %v4841_v44 }
 0x1f1   : > { %v4842_v50 = vpop.f32.mrb[12].mxu0 }
 0x1f2   : > { %v4843_v49 = vpop.f32.mrb[13].mxu0  ;;  %v4882_v51 = vpop.f32.mrb[12].mxu1 }
 0x1f3   : > { %v4844_v54 = vadd.f32 %v4843_v49, %v4842_v50  ;;  %v4845_v55 = vpop.f32.mrb[14].mxu0  ;;  %v4883_v56 = vpop.f32.mrb[13].mxu1 }
 0x1f4   : > { %v4846_v57 = vpop.f32.mrb[15].mxu0  ;;  %v4884_v59 = vadd.f32 %v4883_v56, %v4882_v51  ;;  %v4885_v60 = vpop.f32.mrb[14].mxu1 }
 0x1f5   : > { %v4847_v61 = vadd.f32 %v4846_v57, %v4845_v55  ;;  %v4886_v63 = vpop.f32.mrb[15].mxu1 }
 0x1f6   : > { %v1881_v52 = vadd.f32 %v4884_v59, %v4844_v54  ;;  %v4887_v0 = vadd.f32 %v4886_v63, %v4885_v60 }
 0x1f8   : > { %v6612_v1 = vadd.f32 %v4887_v0, %v4847_v61 }
 0x1f9   : > { %v4904_v58 = vpop.f32.mrb[16].mxu0 }
 0x1fa   : > { %v4944_v5 = vpop.f32.mrb[16].mxu1  ;;  %v4905_v10 = vpop.f32.mrb[17].mxu0 }
 0x1fb   : > { %v4945_v6 = vpop.f32.mrb[17].mxu1  ;;  %v4906_v11 = vadd.f32 %v4905_v10, %v4904_v58  ;;  %v4907_v12 = vpop.f32.mrb[18].mxu0 }
 0x1fc   : > { %v4946_v32 = vadd.f32 %v4945_v6, %v4944_v5  ;;  %v4947_v53 = vpop.f32.mrb[18].mxu1  ;;  %v4908_v13 = vpop.f32.mrb[19].mxu0 }
 0x1fd   : > { %v4948_v7 = vpop.f32.mrb[19].mxu1  ;;  %v2244_v14 = vadd.f32 %v4906_v11, %v1857_v22  ;;  %v4909_v15 = vadd.f32 %v4908_v13, %v4907_v12 }
 0x1fe   : > { %v4949_v9 = vadd.f32 %v4948_v7, %v4947_v53 }
 0x1ff   : > { %v2495_v18 = vadd.f32 %v4946_v32, %v2244_v14  ;;  %v2245_v20 = vadd.f32 %v4909_v15, %v1860_v17 }
 0x201   : > { %v2496_v23 = vadd.f32 %v4949_v9, %v2245_v20  ;;  %v4910_v24 = vpop.f32.mrb[20].mxu0 }
 0x202   : > { %v4950_v16 = vpop.f32.mrb[20].mxu1  ;;  %v4911_v25 = vpop.f32.mrb[21].mxu0 }
 0x203   : > { %v4951_v19 = vpop.f32.mrb[21].mxu1  ;;  %v4912_v2 = vadd.f32 %v4911_v25, %v4910_v24  ;;  %v4913_v26 = vpop.f32.mrb[22].mxu0 }
 0x204   : > { %v4952_v21 = vadd.f32 %v4951_v19, %v4950_v16  ;;  %v4953_v8 = vpop.f32.mrb[22].mxu1  ;;  %v4914_v27 = vpop.f32.mrb[23].mxu0 }
 0x205   : > { %v4954_v3 = vpop.f32.mrb[23].mxu1  ;;  %v2246_v28 = vadd.f32 %v4912_v2, %v1865_v34  ;;  %v4915_v29 = vadd.f32 %v4914_v27, %v4913_v26 }
 0x206   : > { %v4955_v4 = vadd.f32 %v4954_v3, %v4953_v8 }
 0x207   : > { %v2497_v33 = vadd.f32 %v4952_v21, %v2246_v28  ;;  %v2247_v22 = vadd.f32 %v4915_v29, %v1868_v36 }
 0x209   : > { %v2498_v17 = vadd.f32 %v4955_v4, %v2247_v22  ;;  %v4916_v40 = vpop.f32.mrb[24].mxu0 }
 0x20a   : > { %v4956_v30 = vpop.f32.mrb[24].mxu1  ;;  %v4917_v31 = vpop.f32.mrb[25].mxu0 }
 0x20b   : > { %v4957_v62 = vpop.f32.mrb[25].mxu1  ;;  %v4918_v41 = vadd.f32 %v4917_v31, %v4916_v40  ;;  %v4919_v42 = vpop.f32.mrb[26].mxu0 }
 0x20c   : > { %v4958_v35 = vadd.f32 %v4957_v62, %v4956_v30  ;;  %v4959_v37 = vpop.f32.mrb[26].mxu1  ;;  %v4920_v43 = vpop.f32.mrb[27].mxu0 }
 0x20d   : > { %v4960_v38 = vpop.f32.mrb[27].mxu1  ;;  %v2248_v44 = vadd.f32 %v4918_v41, %v1873_v46  ;;  %v4921_v45 = vadd.f32 %v4920_v43, %v4919_v42 }
 0x20e   : > { %v4961_v39 = vadd.f32 %v4960_v38, %v4959_v37 }
 0x20f   : > { %v2499_v50 = vadd.f32 %v4958_v35, %v2248_v44  ;;  %v2249_v34 = vadd.f32 %v4921_v45, %v1876_v48 }
 0x211   : > { %v2500_v36 = vadd.f32 %v4961_v39, %v2249_v34  ;;  %v4922_v56 = vpop.f32.mrb[28].mxu0 }
 0x212   : > { %v4962_v47 = vpop.f32.mrb[28].mxu1  ;;  %v4923_v59 = vpop.f32.mrb[29].mxu0 }
 0x213   : > { %v4963_v49 = vpop.f32.mrb[29].mxu1  ;;  %v4924_v60 = vadd.f32 %v4923_v59, %v4922_v56  ;;  %v4925_v61 = vpop.f32.mrb[30].mxu0 }
 0x214   : > { %v4964_v51 = vadd.f32 %v4963_v49, %v4962_v47  ;;  %v4965_v54 = vpop.f32.mrb[30].mxu1  ;;  %v4926_v63 = vpop.f32.mrb[31].mxu0 }
 0x215   : > { %v4966_v55 = vpop.f32.mrb[31].mxu1  ;;  %v2250_v0 = vadd.f32 %v4924_v60, %v1881_v52  ;;  %v4927_v5 = vadd.f32 %v4926_v63, %v4925_v61 }
 0x216   : > { %v4967_v57 = vadd.f32 %v4966_v55, %v4965_v54 }
 0x217   : > { %v2501_v6 = vadd.f32 %v4964_v51, %v2250_v0  ;;  %v2251_v46 = vadd.f32 %v4927_v5, %v6612_v1 }
 0x219   : > { %v2502_v32 = vadd.f32 %v4967_v57, %v2251_v46  ;;  %v4984_v53 = vpop.f32.mrb[32].mxu0 }
 0x21a   : > { %v4985_v7 = vpop.f32.mrb[33].mxu0  ;;  %v5024_v9 = vpop.f32.mrb[32].mxu1 }
 0x21b   : > { %v4986_v48 = vadd.f32 %v4985_v7, %v4984_v53  ;;  %v4987_v58 = vpop.f32.mrb[34].mxu0  ;;  %v5025_v12 = vpop.f32.mrb[33].mxu1 }
 0x21c   : > { %v4988_v10 = vpop.f32.mrb[35].mxu0  ;;  %v5026_v14 = vadd.f32 %v5025_v12, %v5024_v9  ;;  %v5027_v15 = vpop.f32.mrb[34].mxu1 }
 0x21d   : > { %v2746_v11 = vadd.f32 %v4986_v48, %v2495_v18  ;;  %v4989_v13 = vadd.f32 %v4988_v10, %v4987_v58  ;;  %v5028_v20 = vpop.f32.mrb[35].mxu1 }
 0x21e   : > { %v5029_v52 = vadd.f32 %v5028_v20, %v5027_v15 }
 0x21f   : > { %v2747_v16 = vadd.f32 %v4989_v13, %v2496_v23  ;;  %v3108_v19 = vadd.f32 %v5026_v14, %v2746_v11 }
 0x221   : > { %v4990_v21 = vpop.f32.mrb[36].mxu0  ;;  %v3109_v8 = vadd.f32 %v5029_v52, %v2747_v16 }
 0x222   : > { %v4991_v3 = vpop.f32.mrb[37].mxu0  ;;  %v5030_v25 = vpop.f32.mrb[36].mxu1 }
 0x223   : > { %v4992_v1 = vadd.f32 %v4991_v3, %v4990_v21  ;;  %v4993_v24 = vpop.f32.mrb[38].mxu0  ;;  %v5031_v27 = vpop.f32.mrb[37].mxu1 }
 0x224   : > { %v4994_v4 = vpop.f32.mrb[39].mxu0  ;;  %v5032_v28 = vadd.f32 %v5031_v27, %v5030_v25  ;;  %v5033_v18 = vpop.f32.mrb[38].mxu1 }
 0x225   : > { %v2748_v2 = vadd.f32 %v4992_v1, %v2497_v33  ;;  %v4995_v26 = vadd.f32 %v4994_v4, %v4993_v24  ;;  %v5034_v30 = vpop.f32.mrb[39].mxu1 }
 0x226   : > { %v5035_v62 = vadd.f32 %v5034_v30, %v5033_v18 }
 0x227   : > { %v2749_v29 = vadd.f32 %v4995_v26, %v2498_v17  ;;  %v3110_v22 = vadd.f32 %v5032_v28, %v2748_v2 }
 0x229   : > { %v4996_v23 = vpop.f32.mrb[40].mxu0  ;;  %v3111_v37 = vadd.f32 %v5035_v62, %v2749_v29 }
 0x22a   : > { %v4997_v35 = vpop.f32.mrb[41].mxu0  ;;  %v5036_v43 = vpop.f32.mrb[40].mxu1 }
 0x22b   : > { %v4998_v38 = vadd.f32 %v4997_v35, %v4996_v23  ;;  %v4999_v39 = vpop.f32.mrb[42].mxu0  ;;  %v5037_v44 = vpop.f32.mrb[41].mxu1 }
 0x22c   : > { %v5000_v40 = vpop.f32.mrb[43].mxu0  ;;  %v5038_v33 = vadd.f32 %v5037_v44, %v5036_v43  ;;  %v5039_v45 = vpop.f32.mrb[42].mxu1 }
 0x22d   : > { %v2750_v31 = vadd.f32 %v4998_v38, %v2499_v50  ;;  %v5001_v41 = vadd.f32 %v5000_v40, %v4999_v39  ;;  %v5040_v47 = vpop.f32.mrb[43].mxu1 }
 0x22e   : > { %v5041_v17 = vadd.f32 %v5040_v47, %v5039_v45 }
 0x22f   : > { %v2751_v42 = vadd.f32 %v5001_v41, %v2500_v36  ;;  %v3112_v49 = vadd.f32 %v5038_v33, %v2750_v31 }
 0x231   : > { %v5002_v34 = vpop.f32.mrb[44].mxu0  ;;  %v3113_v56 = vadd.f32 %v5041_v17, %v2751_v42 }
 0x232   : > { %v5003_v51 = vpop.f32.mrb[45].mxu0  ;;  %v5042_v63 = vpop.f32.mrb[44].mxu1 }
 0x233   : > { %v5004_v54 = vadd.f32 %v5003_v51, %v5002_v34  ;;  %v5005_v55 = vpop.f32.mrb[46].mxu0  ;;  %v5043_v50 = vpop.f32.mrb[45].mxu1 }
 0x234   : > { %v5006_v57 = vpop.f32.mrb[47].mxu0  ;;  %v5044_v0 = vadd.f32 %v5043_v50, %v5042_v63  ;;  %v5045_v36 = vpop.f32.mrb[46].mxu1 }
 0x235   : > { %v2752_v59 = vadd.f32 %v5004_v54, %v2501_v6  ;;  %v5007_v60 = vadd.f32 %v5006_v57, %v5005_v55  ;;  %v5046_v5 = vpop.f32.mrb[47].mxu1 }
 0x236   : > { %v5047_v53 = vadd.f32 %v5046_v5, %v5045_v36 }
 0x237   : > { %v2753_v61 = vadd.f32 %v5007_v60, %v2502_v32  ;;  %v3114_v46 = vadd.f32 %v5044_v0, %v2752_v59 }
 0x239   : > { %v5064_v7 = vpop.f32.mrb[48].mxu0  ;;  %v3115_v58 = vadd.f32 %v5047_v53, %v2753_v61 }
 0x23a   : > { %v5065_v48 = vpop.f32.mrb[49].mxu0  ;;  %v5104_v12 = vpop.f32.mrb[48].mxu1 }
 0x23b   : > { %v5066_v9 = vadd.f32 %v5065_v48, %v5064_v7  ;;  %v5067_v10 = vpop.f32.mrb[50].mxu0  ;;  %v5105_v15 = vpop.f32.mrb[49].mxu1 }
 0x23c   : > { %v5068_v11 = vpop.f32.mrb[51].mxu0  ;;  %v5106_v6 = vadd.f32 %v5105_v15, %v5104_v12  ;;  %v5107_v16 = vpop.f32.mrb[50].mxu1 }
 0x23d   : > { %v3359_v13 = vadd.f32 %v5066_v9, %v3108_v19  ;;  %v5069_v14 = vadd.f32 %v5068_v11, %v5067_v10  ;;  %v5108_v20 = vpop.f32.mrb[51].mxu1 }
 0x23e   : > { %v5109_v21 = vadd.f32 %v5108_v20, %v5107_v16 }
 0x23f   : > { %v3360_v32 = vadd.f32 %v5069_v14, %v3109_v8  ;;  %v3610_v52 = vadd.f32 %v5106_v6, %v3359_v13 }
 0x241   : > { %v5070_v3 = vpop.f32.mrb[52].mxu0  ;;  %v6615_v24 = vadd.f32 %v5109_v21, %v3360_v32 }
 0x242   : > { %v5071_v1 = vpop.f32.mrb[53].mxu0 }
 0x243   : > { %v5072_v4 = vadd.f32 %v5071_v1, %v5070_v3  ;;  %v5073_v25 = vpop.f32.mrb[54].mxu0  ;;  %v5110_v26 = vpop.f32.mrb[52].mxu1 }
 0x244   : > { %v5074_v2 = vpop.f32.mrb[55].mxu0  ;;  %v5111_v18 = vpop.f32.mrb[53].mxu1 }
 0x245   : > { %v3361_v27 = vadd.f32 %v5072_v4, %v3110_v22  ;;  %v5075_v28 = vadd.f32 %v5074_v2, %v5073_v25  ;;  %v5112_v19 = vadd.f32 %v5111_v18, %v5110_v26  ;;  %v5113_v29 = vpop.f32.mrb[54].mxu1 }
 0x246   : > { %v5114_v62 = vpop.f32.mrb[55].mxu1 }
 0x247   : > { %v3362_v30 = vadd.f32 %v5075_v28, %v3111_v37  ;;  %v6617_v23 = vadd.f32 %v5112_v19, %v3361_v27  ;;  %v5115_v8 = vadd.f32 %v5114_v62, %v5113_v29 }
 0x249   : > { %v5076_v35 = vpop.f32.mrb[56].mxu0  ;;  %v6619_v39 = vadd.f32 %v5115_v8, %v3362_v30 }
 0x24a   : > { %v5077_v38 = vpop.f32.mrb[57].mxu0 }
 0x24b   : > { %v5078_v40 = vadd.f32 %v5077_v38, %v5076_v35  ;;  %v5079_v31 = vpop.f32.mrb[58].mxu0  ;;  %v5116_v42 = vpop.f32.mrb[56].mxu1 }
 0x24c   : > { %v5080_v41 = vpop.f32.mrb[59].mxu0  ;;  %v5117_v44 = vpop.f32.mrb[57].mxu1 }
 0x24d   : > { %v3363_v43 = vadd.f32 %v5078_v40, %v3112_v49  ;;  %v5081_v22 = vadd.f32 %v5080_v41, %v5079_v31  ;;  %v5118_v33 = vadd.f32 %v5117_v44, %v5116_v42  ;;  %v5119_v45 = vpop.f32.mrb[58].mxu1 }
 0x24e   : > { %v5120_v47 = vpop.f32.mrb[59].mxu1 }
 0x24f   : > { %v3364_v37 = vadd.f32 %v5081_v22, %v3113_v56  ;;  %v3614_v34 = vadd.f32 %v5118_v33, %v3363_v43  ;;  %v5121_v17 = vadd.f32 %v5120_v47, %v5119_v45 }
 0x251   : > { %v5082_v51 = vpop.f32.mrb[60].mxu0  ;;  %v3615_v55 = vadd.f32 %v5121_v17, %v3364_v37 }
 0x252   : > { %v5083_v54 = vpop.f32.mrb[61].mxu0 }
 0x253   : > { %v5084_v57 = vadd.f32 %v5083_v54, %v5082_v51  ;;  %v5085_v59 = vpop.f32.mrb[62].mxu0  ;;  %v5122_v61 = vpop.f32.mrb[60].mxu1 }
 0x254   : > { %v5086_v60 = vpop.f32.mrb[63].mxu0  ;;  %v5123_v49 = vpop.f32.mrb[61].mxu1 }
 0x255   : > { %v3365_v63 = vadd.f32 %v5084_v57, %v3114_v46  ;;  %v5087_v50 = vadd.f32 %v5086_v60, %v5085_v59  ;;  %v5124_v0 = vadd.f32 %v5123_v49, %v5122_v61  ;;  %v5125_v36 = vpop.f32.mrb[62].mxu1  ;;  %v4764_v46 = vld [vmem:[%s1401_s9] ss:$0 sm:$0xff] }
 0x256   : > { %v5126_v56 = vpop.f32.mrb[63].mxu1 }
 0x257   : > { %v3366_v5 = vadd.f32 %v5087_v50, %v3115_v58  ;;  %v3616_v53 = vadd.f32 %v5124_v0, %v3365_v63  ;;  %v5127_v7 = vadd.f32 %v5126_v56, %v5125_v36 }
 0x259   : > { %v5144_v48 = vpop.f32.mrb[64].mxu0  ;;  %v3617_v10 = vadd.f32 %v5127_v7, %v3366_v5 }
 0x25a   : > { %v5145_v9 = vpop.f32.mrb[65].mxu0 }
 0x25b   : > { %v5146_v11 = vadd.f32 %v5145_v9, %v5144_v48  ;;  %v5147_v12 = vpop.f32.mrb[66].mxu0  ;;  %v5156_v14 = vpop.f32.mrb[64].mxu1 }
 0x25c   : > { %v5148_v13 = vpop.f32.mrb[67].mxu0  ;;  %v5157_v16 = vpop.f32.mrb[65].mxu1 }
 0x25d   : > { %v3972_v15 = vadd.f32 %v5146_v11, %v3610_v52  ;;  %v5149_v6 = vadd.f32 %v5148_v13, %v5147_v12  ;;  %v5158_v32 = vadd.f32 %v5157_v16, %v5156_v14  ;;  %v5159_v20 = vpop.f32.mrb[66].mxu1 }
 0x25e   : > { %v5160_v3 = vpop.f32.mrb[67].mxu1 }
 0x25f   : > { %v3987_v58 = vadd.f32 %v4764_v46, %v3972_v15  ;;  %v3973_v21 = vadd.f32 %v5149_v6, %v6615_v24  ;;  %v3976_v1 = vadd.f32 %v5158_v32, %v3614_v34  ;;  %v5161_v25 = vadd.f32 %v5160_v3, %v5159_v20 }
 0x261   : > { %v3988_v4 = vadd.f32 %v4764_v46, %v3973_v21  ;;  %v5150_v2 = vpop.f32.mrb[68].mxu0  ;;  %v3995_v26 = vmax.f32 %v3987_v58, 0.0  ;;  %v3991_v28 = vadd.f32 %v4764_v46, %v3976_v1  ;;  %v3977_v19 = vadd.f32 %v5161_v25, %v3615_v55 }
 0x262   : > { %v5151_v27 = vpop.f32.mrb[69].mxu0 }
 0x263   : > { %v3996_v18 = vmax.f32 %v3988_v4, 0.0  ;;  %v5152_v52 = vadd.f32 %v5151_v27, %v5150_v2  ;;  %v5153_v29 = vpop.f32.mrb[70].mxu0  ;;  %v3992_v8 = vadd.f32 %v4764_v46, %v3977_v19  ;;  %v5162_v35 = vpop.f32.mrb[68].mxu1  ;;  %v3999_v31 = vmax.f32 %v3991_v28, 0.0 }
 0x264   : > { %v5154_v30 = vpop.f32.mrb[71].mxu0  ;;  %v5163_v24 = vpop.f32.mrb[69].mxu1 }
 0x265   : > { %v4788_v62 = vpack.c.bf16 %v3996_v18, %v3995_v26  ;;  %v3974_v38 = vadd.f32 %v5152_v52, %v6617_v23  ;;  %v5155_v40 = vadd.f32 %v5154_v30, %v5153_v29  ;;  %v4000_v41 = vmax.f32 %v3992_v8, 0.0  ;;  %v5165_v43 = vpop.f32.mrb[70].mxu1 }
 0x266   : > { %v5164_v42 = vadd.f32 %v5163_v24, %v5162_v35  ;;  %v5166_v33 = vpop.f32.mrb[71].mxu1 }
 0x267   : > { %4789 = vst [vmem:[%s6629_s12] sm:$0xff] %v4788_v62   ;;  %v3989_v22 = vadd.f32 %v4764_v46, %v3974_v38  ;;  %v3975_v44 = vadd.f32 %v5155_v40, %v6619_v39  ;;  %v4798_v45 = vpack.c.bf16 %v4000_v41, %v3999_v31  ;;  %v5167_v23 = vadd.f32 %v5166_v33, %v5165_v43 }
 0x268   : > { %v3978_v37 = vadd.f32 %v5164_v42, %v3616_v53 }
 0x269   : > { %v3990_v47 = vadd.f32 %v4764_v46, %v3975_v44  ;;  %4806 = vst [vmem:[%s6629_s12 + $0x10] sm:$0xff] %v4798_v45   ;;  %v3979_v17 = vadd.f32 %v5167_v23, %v3617_v10  ;;  %v3997_v51 = vmax.f32 %v3989_v22, 0.0 }
 0x26a   : > { %v3993_v34 = vadd.f32 %v4764_v46, %v3978_v37 }
 0x26b   : > { %v3998_v54 = vmax.f32 %v3990_v47, 0.0  ;;  %v3994_v55 = vadd.f32 %v4764_v46, %v3979_v17  ;;  %4049 = sbr.rel (!%p5623_p9) target bundleno = 634 (0x27a), region = 77 }
 0x26c   : > { %v4001_v59 = vmax.f32 %v3993_v34, 0.0 }
 0x26d   : > { %v4793_v57 = vpack.c.bf16 %v3998_v54, %v3997_v51  ;;  %v4002_v60 = vmax.f32 %v3994_v55, 0.0 }
 0x26e   : > { %v4069_v39 = vld [vmem:[%s6629_s12] sm:$0xf] (%p5623_p9)  ;;  %v4071_v63 = vld [vmem:[%s6629_s12 + $0x4] sm:$0xf] (%p5623_p9) }
 0x26f   : > { %4805 = vst [vmem:[%s6629_s12 + $0x8] sm:$0xff] %v4793_v57   ;;  %v4803_v61 = vpack.c.bf16 %v4002_v60, %v4001_v59  ;;  %4070 = vst [vmem:[%s4053_s26] sm:$0xf] (%p5623_p9), %v4069_v39 }
 0x270   : > { %v4077_v0 = vld [vmem:[%s6629_s12 + $0x10] sm:$0xf] (%p5623_p9)  ;;  %v4079_v36 = vld [vmem:[%s6629_s12 + $0x14] sm:$0xf] (%p5623_p9)  ;;  %4072 = vst [vmem:[%s4053_s26 + $0xc] sm:$0xf] (%p5623_p9), %v4071_v63 }
 0x271   : > { %4807 = vst [vmem:[%s6629_s12 + $0x18] sm:$0xff] %v4803_v61   ;;  %4078 = vst [vmem:[%s4053_s26 + $0x30] sm:$0xf] (%p5623_p9), %v4077_v0 }
 0x272   : > { %4080 = vst [vmem:[%s4053_s26 + $0x3c] sm:$0xf] %v4079_v36 }
 0x276   : > { %v4073_v50 = vld [vmem:[%s6629_s12 + $0x8] sm:$0xf]  ;;  %v4075_v49 = vld [vmem:[%s6629_s12 + $0xc] sm:$0xf] }
 0x277   : > { %4074 = vst [vmem:[%s4053_s26 + $0x18] sm:$0xf] %v4073_v50  ;;  %4076 = vst [vmem:[%s4053_s26 + $0x24] sm:$0xf] %v4075_v49 }
 0x278   : > { %v4081_v5 = vld [vmem:[%s6629_s12 + $0x18] sm:$0xf]  ;;  %v4083_v56 = vld [vmem:[%s6629_s12 + $0x1c] sm:$0xf] }
 0x279   : > { %4082 = vst [vmem:[%s4053_s26 + $0x48] sm:$0xf] %v4081_v5  ;;  %4084 = vst [vmem:[%s4053_s26 + $0x54] sm:$0xf] %v4083_v56 }
 0x27a PF: > { %s13_s20 = sadd.s32 1, %s5534_s20   ;;  %s6685_s12 = smov %s5506_s13 }
 0x27b   : > { %p10_p2 = scmp.ge.s32.totalorder %s13_s20, 8   ;;  %s6686_s13 = smov %s5628_s4 }
 0x27c   : > { %s6687_s14 = smov %s5514_s15  ;;  %s6688_s15 = smov %s5617_s27 }
 0x27d   : > { %s6689_s16 = smov %s5526_s18  ;;  %s6690_s17 = smov %s5530_s19 }
 0x27e   : > { %s6691_s18 = smov %s6694_s22  ;;  %s6692_s19 = smov %s6698_s23 }
 0x27f   :  { %12 = sbr.rel (!%p10_p2) target bundleno = 5 (0x5), region = 168 }

</bundles_post_ra>
